<compile_context>
chip_gen: v7x
topology: tpu7x:2x2x1
jax: 0.10.0
libtpu: 0.0.40
codegen_flags: <defaults>
</compile_context>

<pallas_src>
import numpy as np

import jax
import jax.numpy as jnp
from jax.experimental import pallas as pl
from jax.experimental.pallas import tpu as pltpu

# ------------------------- synthetic FLAGS (deterministic config) -------------------------
N_INITIAL_FILTERS = 8
NETWORK_DEPTH = 2                  # fused kernel below is specialized to depth 2
RES_BLOCKS_PER_LAYER = 1
RES_BLOCKS_DEEPEST_LAYER = 1
RES_BLOCKS_FINAL = 1
NPLANES = 3
BATCH_NORM = False                 # -> no BatchNorm3d in forward
GROWTH_RATE = "multiplicative"     # filters double at each downsample
SUMMED_CONNECTIONS = True          # skip connection is torch.add
CONNECT_PRE_RES_BLOCKS_DOWN = True
CONNECT_PRE_RES_BLOCKS_UP = True


# ------------------------------------ fused Pallas kernel ------------------------------------
def _uresnet_fused_kernel(
        x_ref,                      # [1, NPLANES*H, W]              input (Cin = 1)
        w_init_ref,                 # [5, W*1,  W*F]                 banded 5x5 initial conv
        w_res16_ref,                # [6*nres*3, W*F, W*F]           banded 3x3 convs @16x16
        w_down_ref,                 # [2, W*F, (W/2)*2F]             banded 2x2 s2 downsample
        w_merge_ref,                # [NPLANES, (W/2)*2F, (W/2)*Cd]  banded [3,1,1] merger
        w_deep_ref,                 # [2*ndeep*3, (W/2)*Cd, (W/2)*Cd]banded 3x3 convs @deepest
        w_split_ref,                # [NPLANES, (W/2)*Cd, (W/2)*2F]  banded [3,1,1]^T splitter
        w_up_ref,                   # [2, (W/2)*2F, W*F]             banded 2x2 s2 up (transposed)
        w_bneck_ref,                # [W*F, W*F]                     banded 1x1 bottleneck (padded)
        shift16_ref,                # [5, NPLANES*H, NPLANES*H]      row shifts, deltas -2..2
        shiftd_ref,                 # [3, H/2, H/2]                  row shifts, deltas -1..1
        seld_ref,                   # [2, NPLANES*H/2, NPLANES*H]    stride-2 row gather
        selu_ref,                   # [2, NPLANES*H, NPLANES*H/2]    stride-2 row scatter
        selm_ref,                   # [NPLANES, H/2, NPLANES*H/2]    plane-row gather (merger)
        sels_ref,                   # [NPLANES, NPLANES*H/2, H/2]    plane-row scatter (splitter)
        out_ref):                   # [1, NPLANES*H, W*F]            bottleneck output (lane padded)

    def dot(a, b):
        return jnp.dot(a, b, preferred_element_type=jnp.float32)

    def conv(x, w_ref, w_base, n_taps, pad, shift_ref, shift_base,
             relu=False, residual=None):
        """y[h] = sum_k shift(k-pad) @ (x @ band_k); W-direction + channels are in band_k."""
        acc = None
        for k in range(n_taps):
            t = dot(x, w_ref[w_base + k])
            if k != pad:                                  # off-centre tap -> shifted rows
                t = dot(shift_ref[shift_base + k], t)
            acc = t if acc is None else acc + t
        if residual is not None:
            acc = acc + residual
        if relu:
            acc = jnp.maximum(acc, 0.0)
        return acc

    def res_block(x, w_ref, w_base, shift_ref, shift_base):
        # out = relu(conv2(relu(conv1(x))) + x)  (no BN)
        h = conv(x, w_ref, w_base, 3, 1, shift_ref, shift_base, relu=True)
        return conv(h, w_ref, w_base + 3, 3, 1, shift_ref, shift_base,
                    relu=True, residual=x)

    # ---- initial convolution: [1,5,5], 1 -> F channels, per plane, no relu ----
    x = conv(x_ref[0], w_init_ref, 0, 5, 2, shift16_ref, 0)          # [D*H, W*F]

    # ---- UNetCore (depth 2) ----
    skip = x                                                         # CONNECT_PRE_RES_BLOCKS_DOWN
    base = 0
    for _ in range(RES_BLOCKS_PER_LAYER):                            # down_blocks
        x = res_block(x, w_res16_ref, base, shift16_ref, 1)
        base += 6

    # downsample: [1,2,2] stride [1,2,2] conv, F -> 2F, + ReLU
    x = jnp.maximum(dot(seld_ref[0], dot(x, w_down_ref[0]))
                    + dot(seld_ref[1], dot(x, w_down_ref[1])), 0.0)   # [D*H/2, (W/2)*2F]

    # ---- DeepestBlock ----
    xm = None                                                        # merger [NPLANES,1,1]
    for d in range(NPLANES):
        t = dot(dot(selm_ref[d], x), w_merge_ref[d])
        xm = t if xm is None else xm + t                             # [H/2, (W/2)*Cd]
    dbase = 0
    for _ in range(RES_BLOCKS_DEEPEST_LAYER):
        xm = res_block(xm, w_deep_ref, dbase, shiftd_ref, 0)
        dbase += 6
    xs = None                                                        # splitter [NPLANES,1,1]^T
    for d in range(NPLANES):
        t = dot(sels_ref[d], dot(xm, w_split_ref[d]))
        xs = t if xs is None else xs + t                             # [D*H/2, (W/2)*2F]
    x = xs

    # upsample: transposed [1,2,2] stride [1,2,2], 2F -> F, + ReLU
    x = jnp.maximum(dot(selu_ref[0], dot(x, w_up_ref[0]))
                    + dot(selu_ref[1], dot(x, w_up_ref[1])), 0.0)     # [D*H, W*F]

    x = x + skip                                                     # summed skip connection
    for _ in range(RES_BLOCKS_PER_LAYER):                            # up_blocks
        x = res_block(x, w_res16_ref, base, shift16_ref, 1)
        base += 6

    # ---- final layer + bottleneck (1x1x1, 8 -> 3, lane-padded to F) ----
    for _ in range(RES_BLOCKS_FINAL):
        x = res_block(x, w_res16_ref, base, shift16_ref, 1)
        base += 6
    out_ref[0] = dot(x, w_bneck_ref[...]).astype(out_ref.dtype)


def _pallas_forward(x3, operands):
    """x3: [B, NPLANES*H, W] (Cin=1). Returns [B, NPLANES*H, W*F] (bottleneck, lane padded)."""
    B, R, Wl = x3.shape
    out_lanes = Wl * N_INITIAL_FILTERS

    def _zero_map(ndim):
        return lambda b: (0,) * ndim

    all_inputs = (x3,) + tuple(operands)
    in_specs = [pl.BlockSpec((1, R, Wl), lambda b: (b, 0, 0))]
    for a in all_inputs[1:]:
        in_specs.append(pl.BlockSpec(a.shape, _zero_map(a.ndim)))

    return pl.pallas_call(
        _uresnet_fused_kernel,
        out_shape=jax.ShapeDtypeStruct((B, R, out_lanes), jnp.float32),
        grid=(B,),
        in_specs=in_specs,
        out_specs=pl.BlockSpec((1, R, out_lanes), lambda b: (b, 0, 0)),
        compiler_params=pltpu.CompilerParams(
            dimension_semantics=("parallel",),            # v7x: one batch element per TC
            vmem_limit_bytes=32 * 1024 * 1024,            # ~6 MiB of banded weights, safe on all gens
        ),
    )(*all_inputs)


# ----------------------- banded-weight / selection-matrix preparation -----------------------
def _band(w_kio, w_in, w_out, stride=1, pad=0, transposed=False):
    """Fold the W-direction taps + channels of a conv into one matrix.

    w_kio: [KW, Cin, Cout]  ->  [w_in*Cin, w_out*Cout] with
      normal conv:      entry[(wi,ci),(wo,co)] = w[kw,ci,co]  where wi == stride*wo + kw - pad
      transposed conv:  entry[(wi,ci),(wo,co)] = w[kw,ci,co]  where wo == stride*wi + kw
    W-edge zero padding falls out automatically (missing taps are zero)."""
    KW, Cin, Cout = w_kio.shape
    kw = np.arange(KW)[:, None, None]
    wi = np.arange(w_in)[None, :, None]
    wo = np.arange(w_out)[None, None, :]
    if transposed:
        sel = (wo == stride * wi + kw)
    else:
        sel = (wi == stride * wo + kw - pad)
    P = jnp.asarray(sel.astype(np.float32))                         # [KW, w_in, w_out]
    band = jnp.einsum('kio,kab->aibo', w_kio.astype(jnp.float32), P)
    return band.reshape(w_in * Cin, w_out * Cout)


def _shift_stack(n_blocks, H, deltas):
    """Block-diagonal (per plane) row-shift matrices with zero fill: y[h] = x[h+delta]."""
    mats = []
    for delta in deltas:
        S = np.zeros((n_blocks * H, n_blocks * H), np.float32)
        for b in range(n_blocks):
            for ho in range(H):
                hi = ho + delta
                if 0 <= hi < H:
                    S[b * H + ho, b * H + hi] = 1.0
        mats.append(S)
    return np.stack(mats)


def _parity_select(n_blocks, H_in):
    """Row gather for stride-2 downsample: y[ho] = x[2*ho + kh], per plane block."""
    H_out = H_in // 2
    mats = []
    for kh in range(2):
        S = np.zeros((n_blocks * H_out, n_blocks * H_in), np.float32)
        for b in range(n_blocks):
            for ho in range(H_out):
                S[b * H_out + ho, b * H_in + 2 * ho + kh] = 1.0
        mats.append(S)
    return np.stack(mats)


def _plane_select(n_planes, H):
    """Row gather of one plane's rows out of the (plane, h) row ordering."""
    mats = []
    for d in range(n_planes):
        S = np.zeros((H, n_planes * H), np.float32)
        S[np.arange(H), d * H + np.arange(H)] = 1.0
        mats.append(S)
    return np.stack(mats)


def prepare_operands(params, H, W):
    """One-time preprocessing of the raw weights into the kernel's banded operands."""
    assert NETWORK_DEPTH == 2, "fused kernel is specialized to the synthetic depth-2 config"
    assert H % 2 == 0 and W % 2 == 0
    F = N_INITIAL_FILTERS

    def conv_bands(w, width, pad):
        # w: [KH, KW, Cin, Cout] -> [KH, width*Cin, width*Cout]
        return jnp.stack([_band(w[kh], width, width, 1, pad) for kh in range(w.shape[0])])

    res16 = []
    for blk in params["down_blocks"] + params["up_blocks"] + params["final_layer"]:
        res16 += [conv_bands(blk["w1"], W, 1), conv_bands(blk["w2"], W, 1)]
    deep = []
    for blk in params["deep_blocks"]:
        deep += [conv_bands(blk["w1"], W // 2, 1), conv_bands(blk["w2"], W // 2, 1)]

    wb = jnp.zeros((F, F), jnp.float32).at[:, :3].set(params["bottleneck"])   # lane-pad 3 -> F

    ops = dict(
        w_init=conv_bands(params["initial"], W, 2),
        w_res16=jnp.concatenate(res16, axis=0),
        w_down=jnp.stack([_band(params["downsample"][k], W, W // 2, stride=2)
                          for k in range(2)]),
        w_merge=jnp.stack([_band(params["merger"][d][None], W // 2, W // 2)
                           for d in range(NPLANES)]),
        w_deep=jnp.concatenate(deep, axis=0),
        w_split=jnp.stack([_band(params["splitter"][d][None], W // 2, W // 2)
                           for d in range(NPLANES)]),
        w_up=jnp.stack([_band(params["upsample"][k], W // 2, W, stride=2, transposed=True)
                        for k in range(2)]),
        w_bneck=_band(wb[None], W, W),
    )
    consts = dict(
        shift16=_shift_stack(NPLANES, H, (-2, -1, 0, 1, 2)),
        shiftd=_shift_stack(1, H // 2, (-1, 0, 1)),
        seld=_parity_select(NPLANES, H),
        selm=_plane_select(NPLANES, H // 2),
    )
    consts["selu"] = np.ascontiguousarray(np.transpose(consts["seld"], (0, 2, 1)))
    consts["sels"] = np.ascontiguousarray(np.transpose(consts["selm"], (0, 2, 1)))
    consts = {k: jnp.asarray(v) for k, v in consts.items()}

    return (ops["w_init"], ops["w_res16"], ops["w_down"], ops["w_merge"],
            ops["w_deep"], ops["w_split"], ops["w_up"], ops["w_bneck"],
            consts["shift16"], consts["shiftd"], consts["seld"],
            consts["selu"], consts["selm"], consts["sels"])


# ----------------------------------- parameter init -----------------------------------
def _kaiming(key, shape, fan_out):
    return (jnp.sqrt(2.0 / fan_out) * jax.random.normal(key, shape)).astype(jnp.float32)


def init_params(key):
    keys = iter(jax.random.split(key, 64))
    F = N_INITIAL_FILTERS
    deep_c = NPLANES * 2 * F                                   # merged channels at the deepest level

    def res_blocks(n, c):
        return [{"w1": _kaiming(next(keys), (3, 3, c, c), 9 * c),
                 "w2": _kaiming(next(keys), (3, 3, c, c), 9 * c)} for _ in range(n)]

    return {
        "initial":     _kaiming(next(keys), (5, 5, 1, F), 25 * F),          # [1,5,5] conv, 1->F
        "down_blocks": res_blocks(RES_BLOCKS_PER_LAYER, F),
        "downsample":  _kaiming(next(keys), (2, 2, F, 2 * F), 4 * 2 * F),   # [1,2,2]/s2, F->2F
        "merger":      _kaiming(next(keys), (NPLANES, 2 * F, deep_c), NPLANES * deep_c),
        "deep_blocks": res_blocks(RES_BLOCKS_DEEPEST_LAYER, deep_c),
        "splitter":    _kaiming(next(keys), (NPLANES, deep_c, 2 * F), NPLANES * 2 * F),
        "upsample":    _kaiming(next(keys), (2, 2, 2 * F, F), 4 * F),       # transposed, 2F->F
        "up_blocks":   res_blocks(RES_BLOCKS_PER_LAYER, F),
        "final_layer": res_blocks(RES_BLOCKS_FINAL, F),
        "bottleneck":  _kaiming(next(keys), (F, 3), 3),                     # 1x1x1 conv, F->3
    }


# --------------------------------------- forward ---------------------------------------
@jax.jit
def uresnet_forward(operands, input_tensor):
    """input_tensor: [B, NPLANES, H, W]  (the PyTorch module views it as NCDHW [B,1,D,H,W]).
    Returns NCDHW logits [B, 3, NPLANES, H, W]."""
    B, D, H, W = input_tensor.shape
    x3 = input_tensor.astype(jnp.float32).reshape(B, D * H, W)      # rows = (plane, h), lanes = w
    out = _pallas_forward(x3, operands)                             # [B, D*H, W*F]
    out = out.reshape(B, D, H, W, N_INITIAL_FILTERS)[..., :3]       # drop bottleneck lane padding
    return out.transpose(0, 4, 1, 2, 3)                             # -> NCDHW [B, 3, D, H, W]


if __name__ == "__main__":
    key = jax.random.PRNGKey(0)
    pkey, xkey = jax.random.split(key)
    params = init_params(pkey)
    x = jax.random.normal(xkey, (2, NPLANES, 16, 16), jnp.float32)  # [B, NPLANES, H, W]

    operands = prepare_operands(params, 16, 16)                     # one-time weight preprocessing
    out = uresnet_forward(operands, x)
    out = jax.block_until_ready(out)

    assert out.shape == (2, 3, NPLANES, 16, 16), out.shape
    assert bool(jnp.all(jnp.isfinite(out)))
    print("KERNEL_OK")
</pallas_src>

<mosaic_0001>
module attributes {stable_mosaic.version = 11 : i64} {
  func.func @_uresnet_fused_kernel(%arg0: i32, %arg1: memref<1x48x16xf32, #tpu.memory_space<vmem>>, %arg2: memref<5x16x128xf32, #tpu.memory_space<vmem>>, %arg3: memref<18x128x128xf32, #tpu.memory_space<vmem>>, %arg4: memref<2x128x128xf32, #tpu.memory_space<vmem>>, %arg5: memref<3x128x384xf32, #tpu.memory_space<vmem>>, %arg6: memref<6x384x384xf32, #tpu.memory_space<vmem>>, %arg7: memref<3x384x128xf32, #tpu.memory_space<vmem>>, %arg8: memref<2x128x128xf32, #tpu.memory_space<vmem>>, %arg9: memref<128x128xf32, #tpu.memory_space<vmem>>, %arg10: memref<5x48x48xf32, #tpu.memory_space<vmem>>, %arg11: memref<3x8x8xf32, #tpu.memory_space<vmem>>, %arg12: memref<2x24x48xf32, #tpu.memory_space<vmem>>, %arg13: memref<2x48x24xf32, #tpu.memory_space<vmem>>, %arg14: memref<3x8x24xf32, #tpu.memory_space<vmem>>, %arg15: memref<3x24x8xf32, #tpu.memory_space<vmem>>, %arg16: memref<1x48x128xf32, #tpu.memory_space<vmem>>) attributes {dimension_semantics = [#tpu.dimension_semantics<parallel>], iteration_bounds = array<i64: 2>, scalar_prefetch = 0 : i64, scratch_operands = 0 : i64, tpu.core_type = #tpu.core_type<tc>, window_params = [{transform_indices = @transform_0, window_bounds = array<i64: 1, 48, 16>}, {pipeline_mode = #tpu.pipeline_mode<synchronous>, transform_indices = @transform_1, window_bounds = array<i64: 5, 16, 128>}, {pipeline_mode = #tpu.pipeline_mode<synchronous>, transform_indices = @transform_2, window_bounds = array<i64: 18, 128, 128>}, {pipeline_mode = #tpu.pipeline_mode<synchronous>, transform_indices = @transform_3, window_bounds = array<i64: 2, 128, 128>}, {pipeline_mode = #tpu.pipeline_mode<synchronous>, transform_indices = @transform_4, window_bounds = array<i64: 3, 128, 384>}, {pipeline_mode = #tpu.pipeline_mode<synchronous>, transform_indices = @transform_5, window_bounds = array<i64: 6, 384, 384>}, {pipeline_mode = #tpu.pipeline_mode<synchronous>, transform_indices = @transform_6, window_bounds = array<i64: 3, 384, 128>}, {pipeline_mode = #tpu.pipeline_mode<synchronous>, transform_indices = @transform_7, window_bounds = array<i64: 2, 128, 128>}, {pipeline_mode = #tpu.pipeline_mode<synchronous>, transform_indices = @transform_8, window_bounds = array<i64: 128, 128>}, {pipeline_mode = #tpu.pipeline_mode<synchronous>, transform_indices = @transform_9, window_bounds = array<i64: 5, 48, 48>}, {pipeline_mode = #tpu.pipeline_mode<synchronous>, transform_indices = @transform_10, window_bounds = array<i64: 3, 8, 8>}, {pipeline_mode = #tpu.pipeline_mode<synchronous>, transform_indices = @transform_11, window_bounds = array<i64: 2, 24, 48>}, {pipeline_mode = #tpu.pipeline_mode<synchronous>, transform_indices = @transform_12, window_bounds = array<i64: 2, 48, 24>}, {pipeline_mode = #tpu.pipeline_mode<synchronous>, transform_indices = @transform_13, window_bounds = array<i64: 3, 8, 24>}, {pipeline_mode = #tpu.pipeline_mode<synchronous>, transform_indices = @transform_14, window_bounds = array<i64: 3, 24, 8>}, {transform_indices = @transform_15, window_bounds = array<i64: 1, 48, 128>}]} {
    %c0 = arith.constant 0 : index
    %c0_0 = arith.constant 0 : index
    %c0_1 = arith.constant 0 : index
    %0 = vector.load %arg1[%c0, %c0_0, %c0_1] : memref<1x48x16xf32, #tpu.memory_space<vmem>>, vector<1x48x16xf32>
    %1 = vector.shape_cast %0 : vector<1x48x16xf32> to vector<48x16xf32>
    %c0_2 = arith.constant 0 : index
    %c0_3 = arith.constant 0 : index
    %c0_4 = arith.constant 0 : index
    %2 = vector.load %arg2[%c0_2, %c0_3, %c0_4] : memref<5x16x128xf32, #tpu.memory_space<vmem>>, vector<1x16x128xf32>
    %3 = vector.shape_cast %2 : vector<1x16x128xf32> to vector<16x128xf32>
    %cst = arith.constant dense<0.000000e+00> : vector<48x128xf32>
    %4 = tpu.matmul %1, %3, %cst {dimension_numbers = #tpu.dot_dimension_numbers<[1], [0], [0], [1], [0, 0, 1, 1], [], []>} : vector<48x16xf32>, vector<16x128xf32>, vector<48x128xf32> -> vector<48x128xf32>
    %c0_5 = arith.constant 0 : index
    %c0_6 = arith.constant 0 : index
    %c0_7 = arith.constant 0 : index
    %5 = vector.load %arg10[%c0_5, %c0_6, %c0_7] : memref<5x48x48xf32, #tpu.memory_space<vmem>>, vector<1x48x48xf32>
    %6 = vector.shape_cast %5 : vector<1x48x48xf32> to vector<48x48xf32>
    %cst_8 = arith.constant dense<0.000000e+00> : vector<48x128xf32>
    %7 = tpu.matmul %6, %4, %cst_8 {dimension_numbers = #tpu.dot_dimension_numbers<[1], [0], [0], [1], [0, 0, 1, 1], [], []>} : vector<48x48xf32>, vector<48x128xf32>, vector<48x128xf32> -> vector<48x128xf32>
    %c1 = arith.constant 1 : index
    %c0_9 = arith.constant 0 : index
    %c0_10 = arith.constant 0 : index
    %8 = vector.load %arg2[%c1, %c0_9, %c0_10] : memref<5x16x128xf32, #tpu.memory_space<vmem>>, vector<1x16x128xf32>
    %9 = vector.shape_cast %8 : vector<1x16x128xf32> to vector<16x128xf32>
    %cst_11 = arith.constant dense<0.000000e+00> : vector<48x128xf32>
    %10 = tpu.matmul %1, %9, %cst_11 {dimension_numbers = #tpu.dot_dimension_numbers<[1], [0], [0], [1], [0, 0, 1, 1], [], []>} : vector<48x16xf32>, vector<16x128xf32>, vector<48x128xf32> -> vector<48x128xf32>
    %c1_12 = arith.constant 1 : index
    %c0_13 = arith.constant 0 : index
    %c0_14 = arith.constant 0 : index
    %11 = vector.load %arg10[%c1_12, %c0_13, %c0_14] : memref<5x48x48xf32, #tpu.memory_space<vmem>>, vector<1x48x48xf32>
    %12 = vector.shape_cast %11 : vector<1x48x48xf32> to vector<48x48xf32>
    %cst_15 = arith.constant dense<0.000000e+00> : vector<48x128xf32>
    %13 = tpu.matmul %12, %10, %cst_15 {dimension_numbers = #tpu.dot_dimension_numbers<[1], [0], [0], [1], [0, 0, 1, 1], [], []>} : vector<48x48xf32>, vector<48x128xf32>, vector<48x128xf32> -> vector<48x128xf32>
    %14 = arith.addf %7, %13 : vector<48x128xf32>
    %c2 = arith.constant 2 : index
    %c0_16 = arith.constant 0 : index
    %c0_17 = arith.constant 0 : index
    %15 = vector.load %arg2[%c2, %c0_16, %c0_17] : memref<5x16x128xf32, #tpu.memory_space<vmem>>, vector<1x16x128xf32>
    %16 = vector.shape_cast %15 : vector<1x16x128xf32> to vector<16x128xf32>
    %cst_18 = arith.constant dense<0.000000e+00> : vector<48x128xf32>
    %17 = tpu.matmul %1, %16, %cst_18 {dimension_numbers = #tpu.dot_dimension_numbers<[1], [0], [0], [1], [0, 0, 1, 1], [], []>} : vector<48x16xf32>, vector<16x128xf32>, vector<48x128xf32> -> vector<48x128xf32>
    %18 = arith.addf %14, %17 : vector<48x128xf32>
    %c3 = arith.constant 3 : index
    %c0_19 = arith.constant 0 : index
    %c0_20 = arith.constant 0 : index
    %19 = vector.load %arg2[%c3, %c0_19, %c0_20] : memref<5x16x128xf32, #tpu.memory_space<vmem>>, vector<1x16x128xf32>
    %20 = vector.shape_cast %19 : vector<1x16x128xf32> to vector<16x128xf32>
    %cst_21 = arith.constant dense<0.000000e+00> : vector<48x128xf32>
    %21 = tpu.matmul %1, %20, %cst_21 {dimension_numbers = #tpu.dot_dimension_numbers<[1], [0], [0], [1], [0, 0, 1, 1], [], []>} : vector<48x16xf32>, vector<16x128xf32>, vector<48x128xf32> -> vector<48x128xf32>
    %c3_22 = arith.constant 3 : index
    %c0_23 = arith.constant 0 : index
    %c0_24 = arith.constant 0 : index
    %22 = vector.load %arg10[%c3_22, %c0_23, %c0_24] : memref<5x48x48xf32, #tpu.memory_space<vmem>>, vector<1x48x48xf32>
    %23 = vector.shape_cast %22 : vector<1x48x48xf32> to vector<48x48xf32>
    %cst_25 = arith.constant dense<0.000000e+00> : vector<48x128xf32>
    %24 = tpu.matmul %23, %21, %cst_25 {dimension_numbers = #tpu.dot_dimension_numbers<[1], [0], [0], [1], [0, 0, 1, 1], [], []>} : vector<48x48xf32>, vector<48x128xf32>, vector<48x128xf32> -> vector<48x128xf32>
    %25 = arith.addf %18, %24 : vector<48x128xf32>
    %c4 = arith.constant 4 : index
    %c0_26 = arith.constant 0 : index
    %c0_27 = arith.constant 0 : index
    %26 = vector.load %arg2[%c4, %c0_26, %c0_27] : memref<5x16x128xf32, #tpu.memory_space<vmem>>, vector<1x16x128xf32>
    %27 = vector.shape_cast %26 : vector<1x16x128xf32> to vector<16x128xf32>
    %cst_28 = arith.constant dense<0.000000e+00> : vector<48x128xf32>
    %28 = tpu.matmul %1, %27, %cst_28 {dimension_numbers = #tpu.dot_dimension_numbers<[1], [0], [0], [1], [0, 0, 1, 1], [], []>} : vector<48x16xf32>, vector<16x128xf32>, vector<48x128xf32> -> vector<48x128xf32>
    %c4_29 = arith.constant 4 : index
    %c0_30 = arith.constant 0 : index
    %c0_31 = arith.constant 0 : index
    %29 = vector.load %arg10[%c4_29, %c0_30, %c0_31] : memref<5x48x48xf32, #tpu.memory_space<vmem>>, vector<1x48x48xf32>
    %30 = vector.shape_cast %29 : vector<1x48x48xf32> to vector<48x48xf32>
    %cst_32 = arith.constant dense<0.000000e+00> : vector<48x128xf32>
    %31 = tpu.matmul %30, %28, %cst_32 {dimension_numbers = #tpu.dot_dimension_numbers<[1], [0], [0], [1], [0, 0, 1, 1], [], []>} : vector<48x48xf32>, vector<48x128xf32>, vector<48x128xf32> -> vector<48x128xf32>
    %32 = arith.addf %25, %31 : vector<48x128xf32>
    %c0_33 = arith.constant 0 : index
    %c0_34 = arith.constant 0 : index
    %c0_35 = arith.constant 0 : index
    %33 = vector.load %arg3[%c0_33, %c0_34, %c0_35] : memref<18x128x128xf32, #tpu.memory_space<vmem>>, vector<1x128x128xf32>
    %34 = vector.shape_cast %33 : vector<1x128x128xf32> to vector<128x128xf32>
    %cst_36 = arith.constant dense<0.000000e+00> : vector<48x128xf32>
    %35 = tpu.matmul %32, %34, %cst_36 {dimension_numbers = #tpu.dot_dimension_numbers<[1], [0], [0], [1], [0, 0, 1, 1], [], []>} : vector<48x128xf32>, vector<128x128xf32>, vector<48x128xf32> -> vector<48x128xf32>
    %c1_37 = arith.constant 1 : index
    %c0_38 = arith.constant 0 : index
    %c0_39 = arith.constant 0 : index
    %36 = vector.load %arg10[%c1_37, %c0_38, %c0_39] : memref<5x48x48xf32, #tpu.memory_space<vmem>>, vector<1x48x48xf32>
    %37 = vector.shape_cast %36 : vector<1x48x48xf32> to vector<48x48xf32>
    %cst_40 = arith.constant dense<0.000000e+00> : vector<48x128xf32>
    %38 = tpu.matmul %37, %35, %cst_40 {dimension_numbers = #tpu.dot_dimension_numbers<[1], [0], [0], [1], [0, 0, 1, 1], [], []>} : vector<48x48xf32>, vector<48x128xf32>, vector<48x128xf32> -> vector<48x128xf32>
    %c1_41 = arith.constant 1 : index
    %c0_42 = arith.constant 0 : index
    %c0_43 = arith.constant 0 : index
    %39 = vector.load %arg3[%c1_41, %c0_42, %c0_43] : memref<18x128x128xf32, #tpu.memory_space<vmem>>, vector<1x128x128xf32>
    %40 = vector.shape_cast %39 : vector<1x128x128xf32> to vector<128x128xf32>
    %cst_44 = arith.constant dense<0.000000e+00> : vector<48x128xf32>
    %41 = tpu.matmul %32, %40, %cst_44 {dimension_numbers = #tpu.dot_dimension_numbers<[1], [0], [0], [1], [0, 0, 1, 1], [], []>} : vector<48x128xf32>, vector<128x128xf32>, vector<48x128xf32> -> vector<48x128xf32>
    %42 = arith.addf %38, %41 : vector<48x128xf32>
    %c2_45 = arith.constant 2 : index
    %c0_46 = arith.constant 0 : index
    %c0_47 = arith.constant 0 : index
    %43 = vector.load %arg3[%c2_45, %c0_46, %c0_47] : memref<18x128x128xf32, #tpu.memory_space<vmem>>, vector<1x128x128xf32>
    %44 = vector.shape_cast %43 : vector<1x128x128xf32> to vector<128x128xf32>
    %cst_48 = arith.constant dense<0.000000e+00> : vector<48x128xf32>
    %45 = tpu.matmul %32, %44, %cst_48 {dimension_numbers = #tpu.dot_dimension_numbers<[1], [0], [0], [1], [0, 0, 1, 1], [], []>} : vector<48x128xf32>, vector<128x128xf32>, vector<48x128xf32> -> vector<48x128xf32>
    %c3_49 = arith.constant 3 : index
    %c0_50 = arith.constant 0 : index
    %c0_51 = arith.constant 0 : index
    %46 = vector.load %arg10[%c3_49, %c0_50, %c0_51] : memref<5x48x48xf32, #tpu.memory_space<vmem>>, vector<1x48x48xf32>
    %47 = vector.shape_cast %46 : vector<1x48x48xf32> to vector<48x48xf32>
    %cst_52 = arith.constant dense<0.000000e+00> : vector<48x128xf32>
    %48 = tpu.matmul %47, %45, %cst_52 {dimension_numbers = #tpu.dot_dimension_numbers<[1], [0], [0], [1], [0, 0, 1, 1], [], []>} : vector<48x48xf32>, vector<48x128xf32>, vector<48x128xf32> -> vector<48x128xf32>
    %49 = arith.addf %42, %48 : vector<48x128xf32>
    %cst_53 = arith.constant 0.000000e+00 : f32
    %50 = vector.broadcast %cst_53 : f32 to vector<48x128xf32>
    %51 = arith.maximumf %49, %50 : vector<48x128xf32>
    %c3_54 = arith.constant 3 : index
    %c0_55 = arith.constant 0 : index
    %c0_56 = arith.constant 0 : index
    %52 = vector.load %arg3[%c3_54, %c0_55, %c0_56] : memref<18x128x128xf32, #tpu.memory_space<vmem>>, vector<1x128x128xf32>
    %53 = vector.shape_cast %52 : vector<1x128x128xf32> to vector<128x128xf32>
    %cst_57 = arith.constant dense<0.000000e+00> : vector<48x128xf32>
    %54 = tpu.matmul %51, %53, %cst_57 {dimension_numbers = #tpu.dot_dimension_numbers<[1], [0], [0], [1], [0, 0, 1, 1], [], []>} : vector<48x128xf32>, vector<128x128xf32>, vector<48x128xf32> -> vector<48x128xf32>
    %c1_58 = arith.constant 1 : index
    %c0_59 = arith.constant 0 : index
    %c0_60 = arith.constant 0 : index
    %55 = vector.load %arg10[%c1_58, %c0_59, %c0_60] : memref<5x48x48xf32, #tpu.memory_space<vmem>>, vector<1x48x48xf32>
    %56 = vector.shape_cast %55 : vector<1x48x48xf32> to vector<48x48xf32>
    %cst_61 = arith.constant dense<0.000000e+00> : vector<48x128xf32>
    %57 = tpu.matmul %56, %54, %cst_61 {dimension_numbers = #tpu.dot_dimension_numbers<[1], [0], [0], [1], [0, 0, 1, 1], [], []>} : vector<48x48xf32>, vector<48x128xf32>, vector<48x128xf32> -> vector<48x128xf32>
    %c4_62 = arith.constant 4 : index
    %c0_63 = arith.constant 0 : index
    %c0_64 = arith.constant 0 : index
    %58 = vector.load %arg3[%c4_62, %c0_63, %c0_64] : memref<18x128x128xf32, #tpu.memory_space<vmem>>, vector<1x128x128xf32>
    %59 = vector.shape_cast %58 : vector<1x128x128xf32> to vector<128x128xf32>
    %cst_65 = arith.constant dense<0.000000e+00> : vector<48x128xf32>
    %60 = tpu.matmul %51, %59, %cst_65 {dimension_numbers = #tpu.dot_dimension_numbers<[1], [0], [0], [1], [0, 0, 1, 1], [], []>} : vector<48x128xf32>, vector<128x128xf32>, vector<48x128xf32> -> vector<48x128xf32>
    %61 = arith.addf %57, %60 : vector<48x128xf32>
    %c5 = arith.constant 5 : index
    %c0_66 = arith.constant 0 : index
    %c0_67 = arith.constant 0 : index
    %62 = vector.load %arg3[%c5, %c0_66, %c0_67] : memref<18x128x128xf32, #tpu.memory_space<vmem>>, vector<1x128x128xf32>
    %63 = vector.shape_cast %62 : vector<1x128x128xf32> to vector<128x128xf32>
    %cst_68 = arith.constant dense<0.000000e+00> : vector<48x128xf32>
    %64 = tpu.matmul %51, %63, %cst_68 {dimension_numbers = #tpu.dot_dimension_numbers<[1], [0], [0], [1], [0, 0, 1, 1], [], []>} : vector<48x128xf32>, vector<128x128xf32>, vector<48x128xf32> -> vector<48x128xf32>
    %c3_69 = arith.constant 3 : index
    %c0_70 = arith.constant 0 : index
    %c0_71 = arith.constant 0 : index
    %65 = vector.load %arg10[%c3_69, %c0_70, %c0_71] : memref<5x48x48xf32, #tpu.memory_space<vmem>>, vector<1x48x48xf32>
    %66 = vector.shape_cast %65 : vector<1x48x48xf32> to vector<48x48xf32>
    %cst_72 = arith.constant dense<0.000000e+00> : vector<48x128xf32>
    %67 = tpu.matmul %66, %64, %cst_72 {dimension_numbers = #tpu.dot_dimension_numbers<[1], [0], [0], [1], [0, 0, 1, 1], [], []>} : vector<48x48xf32>, vector<48x128xf32>, vector<48x128xf32> -> vector<48x128xf32>
    %68 = arith.addf %61, %67 : vector<48x128xf32>
    %69 = arith.addf %68, %32 : vector<48x128xf32>
    %cst_73 = arith.constant 0.000000e+00 : f32
    %70 = vector.broadcast %cst_73 : f32 to vector<48x128xf32>
    %71 = arith.maximumf %69, %70 : vector<48x128xf32>
    %c0_74 = arith.constant 0 : index
    %c0_75 = arith.constant 0 : index
    %c0_76 = arith.constant 0 : index
    %72 = vector.load %arg12[%c0_74, %c0_75, %c0_76] : memref<2x24x48xf32, #tpu.memory_space<vmem>>, vector<1x24x48xf32>
    %73 = vector.shape_cast %72 : vector<1x24x48xf32> to vector<24x48xf32>
    %c0_77 = arith.constant 0 : index
    %c0_78 = arith.constant 0 : index
    %c0_79 = arith.constant 0 : index
    %74 = vector.load %arg4[%c0_77, %c0_78, %c0_79] : memref<2x128x128xf32, #tpu.memory_space<vmem>>, vector<1x128x128xf32>
    %75 = vector.shape_cast %74 : vector<1x128x128xf32> to vector<128x128xf32>
    %cst_80 = arith.constant dense<0.000000e+00> : vector<48x128xf32>
    %76 = tpu.matmul %71, %75, %cst_80 {dimension_numbers = #tpu.dot_dimension_numbers<[1], [0], [0], [1], [0, 0, 1, 1], [], []>} : vector<48x128xf32>, vector<128x128xf32>, vector<48x128xf32> -> vector<48x128xf32>
    %cst_81 = arith.constant dense<0.000000e+00> : vector<24x128xf32>
    %77 = tpu.matmul %73, %76, %cst_81 {dimension_numbers = #tpu.dot_dimension_numbers<[1], [0], [0], [1], [0, 0, 1, 1], [], []>} : vector<24x48xf32>, vector<48x128xf32>, vector<24x128xf32> -> vector<24x128xf32>
    %c1_82 = arith.constant 1 : index
    %c0_83 = arith.constant 0 : index
    %c0_84 = arith.constant 0 : index
    %78 = vector.load %arg12[%c1_82, %c0_83, %c0_84] : memref<2x24x48xf32, #tpu.memory_space<vmem>>, vector<1x24x48xf32>
    %79 = vector.shape_cast %78 : vector<1x24x48xf32> to vector<24x48xf32>
    %c1_85 = arith.constant 1 : index
    %c0_86 = arith.constant 0 : index
    %c0_87 = arith.constant 0 : index
    %80 = vector.load %arg4[%c1_85, %c0_86, %c0_87] : memref<2x128x128xf32, #tpu.memory_space<vmem>>, vector<1x128x128xf32>
    %81 = vector.shape_cast %80 : vector<1x128x128xf32> to vector<128x128xf32>
    %cst_88 = arith.constant dense<0.000000e+00> : vector<48x128xf32>
    %82 = tpu.matmul %71, %81, %cst_88 {dimension_numbers = #tpu.dot_dimension_numbers<[1], [0], [0], [1], [0, 0, 1, 1], [], []>} : vector<48x128xf32>, vector<128x128xf32>, vector<48x128xf32> -> vector<48x128xf32>
    %cst_89 = arith.constant dense<0.000000e+00> : vector<24x128xf32>
    %83 = tpu.matmul %79, %82, %cst_89 {dimension_numbers = #tpu.dot_dimension_numbers<[1], [0], [0], [1], [0, 0, 1, 1], [], []>} : vector<24x48xf32>, vector<48x128xf32>, vector<24x128xf32> -> vector<24x128xf32>
    %84 = arith.addf %77, %83 : vector<24x128xf32>
    %cst_90 = arith.constant 0.000000e+00 : f32
    %85 = vector.broadcast %cst_90 : f32 to vector<24x128xf32>
    %86 = arith.maximumf %84, %85 : vector<24x128xf32>
    %c0_91 = arith.constant 0 : index
    %c0_92 = arith.constant 0 : index
    %c0_93 = arith.constant 0 : index
    %87 = vector.load %arg14[%c0_91, %c0_92, %c0_93] : memref<3x8x24xf32, #tpu.memory_space<vmem>>, vector<1x8x24xf32>
    %88 = vector.shape_cast %87 : vector<1x8x24xf32> to vector<8x24xf32>
    %cst_94 = arith.constant dense<0.000000e+00> : vector<8x128xf32>
    %89 = tpu.matmul %88, %86, %cst_94 {dimension_numbers = #tpu.dot_dimension_numbers<[1], [0], [0], [1], [0, 0, 1, 1], [], []>} : vector<8x24xf32>, vector<24x128xf32>, vector<8x128xf32> -> vector<8x128xf32>
    %c0_95 = arith.constant 0 : index
    %c0_96 = arith.constant 0 : index
    %c0_97 = arith.constant 0 : index
    %90 = vector.load %arg5[%c0_95, %c0_96, %c0_97] : memref<3x128x384xf32, #tpu.memory_space<vmem>>, vector<1x128x384xf32>
    %91 = vector.shape_cast %90 : vector<1x128x384xf32> to vector<128x384xf32>
    %cst_98 = arith.constant dense<0.000000e+00> : vector<8x384xf32>
    %92 = tpu.matmul %89, %91, %cst_98 {dimension_numbers = #tpu.dot_dimension_numbers<[1], [0], [0], [1], [0, 0, 1, 1], [], []>} : vector<8x128xf32>, vector<128x384xf32>, vector<8x384xf32> -> vector<8x384xf32>
    %c1_99 = arith.constant 1 : index
    %c0_100 = arith.constant 0 : index
    %c0_101 = arith.constant 0 : index
    %93 = vector.load %arg14[%c1_99, %c0_100, %c0_101] : memref<3x8x24xf32, #tpu.memory_space<vmem>>, vector<1x8x24xf32>
    %94 = vector.shape_cast %93 : vector<1x8x24xf32> to vector<8x24xf32>
    %cst_102 = arith.constant dense<0.000000e+00> : vector<8x128xf32>
    %95 = tpu.matmul %94, %86, %cst_102 {dimension_numbers = #tpu.dot_dimension_numbers<[1], [0], [0], [1], [0, 0, 1, 1], [], []>} : vector<8x24xf32>, vector<24x128xf32>, vector<8x128xf32> -> vector<8x128xf32>
    %c1_103 = arith.constant 1 : index
    %c0_104 = arith.constant 0 : index
    %c0_105 = arith.constant 0 : index
    %96 = vector.load %arg5[%c1_103, %c0_104, %c0_105] : memref<3x128x384xf32, #tpu.memory_space<vmem>>, vector<1x128x384xf32>
    %97 = vector.shape_cast %96 : vector<1x128x384xf32> to vector<128x384xf32>
    %cst_106 = arith.constant dense<0.000000e+00> : vector<8x384xf32>
    %98 = tpu.matmul %95, %97, %cst_106 {dimension_numbers = #tpu.dot_dimension_numbers<[1], [0], [0], [1], [0, 0, 1, 1], [], []>} : vector<8x128xf32>, vector<128x384xf32>, vector<8x384xf32> -> vector<8x384xf32>
    %99 = arith.addf %92, %98 : vector<8x384xf32>
    %c2_107 = arith.constant 2 : index
    %c0_108 = arith.constant 0 : index
    %c0_109 = arith.constant 0 : index
    %100 = vector.load %arg14[%c2_107, %c0_108, %c0_109] : memref<3x8x24xf32, #tpu.memory_space<vmem>>, vector<1x8x24xf32>
    %101 = vector.shape_cast %100 : vector<1x8x24xf32> to vector<8x24xf32>
    %cst_110 = arith.constant dense<0.000000e+00> : vector<8x128xf32>
    %102 = tpu.matmul %101, %86, %cst_110 {dimension_numbers = #tpu.dot_dimension_numbers<[1], [0], [0], [1], [0, 0, 1, 1], [], []>} : vector<8x24xf32>, vector<24x128xf32>, vector<8x128xf32> -> vector<8x128xf32>
    %c2_111 = arith.constant 2 : index
    %c0_112 = arith.constant 0 : index
    %c0_113 = arith.constant 0 : index
    %103 = vector.load %arg5[%c2_111, %c0_112, %c0_113] : memref<3x128x384xf32, #tpu.memory_space<vmem>>, vector<1x128x384xf32>
    %104 = vector.shape_cast %103 : vector<1x128x384xf32> to vector<128x384xf32>
    %cst_114 = arith.constant dense<0.000000e+00> : vector<8x384xf32>
    %105 = tpu.matmul %102, %104, %cst_114 {dimension_numbers = #tpu.dot_dimension_numbers<[1], [0], [0], [1], [0, 0, 1, 1], [], []>} : vector<8x128xf32>, vector<128x384xf32>, vector<8x384xf32> -> vector<8x384xf32>
    %106 = arith.addf %99, %105 : vector<8x384xf32>
    %c0_115 = arith.constant 0 : index
    %c0_116 = arith.constant 0 : index
    %c0_117 = arith.constant 0 : index
    %107 = vector.load %arg6[%c0_115, %c0_116, %c0_117] : memref<6x384x384xf32, #tpu.memory_space<vmem>>, vector<1x384x384xf32>
    %108 = vector.shape_cast %107 : vector<1x384x384xf32> to vector<384x384xf32>
    %cst_118 = arith.constant dense<0.000000e+00> : vector<8x384xf32>
    %109 = tpu.matmul %106, %108, %cst_118 {dimension_numbers = #tpu.dot_dimension_numbers<[1], [0], [0], [1], [0, 0, 1, 1], [], []>} : vector<8x384xf32>, vector<384x384xf32>, vector<8x384xf32> -> vector<8x384xf32>
    %c0_119 = arith.constant 0 : index
    %c0_120 = arith.constant 0 : index
    %c0_121 = arith.constant 0 : index
    %110 = vector.load %arg11[%c0_119, %c0_120, %c0_121] : memref<3x8x8xf32, #tpu.memory_space<vmem>>, vector<1x8x8xf32>
    %111 = vector.shape_cast %110 : vector<1x8x8xf32> to vector<8x8xf32>
    %cst_122 = arith.constant dense<0.000000e+00> : vector<8x384xf32>
    %112 = tpu.matmul %111, %109, %cst_122 {dimension_numbers = #tpu.dot_dimension_numbers<[1], [0], [0], [1], [0, 0, 1, 1], [], []>} : vector<8x8xf32>, vector<8x384xf32>, vector<8x384xf32> -> vector<8x384xf32>
    %c1_123 = arith.constant 1 : index
    %c0_124 = arith.constant 0 : index
    %c0_125 = arith.constant 0 : index
    %113 = vector.load %arg6[%c1_123, %c0_124, %c0_125] : memref<6x384x384xf32, #tpu.memory_space<vmem>>, vector<1x384x384xf32>
    %114 = vector.shape_cast %113 : vector<1x384x384xf32> to vector<384x384xf32>
    %cst_126 = arith.constant dense<0.000000e+00> : vector<8x384xf32>
    %115 = tpu.matmul %106, %114, %cst_126 {dimension_numbers = #tpu.dot_dimension_numbers<[1], [0], [0], [1], [0, 0, 1, 1], [], []>} : vector<8x384xf32>, vector<384x384xf32>, vector<8x384xf32> -> vector<8x384xf32>
    %116 = arith.addf %112, %115 : vector<8x384xf32>
    %c2_127 = arith.constant 2 : index
    %c0_128 = arith.constant 0 : index
    %c0_129 = arith.constant 0 : index
    %117 = vector.load %arg6[%c2_127, %c0_128, %c0_129] : memref<6x384x384xf32, #tpu.memory_space<vmem>>, vector<1x384x384xf32>
    %118 = vector.shape_cast %117 : vector<1x384x384xf32> to vector<384x384xf32>
    %cst_130 = arith.constant dense<0.000000e+00> : vector<8x384xf32>
    %119 = tpu.matmul %106, %118, %cst_130 {dimension_numbers = #tpu.dot_dimension_numbers<[1], [0], [0], [1], [0, 0, 1, 1], [], []>} : vector<8x384xf32>, vector<384x384xf32>, vector<8x384xf32> -> vector<8x384xf32>
    %c2_131 = arith.constant 2 : index
    %c0_132 = arith.constant 0 : index
    %c0_133 = arith.constant 0 : index
    %120 = vector.load %arg11[%c2_131, %c0_132, %c0_133] : memref<3x8x8xf32, #tpu.memory_space<vmem>>, vector<1x8x8xf32>
    %121 = vector.shape_cast %120 : vector<1x8x8xf32> to vector<8x8xf32>
    %cst_134 = arith.constant dense<0.000000e+00> : vector<8x384xf32>
    %122 = tpu.matmul %121, %119, %cst_134 {dimension_numbers = #tpu.dot_dimension_numbers<[1], [0], [0], [1], [0, 0, 1, 1], [], []>} : vector<8x8xf32>, vector<8x384xf32>, vector<8x384xf32> -> vector<8x384xf32>
    %123 = arith.addf %116, %122 : vector<8x384xf32>
    %cst_135 = arith.constant 0.000000e+00 : f32
    %124 = vector.broadcast %cst_135 : f32 to vector<8x384xf32>
    %125 = arith.maximumf %123, %124 : vector<8x384xf32>
    %c3_136 = arith.constant 3 : index
    %c0_137 = arith.constant 0 : index
    %c0_138 = arith.constant 0 : index
    %126 = vector.load %arg6[%c3_136, %c0_137, %c0_138] : memref<6x384x384xf32, #tpu.memory_space<vmem>>, vector<1x384x384xf32>
    %127 = vector.shape_cast %126 : vector<1x384x384xf32> to vector<384x384xf32>
    %cst_139 = arith.constant dense<0.000000e+00> : vector<8x384xf32>
    %128 = tpu.matmul %125, %127, %cst_139 {dimension_numbers = #tpu.dot_dimension_numbers<[1], [0], [0], [1], [0, 0, 1, 1], [], []>} : vector<8x384xf32>, vector<384x384xf32>, vector<8x384xf32> -> vector<8x384xf32>
    %c0_140 = arith.constant 0 : index
    %c0_141 = arith.constant 0 : index
    %c0_142 = arith.constant 0 : index
    %129 = vector.load %arg11[%c0_140, %c0_141, %c0_142] : memref<3x8x8xf32, #tpu.memory_space<vmem>>, vector<1x8x8xf32>
    %130 = vector.shape_cast %129 : vector<1x8x8xf32> to vector<8x8xf32>
    %cst_143 = arith.constant dense<0.000000e+00> : vector<8x384xf32>
    %131 = tpu.matmul %130, %128, %cst_143 {dimension_numbers = #tpu.dot_dimension_numbers<[1], [0], [0], [1], [0, 0, 1, 1], [], []>} : vector<8x8xf32>, vector<8x384xf32>, vector<8x384xf32> -> vector<8x384xf32>
    %c4_144 = arith.constant 4 : index
    %c0_145 = arith.constant 0 : index
    %c0_146 = arith.constant 0 : index
    %132 = vector.load %arg6[%c4_144, %c0_145, %c0_146] : memref<6x384x384xf32, #tpu.memory_space<vmem>>, vector<1x384x384xf32>
    %133 = vector.shape_cast %132 : vector<1x384x384xf32> to vector<384x384xf32>
    %cst_147 = arith.constant dense<0.000000e+00> : vector<8x384xf32>
    %134 = tpu.matmul %125, %133, %cst_147 {dimension_numbers = #tpu.dot_dimension_numbers<[1], [0], [0], [1], [0, 0, 1, 1], [], []>} : vector<8x384xf32>, vector<384x384xf32>, vector<8x384xf32> -> vector<8x384xf32>
    %135 = arith.addf %131, %134 : vector<8x384xf32>
    %c5_148 = arith.constant 5 : index
    %c0_149 = arith.constant 0 : index
    %c0_150 = arith.constant 0 : index
    %136 = vector.load %arg6[%c5_148, %c0_149, %c0_150] : memref<6x384x384xf32, #tpu.memory_space<vmem>>, vector<1x384x384xf32>
    %137 = vector.shape_cast %136 : vector<1x384x384xf32> to vector<384x384xf32>
    %cst_151 = arith.constant dense<0.000000e+00> : vector<8x384xf32>
    %138 = tpu.matmul %125, %137, %cst_151 {dimension_numbers = #tpu.dot_dimension_numbers<[1], [0], [0], [1], [0, 0, 1, 1], [], []>} : vector<8x384xf32>, vector<384x384xf32>, vector<8x384xf32> -> vector<8x384xf32>
    %c2_152 = arith.constant 2 : index
    %c0_153 = arith.constant 0 : index
    %c0_154 = arith.constant 0 : index
    %139 = vector.load %arg11[%c2_152, %c0_153, %c0_154] : memref<3x8x8xf32, #tpu.memory_space<vmem>>, vector<1x8x8xf32>
    %140 = vector.shape_cast %139 : vector<1x8x8xf32> to vector<8x8xf32>
    %cst_155 = arith.constant dense<0.000000e+00> : vector<8x384xf32>
    %141 = tpu.matmul %140, %138, %cst_155 {dimension_numbers = #tpu.dot_dimension_numbers<[1], [0], [0], [1], [0, 0, 1, 1], [], []>} : vector<8x8xf32>, vector<8x384xf32>, vector<8x384xf32> -> vector<8x384xf32>
    %142 = arith.addf %135, %141 : vector<8x384xf32>
    %143 = arith.addf %142, %106 : vector<8x384xf32>
    %cst_156 = arith.constant 0.000000e+00 : f32
    %144 = vector.broadcast %cst_156 : f32 to vector<8x384xf32>
    %145 = arith.maximumf %143, %144 : vector<8x384xf32>
    %c0_157 = arith.constant 0 : index
    %c0_158 = arith.constant 0 : index
    %c0_159 = arith.constant 0 : index
    %146 = vector.load %arg15[%c0_157, %c0_158, %c0_159] : memref<3x24x8xf32, #tpu.memory_space<vmem>>, vector<1x24x8xf32>
    %147 = vector.shape_cast %146 : vector<1x24x8xf32> to vector<24x8xf32>
    %c0_160 = arith.constant 0 : index
    %c0_161 = arith.constant 0 : index
    %c0_162 = arith.constant 0 : index
    %148 = vector.load %arg7[%c0_160, %c0_161, %c0_162] : memref<3x384x128xf32, #tpu.memory_space<vmem>>, vector<1x384x128xf32>
    %149 = vector.shape_cast %148 : vector<1x384x128xf32> to vector<384x128xf32>
    %cst_163 = arith.constant dense<0.000000e+00> : vector<8x128xf32>
    %150 = tpu.matmul %145, %149, %cst_163 {dimension_numbers = #tpu.dot_dimension_numbers<[1], [0], [0], [1], [0, 0, 1, 1], [], []>} : vector<8x384xf32>, vector<384x128xf32>, vector<8x128xf32> -> vector<8x128xf32>
    %cst_164 = arith.constant dense<0.000000e+00> : vector<24x128xf32>
    %151 = tpu.matmul %147, %150, %cst_164 {dimension_numbers = #tpu.dot_dimension_numbers<[1], [0], [0], [1], [0, 0, 1, 1], [], []>} : vector<24x8xf32>, vector<8x128xf32>, vector<24x128xf32> -> vector<24x128xf32>
    %c1_165 = arith.constant 1 : index
    %c0_166 = arith.constant 0 : index
    %c0_167 = arith.constant 0 : index
    %152 = vector.load %arg15[%c1_165, %c0_166, %c0_167] : memref<3x24x8xf32, #tpu.memory_space<vmem>>, vector<1x24x8xf32>
    %153 = vector.shape_cast %152 : vector<1x24x8xf32> to vector<24x8xf32>
    %c1_168 = arith.constant 1 : index
    %c0_169 = arith.constant 0 : index
    %c0_170 = arith.constant 0 : index
    %154 = vector.load %arg7[%c1_168, %c0_169, %c0_170] : memref<3x384x128xf32, #tpu.memory_space<vmem>>, vector<1x384x128xf32>
    %155 = vector.shape_cast %154 : vector<1x384x128xf32> to vector<384x128xf32>
    %cst_171 = arith.constant dense<0.000000e+00> : vector<8x128xf32>
    %156 = tpu.matmul %145, %155, %cst_171 {dimension_numbers = #tpu.dot_dimension_numbers<[1], [0], [0], [1], [0, 0, 1, 1], [], []>} : vector<8x384xf32>, vector<384x128xf32>, vector<8x128xf32> -> vector<8x128xf32>
    %cst_172 = arith.constant dense<0.000000e+00> : vector<24x128xf32>
    %157 = tpu.matmul %153, %156, %cst_172 {dimension_numbers = #tpu.dot_dimension_numbers<[1], [0], [0], [1], [0, 0, 1, 1], [], []>} : vector<24x8xf32>, vector<8x128xf32>, vector<24x128xf32> -> vector<24x128xf32>
    %158 = arith.addf %151, %157 : vector<24x128xf32>
    %c2_173 = arith.constant 2 : index
    %c0_174 = arith.constant 0 : index
    %c0_175 = arith.constant 0 : index
    %159 = vector.load %arg15[%c2_173, %c0_174, %c0_175] : memref<3x24x8xf32, #tpu.memory_space<vmem>>, vector<1x24x8xf32>
    %160 = vector.shape_cast %159 : vector<1x24x8xf32> to vector<24x8xf32>
    %c2_176 = arith.constant 2 : index
    %c0_177 = arith.constant 0 : index
    %c0_178 = arith.constant 0 : index
    %161 = vector.load %arg7[%c2_176, %c0_177, %c0_178] : memref<3x384x128xf32, #tpu.memory_space<vmem>>, vector<1x384x128xf32>
    %162 = vector.shape_cast %161 : vector<1x384x128xf32> to vector<384x128xf32>
    %cst_179 = arith.constant dense<0.000000e+00> : vector<8x128xf32>
    %163 = tpu.matmul %145, %162, %cst_179 {dimension_numbers = #tpu.dot_dimension_numbers<[1], [0], [0], [1], [0, 0, 1, 1], [], []>} : vector<8x384xf32>, vector<384x128xf32>, vector<8x128xf32> -> vector<8x128xf32>
    %cst_180 = arith.constant dense<0.000000e+00> : vector<24x128xf32>
    %164 = tpu.matmul %160, %163, %cst_180 {dimension_numbers = #tpu.dot_dimension_numbers<[1], [0], [0], [1], [0, 0, 1, 1], [], []>} : vector<24x8xf32>, vector<8x128xf32>, vector<24x128xf32> -> vector<24x128xf32>
    %165 = arith.addf %158, %164 : vector<24x128xf32>
    %c0_181 = arith.constant 0 : index
    %c0_182 = arith.constant 0 : index
    %c0_183 = arith.constant 0 : index
    %166 = vector.load %arg13[%c0_181, %c0_182, %c0_183] : memref<2x48x24xf32, #tpu.memory_space<vmem>>, vector<1x48x24xf32>
    %167 = vector.shape_cast %166 : vector<1x48x24xf32> to vector<48x24xf32>
    %c0_184 = arith.constant 0 : index
    %c0_185 = arith.constant 0 : index
    %c0_186 = arith.constant 0 : index
    %168 = vector.load %arg8[%c0_184, %c0_185, %c0_186] : memref<2x128x128xf32, #tpu.memory_space<vmem>>, vector<1x128x128xf32>
    %169 = vector.shape_cast %168 : vector<1x128x128xf32> to vector<128x128xf32>
    %cst_187 = arith.constant dense<0.000000e+00> : vector<24x128xf32>
    %170 = tpu.matmul %165, %169, %cst_187 {dimension_numbers = #tpu.dot_dimension_numbers<[1], [0], [0], [1], [0, 0, 1, 1], [], []>} : vector<24x128xf32>, vector<128x128xf32>, vector<24x128xf32> -> vector<24x128xf32>
    %cst_188 = arith.constant dense<0.000000e+00> : vector<48x128xf32>
    %171 = tpu.matmul %167, %170, %cst_188 {dimension_numbers = #tpu.dot_dimension_numbers<[1], [0], [0], [1], [0, 0, 1, 1], [], []>} : vector<48x24xf32>, vector<24x128xf32>, vector<48x128xf32> -> vector<48x128xf32>
    %c1_189 = arith.constant 1 : index
    %c0_190 = arith.constant 0 : index
    %c0_191 = arith.constant 0 : index
    %172 = vector.load %arg13[%c1_189, %c0_190, %c0_191] : memref<2x48x24xf32, #tpu.memory_space<vmem>>, vector<1x48x24xf32>
    %173 = vector.shape_cast %172 : vector<1x48x24xf32> to vector<48x24xf32>
    %c1_192 = arith.constant 1 : index
    %c0_193 = arith.constant 0 : index
    %c0_194 = arith.constant 0 : index
    %174 = vector.load %arg8[%c1_192, %c0_193, %c0_194] : memref<2x128x128xf32, #tpu.memory_space<vmem>>, vector<1x128x128xf32>
    %175 = vector.shape_cast %174 : vector<1x128x128xf32> to vector<128x128xf32>
    %cst_195 = arith.constant dense<0.000000e+00> : vector<24x128xf32>
    %176 = tpu.matmul %165, %175, %cst_195 {dimension_numbers = #tpu.dot_dimension_numbers<[1], [0], [0], [1], [0, 0, 1, 1], [], []>} : vector<24x128xf32>, vector<128x128xf32>, vector<24x128xf32> -> vector<24x128xf32>
    %cst_196 = arith.constant dense<0.000000e+00> : vector<48x128xf32>
    %177 = tpu.matmul %173, %176, %cst_196 {dimension_numbers = #tpu.dot_dimension_numbers<[1], [0], [0], [1], [0, 0, 1, 1], [], []>} : vector<48x24xf32>, vector<24x128xf32>, vector<48x128xf32> -> vector<48x128xf32>
    %178 = arith.addf %171, %177 : vector<48x128xf32>
    %cst_197 = arith.constant 0.000000e+00 : f32
    %179 = vector.broadcast %cst_197 : f32 to vector<48x128xf32>
    %180 = arith.maximumf %178, %179 : vector<48x128xf32>
    %181 = arith.addf %180, %32 : vector<48x128xf32>
    %c6 = arith.constant 6 : index
    %c0_198 = arith.constant 0 : index
    %c0_199 = arith.constant 0 : index
    %182 = vector.load %arg3[%c6, %c0_198, %c0_199] : memref<18x128x128xf32, #tpu.memory_space<vmem>>, vector<1x128x128xf32>
    %183 = vector.shape_cast %182 : vector<1x128x128xf32> to vector<128x128xf32>
    %cst_200 = arith.constant dense<0.000000e+00> : vector<48x128xf32>
    %184 = tpu.matmul %181, %183, %cst_200 {dimension_numbers = #tpu.dot_dimension_numbers<[1], [0], [0], [1], [0, 0, 1, 1], [], []>} : vector<48x128xf32>, vector<128x128xf32>, vector<48x128xf32> -> vector<48x128xf32>
    %c1_201 = arith.constant 1 : index
    %c0_202 = arith.constant 0 : index
    %c0_203 = arith.constant 0 : index
    %185 = vector.load %arg10[%c1_201, %c0_202, %c0_203] : memref<5x48x48xf32, #tpu.memory_space<vmem>>, vector<1x48x48xf32>
    %186 = vector.shape_cast %185 : vector<1x48x48xf32> to vector<48x48xf32>
    %cst_204 = arith.constant dense<0.000000e+00> : vector<48x128xf32>
    %187 = tpu.matmul %186, %184, %cst_204 {dimension_numbers = #tpu.dot_dimension_numbers<[1], [0], [0], [1], [0, 0, 1, 1], [], []>} : vector<48x48xf32>, vector<48x128xf32>, vector<48x128xf32> -> vector<48x128xf32>
    %c7 = arith.constant 7 : index
    %c0_205 = arith.constant 0 : index
    %c0_206 = arith.constant 0 : index
    %188 = vector.load %arg3[%c7, %c0_205, %c0_206] : memref<18x128x128xf32, #tpu.memory_space<vmem>>, vector<1x128x128xf32>
    %189 = vector.shape_cast %188 : vector<1x128x128xf32> to vector<128x128xf32>
    %cst_207 = arith.constant dense<0.000000e+00> : vector<48x128xf32>
    %190 = tpu.matmul %181, %189, %cst_207 {dimension_numbers = #tpu.dot_dimension_numbers<[1], [0], [0], [1], [0, 0, 1, 1], [], []>} : vector<48x128xf32>, vector<128x128xf32>, vector<48x128xf32> -> vector<48x128xf32>
    %191 = arith.addf %187, %190 : vector<48x128xf32>
    %c8 = arith.constant 8 : index
    %c0_208 = arith.constant 0 : index
    %c0_209 = arith.constant 0 : index
    %192 = vector.load %arg3[%c8, %c0_208, %c0_209] : memref<18x128x128xf32, #tpu.memory_space<vmem>>, vector<1x128x128xf32>
    %193 = vector.shape_cast %192 : vector<1x128x128xf32> to vector<128x128xf32>
    %cst_210 = arith.constant dense<0.000000e+00> : vector<48x128xf32>
    %194 = tpu.matmul %181, %193, %cst_210 {dimension_numbers = #tpu.dot_dimension_numbers<[1], [0], [0], [1], [0, 0, 1, 1], [], []>} : vector<48x128xf32>, vector<128x128xf32>, vector<48x128xf32> -> vector<48x128xf32>
    %c3_211 = arith.constant 3 : index
    %c0_212 = arith.constant 0 : index
    %c0_213 = arith.constant 0 : index
    %195 = vector.load %arg10[%c3_211, %c0_212, %c0_213] : memref<5x48x48xf32, #tpu.memory_space<vmem>>, vector<1x48x48xf32>
    %196 = vector.shape_cast %195 : vector<1x48x48xf32> to vector<48x48xf32>
    %cst_214 = arith.constant dense<0.000000e+00> : vector<48x128xf32>
    %197 = tpu.matmul %196, %194, %cst_214 {dimension_numbers = #tpu.dot_dimension_numbers<[1], [0], [0], [1], [0, 0, 1, 1], [], []>} : vector<48x48xf32>, vector<48x128xf32>, vector<48x128xf32> -> vector<48x128xf32>
    %198 = arith.addf %191, %197 : vector<48x128xf32>
    %cst_215 = arith.constant 0.000000e+00 : f32
    %199 = vector.broadcast %cst_215 : f32 to vector<48x128xf32>
    %200 = arith.maximumf %198, %199 : vector<48x128xf32>
    %c9 = arith.constant 9 : index
    %c0_216 = arith.constant 0 : index
    %c0_217 = arith.constant 0 : index
    %201 = vector.load %arg3[%c9, %c0_216, %c0_217] : memref<18x128x128xf32, #tpu.memory_space<vmem>>, vector<1x128x128xf32>
    %202 = vector.shape_cast %201 : vector<1x128x128xf32> to vector<128x128xf32>
    %cst_218 = arith.constant dense<0.000000e+00> : vector<48x128xf32>
    %203 = tpu.matmul %200, %202, %cst_218 {dimension_numbers = #tpu.dot_dimension_numbers<[1], [0], [0], [1], [0, 0, 1, 1], [], []>} : vector<48x128xf32>, vector<128x128xf32>, vector<48x128xf32> -> vector<48x128xf32>
    %c1_219 = arith.constant 1 : index
    %c0_220 = arith.constant 0 : index
    %c0_221 = arith.constant 0 : index
    %204 = vector.load %arg10[%c1_219, %c0_220, %c0_221] : memref<5x48x48xf32, #tpu.memory_space<vmem>>, vector<1x48x48xf32>
    %205 = vector.shape_cast %204 : vector<1x48x48xf32> to vector<48x48xf32>
    %cst_222 = arith.constant dense<0.000000e+00> : vector<48x128xf32>
    %206 = tpu.matmul %205, %203, %cst_222 {dimension_numbers = #tpu.dot_dimension_numbers<[1], [0], [0], [1], [0, 0, 1, 1], [], []>} : vector<48x48xf32>, vector<48x128xf32>, vector<48x128xf32> -> vector<48x128xf32>
    %c10 = arith.constant 10 : index
    %c0_223 = arith.constant 0 : index
    %c0_224 = arith.constant 0 : index
    %207 = vector.load %arg3[%c10, %c0_223, %c0_224] : memref<18x128x128xf32, #tpu.memory_space<vmem>>, vector<1x128x128xf32>
    %208 = vector.shape_cast %207 : vector<1x128x128xf32> to vector<128x128xf32>
    %cst_225 = arith.constant dense<0.000000e+00> : vector<48x128xf32>
    %209 = tpu.matmul %200, %208, %cst_225 {dimension_numbers = #tpu.dot_dimension_numbers<[1], [0], [0], [1], [0, 0, 1, 1], [], []>} : vector<48x128xf32>, vector<128x128xf32>, vector<48x128xf32> -> vector<48x128xf32>
    %210 = arith.addf %206, %209 : vector<48x128xf32>
    %c11 = arith.constant 11 : index
    %c0_226 = arith.constant 0 : index
    %c0_227 = arith.constant 0 : index
    %211 = vector.load %arg3[%c11, %c0_226, %c0_227] : memref<18x128x128xf32, #tpu.memory_space<vmem>>, vector<1x128x128xf32>
    %212 = vector.shape_cast %211 : vector<1x128x128xf32> to vector<128x128xf32>
    %cst_228 = arith.constant dense<0.000000e+00> : vector<48x128xf32>
    %213 = tpu.matmul %200, %212, %cst_228 {dimension_numbers = #tpu.dot_dimension_numbers<[1], [0], [0], [1], [0, 0, 1, 1], [], []>} : vector<48x128xf32>, vector<128x128xf32>, vector<48x128xf32> -> vector<48x128xf32>
    %c3_229 = arith.constant 3 : index
    %c0_230 = arith.constant 0 : index
    %c0_231 = arith.constant 0 : index
    %214 = vector.load %arg10[%c3_229, %c0_230, %c0_231] : memref<5x48x48xf32, #tpu.memory_space<vmem>>, vector<1x48x48xf32>
    %215 = vector.shape_cast %214 : vector<1x48x48xf32> to vector<48x48xf32>
    %cst_232 = arith.constant dense<0.000000e+00> : vector<48x128xf32>
    %216 = tpu.matmul %215, %213, %cst_232 {dimension_numbers = #tpu.dot_dimension_numbers<[1], [0], [0], [1], [0, 0, 1, 1], [], []>} : vector<48x48xf32>, vector<48x128xf32>, vector<48x128xf32> -> vector<48x128xf32>
    %217 = arith.addf %210, %216 : vector<48x128xf32>
    %218 = arith.addf %217, %181 : vector<48x128xf32>
    %cst_233 = arith.constant 0.000000e+00 : f32
    %219 = vector.broadcast %cst_233 : f32 to vector<48x128xf32>
    %220 = arith.maximumf %218, %219 : vector<48x128xf32>
    %c12 = arith.constant 12 : index
    %c0_234 = arith.constant 0 : index
    %c0_235 = arith.constant 0 : index
    %221 = vector.load %arg3[%c12, %c0_234, %c0_235] : memref<18x128x128xf32, #tpu.memory_space<vmem>>, vector<1x128x128xf32>
    %222 = vector.shape_cast %221 : vector<1x128x128xf32> to vector<128x128xf32>
    %cst_236 = arith.constant dense<0.000000e+00> : vector<48x128xf32>
    %223 = tpu.matmul %220, %222, %cst_236 {dimension_numbers = #tpu.dot_dimension_numbers<[1], [0], [0], [1], [0, 0, 1, 1], [], []>} : vector<48x128xf32>, vector<128x128xf32>, vector<48x128xf32> -> vector<48x128xf32>
    %c1_237 = arith.constant 1 : index
    %c0_238 = arith.constant 0 : index
    %c0_239 = arith.constant 0 : index
    %224 = vector.load %arg10[%c1_237, %c0_238, %c0_239] : memref<5x48x48xf32, #tpu.memory_space<vmem>>, vector<1x48x48xf32>
    %225 = vector.shape_cast %224 : vector<1x48x48xf32> to vector<48x48xf32>
    %cst_240 = arith.constant dense<0.000000e+00> : vector<48x128xf32>
    %226 = tpu.matmul %225, %223, %cst_240 {dimension_numbers = #tpu.dot_dimension_numbers<[1], [0], [0], [1], [0, 0, 1, 1], [], []>} : vector<48x48xf32>, vector<48x128xf32>, vector<48x128xf32> -> vector<48x128xf32>
    %c13 = arith.constant 13 : index
    %c0_241 = arith.constant 0 : index
    %c0_242 = arith.constant 0 : index
    %227 = vector.load %arg3[%c13, %c0_241, %c0_242] : memref<18x128x128xf32, #tpu.memory_space<vmem>>, vector<1x128x128xf32>
    %228 = vector.shape_cast %227 : vector<1x128x128xf32> to vector<128x128xf32>
    %cst_243 = arith.constant dense<0.000000e+00> : vector<48x128xf32>
    %229 = tpu.matmul %220, %228, %cst_243 {dimension_numbers = #tpu.dot_dimension_numbers<[1], [0], [0], [1], [0, 0, 1, 1], [], []>} : vector<48x128xf32>, vector<128x128xf32>, vector<48x128xf32> -> vector<48x128xf32>
    %230 = arith.addf %226, %229 : vector<48x128xf32>
    %c14 = arith.constant 14 : index
    %c0_244 = arith.constant 0 : index
    %c0_245 = arith.constant 0 : index
    %231 = vector.load %arg3[%c14, %c0_244, %c0_245] : memref<18x128x128xf32, #tpu.memory_space<vmem>>, vector<1x128x128xf32>
    %232 = vector.shape_cast %231 : vector<1x128x128xf32> to vector<128x128xf32>
    %cst_246 = arith.constant dense<0.000000e+00> : vector<48x128xf32>
    %233 = tpu.matmul %220, %232, %cst_246 {dimension_numbers = #tpu.dot_dimension_numbers<[1], [0], [0], [1], [0, 0, 1, 1], [], []>} : vector<48x128xf32>, vector<128x128xf32>, vector<48x128xf32> -> vector<48x128xf32>
    %c3_247 = arith.constant 3 : index
    %c0_248 = arith.constant 0 : index
    %c0_249 = arith.constant 0 : index
    %234 = vector.load %arg10[%c3_247, %c0_248, %c0_249] : memref<5x48x48xf32, #tpu.memory_space<vmem>>, vector<1x48x48xf32>
    %235 = vector.shape_cast %234 : vector<1x48x48xf32> to vector<48x48xf32>
    %cst_250 = arith.constant dense<0.000000e+00> : vector<48x128xf32>
    %236 = tpu.matmul %235, %233, %cst_250 {dimension_numbers = #tpu.dot_dimension_numbers<[1], [0], [0], [1], [0, 0, 1, 1], [], []>} : vector<48x48xf32>, vector<48x128xf32>, vector<48x128xf32> -> vector<48x128xf32>
    %237 = arith.addf %230, %236 : vector<48x128xf32>
    %cst_251 = arith.constant 0.000000e+00 : f32
    %238 = vector.broadcast %cst_251 : f32 to vector<48x128xf32>
    %239 = arith.maximumf %237, %238 : vector<48x128xf32>
    %c15 = arith.constant 15 : index
    %c0_252 = arith.constant 0 : index
    %c0_253 = arith.constant 0 : index
    %240 = vector.load %arg3[%c15, %c0_252, %c0_253] : memref<18x128x128xf32, #tpu.memory_space<vmem>>, vector<1x128x128xf32>
    %241 = vector.shape_cast %240 : vector<1x128x128xf32> to vector<128x128xf32>
    %cst_254 = arith.constant dense<0.000000e+00> : vector<48x128xf32>
    %242 = tpu.matmul %239, %241, %cst_254 {dimension_numbers = #tpu.dot_dimension_numbers<[1], [0], [0], [1], [0, 0, 1, 1], [], []>} : vector<48x128xf32>, vector<128x128xf32>, vector<48x128xf32> -> vector<48x128xf32>
    %c1_255 = arith.constant 1 : index
    %c0_256 = arith.constant 0 : index
    %c0_257 = arith.constant 0 : index
    %243 = vector.load %arg10[%c1_255, %c0_256, %c0_257] : memref<5x48x48xf32, #tpu.memory_space<vmem>>, vector<1x48x48xf32>
    %244 = vector.shape_cast %243 : vector<1x48x48xf32> to vector<48x48xf32>
    %cst_258 = arith.constant dense<0.000000e+00> : vector<48x128xf32>
    %245 = tpu.matmul %244, %242, %cst_258 {dimension_numbers = #tpu.dot_dimension_numbers<[1], [0], [0], [1], [0, 0, 1, 1], [], []>} : vector<48x48xf32>, vector<48x128xf32>, vector<48x128xf32> -> vector<48x128xf32>
    %c16 = arith.constant 16 : index
    %c0_259 = arith.constant 0 : index
    %c0_260 = arith.constant 0 : index
    %246 = vector.load %arg3[%c16, %c0_259, %c0_260] : memref<18x128x128xf32, #tpu.memory_space<vmem>>, vector<1x128x128xf32>
    %247 = vector.shape_cast %246 : vector<1x128x128xf32> to vector<128x128xf32>
    %cst_261 = arith.constant dense<0.000000e+00> : vector<48x128xf32>
    %248 = tpu.matmul %239, %247, %cst_261 {dimension_numbers = #tpu.dot_dimension_numbers<[1], [0], [0], [1], [0, 0, 1, 1], [], []>} : vector<48x128xf32>, vector<128x128xf32>, vector<48x128xf32> -> vector<48x128xf32>
    %249 = arith.addf %245, %248 : vector<48x128xf32>
    %c17 = arith.constant 17 : index
    %c0_262 = arith.constant 0 : index
    %c0_263 = arith.constant 0 : index
    %250 = vector.load %arg3[%c17, %c0_262, %c0_263] : memref<18x128x128xf32, #tpu.memory_space<vmem>>, vector<1x128x128xf32>
    %251 = vector.shape_cast %250 : vector<1x128x128xf32> to vector<128x128xf32>
    %cst_264 = arith.constant dense<0.000000e+00> : vector<48x128xf32>
    %252 = tpu.matmul %239, %251, %cst_264 {dimension_numbers = #tpu.dot_dimension_numbers<[1], [0], [0], [1], [0, 0, 1, 1], [], []>} : vector<48x128xf32>, vector<128x128xf32>, vector<48x128xf32> -> vector<48x128xf32>
    %c3_265 = arith.constant 3 : index
    %c0_266 = arith.constant 0 : index
    %c0_267 = arith.constant 0 : index
    %253 = vector.load %arg10[%c3_265, %c0_266, %c0_267] : memref<5x48x48xf32, #tpu.memory_space<vmem>>, vector<1x48x48xf32>
    %254 = vector.shape_cast %253 : vector<1x48x48xf32> to vector<48x48xf32>
    %cst_268 = arith.constant dense<0.000000e+00> : vector<48x128xf32>
    %255 = tpu.matmul %254, %252, %cst_268 {dimension_numbers = #tpu.dot_dimension_numbers<[1], [0], [0], [1], [0, 0, 1, 1], [], []>} : vector<48x48xf32>, vector<48x128xf32>, vector<48x128xf32> -> vector<48x128xf32>
    %256 = arith.addf %249, %255 : vector<48x128xf32>
    %257 = arith.addf %256, %220 : vector<48x128xf32>
    %cst_269 = arith.constant 0.000000e+00 : f32
    %258 = vector.broadcast %cst_269 : f32 to vector<48x128xf32>
    %259 = arith.maximumf %257, %258 : vector<48x128xf32>
    %c0_270 = arith.constant 0 : index
    %c0_271 = arith.constant 0 : index
    %260 = vector.load %arg9[%c0_270, %c0_271] : memref<128x128xf32, #tpu.memory_space<vmem>>, vector<128x128xf32>
    %cst_272 = arith.constant dense<0.000000e+00> : vector<48x128xf32>
    %261 = tpu.matmul %259, %260, %cst_272 {dimension_numbers = #tpu.dot_dimension_numbers<[1], [0], [0], [1], [0, 0, 1, 1], [], []>} : vector<48x128xf32>, vector<128x128xf32>, vector<48x128xf32> -> vector<48x128xf32>
    %c0_273 = arith.constant 0 : index
    %c0_274 = arith.constant 0 : index
    %c0_275 = arith.constant 0 : index
    %262 = vector.load %arg16[%c0_273, %c0_274, %c0_275] : memref<1x48x128xf32, #tpu.memory_space<vmem>>, vector<1x48x128xf32>
    %263 = vector.shape_cast %262 : vector<1x48x128xf32> to vector<48x128xf32>
    %264 = vector.shape_cast %261 : vector<48x128xf32> to vector<1x48x128xf32>
    tpu.vector_store %arg16[%c0_273, %c0_274, %c0_275], %264 {strides = array<i32>} : memref<1x48x128xf32, #tpu.memory_space<vmem>>, vector<1x48x128xf32>,
    return
  }
  func.func @transform_0(%arg0: i32) -> (i32, i32, i32) {
    %c0_i32 = arith.constant 0 : i32
    %c0_i32_0 = arith.constant 0 : i32
    %c0_i32_1 = arith.constant 0 : i32
    return %arg0, %c0_i32, %c0_i32_0 : i32, i32, i32
  }
  func.func @transform_1(%arg0: i32) -> (i32, i32, i32) {
    %c0_i32 = arith.constant 0 : i32
    %c0_i32_0 = arith.constant 0 : i32
    %c0_i32_1 = arith.constant 0 : i32
    %c0_i32_2 = arith.constant 0 : i32
    return %c0_i32, %c0_i32_0, %c0_i32_1 : i32, i32, i32
  }
  func.func @transform_2(%arg0: i32) -> (i32, i32, i32) {
    %c0_i32 = arith.constant 0 : i32
    %c0_i32_0 = arith.constant 0 : i32
    %c0_i32_1 = arith.constant 0 : i32
    %c0_i32_2 = arith.constant 0 : i32
    return %c0_i32, %c0_i32_0, %c0_i32_1 : i32, i32, i32
  }
  func.func @transform_3(%arg0: i32) -> (i32, i32, i32) {
    %c0_i32 = arith.constant 0 : i32
    %c0_i32_0 = arith.constant 0 : i32
    %c0_i32_1 = arith.constant 0 : i32
    %c0_i32_2 = arith.constant 0 : i32
    return %c0_i32, %c0_i32_0, %c0_i32_1 : i32, i32, i32
  }
  func.func @transform_4(%arg0: i32) -> (i32, i32, i32) {
    %c0_i32 = arith.constant 0 : i32
    %c0_i32_0 = arith.constant 0 : i32
    %c0_i32_1 = arith.constant 0 : i32
    %c0_i32_2 = arith.constant 0 : i32
    return %c0_i32, %c0_i32_0, %c0_i32_1 : i32, i32, i32
  }
  func.func @transform_5(%arg0: i32) -> (i32, i32, i32) {
    %c0_i32 = arith.constant 0 : i32
    %c0_i32_0 = arith.constant 0 : i32
    %c0_i32_1 = arith.constant 0 : i32
    %c0_i32_2 = arith.constant 0 : i32
    return %c0_i32, %c0_i32_0, %c0_i32_1 : i32, i32, i32
  }
  func.func @transform_6(%arg0: i32) -> (i32, i32, i32) {
    %c0_i32 = arith.constant 0 : i32
    %c0_i32_0 = arith.constant 0 : i32
    %c0_i32_1 = arith.constant 0 : i32
    %c0_i32_2 = arith.constant 0 : i32
    return %c0_i32, %c0_i32_0, %c0_i32_1 : i32, i32, i32
  }
  func.func @transform_7(%arg0: i32) -> (i32, i32, i32) {
    %c0_i32 = arith.constant 0 : i32
    %c0_i32_0 = arith.constant 0 : i32
    %c0_i32_1 = arith.constant 0 : i32
    %c0_i32_2 = arith.constant 0 : i32
    return %c0_i32, %c0_i32_0, %c0_i32_1 : i32, i32, i32
  }
  func.func @transform_8(%arg0: i32) -> (i32, i32) {
    %c0_i32 = arith.constant 0 : i32
    %c0_i32_0 = arith.constant 0 : i32
    %c0_i32_1 = arith.constant 0 : i32
    return %c0_i32, %c0_i32_0 : i32, i32
  }
  func.func @transform_9(%arg0: i32) -> (i32, i32, i32) {
    %c0_i32 = arith.constant 0 : i32
    %c0_i32_0 = arith.constant 0 : i32
    %c0_i32_1 = arith.constant 0 : i32
    %c0_i32_2 = arith.constant 0 : i32
    return %c0_i32, %c0_i32_0, %c0_i32_1 : i32, i32, i32
  }
  func.func @transform_10(%arg0: i32) -> (i32, i32, i32) {
    %c0_i32 = arith.constant 0 : i32
    %c0_i32_0 = arith.constant 0 : i32
    %c0_i32_1 = arith.constant 0 : i32
    %c0_i32_2 = arith.constant 0 : i32
    return %c0_i32, %c0_i32_0, %c0_i32_1 : i32, i32, i32
  }
  func.func @transform_11(%arg0: i32) -> (i32, i32, i32) {
    %c0_i32 = arith.constant 0 : i32
    %c0_i32_0 = arith.constant 0 : i32
    %c0_i32_1 = arith.constant 0 : i32
    %c0_i32_2 = arith.constant 0 : i32
    return %c0_i32, %c0_i32_0, %c0_i32_1 : i32, i32, i32
  }
  func.func @transform_12(%arg0: i32) -> (i32, i32, i32) {
    %c0_i32 = arith.constant 0 : i32
    %c0_i32_0 = arith.constant 0 : i32
    %c0_i32_1 = arith.constant 0 : i32
    %c0_i32_2 = arith.constant 0 : i32
    return %c0_i32, %c0_i32_0, %c0_i32_1 : i32, i32, i32
  }
  func.func @transform_13(%arg0: i32) -> (i32, i32, i32) {
    %c0_i32 = arith.constant 0 : i32
    %c0_i32_0 = arith.constant 0 : i32
    %c0_i32_1 = arith.constant 0 : i32
    %c0_i32_2 = arith.constant 0 : i32
    return %c0_i32, %c0_i32_0, %c0_i32_1 : i32, i32, i32
  }
  func.func @transform_14(%arg0: i32) -> (i32, i32, i32) {
    %c0_i32 = arith.constant 0 : i32
    %c0_i32_0 = arith.constant 0 : i32
    %c0_i32_1 = arith.constant 0 : i32
    %c0_i32_2 = arith.constant 0 : i32
    return %c0_i32, %c0_i32_0, %c0_i32_1 : i32, i32, i32
  }
  func.func @transform_15(%arg0: i32) -> (i32, i32, i32) {
    %c0_i32 = arith.constant 0 : i32
    %c0_i32_0 = arith.constant 0 : i32
    %c0_i32_1 = arith.constant 0 : i32
    return %arg0, %c0_i32, %c0_i32_0 : i32, i32, i32
  }
}

</mosaic_0001>

<bundles_post_ra>
// kernel: uresnet_forward.1
= control target key start
LH: loop header
LB: loop body
LE: loop exit
PB: predicated region body
PF: predicated region fallthrough
CT: control target
= control target key end

     0   :  { %s18700_s0 = inlined_call_operand.hbm [shape: f32[2,48,16], index: 0, kind: input, shape index: {}]   ;;  %s18701_s1 = inlined_call_operand.hbm [shape: f32[5,16,128], index: 1, kind: input, shape index: {}]   ;;  %s18702_s2 = inlined_call_operand.hbm [shape: f32[18,128,128], index: 2, kind: input, shape index: {}]   ;;  %s18703_s3 = inlined_call_operand.hbm [shape: f32[2,128,128], index: 3, kind: input, shape index: {}]   ;;  %s18704_s4 = inlined_call_operand.hbm [shape: f32[3,128,384], index: 4, kind: input, shape index: {}]   ;;  %s18705_s5 = inlined_call_operand.hbm [shape: f32[6,384,384], index: 5, kind: input, shape index: {}]   ;;  %s18706_s6 = inlined_call_operand.hbm [shape: f32[3,384,128], index: 6, kind: input, shape index: {}]   ;;  %s18707_s7 = inlined_call_operand.hbm [shape: f32[2,128,128], index: 7, kind: input, shape index: {}]   ;;  %s18708_s8 = inlined_call_operand.hbm [shape: f32[128,128], index: 8, kind: input, shape index: {}]   ;;  %s18709_s9 = inlined_call_operand.hbm [shape: f32[5,48,48], index: 9, kind: input, shape index: {}]   ;;  %s18710_s10 = inlined_call_operand.hbm [shape: f32[3,8,8], index: 10, kind: input, shape index: {}]   ;;  %s18711_s11 = inlined_call_operand.hbm [shape: f32[2,24,48], index: 11, kind: input, shape index: {}]   ;;  %s18712_s12 = inlined_call_operand.vmem [shape: f32[2,48,24], index: 12, kind: input, shape index: {}]   ;;  %s18713_s13 = inlined_call_operand.hbm [shape: f32[3,8,24], index: 13, kind: input, shape index: {}]   ;;  %s18714_s14 = inlined_call_operand.vmem [shape: f32[3,24,8], index: 14, kind: input, shape index: {}]   ;;  %s18715_s15 = inlined_call_operand.vmem [shape: f32[2,48,128], index: 15, kind: output, shape index: {}]  }
   0x1   :  { %18729 = sst [smem:[#allocation32_spill]] %s18700_s0 }
   0x2   :  { %18730 = sst [smem:[#allocation33_spill]] %s18701_s1 }
   0x3   :  { %18731 = sst [smem:[#allocation34_spill]] %s18703_s3 }
   0x4   :  { %18732 = sst [smem:[#allocation35_spill]] %s18712_s12 }
   0x5   :  { %18733 = sst [smem:[#allocation36_spill]] %s18714_s14 }
   0x6   :  { %18734 = sst [smem:[#allocation37_spill]] %s18715_s15 }
   0x7   :  { %20 = vsyncpa [#allocation3], 0 }
   0x8   :  { %22 = vsyncpa [#allocation3 + $0x1], 0 }
   0x9   :  { %23 = vsyncpa [#allocation5], 0 }
   0xa   :  { %24 = vsyncpa [#allocation8], 0 }
   0xb   :  { %25 = vsyncpa [#allocation11], 0 }
   0xc   :  { %26 = vsyncpa [#allocation14], 0 }
   0xd   :  { %27 = vsyncpa [#allocation17], 0 }
   0xe   :  { %28 = vsyncpa [#allocation20], 0  ;;  %s17427_s18 = smov 0   ;;  %s17429_s19 = smov 0  }
   0xf   :  { %s17431_s20 = smov 0   ;;  %s17433_s21 = smov 0  }
  0x10 LB: > { %18735 = sst [smem:[#allocation29_spill]] %s17313_s18  ;;  %s17327_s22 = smov [#allocation4]   ;;  %s17325_s21 = sphi %s17433_s21, %s18773_s21   ;;  %s17321_s20 = sphi %s17431_s20, %s18772_s20   ;;  %s17317_s19 = sphi %s17429_s19, %s18771_s19   ;;  %s17313_s18 = sphi %s17427_s18, %s18770_s18  }
  0x11   : > { %s397_s23 = sshll.u32 %s17327_s22, 4  ;;  %s17448_s24 = sadd.s32 4294967295, %s17325_s21   ;;  %s17453_s23 = int_to_ptr.vmem [resolvable:$true] %s397_s23 }
  0x12   : > { %18736 = sst [smem:[#allocation30_spill]] %s17448_s24  ;;  %p10894_p0 = scmp.ge.s32.totalorder %s17325_s21, 1 }
  0x13   : > { %p18722_p1 = scmp.eq.s32.totalorder %s17448_s24, 0  ;;  %p385_p2 = scmp.lt.s32.totalorder %s17325_s21, 3 }
  0x14   : > { %s17328_s26 = smov [#allocation7]   ;;  %s17329_s29 = smov [#allocation10]  }
  0x15   : > { %p17455_p3 = pnand %p10894_p0, %p385_p2  ;;  %s423_s27 = sshll.u32 %s17328_s26, 4  ;;  %s17467_s27 = int_to_ptr.vmem [resolvable:$true] %s423_s27 }
  0x16   : > { %s17469_s30 = sshll.u32 %s17329_s29, 4  ;;  %s18740_s1 = sld [smem:[#allocation33_spill]]  ;;  %s450_s30 = int_to_ptr.vmem [resolvable:$true] %s17469_s30 }
  0x17   : > { %s18737_s25 = scalar_select %p17455_p3, 1, 0 }
  0x18   : > { %p16758_p4 = pneg %p17455_p3 }
  0x19   : > { %18738 = sst [smem:[#allocation31_spill]] %s18737_s25 }
  0x1a   : > { %p17463_p5 = pnand %p16758_p4, %p18722_p1 }
  0x1c   : > { %s16901_s22 = scalar_lea.hbm %s18740_s1, 1280  ;;  %p17479_p7 = pneg %p17463_p5 }
  0x1d   : > { %p16902_p6 = scmp.ne.s32.totalorder %s18740_s1, %s16901_s22  ;;  %p16908_p10 = scmp.lt.u32.totalorder %s16901_s22, %s18740_s1 }
  0x1f   : > { %p16904_p8 = pnand %p17479_p7, %p16902_p6 }
  0x21   : > { %p16905_p9 = pneg %p16904_p8 }
  0x23   : > { %p16910_p11 = pnand %p16908_p10, %p16905_p9 }
  0x25   : > { %16913 = shalt.err (!%p16910_p11)
}
  0x26   : > { %s16914_s12 = scalar_lea.vmem %s17453_s23, 1280  ;;  %p16922_p2 = scmp.lt.s32.totalorder %s17453_s23, %s17453_s23 }
  0x27   : > { %p16915_p12 = scmp.ne.s32.totalorder %s17453_s23, %s16914_s12  ;;  %p16923_p4 = scmp.lt.s32.totalorder %s16914_s12, %s16914_s12 }
  0x29   : > { %p16917_p13 = pnand %p16915_p12, %p17479_p7  ;;  %p16924_p6 = por %p16923_p4, %p16922_p2 }
  0x2b   : > { %p16918_p0 = pneg %p16917_p13 }
  0x2d   : > { %p16925_p8 = pnand %p16924_p6, %p16918_p0 }
  0x2f   : > { %16928 = shalt.err (!%p16925_p8)
}
  0x30   : > { %s18724_s15 = smov 128   ;;  %s18726_s14 = smov 8  }
  0x31   : > { %16761 = dma.hbm_to_vmem [thread:$0]  (!%p17463_p5), %s18740_s1, 1280, %s17453_s23, [#allocation5], %s18724_s15, %s18724_s15, %s18726_s14  }
  0x32   : > { %s18742_s3 = sld [smem:[#allocation34_spill]] }
  0x38   : > { %s16929_s12 = scalar_lea.hbm %s18742_s3, 4096 }
  0x39   : > { %p16930_p9 = scmp.ne.s32.totalorder %s18742_s3, %s16929_s12  ;;  %p16936_p12 = scmp.lt.u32.totalorder %s16929_s12, %s18742_s3 }
  0x3b   : > { %p16932_p10 = pnand %p16930_p9, %p17479_p7 }
  0x3d   : > { %p16933_p11 = pneg %p16932_p10 }
  0x3f   : > { %p16938_p13 = pnand %p16936_p12, %p16933_p11 }
  0x41   : > { %16941 = shalt.err (!%p16938_p13)
}
  0x42   : > { %s16942_s23 = scalar_lea.vmem %s17467_s27, 4096  ;;  %p16950_p6 = scmp.lt.s32.totalorder %s17467_s27, %s17467_s27 }
  0x43   : > { %p16943_p0 = scmp.ne.s32.totalorder %s17467_s27, %s16942_s23  ;;  %p16951_p8 = scmp.lt.s32.totalorder %s16942_s23, %s16942_s23 }
  0x45   : > { %p16945_p2 = pnand %p16943_p0, %p17479_p7  ;;  %p16952_p9 = por %p16951_p8, %p16950_p6 }
  0x47   : > { %p16946_p4 = pneg %p16945_p2 }
  0x49   : > { %p16953_p10 = pnand %p16952_p9, %p16946_p4 }
  0x4b   : > { %16956 = shalt.err (!%p16953_p10)
}
  0x4c   : > { %16767 = dma.hbm_to_vmem [thread:$0]  (!%p17463_p5), %s18742_s3, 4096, %s17467_s27, [#allocation8], %s18724_s15, %s18724_s15, %s18726_s14  }
  0x4d   : > { %s16957_s16 = scalar_lea.hbm %s18705_s5, 110592 }
  0x4e   : > { %p16958_p11 = scmp.ne.s32.totalorder %s18705_s5, %s16957_s16  ;;  %p16964_p0 = scmp.lt.u32.totalorder %s16957_s16, %s18705_s5 }
  0x50   : > { %p16960_p12 = pnand %p16958_p11, %p17479_p7 }
  0x52   : > { %p16961_p13 = pneg %p16960_p12 }
  0x54   : > { %p16966_p2 = pnand %p16964_p0, %p16961_p13 }
  0x56   : > { %16969 = shalt.err (!%p16966_p2)
}
  0x57   : > { %s16970_s23 = scalar_lea.vmem %s450_s30, 110592  ;;  %p16978_p9 = scmp.lt.s32.totalorder %s450_s30, %s450_s30 }
  0x58   : > { %p16971_p4 = scmp.ne.s32.totalorder %s450_s30, %s16970_s23  ;;  %p16979_p10 = scmp.lt.s32.totalorder %s16970_s23, %s16970_s23 }
  0x5a   : > { %p16973_p6 = pnand %p16971_p4, %p17479_p7  ;;  %p16980_p1 = por %p16979_p10, %p16978_p9 }
  0x5c   : > { %p16974_p8 = pneg %p16973_p6 }
  0x5e   : > { %p16981_p3 = pnand %p16980_p1, %p16974_p8 }
  0x60   : > { %16984 = shalt.err (!%p16981_p3)
}
  0x61   : > { %s18728_s27 = smov 384   ;;  %s17333_s0 = smov 24  }
  0x62   : > { %16773 = dma.hbm_to_vmem [thread:$0]  (!%p17463_p5), %s18705_s5, 110592, %s450_s30, [#allocation11], %s18728_s27, %s18728_s27, %s17333_s0  }
  0x63   : > { %s17334_s25 = smov [#allocation13]   ;;  %s17335_s17 = smov [#allocation16]  }
  0x64   : > { %s475_s16 = sshll.u32 %s17334_s25, 4  ;;  %s501_s22 = sshll.u32 %s17335_s17, 4  ;;  %s476_s16 = int_to_ptr.vmem [resolvable:$true] %s475_s16  ;;  %s502_s22 = int_to_ptr.vmem [resolvable:$true] %s501_s22 }
  0x65   : > { %s16985_s23 = scalar_lea.hbm %s18707_s7, 4096 }
  0x66   : > { %p16986_p1 = scmp.ne.s32.totalorder %s18707_s7, %s16985_s23  ;;  %p16992_p12 = scmp.lt.u32.totalorder %s16985_s23, %s18707_s7 }
  0x68   : > { %p16988_p3 = pnand %p16986_p1, %p17479_p7 }
  0x6a   : > { %p16989_p11 = pneg %p16988_p3 }
  0x6c   : > { %p16994_p13 = pnand %p16992_p12, %p16989_p11 }
  0x6e   : > { %16997 = shalt.err (!%p16994_p13)
}
  0x6f   : > { %s16998_s30 = scalar_lea.vmem %s476_s16, 4096  ;;  %p17006_p6 = scmp.lt.s32.totalorder %s476_s16, %s476_s16 }
  0x70   : > { %p16999_p0 = scmp.ne.s32.totalorder %s476_s16, %s16998_s30  ;;  %p17007_p8 = scmp.lt.s32.totalorder %s16998_s30, %s16998_s30 }
  0x72   : > { %p17001_p2 = pnand %p16999_p0, %p17479_p7  ;;  %p17008_p9 = por %p17007_p8, %p17006_p6 }
  0x74   : > { %p17002_p4 = pneg %p17001_p2 }
  0x76   : > { %p17009_p10 = pnand %p17008_p9, %p17002_p4 }
  0x78   : > { %17012 = shalt.err (!%p17009_p10)
}
  0x79   : > { %s18743_s15 = smov 8   ;;  %s18744_s14 = smov 128  }
  0x7a   : > { %16779 = dma.hbm_to_vmem [thread:$0]  (!%p17463_p5), %s18707_s7, 4096, %s476_s16, [#allocation14], %s18744_s14, %s18744_s14, %s18743_s15  }
  0x7b   : > { %s17013_s25 = scalar_lea.hbm %s18709_s9, 3840 }
  0x7c   : > { %p17014_p1 = scmp.ne.s32.totalorder %s18709_s9, %s17013_s25  ;;  %p17020_p12 = scmp.lt.u32.totalorder %s17013_s25, %s18709_s9 }
  0x7e   : > { %p17016_p3 = pnand %p17014_p1, %p17479_p7 }
  0x80   : > { %p17017_p11 = pneg %p17016_p3 }
  0x82   : > { %p17022_p13 = pnand %p17020_p12, %p17017_p11 }
  0x84   : > { %17025 = shalt.err (!%p17022_p13)
}
  0x85   : > { %s17026_s30 = scalar_lea.vmem %s502_s22, 3840  ;;  %p17034_p6 = scmp.lt.s32.totalorder %s502_s22, %s502_s22 }
  0x86   : > { %p17027_p0 = scmp.ne.s32.totalorder %s502_s22, %s17026_s30  ;;  %p17035_p8 = scmp.lt.s32.totalorder %s17026_s30, %s17026_s30 }
  0x88   : > { %p17029_p2 = pnand %p17027_p0, %p17479_p7  ;;  %p17036_p9 = por %p17035_p8, %p17034_p6 }
  0x8a   : > { %p17030_p4 = pneg %p17029_p2 }
  0x8c   : > { %p17037_p10 = pnand %p17036_p9, %p17030_p4 }
  0x8e   : > { %17040 = shalt.err (!%p17037_p10)
}
  0x8f   : > { %16785 = dma.hbm_to_vmem [thread:$0]  (!%p17463_p5), %s18709_s9, 3840, %s502_s22, [#allocation17], %s18744_s14, %s18744_s14, %s18743_s15  }
  0x90   : > { %s17336_s3 = smov [#allocation19]   ;;  %s17337_s24 = smov [#allocation6]  }
  0x91   : > { %s527_s18 = sshll.u32 %s17336_s3, 4  ;;  %s410_s25 = sshll.u32 %s17337_s24, 4  ;;  %s528_s18 = int_to_ptr.vmem [resolvable:$true] %s527_s18  ;;  %s411_s25 = int_to_ptr.vmem [resolvable:$true] %s410_s25 }
  0x92   : > { %s17041_s12 = scalar_lea.hbm %s18711_s11, 768 }
  0x93   : > { %p17042_p1 = scmp.ne.s32.totalorder %s18711_s11, %s17041_s12  ;;  %p17048_p12 = scmp.lt.u32.totalorder %s17041_s12, %s18711_s11 }
  0x95   : > { %p17044_p3 = pnand %p17042_p1, %p17479_p7 }
  0x97   : > { %p17045_p11 = pneg %p17044_p3 }
  0x99   : > { %p17050_p13 = pnand %p17048_p12, %p17045_p11 }
  0x9b   : > { %17053 = shalt.err (!%p17050_p13)
}
  0x9c   : > { %s17054_s22 = scalar_lea.vmem %s528_s18, 768  ;;  %p17062_p6 = scmp.lt.s32.totalorder %s528_s18, %s528_s18 }
  0x9d   : > { %p17055_p0 = scmp.ne.s32.totalorder %s528_s18, %s17054_s22  ;;  %p17063_p8 = scmp.lt.s32.totalorder %s17054_s22, %s17054_s22 }
  0x9f   : > { %p17057_p2 = pnand %p17055_p0, %p17479_p7  ;;  %p17064_p9 = por %p17063_p8, %p17062_p6 }
  0xa1   : > { %p17058_p4 = pneg %p17057_p2 }
  0xa3   : > { %p17065_p10 = pnand %p17064_p9, %p17058_p4 }
  0xa5   : > { %17068 = shalt.err (!%p17065_p10)
}
  0xa6   : > { %16791 = dma.hbm_to_vmem [thread:$0]  (!%p17463_p5), %s18711_s11, 768, %s528_s18, [#allocation20], %s18744_s14, %s18744_s14, %s18743_s15  }
  0xa7   : > { %s17069_s17 = scalar_lea.hbm %s18702_s2, 36864 }
  0xa8   : > { %p17070_p1 = scmp.ne.s32.totalorder %s18702_s2, %s17069_s17  ;;  %p17076_p12 = scmp.lt.u32.totalorder %s17069_s17, %s18702_s2 }
  0xaa   : > { %p17072_p3 = pnand %p17070_p1, %p17479_p7 }
  0xac   : > { %p17073_p11 = pneg %p17072_p3 }
  0xae   : > { %p17078_p13 = pnand %p17076_p12, %p17073_p11 }
  0xb0   : > { %17081 = shalt.err (!%p17078_p13)
}
  0xb1   : > { %s17082_s16 = scalar_lea.vmem %s411_s25, 36864  ;;  %p17090_p6 = scmp.lt.s32.totalorder %s411_s25, %s411_s25 }
  0xb2   : > { %p17083_p0 = scmp.ne.s32.totalorder %s411_s25, %s17082_s16  ;;  %p17091_p8 = scmp.lt.s32.totalorder %s17082_s16, %s17082_s16 }
  0xb4   : > { %p17085_p2 = pnand %p17083_p0, %p17479_p7  ;;  %p17092_p9 = por %p17091_p8, %p17090_p6 }
  0xb6   : > { %p17086_p4 = pneg %p17085_p2 }
  0xb8   : > { %p17093_p10 = pnand %p17092_p9, %p17086_p4 }
  0xba   : > { %17096 = shalt.err (!%p17093_p10)
}
  0xbb   : > { %16764 = dma.hbm_to_vmem [thread:$0]  (!%p17463_p5), %s18702_s2, 36864, %s411_s25, [#allocation5], %s18744_s14, %s18744_s14, %s18743_s15  }
  0xbc   : > { %s17338_s27 = smov [#allocation9]   ;;  %s17339_s3 = smov [#allocation12]  }
  0xbd   : > { %s436_s1 = sshll.u32 %s17338_s27, 4  ;;  %s462_s24 = sshll.u32 %s17339_s3, 4  ;;  %s437_s1 = int_to_ptr.vmem [resolvable:$true] %s436_s1  ;;  %s463_s24 = int_to_ptr.vmem [resolvable:$true] %s462_s24 }
  0xbe   : > { %s17097_s12 = scalar_lea.hbm %s18704_s4, 18432 }
  0xbf   : > { %p17098_p1 = scmp.ne.s32.totalorder %s18704_s4, %s17097_s12  ;;  %p17104_p12 = scmp.lt.u32.totalorder %s17097_s12, %s18704_s4 }
  0xc1   : > { %p17100_p3 = pnand %p17098_p1, %p17479_p7 }
  0xc3   : > { %p17101_p11 = pneg %p17100_p3 }
  0xc5   : > { %p17106_p13 = pnand %p17104_p12, %p17101_p11 }
  0xc7   : > { %17109 = shalt.err (!%p17106_p13)
}
  0xc8   : > { %s17110_s25 = scalar_lea.vmem %s437_s1, 18432  ;;  %p17118_p6 = scmp.lt.s32.totalorder %s437_s1, %s437_s1 }
  0xc9   : > { %p17111_p0 = scmp.ne.s32.totalorder %s437_s1, %s17110_s25  ;;  %p17119_p8 = scmp.lt.s32.totalorder %s17110_s25, %s17110_s25 }
  0xcb   : > { %p17113_p2 = pnand %p17111_p0, %p17479_p7  ;;  %p17120_p9 = por %p17119_p8, %p17118_p6 }
  0xcd   : > { %p17114_p4 = pneg %p17113_p2 }
  0xcf   : > { %p17121_p10 = pnand %p17120_p9, %p17114_p4 }
  0xd1   : > { %17124 = shalt.err (!%p17121_p10)
}
  0xd2   : > { %s18745_s22 = smov 384   ;;  %s17125_s12 = scalar_lea.hbm %s18706_s6, 18432 }
  0xd3   : > { %16770 = dma.hbm_to_vmem [thread:$0]  (!%p17463_p5), %s18704_s4, 18432, %s437_s1, [#allocation8], %s18745_s22, %s18745_s22, %s17333_s0  }
  0xd4   : > { %p17126_p1 = scmp.ne.s32.totalorder %s18706_s6, %s17125_s12  ;;  %p17132_p12 = scmp.lt.u32.totalorder %s17125_s12, %s18706_s6 }
  0xd6   : > { %p17128_p3 = pnand %p17126_p1, %p17479_p7 }
  0xd8   : > { %p17129_p11 = pneg %p17128_p3 }
  0xda   : > { %p17134_p13 = pnand %p17132_p12, %p17129_p11 }
  0xdc   : > { %17137 = shalt.err (!%p17134_p13)
}
  0xdd   : > { %s17138_s25 = scalar_lea.vmem %s463_s24, 18432  ;;  %p17146_p6 = scmp.lt.s32.totalorder %s463_s24, %s463_s24 }
  0xde   : > { %p17139_p0 = scmp.ne.s32.totalorder %s463_s24, %s17138_s25  ;;  %p17147_p8 = scmp.lt.s32.totalorder %s17138_s25, %s17138_s25 }
  0xe0   : > { %p17141_p2 = pnand %p17139_p0, %p17479_p7  ;;  %p17148_p9 = por %p17147_p8, %p17146_p6 }
  0xe2   : > { %p17142_p4 = pneg %p17141_p2 }
  0xe4   : > { %p17149_p10 = pnand %p17148_p9, %p17142_p4 }
  0xe6   : > { %17152 = shalt.err (!%p17149_p10)
}
  0xe7   : > { %16776 = dma.hbm_to_vmem [thread:$0]  (!%p17463_p5), %s18706_s6, 18432, %s463_s24, [#allocation11], %s18744_s14, %s18744_s14, %s18743_s15  }
  0xe8   : > { %s17340_s22 = smov [#allocation15]   ;;  %s17341_s3 = smov [#allocation18]  }
  0xe9   : > { %s488_s27 = sshll.u32 %s17340_s22, 4  ;;  %s514_s17 = sshll.u32 %s17341_s3, 4  ;;  %s489_s27 = int_to_ptr.vmem [resolvable:$true] %s488_s27  ;;  %s515_s17 = int_to_ptr.vmem [resolvable:$true] %s514_s17 }
  0xea   : > { %s17153_s23 = scalar_lea.hbm %s18708_s8, 2048 }
  0xeb   : > { %p17154_p1 = scmp.ne.s32.totalorder %s18708_s8, %s17153_s23  ;;  %p17160_p12 = scmp.lt.u32.totalorder %s17153_s23, %s18708_s8 }
  0xed   : > { %p17156_p3 = pnand %p17154_p1, %p17479_p7 }
  0xef   : > { %p17157_p11 = pneg %p17156_p3 }
  0xf1   : > { %p17162_p13 = pnand %p17160_p12, %p17157_p11 }
  0xf3   : > { %17165 = shalt.err (!%p17162_p13)
}
  0xf4   : > { %s17166_s24 = scalar_lea.vmem %s489_s27, 2048  ;;  %p17174_p6 = scmp.lt.s32.totalorder %s489_s27, %s489_s27 }
  0xf5   : > { %p17167_p0 = scmp.ne.s32.totalorder %s489_s27, %s17166_s24  ;;  %p17175_p8 = scmp.lt.s32.totalorder %s17166_s24, %s17166_s24 }
  0xf7   : > { %p17169_p2 = pnand %p17167_p0, %p17479_p7  ;;  %p17176_p9 = por %p17175_p8, %p17174_p6 }
  0xf9   : > { %p17170_p4 = pneg %p17169_p2 }
  0xfb   : > { %p17177_p10 = pnand %p17176_p9, %p17170_p4 }
  0xfd   : > { %17180 = shalt.err (!%p17177_p10)
}
  0xfe   : > { %16782 = dma.hbm_to_vmem [thread:$0]  (!%p17463_p5), %s18708_s8, 2048, %s489_s27, [#allocation14], %s18744_s14, %s18744_s14, %s18743_s15  }
  0xff   : > { %s17181_s29 = scalar_lea.hbm %s18710_s10, 384 }
 0x100   : > { %p17182_p1 = scmp.ne.s32.totalorder %s18710_s10, %s17181_s29  ;;  %p17188_p12 = scmp.lt.u32.totalorder %s17181_s29, %s18710_s10 }
 0x102   : > { %p17184_p3 = pnand %p17182_p1, %p17479_p7 }
 0x104   : > { %p17185_p11 = pneg %p17184_p3 }
 0x106   : > { %p17190_p13 = pnand %p17188_p12, %p17185_p11 }
 0x108   : > { %17193 = shalt.err (!%p17190_p13)
}
 0x109   : > { %s17194_s18 = scalar_lea.vmem %s515_s17, 384  ;;  %p17202_p6 = scmp.lt.s32.totalorder %s515_s17, %s515_s17 }
 0x10a   : > { %p17195_p0 = scmp.ne.s32.totalorder %s515_s17, %s17194_s18  ;;  %p17203_p8 = scmp.lt.s32.totalorder %s17194_s18, %s17194_s18 }
 0x10c   : > { %p17197_p2 = pnand %p17195_p0, %p17479_p7  ;;  %p17204_p9 = por %p17203_p8, %p17202_p6 }
 0x10e   : > { %p17198_p4 = pneg %p17197_p2 }
 0x110   : > { %p17205_p10 = pnand %p17204_p9, %p17198_p4 }
 0x112   : > { %17208 = shalt.err (!%p17205_p10)
}
 0x113   : > { %16788 = dma.hbm_to_vmem [thread:$0]  (!%p17463_p5), %s18710_s10, 384, %s515_s17, [#allocation17], %s18744_s14, %s18744_s14, %s18743_s15  }
 0x114   : > { %s17342_s24 = smov [#allocation21]   ;;  %s17209_s3 = scalar_lea.hbm %s18713_s13, 384 }
 0x115   : > { %s543_s0 = sshll.u32 %s17342_s24, 4  ;;  %p17210_p1 = scmp.ne.s32.totalorder %s18713_s13, %s17209_s3  ;;  %s544_s0 = int_to_ptr.vmem [resolvable:$true] %s543_s0 }
 0x116   : > { %p17216_p12 = scmp.lt.u32.totalorder %s17209_s3, %s18713_s13 }
 0x117   : > { %p17212_p3 = pnand %p17210_p1, %p17479_p7 }
 0x119   : > { %p17213_p11 = pneg %p17212_p3 }
 0x11b   : > { %p17218_p13 = pnand %p17216_p12, %p17213_p11 }
 0x11d   : > { %17221 = shalt.err (!%p17218_p13)
}
 0x11e   : > { %s17222_s17 = scalar_lea.vmem %s544_s0, 384  ;;  %p17230_p6 = scmp.lt.s32.totalorder %s544_s0, %s544_s0 }
 0x11f   : > { %p17223_p0 = scmp.ne.s32.totalorder %s544_s0, %s17222_s17  ;;  %p17231_p8 = scmp.lt.s32.totalorder %s17222_s17, %s17222_s17 }
 0x121   : > { %p17225_p2 = pnand %p17223_p0, %p17479_p7  ;;  %p17232_p9 = por %p17231_p8, %p17230_p6 }
 0x123   : > { %p17226_p4 = pneg %p17225_p2 }
 0x125   : > { %p17233_p10 = pnand %p17232_p9, %p17226_p4 }
 0x127   : > { %17236 = shalt.err (!%p17233_p10)
}
 0x128   : > { %s18746_s26 = sld [smem:[#allocation29_spill]]  ;;  %s18747_s27 = sld [smem:[#allocation30_spill]] }
 0x129   : > { %16794 = dma.hbm_to_vmem [thread:$0]  (!%p17463_p5), %s18713_s13, 384, %s544_s0, [#allocation20], %s18744_s14, %s18744_s14, %s18743_s15  }
 0x12a   : > { %s17741_s28 = sadd.s32 1, %s17325_s21   ;;  %s41_s25 = sadd.s32 1, %s17321_s20 }
 0x12b   : > { %s38_s24 = ssub.s32 %s17325_s21, %s17741_s28  ;;  %p48_p7 = scmp.ne.s32.totalorder %s17321_s20, %s17317_s19 }
 0x12c   : > { %p39_p1 = scmp.eq.s32.totalorder %s38_s24, 0  ;;  %p49_p3 = scmp.eq.s32.totalorder %s17325_s21, 0 }
 0x12d   : > { %p16811_p12 = scmp.lt.s32.totalorder %s17325_s21, 2  ;;  %s560_s3 = sand.u32 1, %s17321_s20  }
 0x12e   : > { %p54_p11 = scmp.ne.s32.totalorder %s17317_s19, %s18746_s26  ;;  %p50_p13 = por %p49_p3, %p48_p7 }
 0x12f   : > { %s17753_s1 = scalar_select %p39_p1, %s17321_s20, %s41_s25  }
 0x130   : > { %p18748_p0 = scmp.eq.s32.totalorder %s18747_s27, 0  ;;  %s16705_s0 = smul.u32 768, %s17325_s21 }
 0x131   : > { %s16704_s29 = smul.u32 48, %s560_s3  ;;  %p17763_p5 = pnand %p16811_p12, %p50_p13 }
 0x132   : > { %p17757_p2 = por %p18748_p0, %p54_p11  ;;  %s18751_s17 = sld [smem:[#allocation32_spill]] }
 0x133   : > { %s564_s18 = scalar_lea.vmem [#allocation2], %s16704_s29  ;;  %s17774_s21 = scalar_lea.sflag [#allocation3], %s560_s3 }
 0x134   : > { %s571_s26 = sshll.u32 %s564_s18, 4  ;;  %p17239_p6 = pneg %p17763_p5  ;;  %s17772_s26 = int_to_ptr.vmem [resolvable:$true] %s571_s26 }
 0x138   : > { %s17770_s16 = scalar_lea.hbm %s18751_s17, %s16705_s0  ;;  %s17242_s0 = scalar_lea.hbm %s18751_s17, 1536 }
 0x139   : > { %s17237_s27 = scalar_lea.hbm %s17770_s16, 768  ;;  %p17243_p10 = scmp.lt.u32.totalorder %s17770_s16, %s18751_s17 }
 0x13a   : > { %p17238_p4 = scmp.ne.s32.totalorder %s17770_s16, %s17237_s27  ;;  %p17244_p7 = scmp.lt.u32.totalorder %s17242_s0, %s17237_s27 }
 0x13b   : > { %p17246_p3 = scmp.lt.u32.totalorder %s17237_s27, %s17770_s16 }
 0x13c   : > { %p17240_p8 = pnand %p17239_p6, %p17238_p4  ;;  %p17245_p1 = por %p17244_p7, %p17243_p10 }
 0x13e   : > { %p17241_p9 = pneg %p17240_p8  ;;  %p17247_p11 = por %p17246_p3, %p17245_p1 }
 0x140   : > { %p17248_p12 = pnand %p17247_p11, %p17241_p9 }
 0x142   : > { %17251 = shalt.err (!%p17248_p12)
}
 0x143   : > { %s17252_s3 = scalar_lea.vmem %s17772_s26, 768  ;;  %s17343_s29 = smov [#allocation2]  }
 0x144   : > { %p17253_p13 = scmp.ne.s32.totalorder %s17772_s26, %s17252_s3  ;;  %s17257_s18 = sshll.u32 %s17343_s29, 4  ;;  %s17258_s18 = int_to_ptr.vmem [resolvable:$false] %s17257_s18 }
 0x145   : > { %s17259_s25 = scalar_lea.vmem %s17258_s18, 1536  ;;  %p17260_p8 = scmp.lt.s32.totalorder %s17772_s26, %s17258_s18 }
 0x146   : > { %p17255_p0 = pnand %p17253_p13, %p17239_p6  ;;  %p17261_p10 = scmp.lt.s32.totalorder %s17259_s25, %s17252_s3 }
 0x148   : > { %p17256_p4 = pneg %p17255_p0  ;;  %p17262_p7 = por %p17261_p10, %p17260_p8 }
 0x14a   : > { %p17263_p1 = pnand %p17262_p7, %p17256_p4 }
 0x14c   : > { %17266 = shalt.err (!%p17263_p1)
}
 0x14d   : > { %16798 = dma.hbm_to_vmem [thread:$0]  (!%p17763_p5), %s17770_s16, 768, %s17772_s26, %s17774_s21, %s18744_s14, %s18744_s14, %s18743_s15  }
 0x14e   : > { %s18752_s27 = sld [smem:[#allocation31_spill]] }
 0x154   : > { %p18753_p6 = scmp.ne.s32.totalorder %s18752_s27, 0 }
 0x155   : > { %s585_s24 = sand.u32 (!%p18753_p6), 1, %s17317_s19  }
 0x156   : > { %583 = sbr.rel (%p18753_p6) target bundleno = 8007 (0x1f47), region = 80  ;;  %s586_s23 = scalar_lea.sflag (!%p18753_p6), [#allocation3], %s585_s24 }
 0x157   : > { %s16706_s0 = smul.u32 (!%p18753_p6), 48, %s585_s24 }
 0x159   : > { %s17808_s30 = scalar_lea.vmem (!%p18753_p6), [#allocation2], %s16706_s0 }
 0x15d   : > { %17284 = dma.done.wait (%p17757_p2), %s586_s23, 768  }
 0x15e   : > { %17286 = vsyncadd (%p17757_p2), %s586_s23, 4294966528  ;;  %s18754_s12 = sld [smem:[#allocation30_spill]] }
 0x164   : > { %p18755_p9 = scmp.eq.s32.totalorder %s18754_s12, 0 }
 0x166   : > { %17288 = dma.done.wait (%p18755_p9), [#allocation5], 38144   ;;  %p18756_p5 = pmov %p18755_p9 }
 0x168   : > { %17290 = vsyncadd (%p18756_p5), [#allocation5], 4294929152  ;;  %p18757_p3 = pmov %p18756_p5 }
 0x16a   : > { %17292 = dma.done.wait (%p18757_p3), [#allocation8], 22528   ;;  %p18758_p11 = pmov %p18757_p3 }
 0x16b   : > { %p18759_p12 = pmov %p18757_p3 }
 0x16c   : > { %17294 = vsyncadd (%p18758_p11), [#allocation8], 4294944768 }
 0x16d   : > { %17296 = dma.done.wait (%p18759_p12), [#allocation11], 129024   ;;  %p18760_p13 = pmov %p18757_p3 }
 0x16e   : > { %p18761_p2 = pmov %p18757_p3 }
 0x16f   : > { %17298 = vsyncadd (%p18760_p13), [#allocation11], 4294838272 }
 0x170   : > { %17300 = dma.done.wait (%p18761_p2), [#allocation14], 6144   ;;  %p18762_p0 = pmov %p18761_p2 }
 0x172   : > { %17302 = vsyncadd (%p18762_p0), [#allocation14], 4294961152  ;;  %p18763_p4 = pmov %p18762_p0 }
 0x173   : > { %p18764_p8 = pmov %p18762_p0 }
 0x174   : > { %17304 = dma.done.wait (%p18763_p4), [#allocation17], 4224  }
 0x175   : > { %17306 = vsyncadd (%p18764_p8), [#allocation17], 4294963072  ;;  %p18765_p10 = pmov %p18762_p0 }
 0x176   : > { %p18766_p7 = pmov %p18762_p0 }
 0x177   : > { %17308 = dma.done.wait (%p18765_p10), [#allocation20], 1152  }
 0x178   : > { %17310 = vsyncadd (%p18766_p7), [#allocation20], 4294966144  ;;  %vm697_vm0 = vcmask 130048   ;;  %v818_v0 = vld [vmem:[#allocation4 + $0x10] sm:$0xff]  ;;  %v819_v1 = vld [vmem:[#allocation4 + $0x18] sm:$0xff]  ;;  %vm922_vm1 = vcmask 392192  }
 0x179   : > { %v17839_v2 = vld [vmem:[%s17808_s30] sm:$0xff]  ;;  %v14340_v3 = vpack.c.bf16 %v819_v1, %v818_v0  ;;  %v696_v5 = vld [vmem:[#allocation4 + $0x8] sm:$0xff]  ;;  %v17849_v8 = vld [vmem:[%s17808_s30 + $0x10] sm:$0xff]  ;;  %vm17345_vm2 = vmmov 0   ;;  %vm3194_vm3 = vcmask 195584   ;;  %vm4844_vm4 = vcmask 64512  }
 0x17a   : > { %12437 = vmatprep.mubr.msk.f32.mxu1 %vm697_vm0, %v17839_v2  ;;  %12424 = vmatprep.mubr.msk.f32.mxu0 %vm697_vm0, %v17839_v2  ;;  %v695_v4 = vld [vmem:[#allocation4] sm:$0xff]  ;;  %v17846_v6 = vld [vmem:[%s17808_s30 + $0x8] sm:$0xff]  ;;  %v17856_v9 = vld [vmem:[%s17808_s30 + $0x18] sm:$0xff]  ;;  %s18767_s22 = sld [smem:[#allocation36_spill]]  ;;  %s18768_s29 = sld [smem:[#allocation35_spill]] }
 0x17b   : > { %14341 = vmatprep.subr.bf16.mxu1 %v14340_v3  ;;  %v14336_v7 = vpack.c.bf16 %v696_v5, %v695_v4  ;;  %v17859_v10 = vld [vmem:[%s17808_s30 + $0x20] sm:$0xff]  ;;  %v17870_v11 = vld [vmem:[%s17808_s30 + $0x28] sm:$0xff]  ;;  %p684_p1 = scmp.lt.s32.totalorder %s18754_s12, 1  ;;  %s18769_s3 = sld [smem:[#allocation37_spill]] }
 0x17c   : > { %14343 = vmatpush3.bf16.msra.mxu1 %v14340_v3  ;;  %v17880_v12 = vld [vmem:[#allocation16 + $0x30] sm:$0xff]  ;;  %v1254_v22 = vld [vmem:[#allocation4 + $0x30] sm:$0xff]  ;;  %v1255_v23 = vld [vmem:[#allocation4 + $0x38] sm:$0xff] }
 0x17d   : > { %14337 = vmatprep.subr.bf16.mxu0 %v14336_v7  ;;  %v14372_v30 = vpack.c.bf16 %v1255_v23, %v1254_v22  ;;  %v1478_v31 = vld [vmem:[#allocation4 + $0x40] sm:$0xff]  ;;  %v1479_v32 = vld [vmem:[#allocation4 + $0x48] sm:$0xff]  ;;  %v17886_v37 = vld [vmem:[#allocation16 + $0x40] sm:$0xff]  ;;  %s18775_s12 = smov (!%p684_p1, %s18754_s12), 1 }
 0x17e   : > { %14339 = vmatpush3.bf16.msra.mxu0 %v14336_v7  ;;  %v17884_v35 = vld [vmem:[#allocation16 + $0x38] sm:$0xff]  ;;  %v14388_v38 = vpack.c.bf16 %v1479_v32, %v1478_v31  ;;  %v17892_v39 = vld [vmem:[#allocation16 + $0x48] sm:$0xff]  ;;  %v17894_v40 = vld [vmem:[#allocation16 + $0x50] sm:$0xff]  ;;  %s16707_s16 = smul.u32 48, %s18775_s12 }
 0x17f   : > { %12438 = vmatmul.mubr.msk.f32.vlgmr.msra.gmra.mrb[0].mxu1 %vm697_vm0, %v17846_v6  ;;  %v17900_v41 = vld [vmem:[#allocation16 + $0x58] sm:$0xff]  ;;  %v811_v42 = vld [vmem:[#allocation16] sm:$0xff]  ;;  %v812_v43 = vld [vmem:[#allocation16 + $0x8] sm:$0xff] }
 0x180   : > { %12440 = vmatprep.mubr.msk.f32.mxu1 %vm697_vm0, %v17849_v8  ;;  %v813_v44 = vld [vmem:[#allocation16 + $0x10] sm:$0xff]  ;;  %v814_v45 = vld [vmem:[#allocation16 + $0x18] sm:$0xff]  ;;  %v815_v48 = vld [vmem:[#allocation16 + $0x20] sm:$0xff] }
 0x181   : > { %12425 = vmatmul.mubr.msk.f32.vlgmr.msra.gmra.mrb[0].mxu0 %vm697_vm0, %v17846_v6  ;;  %v1150_v46 = vld [vmem:[#allocation4 + $0x20] sm:$0xff]  ;;  %v1151_v47 = vld [vmem:[#allocation4 + $0x28] sm:$0xff]  ;;  %v816_v50 = vld [vmem:[#allocation16 + $0x28] sm:$0xff]  ;;  %s688_s18 = scalar_lea.vmem %s18769_s3, %s16707_s16 }
 0x182   : > { %12427 = vmatprep.mubr.msk.f32.mxu0 %vm697_vm0, %v17849_v8  ;;  %v14368_v49 = vpack.c.bf16 %v1151_v47, %v1150_v46  ;;  %v17946_v51 = vld [vmem:[#allocation16 + $0x90] sm:$0xff]  ;;  %v1701_v52 = vld [vmem:[#allocation6] sm:$0xff]  ;;  %v1702_v53 = vld [vmem:[#allocation6 + $0x8] sm:$0xff] }
 0x183   : > { %12441 = vmatmul.mubr.msk.f32.gmra.mrb[2].mxu1 %vm697_vm0, %v17856_v9  ;;  %v14404_v54 = vpack.c.bf16 %v1702_v53, %v1701_v52  ;;  %v1703_v55 = vld [vmem:[#allocation6 + $0x10] sm:$0xff]  ;;  %v1704_v56 = vld [vmem:[#allocation6 + $0x18] sm:$0xff]  ;;  %v1705_v58 = vld [vmem:[#allocation6 + $0x20] sm:$0xff] }
 0x184   : > { %12443 = vmatprep.mubr.msk.f32.mxu1 %vm697_vm0, %v17859_v10  ;;  %v14408_v57 = vpack.c.bf16 %v1704_v56, %v1703_v55  ;;  %v1706_v59 = vld [vmem:[#allocation6 + $0x28] sm:$0xff]  ;;  %v1707_v61 = vld [vmem:[#allocation6 + $0x30] sm:$0xff]  ;;  %v1708_v62 = vld [vmem:[#allocation6 + $0x38] sm:$0xff] }
 0x185   : > { %12428 = vmatmul.mubr.msk.f32.gmra.mrb[2].mxu0 %vm697_vm0, %v17856_v9  ;;  %v14412_v60 = vpack.c.bf16 %v1706_v59, %v1705_v58  ;;  %v14416_v63 = vpack.c.bf16 %v1708_v62, %v1707_v61  ;;  %v1709_v0 = vld [vmem:[#allocation6 + $0x40] sm:$0xff]  ;;  %v1710_v1 = vld [vmem:[#allocation6 + $0x48] sm:$0xff]  ;;  %v1711_v3 = vld [vmem:[#allocation6 + $0x50] sm:$0xff] }
 0x186   : > { %12430 = vmatprep.mubr.msk.f32.mxu0 %vm697_vm0, %v17859_v10  ;;  %v1712_v4 = vld [vmem:[#allocation6 + $0x58] sm:$0xff]  ;;  %v1714_v7 = vld [vmem:[#allocation6 + $0x68] sm:$0xff]  ;;  %v1576_v46 = vld [vmem:[#allocation16 + $0xc0] sm:$0xff] }
 0x187   : > { %12444 = vmatmul.mubr.msk.f32.gmra.mrb[4].mxu1 %vm697_vm0, %v17870_v11  ;;  %v14424_v5 = vpack.c.bf16 %v1712_v4, %v1711_v3  ;;  %v17970_v32 = vld [vmem:[#allocation16 + $0xa8] sm:$0xff]  ;;  %v1578_v52 = vld [vmem:[#allocation16 + $0xd0] sm:$0xff]  ;;  %v1579_v56 = vld [vmem:[#allocation16 + $0xd8] sm:$0xff] }
 0x188   : > { %12458 = vmatprep.mubr.msk.f32.mxu1 %vm922_vm1, %v17880_v12  ;;  %v2025_v55 = vld [vmem:[#allocation6 + $0x128] sm:$0xff]  ;;  %v2026_v59 = vld [vmem:[#allocation6 + $0x130] sm:$0xff]  ;;  %v2031_v3 = vld [vmem:[#allocation6 + $0x158] sm:$0xff] }
 0x189   : > { %12431 = vmatmul.mubr.msk.f32.gmra.mrb[4].mxu0 %vm697_vm0, %v17870_v11  ;;  %v1581_v61 = vld [vmem:[#allocation16 + $0xe8] sm:$0xff] }
 0x18a   : > { %12479 = vmatprep.mubr.msk.f32.mxu0 %vm922_vm1, %v811_v42 }
 0x252   : > { %v12439_v13 = vpop.f32.mrb[0].mxu1 }
 0x253   : > { %v886_v14 = vpop.f32.mrb[1].mxu1 }
 0x254   : > { %v14344_v15 = vpack.c.bf16 %v12439_v13, %v886_v14  ;;  %v12426_v16 = vpop.f32.mrb[0].mxu0 }
 0x255   : > { %v782_v18 = vpop.f32.mrb[1].mxu0 }
 0x256   : > { %v12442_v17 = vpop.f32.mrb[2].mxu1  ;;  %14345 = vmatprep.subr.bf16.mxu1 %v14344_v15  ;;  %v14356_v20 = vpack.c.bf16 %v12426_v16, %v782_v18 }
 0x257   : > { %v896_v19 = vpop.f32.mrb[3].mxu1  ;;  %14347 = vmatpush3.bf16.msra.mxu1 %v14344_v15 }
 0x258   : > { %v14348_v21 = vpack.c.bf16 %v12442_v17, %v896_v19  ;;  %v12429_v24 = vpop.f32.mrb[2].mxu0  ;;  %14357 = vmatprep.subr.bf16.mxu0 %v14356_v20 }
 0x259   : > { %v792_v26 = vpop.f32.mrb[3].mxu0  ;;  %14359 = vmatpush3.bf16.msra.mxu0 %v14356_v20 }
 0x25a   : > { %v12445_v25 = vpop.f32.mrb[4].mxu1  ;;  %14349 = vmatprep.subr.bf16.mxu1 %v14348_v21  ;;  %v14360_v28 = vpack.c.bf16 %v12429_v24, %v792_v26 }
 0x25b   : > { %v906_v27 = vpop.f32.mrb[5].mxu1  ;;  %14351 = vmatpush3.bf16.msra.mxu1 %v14348_v21 }
 0x25c   : > { %v14352_v29 = vpack.c.bf16 %v12445_v25, %v906_v27  ;;  %v12432_v33 = vpop.f32.mrb[4].mxu0  ;;  %14361 = vmatprep.subr.bf16.mxu0 %v14360_v28  ;;  %v17962_v27 = vld [vmem:[#allocation16 + $0x98] sm:$0xff] }
 0x25d   : > { %v802_v34 = vpop.f32.mrb[5].mxu0  ;;  %14363 = vmatpush3.bf16.msra.mxu0 %v14360_v28 }
 0x25e   : > { %14353 = vmatprep.subr.bf16.mxu1 %v14352_v29  ;;  %v14364_v36 = vpack.c.bf16 %v12432_v33, %v802_v34  ;;  %v17972_v34 = vld [vmem:[#allocation16 + $0xb0] sm:$0xff] }
 0x25f   : > { %14355 = vmatpush3.bf16.msra.mxu1 %v14352_v29  ;;  %v17964_v29 = vld [vmem:[#allocation16 + $0xa0] sm:$0xff] }
 0x260   : > { %14373 = vmatprep.subr.bf16.mxu1 %v14372_v30  ;;  %14365 = vmatprep.subr.bf16.mxu0 %v14364_v36 }
 0x261   : > { %14367 = vmatpush3.bf16.msra.mxu0 %v14364_v36  ;;  %v2020_v36 = vld [vmem:[#allocation6 + $0x100] sm:$0xff] }
 0x262   : > { %12459 = vmatmul.mubr.msk.f32.vlgmr.msra.gmra.mrb[6].mxu1 %vm922_vm1, %v17884_v35  ;;  %14369 = vmatprep.subr.bf16.mxu0 %v14368_v49 }
 0x263   : > { %12461 = vmatprep.mubr.msk.f32.mxu1 %vm922_vm1, %v17886_v37  ;;  %14375 = vmatpush3.bf16.msra.mxu1 %v14372_v30 }
 0x264   : > { %14389 = vmatprep.subr.bf16.mxu1 %v14388_v38  ;;  %12480 = vmatmul.mubr.msk.f32.vlgmr.msra.gmra.mrb[6].mxu0 %vm922_vm1, %v812_v43 }
 0x265   : > { %12482 = vmatprep.mubr.msk.f32.mxu0 %vm922_vm1, %v813_v44  ;;  %14371 = vmatpush3.bf16.msra.mxu0 %v14368_v49  ;;  %v17978_v44 = vld [vmem:[#allocation16 + $0xb8] sm:$0xff] }
 0x266   : > { %12462 = vmatmul.mubr.msk.f32.gmra.mrb[8].mxu1 %vm922_vm1, %v17892_v39  ;;  %v2023_v49 = vld [vmem:[#allocation6 + $0x118] sm:$0xff] }
 0x267   : > { %12464 = vmatprep.mubr.msk.f32.mxu1 %vm922_vm1, %v17894_v40 }
 0x268   : > { %12483 = vmatmul.mubr.msk.f32.gmra.mrb[8].mxu0 %vm922_vm1, %v814_v45 }
 0x269   : > { %12485 = vmatprep.mubr.msk.f32.mxu0 %vm922_vm1, %v815_v48  ;;  %v2022_v48 = vld [vmem:[#allocation6 + $0x110] sm:$0xff] }
 0x26a   : > { %12465 = vmatmul.mubr.msk.f32.gmra.mrb[10].mxu1 %vm922_vm1, %v17900_v41  ;;  %v14484_v53 = vpack.c.bf16 %v2023_v49, %v2022_v48  ;;  %v1820_v48 = vld [vmem:[#allocation6 + $0xb8] sm:$0xff] }
 0x26b   : > { %12505 = vmatprep.mubr.msk.f32.mxu1 %vm697_vm0, %v17839_v2 }
 0x26c   : > { %12486 = vmatmul.mubr.msk.f32.gmra.mrb[10].mxu0 %vm922_vm1, %v816_v50  ;;  %v1577_v50 = vld [vmem:[#allocation16 + $0xc8] sm:$0xff] }
 0x26d   : > { %12492 = vmatprep.mubr.msk.f32.mxu0 %vm697_vm0, %v17839_v2 }
 0x26e   : > { %12506 = vmatmul.mubr.msk.f32.vlgmr.msra.gmra.mrb[12].mxu1 %vm697_vm0, %v17846_v6 }
 0x26f   : > { %12508 = vmatprep.mubr.msk.f32.mxu1 %vm697_vm0, %v17849_v8  ;;  %14391 = vmatpush3.bf16.msra.mxu1 %v14388_v38  ;;  %v2021_v38 = vld [vmem:[#allocation6 + $0x108] sm:$0xff] }
 0x270   : > { %12493 = vmatmul.mubr.msk.f32.vlgmr.msra.gmra.mrb[6].mxu0 %vm697_vm0, %v17846_v6  ;;  %14405 = vmatprep.subr.bf16.mxu1 %v14404_v54  ;;  %v14480_v47 = vpack.c.bf16 %v2021_v38, %v2020_v36  ;;  %v1817_v38 = vld [vmem:[#allocation6 + $0xa0] sm:$0xff] }
 0x271   : > { %12495 = vmatprep.mubr.msk.f32.mxu0 %vm697_vm0, %v17849_v8 }
 0x272   : > { %12509 = vmatmul.mubr.msk.f32.gmra.mrb[14].mxu1 %vm697_vm0, %v17856_v9 }
 0x273   : > { %12511 = vmatprep.mubr.msk.f32.mxu1 %vm697_vm0, %v17859_v10 }
 0x274   : > { %12496 = vmatmul.mubr.msk.f32.gmra.mrb[8].mxu0 %vm697_vm0, %v17856_v9 }
 0x275   : > { %12498 = vmatprep.mubr.msk.f32.mxu0 %vm697_vm0, %v17859_v10 }
 0x276   : > { %12512 = vmatmul.mubr.msk.f32.gmra.mrb[16].mxu1 %vm697_vm0, %v17870_v11 }
 0x277   : > { %12539 = vmatprep.mubr.msk.f32.mxu1 %vm697_vm0, %v17839_v2  ;;  %v14420_v2 = vpack.c.bf16 %v1710_v1, %v1709_v0  ;;  %v2029_v0 = vld [vmem:[#allocation6 + $0x148] sm:$0xff] }
 0x278   : > { %12499 = vmatmul.mubr.msk.f32.gmra.mrb[10].mxu0 %vm697_vm0, %v17870_v11 }
 0x279   : > { %12526 = vmatprep.mubr.msk.f32.mxu0 %vm922_vm1, %v17946_v51 }
 0x27a   : > { %12540 = vmatmul.mubr.msk.f32.vlgmr.msra.gmra.mrb[18].mxu1 %vm697_vm0, %v17846_v6  ;;  %v1713_v6 = vld [vmem:[#allocation6 + $0x60] sm:$0xff] }
 0x27b   : > { %12542 = vmatprep.mubr.msk.f32.mxu1 %vm697_vm0, %v17849_v8  ;;  %14407 = vmatpush3.bf16.msra.mxu1 %v14404_v54  ;;  %v14428_v8 = vpack.c.bf16 %v1714_v7, %v1713_v6  ;;  %v2024_v54 = vld [vmem:[#allocation6 + $0x120] sm:$0xff]  ;;  %v2033_v6 = vld [vmem:[#allocation6 + $0x168] sm:$0xff] }
 0x27c   : > { %14409 = vmatprep.subr.bf16.mxu1 %v14408_v57  ;;  %v14488_v58 = vpack.c.bf16 %v2025_v55, %v2024_v54  ;;  %v1824_v54 = vld [vmem:[#allocation6 + $0xd8] sm:$0xff] }
 0x27e   : > { %12543 = vmatmul.mubr.msk.f32.gmra.mrb[20].mxu1 %vm697_vm0, %v17856_v9 }
 0x27f   : > { %12545 = vmatprep.mubr.msk.f32.mxu1 %vm697_vm0, %v17859_v10  ;;  %14411 = vmatpush3.bf16.msra.mxu1 %v14408_v57  ;;  %v1580_v57 = vld [vmem:[#allocation16 + $0xe0] sm:$0xff] }
 0x280   : > { %14413 = vmatprep.subr.bf16.mxu1 %v14412_v60 }
 0x282   : > { %12546 = vmatmul.mubr.msk.f32.gmra.mrb[22].mxu1 %vm697_vm0, %v17870_v11 }
 0x283   : > { %14415 = vmatpush3.bf16.msra.mxu1 %v14412_v60  ;;  %v2027_v60 = vld [vmem:[#allocation6 + $0x138] sm:$0xff] }
 0x284   : > { %14417 = vmatprep.subr.bf16.mxu1 %v14416_v63  ;;  %v14492_v62 = vpack.c.bf16 %v2027_v60, %v2026_v59  ;;  %v1827_v59 = vld [vmem:[#allocation6 + $0xf0] sm:$0xff]  ;;  %v1828_v60 = vld [vmem:[#allocation6 + $0xf8] sm:$0xff] }
 0x287   : > { %14419 = vmatpush3.bf16.msra.mxu1 %v14416_v63  ;;  %v2028_v63 = vld [vmem:[#allocation6 + $0x140] sm:$0xff] }
 0x288   : > { %14421 = vmatprep.subr.bf16.mxu1 %v14420_v2  ;;  %v14496_v1 = vpack.c.bf16 %v2029_v0, %v2028_v63  ;;  %v2240_v63 = vld [vmem:[#allocation6 + $0x188] sm:$0xff] }
 0x28b   : > { %14423 = vmatpush3.bf16.msra.mxu1 %v14420_v2  ;;  %v2030_v2 = vld [vmem:[#allocation6 + $0x150] sm:$0xff] }
 0x28c   : > { %14425 = vmatprep.subr.bf16.mxu1 %v14424_v5  ;;  %v14500_v4 = vpack.c.bf16 %v2031_v3, %v2030_v2  ;;  %v2242_v2 = vld [vmem:[#allocation6 + $0x198] sm:$0xff] }
 0x28f   : > { %14427 = vmatpush3.bf16.msra.mxu1 %v14424_v5  ;;  %v2032_v5 = vld [vmem:[#allocation6 + $0x160] sm:$0xff] }
 0x290   : > { %14429 = vmatprep.subr.bf16.mxu1 %v14428_v8  ;;  %v14504_v7 = vpack.c.bf16 %v2033_v6, %v2032_v5  ;;  %v2244_v5 = vld [vmem:[#allocation6 + $0x1a8] sm:$0xff] }
 0x293   : > { %14431 = vmatpush3.bf16.msra.mxu1 %v14428_v8  ;;  %v1715_v8 = vld [vmem:[#allocation6 + $0x70] sm:$0xff] }
 0x335   : > { %v17950_v9 = vpop.f32.mrb[6].mxu1 }
 0x336   : > { %v17952_v10 = vpop.f32.mrb[7].mxu1 }
 0x339   : > { %v17954_v11 = vpop.f32.mrb[8].mxu1 }
 0x33a   : > { %v17956_v13 = vpop.f32.mrb[9].mxu1 }
 0x33d   : > { %v17958_v14 = vpop.f32.mrb[10].mxu1 }
 0x33e   : > { %v17960_v15 = vpop.f32.mrb[11].mxu1 }
 0x341   : > { %v12507_v16 = vpop.f32.mrb[12].mxu1 }
 0x342   : > { %v1322_v17 = vpop.f32.mrb[13].mxu1 }
 0x343   : > { %v14376_v18 = vpack.c.bf16 %v12507_v16, %v1322_v17  ;;  %v1716_v16 = vld [vmem:[#allocation6 + $0x78] sm:$0xff] }
 0x344   : > { %v14432_v17 = vpack.c.bf16 %v1716_v16, %v1715_v8  ;;  %v2246_v8 = vld [vmem:[#allocation6 + $0x1b8] sm:$0xff] }
 0x345   : > { %v12510_v19 = vpop.f32.mrb[14].mxu1  ;;  %14377 = vmatprep.subr.bf16.mxu0 %v14376_v18 }
 0x346   : > { %v1332_v20 = vpop.f32.mrb[15].mxu1  ;;  %14379 = vmatpush3.bf16.msra.mxu0 %v14376_v18  ;;  %v2034_v18 = vld [vmem:[#allocation6 + $0x170] sm:$0xff]  ;;  %14433 = vmatprep.subr.bf16.mxu1 %v14432_v17 }
 0x347   : > { %v14380_v21 = vpack.c.bf16 %v12510_v19, %v1332_v20  ;;  %v2035_v19 = vld [vmem:[#allocation6 + $0x178] sm:$0xff]  ;;  %14435 = vmatpush3.bf16.msra.mxu1 %v14432_v17  ;;  %v2247_v17 = vld [vmem:[#allocation6 + $0x1c0] sm:$0xff] }
 0x348   : > { %v14508_v20 = vpack.c.bf16 %v2035_v19, %v2034_v18  ;;  %v2248_v18 = vld [vmem:[#allocation6 + $0x1c8] sm:$0xff] }
 0x349   : > { %v12513_v22 = vpop.f32.mrb[16].mxu1  ;;  %14381 = vmatprep.subr.bf16.mxu0 %v14380_v21  ;;  %v14540_v19 = vpack.c.bf16 %v2248_v18, %v2247_v17  ;;  %v2364_v17 = vld [vmem:[#allocation6 + $0x268] sm:$0xff] }
 0x34a   : > { %v1342_v23 = vpop.f32.mrb[17].mxu1  ;;  %14383 = vmatpush3.bf16.msra.mxu0 %v14380_v21  ;;  %v1813_v21 = vld [vmem:[#allocation6 + $0x80] sm:$0xff] }
 0x34b   : > { %v14384_v24 = vpack.c.bf16 %v12513_v22, %v1342_v23  ;;  %v1814_v22 = vld [vmem:[#allocation6 + $0x88] sm:$0xff] }
 0x34c   : > { %v14436_v23 = vpack.c.bf16 %v1814_v22, %v1813_v21  ;;  %v2250_v21 = vld [vmem:[#allocation6 + $0x1d8] sm:$0xff] }
 0x34d   : > { %14385 = vmatprep.subr.bf16.mxu0 %v14384_v24  ;;  %v12541_v25 = vpop.f32.mrb[18].mxu1 }
 0x34e   : > { %14387 = vmatpush3.bf16.msra.mxu0 %v14384_v24  ;;  %v1546_v26 = vpop.f32.mrb[19].mxu1  ;;  %14437 = vmatprep.subr.bf16.mxu1 %v14436_v23 }
 0x34f   : > { %v14392_v28 = vpack.c.bf16 %v12541_v25, %v1546_v26  ;;  %v1815_v25 = vld [vmem:[#allocation6 + $0x90] sm:$0xff]  ;;  %v1816_v26 = vld [vmem:[#allocation6 + $0x98] sm:$0xff] }
 0x351   : > { %12527 = vmatmul.mubr.msk.f32.vlgmr.msra.gmra.mrb[6].mxu0 %vm922_vm1, %v17962_v27  ;;  %v12544_v30 = vpop.f32.mrb[20].mxu1  ;;  %14393 = vmatprep.subr.bf16.mxu0 %v14392_v28 }
 0x352   : > { %v1556_v31 = vpop.f32.mrb[21].mxu1  ;;  %14395 = vmatpush3.bf16.msra.mxu0 %v14392_v28  ;;  %12529 = vmatprep.mubr.msk.f32.mxu0 %vm922_vm1, %v17964_v29 }
 0x353   : > { %v14396_v33 = vpack.c.bf16 %v12544_v30, %v1556_v31 }
 0x355   : > { %12530 = vmatmul.mubr.msk.f32.gmra.mrb[8].mxu0 %vm922_vm1, %v17970_v32  ;;  %v12547_v42 = vpop.f32.mrb[22].mxu1  ;;  %14397 = vmatprep.subr.bf16.mxu0 %v14396_v33 }
 0x356   : > { %v1566_v43 = vpop.f32.mrb[23].mxu1  ;;  %14399 = vmatpush3.bf16.msra.mxu0 %v14396_v33  ;;  %12532 = vmatprep.mubr.msk.f32.mxu0 %vm922_vm1, %v17972_v34  ;;  %v14440_v33 = vpack.c.bf16 %v1816_v26, %v1815_v25 }
 0x357   : > { %v14400_v45 = vpack.c.bf16 %v12547_v42, %v1566_v43  ;;  %v1818_v42 = vld [vmem:[#allocation6 + $0xa8] sm:$0xff] }
 0x359   : > { %12533 = vmatmul.mubr.msk.f32.gmra.mrb[10].mxu0 %vm922_vm1, %v17978_v44  ;;  %14401 = vmatprep.subr.bf16.mxu0 %v14400_v45 }
 0x35a   : > { %14403 = vmatpush3.bf16.msra.mxu0 %v14400_v45  ;;  %12560 = vmatprep.mubr.msk.f32.mxu0 %vm922_vm1, %v1576_v46 }
 0x35b   : > { %14481 = vmatprep.subr.bf16.mxu0 %v14480_v47 }
 0x35d   : > { %12561 = vmatmul.mubr.msk.f32.vlgmr.msra.gmra.mrb[6].mxu0 %vm922_vm1, %v1577_v50 }
 0x35e   : > { %12563 = vmatprep.mubr.msk.f32.mxu0 %vm922_vm1, %v1578_v52  ;;  %14483 = vmatpush3.bf16.msra.mxu0 %v14480_v47  ;;  %v1819_v47 = vld [vmem:[#allocation6 + $0xb0] sm:$0xff]  ;;  %v1821_v52 = vld [vmem:[#allocation6 + $0xc0] sm:$0xff] }
 0x35f   : > { %14485 = vmatprep.subr.bf16.mxu0 %v14484_v53  ;;  %v14448_v50 = vpack.c.bf16 %v1820_v48, %v1819_v47 }
 0x361   : > { %12564 = vmatmul.mubr.msk.f32.gmra.mrb[8].mxu0 %vm922_vm1, %v1579_v56  ;;  %v1825_v56 = vld [vmem:[#allocation6 + $0xe0] sm:$0xff] }
 0x362   : > { %12566 = vmatprep.mubr.msk.f32.mxu0 %vm922_vm1, %v1580_v57  ;;  %14487 = vmatpush3.bf16.msra.mxu0 %v14484_v53  ;;  %v1822_v53 = vld [vmem:[#allocation6 + $0xc8] sm:$0xff] }
 0x363   : > { %14489 = vmatprep.subr.bf16.mxu0 %v14488_v58  ;;  %v1826_v57 = vld [vmem:[#allocation6 + $0xe8] sm:$0xff] }
 0x365   : > { %12567 = vmatmul.mubr.msk.f32.gmra.mrb[10].mxu0 %vm922_vm1, %v1581_v61  ;;  %v14464_v61 = vpack.c.bf16 %v1828_v60, %v1827_v59  ;;  %v2354_v59 = vld [vmem:[#allocation6 + $0x218] sm:$0xff] }
 0x366   : > { %14491 = vmatpush3.bf16.msra.mxu0 %v14488_v58  ;;  %v14460_v58 = vpack.c.bf16 %v1826_v57, %v1825_v56  ;;  %v2352_v56 = vld [vmem:[#allocation6 + $0x208] sm:$0xff] }
 0x367   : > { %14493 = vmatprep.subr.bf16.mxu0 %v14492_v62 }
 0x36a   : > { %14495 = vmatpush3.bf16.msra.mxu0 %v14492_v62  ;;  %v2239_v62 = vld [vmem:[#allocation6 + $0x180] sm:$0xff] }
 0x36b   : > { %14497 = vmatprep.subr.bf16.mxu0 %v14496_v1  ;;  %v14524_v0 = vpack.c.bf16 %v2240_v63, %v2239_v62  ;;  %v2356_v62 = vld [vmem:[#allocation6 + $0x228] sm:$0xff] }
 0x36e   : > { %14499 = vmatpush3.bf16.msra.mxu0 %v14496_v1  ;;  %v2241_v1 = vld [vmem:[#allocation6 + $0x190] sm:$0xff] }
 0x36f   : > { %14501 = vmatprep.subr.bf16.mxu0 %v14500_v4  ;;  %v14528_v3 = vpack.c.bf16 %v2242_v2, %v2241_v1  ;;  %v2358_v1 = vld [vmem:[#allocation6 + $0x238] sm:$0xff] }
 0x372   : > { %14503 = vmatpush3.bf16.msra.mxu0 %v14500_v4  ;;  %v2243_v4 = vld [vmem:[#allocation6 + $0x1a0] sm:$0xff] }
 0x373   : > { %14505 = vmatprep.subr.bf16.mxu0 %v14504_v7  ;;  %v14532_v6 = vpack.c.bf16 %v2244_v5, %v2243_v4  ;;  %v2360_v4 = vld [vmem:[#allocation6 + $0x248] sm:$0xff] }
 0x376   : > { %14507 = vmatpush3.bf16.msra.mxu0 %v14504_v7  ;;  %v2245_v7 = vld [vmem:[#allocation6 + $0x1b0] sm:$0xff] }
 0x377   : > { %14509 = vmatprep.subr.bf16.mxu0 %v14508_v20  ;;  %v14536_v16 = vpack.c.bf16 %v2246_v8, %v2245_v7  ;;  %v2362_v7 = vld [vmem:[#allocation6 + $0x258] sm:$0xff] }
 0x37a   : > { %14511 = vmatpush3.bf16.msra.mxu0 %v14508_v20  ;;  %v2249_v20 = vld [vmem:[#allocation6 + $0x1d0] sm:$0xff] }
 0x37b   : > { %14525 = vmatprep.subr.bf16.mxu0 %v14524_v0  ;;  %v14544_v22 = vpack.c.bf16 %v2250_v21, %v2249_v20  ;;  %v2254_v20 = vld [vmem:[#allocation6 + $0x1f8] sm:$0xff] }
 0x430   : > { %v12562_v24 = vpop.f32.mrb[6].mxu0 }
 0x431   : > { %v17989_v28 = vadd.f32 %v12562_v24, %v17950_v9  ;;  %v1666_v30 = vpop.f32.mrb[7].mxu0  ;;  %v2252_v24 = vld [vmem:[#allocation6 + $0x1e8] sm:$0xff] }
 0x432   : > { %v17992_v31 = vadd.f32 %v1666_v30, %v17952_v10  ;;  %v14444_v10 = vpack.c.bf16 %v1818_v42, %v1817_v38 }
 0x434   : > { %v12565_v36 = vpop.f32.mrb[8].mxu0  ;;  %12601 = vmatprep.mubr.f32.mxu1 %v17992_v31  ;;  %12704 = vmatprep.mubr.f32.mxu0 %v17992_v31 }
 0x435   : > { %v17997_v43 = vadd.f32 %v12565_v36, %v17954_v11  ;;  %v1676_v45 = vpop.f32.mrb[9].mxu0  ;;  %12602 = vmatmul.mubr.f32.vlgmr.msra.gmra.mrb[24].mxu1 %v17989_v28  ;;  %12705 = vmatmul.mubr.f32.vlgmr.msra.gmra.mrb[12].mxu0 %v17989_v28 }
 0x436   : > { %v18002_v9 = vadd.f32 %v1676_v45, %v17956_v13  ;;  %14439 = vmatpush3.bf16.msra.mxu1 %v14436_v23  ;;  %14527 = vmatpush3.bf16.msra.mxu0 %v14524_v0  ;;  %v2251_v23 = vld [vmem:[#allocation6 + $0x1e0] sm:$0xff]  ;;  %v2357_v0 = vld [vmem:[#allocation6 + $0x230] sm:$0xff] }
 0x437   : > { %14441 = vmatprep.subr.bf16.mxu1 %v14440_v33  ;;  %14529 = vmatprep.subr.bf16.mxu0 %v14528_v3  ;;  %v14548_v25 = vpack.c.bf16 %v2252_v24, %v2251_v23  ;;  %v14568_v2 = vpack.c.bf16 %v2358_v1, %v2357_v0  ;;  %v2366_v23 = vld [vmem:[#allocation6 + $0x278] sm:$0xff] }
 0x438   : > { %v12568_v46 = vpop.f32.mrb[10].mxu0  ;;  %12604 = vmatprep.mubr.f32.mxu1 %v18002_v9  ;;  %12707 = vmatprep.mubr.f32.mxu0 %v18002_v9  ;;  %v2569_v0 = vld [vmem:[#allocation6 + $0x2d8] sm:$0xff] }
 0x439   : > { %v18007_v11 = vadd.f32 %v12568_v46, %v17958_v14  ;;  %v1686_v49 = vpop.f32.mrb[11].mxu0  ;;  %12605 = vmatmul.mubr.f32.gmra.mrb[26].mxu1 %v17997_v43  ;;  %12708 = vmatmul.mubr.f32.gmra.mrb[14].mxu0 %v17997_v43  ;;  %v14452_v14 = vpack.c.bf16 %v1822_v53, %v1821_v52 }
 0x43a   : > { %v18012_v13 = vadd.f32 %v1686_v49, %v17960_v15  ;;  %14443 = vmatpush3.bf16.msra.mxu1 %v14440_v33  ;;  %v1823_v15 = vld [vmem:[#allocation6 + $0xd0] sm:$0xff]  ;;  %14531 = vmatpush3.bf16.msra.mxu0 %v14528_v3  ;;  %v2359_v3 = vld [vmem:[#allocation6 + $0x240] sm:$0xff] }
 0x43b   : > { %14445 = vmatprep.subr.bf16.mxu1 %v14444_v10  ;;  %v14456_v55 = vpack.c.bf16 %v1824_v54, %v1823_v15  ;;  %14533 = vmatprep.subr.bf16.mxu0 %v14532_v6  ;;  %v14572_v5 = vpack.c.bf16 %v2360_v4, %v2359_v3  ;;  %v2571_v3 = vld [vmem:[#allocation6 + $0x2e8] sm:$0xff] }
 0x43c   : > { %12607 = vmatprep.mubr.f32.mxu1 %v18012_v13  ;;  %12710 = vmatprep.mubr.f32.mxu0 %v18012_v13 }
 0x43d   : > { %12608 = vmatmul.mubr.f32.gmra.mrb[28].mxu1 %v18007_v11  ;;  %12711 = vmatmul.mubr.f32.gmra.mrb[16].mxu0 %v18007_v11 }
 0x43e   : > { %14447 = vmatpush3.bf16.msra.mxu1 %v14444_v10  ;;  %12642 = vmatprep.mubr.f32.mxu1 %v17992_v31 }
 0x43f   : > { %14449 = vmatprep.subr.bf16.mxu1 %v14448_v50  ;;  %14535 = vmatpush3.bf16.msra.mxu0 %v14532_v6  ;;  %v2361_v6 = vld [vmem:[#allocation6 + $0x250] sm:$0xff] }
 0x440   : > { %14537 = vmatprep.subr.bf16.mxu0 %v14536_v16  ;;  %v14576_v8 = vpack.c.bf16 %v2362_v7, %v2361_v6  ;;  %v2573_v6 = vld [vmem:[#allocation6 + $0x2f8] sm:$0xff] }
 0x442   : > { %14451 = vmatpush3.bf16.msra.mxu1 %v14448_v50 }
 0x443   : > { %14453 = vmatprep.subr.bf16.mxu1 %v14452_v14  ;;  %14539 = vmatpush3.bf16.msra.mxu0 %v14536_v16  ;;  %v2363_v16 = vld [vmem:[#allocation6 + $0x260] sm:$0xff] }
 0x444   : > { %14541 = vmatprep.subr.bf16.mxu0 %v14540_v19  ;;  %v14580_v18 = vpack.c.bf16 %v2364_v17, %v2363_v16  ;;  %v2787_v17 = vld [vmem:[#allocation7 + $0x10] sm:$0xff] }
 0x446   : > { %14455 = vmatpush3.bf16.msra.mxu1 %v14452_v14 }
 0x447   : > { %14457 = vmatprep.subr.bf16.mxu1 %v14456_v55  ;;  %14543 = vmatpush3.bf16.msra.mxu0 %v14540_v19  ;;  %v2253_v19 = vld [vmem:[#allocation6 + $0x1f0] sm:$0xff] }
 0x448   : > { %14545 = vmatprep.subr.bf16.mxu0 %v14544_v22  ;;  %v14552_v21 = vpack.c.bf16 %v2254_v20, %v2253_v19  ;;  %v2789_v20 = vld [vmem:[#allocation7 + $0x20] sm:$0xff] }
 0x44a   : > { %14459 = vmatpush3.bf16.msra.mxu1 %v14456_v55  ;;  %v2351_v55 = vld [vmem:[#allocation6 + $0x200] sm:$0xff] }
 0x44b   : > { %14461 = vmatprep.subr.bf16.mxu1 %v14460_v58  ;;  %14547 = vmatpush3.bf16.msra.mxu0 %v14544_v22  ;;  %v14556_v57 = vpack.c.bf16 %v2352_v56, %v2351_v55  ;;  %v2365_v22 = vld [vmem:[#allocation6 + $0x270] sm:$0xff]  ;;  %v2565_v55 = vld [vmem:[#allocation6 + $0x2b8] sm:$0xff] }
 0x44c   : > { %14549 = vmatprep.subr.bf16.mxu0 %v14548_v25  ;;  %v14584_v24 = vpack.c.bf16 %v2366_v23, %v2365_v22  ;;  %v2791_v23 = vld [vmem:[#allocation7 + $0x30] sm:$0xff] }
 0x44e   : > { %14463 = vmatpush3.bf16.msra.mxu1 %v14460_v58  ;;  %v2353_v58 = vld [vmem:[#allocation6 + $0x210] sm:$0xff] }
 0x44f   : > { %14465 = vmatprep.subr.bf16.mxu1 %v14464_v61  ;;  %14551 = vmatpush3.bf16.msra.mxu0 %v14548_v25  ;;  %v14560_v60 = vpack.c.bf16 %v2354_v59, %v2353_v58  ;;  %v2558_v25 = vld [vmem:[#allocation6 + $0x280] sm:$0xff] }
 0x450   : > { %14553 = vmatprep.subr.bf16.mxu0 %v14552_v21 }
 0x452   : > { %14467 = vmatpush3.bf16.msra.mxu1 %v14464_v61  ;;  %v2355_v61 = vld [vmem:[#allocation6 + $0x220] sm:$0xff] }
 0x453   : > { %v14564_v63 = vpack.c.bf16 %v2356_v62, %v2355_v61  ;;  %14555 = vmatpush3.bf16.msra.mxu0 %v14552_v21  ;;  %v2567_v61 = vld [vmem:[#allocation6 + $0x2c8] sm:$0xff] }
 0x454   : > { %v2790_v21 = vld [vmem:[#allocation7 + $0x28] sm:$0xff] }
 0x455   : > { %12643 = vmatmul.mubr.f32.vlgmr.msra.gmra.mrb[30].mxu1 %v17989_v28  ;;  %v14652_v22 = vpack.c.bf16 %v2790_v21, %v2789_v20  ;;  %v2916_v20 = vld [vmem:[#allocation7 + $0xf8] sm:$0xff] }
 0x456   : > { %12645 = vmatprep.mubr.f32.mxu1 %v18002_v9 }
 0x459   : > { %12646 = vmatmul.mubr.f32.gmra.mrb[32].mxu1 %v17997_v43 }
 0x45a   : > { %12648 = vmatprep.mubr.f32.mxu1 %v18012_v13 }
 0x45d   : > { %12649 = vmatmul.mubr.f32.gmra.mrb[34].mxu1 %v18007_v11 }
 0x45e   : > { %12663 = vmatprep.mubr.msk.f32.mxu1 %vm922_vm1, %v17880_v12 }
 0x508   : > { %v12603_v26 = vpop.f32.mrb[24].mxu1  ;;  %v12706_v30 = vpop.f32.mrb[12].mxu0 }
 0x509   : > { %v1783_v33 = vpop.f32.mrb[25].mxu1  ;;  %v2102_v36 = vpop.f32.mrb[13].mxu0 }
 0x50a   : > { %v14468_v38 = vpack.c.bf16 %v12603_v26, %v1783_v33  ;;  %v14512_v42 = vpack.c.bf16 %v12706_v30, %v2102_v36  ;;  %v2559_v26 = vld [vmem:[#allocation6 + $0x288] sm:$0xff]  ;;  %v2560_v36 = vld [vmem:[#allocation6 + $0x290] sm:$0xff] }
 0x50b   : > { %v14600_v30 = vpack.c.bf16 %v2559_v26, %v2558_v25  ;;  %v2793_v26 = vld [vmem:[#allocation7 + $0x40] sm:$0xff] }
 0x50c   : > { %v12606_v45 = vpop.f32.mrb[26].mxu1  ;;  %14469 = vmatprep.subr.bf16.mxu1 %v14468_v38  ;;  %v12709_v10 = vpop.f32.mrb[14].mxu0 }
 0x50d   : > { %v1793_v46 = vpop.f32.mrb[27].mxu1  ;;  %14471 = vmatpush3.bf16.msra.mxu1 %v14468_v38  ;;  %v2112_v47 = vpop.f32.mrb[15].mxu0  ;;  %14601 = vmatprep.subr.bf16.mxu0 %v14600_v30  ;;  %v2561_v38 = vld [vmem:[#allocation6 + $0x298] sm:$0xff] }
 0x50e   : > { %v14472_v48 = vpack.c.bf16 %v12606_v45, %v1793_v46  ;;  %v14516_v49 = vpack.c.bf16 %v12709_v10, %v2112_v47  ;;  %v14604_v46 = vpack.c.bf16 %v2561_v38, %v2560_v36  ;;  %v2795_v36 = vld [vmem:[#allocation7 + $0x50] sm:$0xff]  ;;  %v2796_v38 = vld [vmem:[#allocation7 + $0x58] sm:$0xff] }
 0x510   : > { %v12609_v50 = vpop.f32.mrb[28].mxu1  ;;  %14473 = vmatprep.subr.bf16.mxu1 %v14472_v48  ;;  %v12712_v52 = vpop.f32.mrb[16].mxu0 }
 0x511   : > { %v1803_v53 = vpop.f32.mrb[29].mxu1  ;;  %14475 = vmatpush3.bf16.msra.mxu1 %v14472_v48  ;;  %v2122_v14 = vpop.f32.mrb[17].mxu0  ;;  %v2562_v48 = vld [vmem:[#allocation6 + $0x2a0] sm:$0xff] }
 0x512   : > { %v14476_v15 = vpack.c.bf16 %v12609_v50, %v1803_v53  ;;  %v14520_v54 = vpack.c.bf16 %v12712_v52, %v2122_v14 }
 0x514   : > { %14477 = vmatprep.subr.bf16.mxu1 %v14476_v15 }
 0x515   : > { %14479 = vmatpush3.bf16.msra.mxu1 %v14476_v15 }
 0x516   : > { %14513 = vmatprep.subr.bf16.mxu1 %v14512_v42 }
 0x518   : > { %12664 = vmatmul.mubr.msk.f32.vlgmr.msra.gmra.mrb[30].mxu1 %vm922_vm1, %v17884_v35 }
 0x519   : > { %14515 = vmatpush3.bf16.msra.mxu1 %v14512_v42  ;;  %12666 = vmatprep.mubr.msk.f32.mxu1 %vm922_vm1, %v17886_v37 }
 0x51a   : > { %14517 = vmatprep.subr.bf16.mxu1 %v14516_v49 }
 0x51c   : > { %12667 = vmatmul.mubr.msk.f32.gmra.mrb[32].mxu1 %vm922_vm1, %v17892_v39 }
 0x51d   : > { %14519 = vmatpush3.bf16.msra.mxu1 %v14516_v49  ;;  %12669 = vmatprep.mubr.msk.f32.mxu1 %vm922_vm1, %v17894_v40  ;;  %v2563_v49 = vld [vmem:[#allocation6 + $0x2a8] sm:$0xff] }
 0x51e   : > { %14521 = vmatprep.subr.bf16.mxu1 %v14520_v54  ;;  %v14608_v14 = vpack.c.bf16 %v2563_v49, %v2562_v48 }
 0x520   : > { %12670 = vmatmul.mubr.msk.f32.gmra.mrb[34].mxu1 %vm922_vm1, %v17900_v41 }
 0x521   : > { %14523 = vmatpush3.bf16.msra.mxu1 %v14520_v54  ;;  %12725 = vmatprep.mubr.msk.f32.mxu1 %vm922_vm1, %v17946_v51  ;;  %v2564_v54 = vld [vmem:[#allocation6 + $0x2b0] sm:$0xff] }
 0x522   : > { %14557 = vmatprep.subr.bf16.mxu1 %v14556_v57  ;;  %v14612_v59 = vpack.c.bf16 %v2565_v55, %v2564_v54 }
 0x524   : > { %12726 = vmatmul.mubr.msk.f32.vlgmr.msra.gmra.mrb[30].mxu1 %vm922_vm1, %v17962_v27 }
 0x525   : > { %12728 = vmatprep.mubr.msk.f32.mxu1 %vm922_vm1, %v17964_v29  ;;  %14559 = vmatpush3.bf16.msra.mxu1 %v14556_v57 }
 0x526   : > { %14561 = vmatprep.subr.bf16.mxu1 %v14560_v60 }
 0x528   : > { %12729 = vmatmul.mubr.msk.f32.gmra.mrb[32].mxu1 %vm922_vm1, %v17970_v32 }
 0x529   : > { %12731 = vmatprep.mubr.msk.f32.mxu1 %vm922_vm1, %v17972_v34  ;;  %14563 = vmatpush3.bf16.msra.mxu1 %v14560_v60  ;;  %v2566_v60 = vld [vmem:[#allocation6 + $0x2c0] sm:$0xff] }
 0x52a   : > { %14565 = vmatprep.subr.bf16.mxu1 %v14564_v63  ;;  %v14616_v62 = vpack.c.bf16 %v2567_v61, %v2566_v60  ;;  %v2902_v60 = vld [vmem:[#allocation7 + $0x88] sm:$0xff] }
 0x52c   : > { %12732 = vmatmul.mubr.msk.f32.gmra.mrb[34].mxu1 %vm922_vm1, %v17978_v44 }
 0x52d   : > { %14567 = vmatpush3.bf16.msra.mxu1 %v14564_v63  ;;  %v2568_v63 = vld [vmem:[#allocation6 + $0x2d0] sm:$0xff] }
 0x52e   : > { %14569 = vmatprep.subr.bf16.mxu1 %v14568_v2  ;;  %v14620_v1 = vpack.c.bf16 %v2569_v0, %v2568_v63  ;;  %v2904_v63 = vld [vmem:[#allocation7 + $0x98] sm:$0xff]  ;;  %v2905_v0 = vld [vmem:[#allocation7 + $0xa0] sm:$0xff] }
 0x531   : > { %14571 = vmatpush3.bf16.msra.mxu1 %v14568_v2  ;;  %v2570_v2 = vld [vmem:[#allocation6 + $0x2e0] sm:$0xff] }
 0x532   : > { %14573 = vmatprep.subr.bf16.mxu1 %v14572_v5  ;;  %v14624_v4 = vpack.c.bf16 %v2571_v3, %v2570_v2  ;;  %v2907_v3 = vld [vmem:[#allocation7 + $0xb0] sm:$0xff] }
 0x535   : > { %14575 = vmatpush3.bf16.msra.mxu1 %v14572_v5  ;;  %v2572_v5 = vld [vmem:[#allocation6 + $0x2f0] sm:$0xff] }
 0x536   : > { %14577 = vmatprep.subr.bf16.mxu1 %v14576_v8  ;;  %v14628_v7 = vpack.c.bf16 %v2573_v6, %v2572_v5  ;;  %v2909_v6 = vld [vmem:[#allocation7 + $0xc0] sm:$0xff] }
 0x539   : > { %14579 = vmatpush3.bf16.msra.mxu1 %v14576_v8  ;;  %v2786_v8 = vld [vmem:[#allocation7 + $0x8] sm:$0xff] }
 0x53a   : > { %14581 = vmatprep.subr.bf16.mxu1 %v14580_v18 }
 0x53d   : > { %14583 = vmatpush3.bf16.msra.mxu1 %v14580_v18  ;;  %v2788_v18 = vld [vmem:[#allocation7 + $0x18] sm:$0xff] }
 0x53e   : > { %14585 = vmatprep.subr.bf16.mxu1 %v14584_v24  ;;  %v14648_v19 = vpack.c.bf16 %v2788_v18, %v2787_v17  ;;  %v2799_v17 = vld [vmem:[#allocation7 + $0x70] sm:$0xff]  ;;  %v2800_v18 = vld [vmem:[#allocation7 + $0x78] sm:$0xff] }
 0x541   : > { %14587 = vmatpush3.bf16.msra.mxu1 %v14584_v24  ;;  %v2792_v24 = vld [vmem:[#allocation7 + $0x38] sm:$0xff] }
 0x542   : > { %v14656_v25 = vpack.c.bf16 %v2792_v24, %v2791_v23 }
 0x5f7   : > { %v12727_v33 = vpop.f32.mrb[30].mxu1 }
 0x5f8   : > { %v2197_v42 = vpop.f32.mrb[31].mxu1  ;;  %v2233_v10 = vmax.f32 %v12727_v33, 0.0 }
 0x5f9   : > { %v2232_v45 = vmax.f32 %v2197_v42, 0.0  ;;  %v14664_v42 = vpack.c.bf16 %v2796_v38, %v2795_v36 }
 0x5fb   : > { %v12730_v47 = vpop.f32.mrb[32].mxu1  ;;  %12766 = vmatprep.mubr.f32.mxu0 %v2232_v45  ;;  %12807 = vmatprep.mubr.f32.mxu1 %v2232_v45 }
 0x5fc   : > { %v2207_v50 = vpop.f32.mrb[33].mxu1  ;;  %12767 = vmatmul.mubr.f32.vlgmr.msra.gmra.mrb[18].mxu0 %v2233_v10  ;;  %12808 = vmatmul.mubr.f32.vlgmr.msra.gmra.mrb[36].mxu1 %v2233_v10  ;;  %v2235_v53 = vmax.f32 %v12730_v47, 0.0 }
 0x5fd   : > { %v2234_v52 = vmax.f32 %v2207_v50, 0.0  ;;  %14603 = vmatpush3.bf16.msra.mxu0 %v14600_v30  ;;  %v2794_v30 = vld [vmem:[#allocation7 + $0x48] sm:$0xff] }
 0x5fe   : > { %14605 = vmatprep.subr.bf16.mxu0 %v14604_v46  ;;  %v14660_v33 = vpack.c.bf16 %v2794_v30, %v2793_v26 }
 0x5ff   : > { %v12733_v15 = vpop.f32.mrb[34].mxu1  ;;  %12769 = vmatprep.mubr.f32.mxu0 %v2234_v52  ;;  %12810 = vmatprep.mubr.f32.mxu1 %v2234_v52 }
 0x600   : > { %v2217_v56 = vpop.f32.mrb[35].mxu1  ;;  %12770 = vmatmul.mubr.f32.gmra.mrb[20].mxu0 %v2235_v53  ;;  %12811 = vmatmul.mubr.f32.gmra.mrb[38].mxu1 %v2235_v53  ;;  %v2237_v58 = vmax.f32 %v12733_v15, 0.0 }
 0x601   : > { %v2236_v57 = vmax.f32 %v2217_v56, 0.0  ;;  %14607 = vmatpush3.bf16.msra.mxu0 %v14604_v46 }
 0x602   : > { %14609 = vmatprep.subr.bf16.mxu0 %v14608_v14 }
 0x603   : > { %12772 = vmatprep.mubr.f32.mxu0 %v2236_v57  ;;  %12813 = vmatprep.mubr.f32.mxu1 %v2236_v57 }
 0x604   : > { %12773 = vmatmul.mubr.f32.gmra.mrb[22].mxu0 %v2237_v58  ;;  %12814 = vmatmul.mubr.f32.gmra.mrb[40].mxu1 %v2237_v58 }
 0x605   : > { %14611 = vmatpush3.bf16.msra.mxu0 %v14608_v14  ;;  %12869 = vmatprep.mubr.f32.mxu0 %v2232_v45  ;;  %v2797_v45 = vld [vmem:[#allocation7 + $0x60] sm:$0xff] }
 0x606   : > { %14613 = vmatprep.subr.bf16.mxu0 %v14612_v59  ;;  %12828 = vmatprep.mubr.msk.f32.mxu1 %vm922_vm1, %v17880_v12  ;;  %v2785_v12 = vld [vmem:[#allocation7] sm:$0xff] }
 0x607   : > { %v14644_v16 = vpack.c.bf16 %v2786_v8, %v2785_v12  ;;  %v2912_v12 = vld [vmem:[#allocation7 + $0xd8] sm:$0xff] }
 0x609   : > { %14615 = vmatpush3.bf16.msra.mxu0 %v14612_v59  ;;  %v2901_v59 = vld [vmem:[#allocation7 + $0x80] sm:$0xff] }
 0x60a   : > { %14617 = vmatprep.subr.bf16.mxu0 %v14616_v62 }
 0x60d   : > { %14619 = vmatpush3.bf16.msra.mxu0 %v14616_v62  ;;  %v14676_v62 = vpack.c.bf16 %v2902_v60, %v2901_v59 }
 0x60e   : > { %14621 = vmatprep.subr.bf16.mxu0 %v14620_v1 }
 0x611   : > { %14623 = vmatpush3.bf16.msra.mxu0 %v14620_v1  ;;  %v2906_v1 = vld [vmem:[#allocation7 + $0xa8] sm:$0xff] }
 0x612   : > { %14625 = vmatprep.subr.bf16.mxu0 %v14624_v4  ;;  %v14684_v2 = vpack.c.bf16 %v2906_v1, %v2905_v0  ;;  %v2897_v1 = vld [vmem:[#allocation19 + $0x18] sm:$0xff] }
 0x615   : > { %14627 = vmatpush3.bf16.msra.mxu0 %v14624_v4  ;;  %v2908_v4 = vld [vmem:[#allocation7 + $0xb8] sm:$0xff] }
 0x616   : > { %14629 = vmatprep.subr.bf16.mxu0 %v14628_v7  ;;  %v14688_v5 = vpack.c.bf16 %v2908_v4, %v2907_v3  ;;  %v2899_v3 = vld [vmem:[#allocation19 + $0x28] sm:$0xff]  ;;  %v2782_v4 = vld [vmem:[#allocation19] sm:$0xff] }
 0x619   : > { %14631 = vmatpush3.bf16.msra.mxu0 %v14628_v7  ;;  %v2910_v7 = vld [vmem:[#allocation7 + $0xc8] sm:$0xff] }
 0x61a   : > { %14645 = vmatprep.subr.bf16.mxu0 %v14644_v16 }
 0x61c   : > { %12870 = vmatmul.mubr.f32.vlgmr.msra.gmra.mrb[24].mxu0 %v2233_v10  ;;  %v2798_v10 = vld [vmem:[#allocation7 + $0x68] sm:$0xff] }
 0x61d   : > { %12872 = vmatprep.mubr.f32.mxu0 %v2234_v52  ;;  %14647 = vmatpush3.bf16.msra.mxu0 %v14644_v16  ;;  %v14668_v46 = vpack.c.bf16 %v2798_v10, %v2797_v45  ;;  %v2914_v16 = vld [vmem:[#allocation7 + $0xe8] sm:$0xff] }
 0x61e   : > { %14649 = vmatprep.subr.bf16.mxu0 %v14648_v19 }
 0x620   : > { %12873 = vmatmul.mubr.f32.gmra.mrb[26].mxu0 %v2235_v53 }
 0x621   : > { %12875 = vmatprep.mubr.f32.mxu0 %v2236_v57  ;;  %14651 = vmatpush3.bf16.msra.mxu0 %v14648_v19  ;;  %v2915_v19 = vld [vmem:[#allocation7 + $0xf0] sm:$0xff] }
 0x622   : > { %14653 = vmatprep.subr.bf16.mxu0 %v14652_v22  ;;  %v14704_v21 = vpack.c.bf16 %v2916_v20, %v2915_v19  ;;  %v3401_v19 = vld [vmem:[#allocation9 + $0x1c8] sm:$0xff] }
 0x623   : > { %v3405_v20 = vld [vmem:[#allocation9 + $0x1e8] sm:$0xff] }
 0x624   : > { %12876 = vmatmul.mubr.f32.gmra.mrb[28].mxu0 %v2237_v58 }
 0x625   : > { %14655 = vmatpush3.bf16.msra.mxu0 %v14652_v22 }
 0x626   : > { %14657 = vmatprep.subr.bf16.mxu0 %v14656_v25 }
 0x629   : > { %14659 = vmatpush3.bf16.msra.mxu0 %v14656_v25 }
 0x62a   : > { %14661 = vmatprep.subr.bf16.mxu0 %v14660_v33 }
 0x62d   : > { %14663 = vmatpush3.bf16.msra.mxu0 %v14660_v33 }
 0x62e   : > { %14665 = vmatprep.subr.bf16.mxu0 %v14664_v42 }
 0x631   : > { %14667 = vmatpush3.bf16.msra.mxu0 %v14664_v42 }
 0x632   : > { %14669 = vmatprep.subr.bf16.mxu0 %v14668_v46 }
 0x635   : > { %14671 = vmatpush3.bf16.msra.mxu0 %v14668_v46 }
 0x6cf   : > { %v12768_v47 = vpop.f32.mrb[18].mxu0 }
 0x6d0   : > { %v2321_v48 = vpop.f32.mrb[19].mxu0 }
 0x6d1   : > { %v14588_v49 = vpack.c.bf16 %v12768_v47, %v2321_v48 }
 0x6d3   : > { %v12771_v50 = vpop.f32.mrb[20].mxu0  ;;  %14589 = vmatprep.subr.bf16.mxu1 %v14588_v49 }
 0x6d4   : > { %v2331_v52 = vpop.f32.mrb[21].mxu0  ;;  %14591 = vmatpush3.bf16.msra.mxu1 %v14588_v49 }
 0x6d5   : > { %v14592_v53 = vpack.c.bf16 %v12771_v50, %v2331_v52 }
 0x6d7   : > { %v12774_v14 = vpop.f32.mrb[22].mxu0  ;;  %14593 = vmatprep.subr.bf16.mxu1 %v14592_v53 }
 0x6d8   : > { %v2341_v15 = vpop.f32.mrb[23].mxu0  ;;  %14595 = vmatpush3.bf16.msra.mxu1 %v14592_v53  ;;  %v17344_v53 = vmov 0.0|0.0  }
 0x6d9   : > { %v14596_v54 = vpack.c.bf16 %v12774_v14, %v2341_v15  ;;  %v17346_v14 = vmov 0.0  }
 0x6db   : > { %14597 = vmatprep.subr.bf16.mxu1 %v14596_v54 }
 0x6dc   : > { %14599 = vmatpush3.bf16.msra.mxu1 %v14596_v54 }
 0x6df   : > { %12829 = vmatmul.mubr.msk.f32.vlgmr.msra.gmra.mrb[36].mxu1 %vm922_vm1, %v17884_v35 }
 0x6e0   : > { %12831 = vmatprep.mubr.msk.f32.mxu1 %vm922_vm1, %v17886_v37 }
 0x6e3   : > { %12832 = vmatmul.mubr.msk.f32.gmra.mrb[38].mxu1 %vm922_vm1, %v17892_v39 }
 0x6e4   : > { %12834 = vmatprep.mubr.msk.f32.mxu1 %vm922_vm1, %v17894_v40 }
 0x6e7   : > { %12835 = vmatmul.mubr.msk.f32.gmra.mrb[40].mxu1 %vm922_vm1, %v17900_v41  ;;  %v2903_v41 = vld [vmem:[#allocation7 + $0x90] sm:$0xff] }
 0x6e8   : > { %12890 = vmatprep.mubr.msk.f32.mxu1 %vm922_vm1, %v17946_v51  ;;  %v14680_v51 = vpack.c.bf16 %v2904_v63, %v2903_v41 }
 0x6ef   : > { %v12871_v55 = vpop.f32.mrb[24].mxu0 }
 0x6f0   : > { %v2640_v56 = vpop.f32.mrb[25].mxu0 }
 0x6f1   : > { %v14632_v57 = vpack.c.bf16 %v12871_v55, %v2640_v56 }
 0x6f3   : > { %v12874_v58 = vpop.f32.mrb[26].mxu0  ;;  %14633 = vmatprep.subr.bf16.mxu1 %v14632_v57 }
 0x6f4   : > { %v2650_v35 = vpop.f32.mrb[27].mxu0  ;;  %14635 = vmatpush3.bf16.msra.mxu1 %v14632_v57 }
 0x6f5   : > { %v14636_v37 = vpack.c.bf16 %v12874_v58, %v2650_v35 }
 0x6f7   : > { %v12877_v39 = vpop.f32.mrb[28].mxu0  ;;  %14637 = vmatprep.subr.bf16.mxu1 %v14636_v37 }
 0x6f8   : > { %v2660_v61 = vpop.f32.mrb[29].mxu0  ;;  %14639 = vmatpush3.bf16.msra.mxu1 %v14636_v37 }
 0x6f9   : > { %v14640_v40 = vpack.c.bf16 %v12877_v39, %v2660_v61 }
 0x6fb   : > { %14641 = vmatprep.subr.bf16.mxu1 %v14640_v40 }
 0x6fc   : > { %14643 = vmatpush3.bf16.msra.mxu1 %v14640_v40 }
 0x6fd   : > { %14677 = vmatprep.subr.bf16.mxu1 %v14676_v62 }
 0x6ff   : > { %12891 = vmatmul.mubr.msk.f32.vlgmr.msra.gmra.mrb[36].mxu1 %vm922_vm1, %v17962_v27  ;;  %v14692_v27 = vpack.c.bf16 %v2910_v7, %v2909_v6  ;;  %v2784_v6 = vld [vmem:[#allocation19 + $0x10] sm:$0xff]  ;;  %v3393_v7 = vld [vmem:[#allocation9 + $0x188] sm:$0xff] }
 0x700   : > { %12893 = vmatprep.mubr.msk.f32.mxu1 %vm922_vm1, %v17964_v29  ;;  %14679 = vmatpush3.bf16.msra.mxu1 %v14676_v62  ;;  %v2911_v29 = vld [vmem:[#allocation7 + $0xd0] sm:$0xff] }
 0x701   : > { %14681 = vmatprep.subr.bf16.mxu1 %v14680_v51  ;;  %v14696_v8 = vpack.c.bf16 %v2912_v12, %v2911_v29  ;;  %v3392_v29 = vld [vmem:[#allocation9 + $0x180] sm:$0xff] }
 0x703   : > { %12894 = vmatmul.mubr.msk.f32.gmra.mrb[38].mxu1 %vm922_vm1, %v17970_v32  ;;  %v2913_v32 = vld [vmem:[#allocation7 + $0xe0] sm:$0xff] }
 0x704   : > { %12896 = vmatprep.mubr.msk.f32.mxu1 %vm922_vm1, %v17972_v34  ;;  %14683 = vmatpush3.bf16.msra.mxu1 %v14680_v51  ;;  %v14700_v34 = vpack.c.bf16 %v2914_v16, %v2913_v32  ;;  %v3399_v16 = vld [vmem:[#allocation9 + $0x1b8] sm:$0xff] }
 0x705   : > { %14685 = vmatprep.subr.bf16.mxu1 %v14684_v2 }
 0x707   : > { %12897 = vmatmul.mubr.msk.f32.gmra.mrb[40].mxu1 %vm922_vm1, %v17978_v44  ;;  %v14672_v44 = vpack.c.bf16 %v2800_v18, %v2799_v17  ;;  %v3398_v17 = vld [vmem:[#allocation9 + $0x1b0] sm:$0xff] }
 0x708   : > { %14687 = vmatpush3.bf16.msra.mxu1 %v14684_v2  ;;  %v2898_v2 = vld [vmem:[#allocation19 + $0x20] sm:$0xff] }
 0x709   : > { %14689 = vmatprep.subr.bf16.mxu1 %v14688_v5  ;;  %14673 = vmatprep.subr.bf16.mxu0 %v14672_v44 }
 0x70a   : > { %14675 = vmatpush3.bf16.msra.mxu0 %v14672_v44  ;;  %v14738_v44 = vpack.c.bf16 %v3401_v19, %v3398_v17  ;;  %v3415_v17 = vld [vmem:[#allocation9 + $0x238] sm:$0xff]  ;;  %v3418_v19 = vld [vmem:[#allocation9 + $0x250] sm:$0xff] }
 0x70b   : > { %14708 = vmatprep.subr.bf16.mxu0 %v17344_v53 }
 0x70c   : > { %14691 = vmatpush3.bf16.msra.mxu1 %v14688_v5  ;;  %v2783_v5 = vld [vmem:[#allocation19 + $0x8] sm:$0xff] }
 0x70d   : > { %14693 = vmatprep.subr.bf16.mxu1 %v14692_v27 }
 0x710   : > { %14695 = vmatpush3.bf16.msra.mxu1 %v14692_v27  ;;  %v3396_v27 = vld [vmem:[#allocation9 + $0x1a0] sm:$0xff] }
 0x711   : > { %14697 = vmatprep.subr.bf16.mxu1 %v14696_v8  ;;  %v14732_v12 = vpack.c.bf16 %v3396_v27, %v3393_v7  ;;  %v3400_v27 = vld [vmem:[#allocation9 + $0x1c0] sm:$0xff] }
 0x714   : > { %14699 = vmatpush3.bf16.msra.mxu1 %v14696_v8  ;;  %v3395_v8 = vld [vmem:[#allocation9 + $0x198] sm:$0xff] }
 0x715   : > { %14701 = vmatprep.subr.bf16.mxu1 %v14700_v34  ;;  %v14734_v32 = vpack.c.bf16 %v3395_v8, %v3392_v29  ;;  %v3403_v29 = vld [vmem:[#allocation9 + $0x1d8] sm:$0xff]  ;;  %v3406_v8 = vld [vmem:[#allocation9 + $0x1f0] sm:$0xff] }
 0x718   : > { %14703 = vmatpush3.bf16.msra.mxu1 %v14700_v34  ;;  %v3402_v34 = vld [vmem:[#allocation9 + $0x1d0] sm:$0xff] }
 0x719   : > { %14705 = vmatprep.subr.bf16.mxu1 %v14704_v21  ;;  %v14736_v18 = vpack.c.bf16 %v3402_v34, %v3399_v16  ;;  %v3412_v34 = vld [vmem:[#allocation9 + $0x220] sm:$0xff] }
 0x71c   : > { %14707 = vmatpush3.bf16.msra.mxu1 %v14704_v21  ;;  %v3408_v21 = vld [vmem:[#allocation9 + $0x200] sm:$0xff] }
 0x71d   : > { %14726 = vmatprep.subr.bf16.mxu1 %v17344_v53 }
 0x7d2   : > { %v12892_v22 = vpop.f32.mrb[36].mxu1 }
 0x7d3   : > { %v2771_v23 = vadd.f32 %v17989_v28, %v12892_v22  ;;  %v2735_v24 = vpop.f32.mrb[37].mxu1  ;;  %v14740_v22 = vpack.c.bf16 %v3408_v21, %v3405_v20  ;;  %v3424_v21 = vld [vmem:[#allocation9 + $0x280] sm:$0xff] }
 0x7d4   : > { %v2770_v25 = vadd.f32 %v17992_v31, %v2735_v24  ;;  %v3407_v24 = vld [vmem:[#allocation9 + $0x1f8] sm:$0xff] }
 0x7d5   : > { %v2777_v33 = vmax.f32 %v2771_v23, 0.0  ;;  %v3404_v23 = vld [vmem:[#allocation9 + $0x1e0] sm:$0xff] }
 0x7d6   : > { %v2776_v26 = vmax.f32 %v2770_v25, 0.0  ;;  %v12895_v30 = vpop.f32.mrb[38].mxu1  ;;  %v14742_v25 = vpack.c.bf16 %v3407_v24, %v3404_v23  ;;  %v3430_v24 = vld [vmem:[#allocation9 + $0x2b0] sm:$0xff] }
 0x7d7   : > { %v2773_v36 = vadd.f32 %v17997_v43, %v12895_v30  ;;  %v2745_v38 = vpop.f32.mrb[39].mxu1  ;;  %v3414_v30 = vld [vmem:[#allocation9 + $0x230] sm:$0xff] }
 0x7d8   : > { %v2772_v42 = vadd.f32 %v18002_v9, %v2745_v38  ;;  %12931 = vmatprep.mubr.f32.mxu0 %v2776_v26  ;;  %12972 = vmatprep.mubr.f32.mxu1 %v2776_v26  ;;  %v3411_v26 = vld [vmem:[#allocation9 + $0x218] sm:$0xff]  ;;  %v3413_v38 = vld [vmem:[#allocation9 + $0x228] sm:$0xff] }
 0x7d9   : > { %12932 = vmatmul.mubr.f32.vlgmr.msra.gmra.mrb[30].mxu0 %v2777_v33  ;;  %12973 = vmatmul.mubr.f32.vlgmr.msra.gmra.mrb[42].mxu1 %v2777_v33  ;;  %v2779_v46 = vmax.f32 %v2773_v36, 0.0  ;;  %v14744_v33 = vpack.c.bf16 %v3414_v30, %v3411_v26  ;;  %v3410_v36 = vld [vmem:[#allocation9 + $0x210] sm:$0xff]  ;;  %v3435_v30 = vld [vmem:[#allocation9 + $0x2d8] sm:$0xff] }
 0x7da   : > { %v2778_v45 = vmax.f32 %v2772_v42, 0.0  ;;  %v12898_v10 = vpop.f32.mrb[40].mxu1  ;;  %v14746_v42 = vpack.c.bf16 %v3413_v38, %v3410_v36  ;;  %v3434_v38 = vld [vmem:[#allocation9 + $0x2d0] sm:$0xff] }
 0x7db   : > { %v2775_v47 = vadd.f32 %v18007_v11, %v12898_v10  ;;  %v2755_v48 = vpop.f32.mrb[41].mxu1  ;;  %v3420_v10 = vld [vmem:[#allocation9 + $0x260] sm:$0xff] }
 0x7dc   : > { %v2774_v49 = vadd.f32 %v18012_v13, %v2755_v48  ;;  %12934 = vmatprep.mubr.f32.mxu0 %v2778_v45  ;;  %12975 = vmatprep.mubr.f32.mxu1 %v2778_v45  ;;  %v3417_v45 = vld [vmem:[#allocation9 + $0x248] sm:$0xff]  ;;  %v3419_v48 = vld [vmem:[#allocation9 + $0x258] sm:$0xff] }
 0x7dd   : > { %12935 = vmatmul.mubr.f32.gmra.mrb[32].mxu0 %v2779_v46  ;;  %12976 = vmatmul.mubr.f32.gmra.mrb[44].mxu1 %v2779_v46  ;;  %v2781_v52 = vmax.f32 %v2775_v47, 0.0  ;;  %v14748_v46 = vpack.c.bf16 %v3420_v10, %v3417_v45  ;;  %v3416_v47 = vld [vmem:[#allocation9 + $0x240] sm:$0xff] }
 0x7de   : > { %v2780_v50 = vmax.f32 %v2774_v49, 0.0  ;;  %v14750_v49 = vpack.c.bf16 %v3419_v48, %v3416_v47  ;;  %v3436_v45 = vld [vmem:[#allocation9 + $0x2e0] sm:$0xff]  ;;  %v3269_v48 = vld [vmem:[#allocation9 + $0x8] sm:$0xff] }
 0x7e0   : > { %12937 = vmatprep.mubr.f32.mxu0 %v2780_v50  ;;  %12978 = vmatprep.mubr.f32.mxu1 %v2780_v50  ;;  %v3423_v50 = vld [vmem:[#allocation9 + $0x278] sm:$0xff] }
 0x7e1   : > { %12938 = vmatmul.mubr.f32.gmra.mrb[34].mxu0 %v2781_v52  ;;  %12979 = vmatmul.mubr.f32.gmra.mrb[46].mxu1 %v2781_v52  ;;  %v3426_v52 = vld [vmem:[#allocation9 + $0x290] sm:$0xff] }
 0x7e2   : > { %12993 = vmatprep.mubr.msk.f32.mxu0 %vm17345_vm2, %v17346_v14  ;;  %13029 = vmatprep.mubr.msk.f32.mxu1 %vm17345_vm2, %v17346_v14 }
 0x8ac   : > { %v12933_v15 = vpop.f32.mrb[30].mxu0  ;;  %v12974_v54 = vpop.f32.mrb[42].mxu1 }
 0x8ad   : > { %v2867_v55 = vpop.f32.mrb[31].mxu0  ;;  %v2983_v56 = vpop.f32.mrb[43].mxu1 }
 0x8ae   : > { %v14718_v57 = vpack.c.bf16 %v12933_v15, %v2867_v55  ;;  %v14709_v58 = vpack.c.bf16 %v12974_v54, %v2983_v56  ;;  %v14752_v15 = vpack.c.bf16 %v3426_v52, %v3423_v50  ;;  %v3422_v54 = vld [vmem:[#allocation9 + $0x270] sm:$0xff]  ;;  %v3425_v55 = vld [vmem:[#allocation9 + $0x288] sm:$0xff] }
 0x8af   : > { %v14754_v56 = vpack.c.bf16 %v3425_v55, %v3422_v54  ;;  %v3271_v55 = vld [vmem:[#allocation9 + $0x18] sm:$0xff] }
 0x8b0   : > { %v12936_v35 = vpop.f32.mrb[32].mxu0  ;;  %v12977_v37 = vpop.f32.mrb[44].mxu1  ;;  %14710 = vmatpush3.bf16.msra.mxu0 %v14709_v58  ;;  %v3432_v58 = vld [vmem:[#allocation9 + $0x2c0] sm:$0xff] }
 0x8b1   : > { %v2877_v59 = vpop.f32.mrb[33].mxu0  ;;  %v2993_v60 = vpop.f32.mrb[45].mxu1  ;;  %14711 = vmatprep.subr.bf16.mxu0 %v17344_v53 }
 0x8b2   : > { %v14721_v39 = vpack.c.bf16 %v12936_v35, %v2877_v59  ;;  %v14712_v61 = vpack.c.bf16 %v12977_v37, %v2993_v60  ;;  %v3428_v37 = vld [vmem:[#allocation9 + $0x2a0] sm:$0xff]  ;;  %v3431_v59 = vld [vmem:[#allocation9 + $0x2b8] sm:$0xff] }
 0x8b3   : > { %v14758_v60 = vpack.c.bf16 %v3431_v59, %v3428_v37 }
 0x8b4   : > { %v12939_v40 = vpop.f32.mrb[34].mxu0  ;;  %v12980_v62 = vpop.f32.mrb[46].mxu1  ;;  %14713 = vmatpush3.bf16.msra.mxu0 %v14712_v61 }
 0x8b5   : > { %v2887_v41 = vpop.f32.mrb[35].mxu0  ;;  %v3003_v63 = vpop.f32.mrb[47].mxu1  ;;  %14714 = vmatprep.subr.bf16.mxu0 %v17344_v53 }
 0x8b6   : > { %v14724_v51 = vpack.c.bf16 %v12939_v40, %v2887_v41  ;;  %v14715_v0 = vpack.c.bf16 %v12980_v62, %v3003_v63 }
 0x8b8   : > { %14716 = vmatpush3.bf16.msra.mxu0 %v14715_v0 }
 0x8b9   : > { %14717 = vmatprep.subr.bf16.mxu0 %v17344_v53 }
 0x8bb   : > { %12994 = vmatmul.mubr.msk.f32.vlgmr.msra.gmra.mrb[36].mxu0 %vm922_vm1, %v2897_v1 }
 0x8bc   : > { %14719 = vmatpush3.bf16.msra.mxu0 %v14718_v57  ;;  %12996 = vmatprep.mubr.msk.f32.mxu0 %vm17345_vm2, %v17346_v14  ;;  %v3429_v57 = vld [vmem:[#allocation9 + $0x2a8] sm:$0xff] }
 0x8bd   : > { %14720 = vmatprep.subr.bf16.mxu0 %v17344_v53  ;;  %v14756_v35 = vpack.c.bf16 %v3432_v58, %v3429_v57  ;;  %v3273_v57 = vld [vmem:[#allocation9 + $0x28] sm:$0xff]  ;;  %v3275_v58 = vld [vmem:[#allocation9 + $0x38] sm:$0xff] }
 0x8bf   : > { %12997 = vmatmul.mubr.msk.f32.gmra.mrb[38].mxu0 %vm922_vm1, %v2898_v2 }
 0x8c0   : > { %14722 = vmatpush3.bf16.msra.mxu0 %v14721_v39  ;;  %12999 = vmatprep.mubr.msk.f32.mxu0 %vm17345_vm2, %v17346_v14 }
 0x8c1   : > { %14723 = vmatprep.subr.bf16.mxu0 %v17344_v53 }
 0x8c3   : > { %13000 = vmatmul.mubr.msk.f32.gmra.mrb[40].mxu0 %vm922_vm1, %v2899_v3  ;;  %v3193_v3 = vld [vmem:[#allocation21] sm:$0xff] }
 0x8c4   : > { %14725 = vmatpush3.bf16.msra.mxu0 %v14724_v51  ;;  %13014 = vmatprep.mubr.msk.f32.mxu0 %vm17345_vm2, %v17346_v14 }
 0x8c5   : > { %14733 = vmatprep.subr.bf16.mxu0 %v14732_v12  ;;  %v14768_v12 = vpack.c.bf16 %v3403_v29, %v3400_v27  ;;  %v3282_v27 = vld [vmem:[#allocation9 + $0x70] sm:$0xff]  ;;  %v3285_v29 = vld [vmem:[#allocation9 + $0x88] sm:$0xff] }
 0x8c7   : > { %13015 = vmatmul.mubr.msk.f32.vlgmr.msra.gmra.mrb[36].mxu0 %vm922_vm1, %v2782_v4  ;;  %v3394_v4 = vld [vmem:[#allocation9 + $0x190] sm:$0xff] }
 0x8c8   : > { %13017 = vmatprep.mubr.msk.f32.mxu0 %vm17345_vm2, %v17346_v14  ;;  %14735 = vmatpush1.bf16.msra.mxu0 %v14734_v32  ;;  %v3409_v32 = vld [vmem:[#allocation9 + $0x208] sm:$0xff] }
 0x8c9   : > { %14737 = vmatprep.subr.bf16.mxu0 %v14736_v18  ;;  %v14771_v16 = vpack.c.bf16 %v3409_v32, %v3406_v8  ;;  %v14774_v18 = vpack.c.bf16 %v3415_v17, %v3412_v34  ;;  %v3290_v8 = vld [vmem:[#allocation9 + $0xb0] sm:$0xff] }
 0x8ca   : > { %v3286_v34 = vld [vmem:[#allocation9 + $0x90] sm:$0xff] }
 0x8cb   : > { %13018 = vmatmul.mubr.msk.f32.gmra.mrb[38].mxu0 %vm922_vm1, %v2783_v5  ;;  %v3397_v5 = vld [vmem:[#allocation9 + $0x1a8] sm:$0xff] }
 0x8cc   : > { %13020 = vmatprep.mubr.msk.f32.mxu0 %vm17345_vm2, %v17346_v14  ;;  %14739 = vmatpush1.bf16.msra.mxu0 %v14738_v44  ;;  %v14765_v7 = vpack.c.bf16 %v3397_v5, %v3394_v4  ;;  %v3421_v44 = vld [vmem:[#allocation9 + $0x268] sm:$0xff]  ;;  %v3280_v5 = vld [vmem:[#allocation9 + $0x60] sm:$0xff] }
 0x8cd   : > { %14741 = vmatprep.subr.bf16.mxu0 %v14740_v22  ;;  %v14777_v20 = vpack.c.bf16 %v3421_v44, %v3418_v19  ;;  %v3427_v22 = vld [vmem:[#allocation9 + $0x298] sm:$0xff]  ;;  %v3288_v19 = vld [vmem:[#allocation9 + $0xa0] sm:$0xff] }
 0x8ce   : > { %v14780_v23 = vpack.c.bf16 %v3427_v22, %v3424_v21  ;;  %v3291_v44 = vld [vmem:[#allocation9 + $0xb8] sm:$0xff]  ;;  %v3296_v21 = vld [vmem:[#allocation9 + $0xe0] sm:$0xff] }
 0x8cf   : > { %13021 = vmatmul.mubr.msk.f32.gmra.mrb[40].mxu0 %vm922_vm1, %v2784_v6  ;;  %v3317_v6 = vld [vmem:[#allocation21 + $0x8] sm:$0xff] }
 0x8d0   : > { %3504 = vmatprep.mubr.f32.mxu0 %v17346_v14  ;;  %14743 = vmatpush1.bf16.msra.mxu0 %v14742_v25  ;;  %v3433_v25 = vld [vmem:[#allocation9 + $0x2c8] sm:$0xff] }
 0x8d1   : > { %14745 = vmatprep.subr.bf16.mxu0 %v14744_v33  ;;  %v14783_v26 = vpack.c.bf16 %v3433_v25, %v3430_v24  ;;  %v3438_v33 = vld [vmem:[#allocation9 + $0x2f0] sm:$0xff]  ;;  %v3292_v24 = vld [vmem:[#allocation9 + $0xc0] sm:$0xff] }
 0x8d2   : > { %v14760_v36 = vpack.c.bf16 %v3438_v33, %v3435_v30  ;;  %v3294_v30 = vld [vmem:[#allocation9 + $0xd0] sm:$0xff]  ;;  %v3297_v33 = vld [vmem:[#allocation9 + $0xe8] sm:$0xff] }
 0x8d4   : > { %14747 = vmatpush1.bf16.msra.mxu0 %v14746_v42  ;;  %v3437_v42 = vld [vmem:[#allocation9 + $0x2e8] sm:$0xff] }
 0x8d5   : > { %14749 = vmatprep.subr.bf16.mxu0 %v14748_v46  ;;  %v14762_v10 = vpack.c.bf16 %v3437_v42, %v3434_v38  ;;  %v3439_v46 = vld [vmem:[#allocation9 + $0x2f8] sm:$0xff]  ;;  %v3302_v38 = vld [vmem:[#allocation9 + $0x110] sm:$0xff] }
 0x8d6   : > { %v14786_v47 = vpack.c.bf16 %v3439_v46, %v3436_v45  ;;  %v14833_v45 = vpack.c.bf16 %v3297_v33, %v3294_v30 }
 0x8d8   : > { %14751 = vmatpush1.bf16.msra.mxu0 %v14750_v49  ;;  %v3272_v49 = vld [vmem:[#allocation9 + $0x20] sm:$0xff] }
 0x8d9   : > { %14753 = vmatprep.subr.bf16.mxu0 %v14752_v15  ;;  %v14788_v50 = vpack.c.bf16 %v3272_v49, %v3269_v48  ;;  %v3268_v15 = vld [vmem:[#allocation9] sm:$0xff]  ;;  %v3303_v49 = vld [vmem:[#allocation9 + $0x118] sm:$0xff] }
 0x8da   : > { %v14790_v37 = vpack.c.bf16 %v3271_v55, %v3268_v15  ;;  %v3300_v48 = vld [vmem:[#allocation9 + $0x100] sm:$0xff] }
 0x8db   : > { %v3308_v15 = vld [vmem:[#allocation9 + $0x140] sm:$0xff]  ;;  %v14836_v55 = vpack.c.bf16 %v3303_v49, %v3300_v48  ;;  %v3819_v49 = vld [vmem:[#allocation9 + $0x3a8] sm:$0xff] }
 0x8dc   : > { %14755 = vmatpush1.bf16.msra.mxu0 %v14754_v56  ;;  %v3270_v56 = vld [vmem:[#allocation9 + $0x10] sm:$0xff] }
 0x8dd   : > { %14757 = vmatprep.subr.bf16.mxu0 %v14756_v35  ;;  %v3278_v35 = vld [vmem:[#allocation9 + $0x50] sm:$0xff]  ;;  %v14821_v59 = vpack.c.bf16 %v3273_v57, %v3270_v56  ;;  %v3304_v56 = vld [vmem:[#allocation9 + $0x120] sm:$0xff] }
 0x8e0   : > { %14759 = vmatpush1.bf16.msra.mxu0 %v14758_v60  ;;  %v3274_v60 = vld [vmem:[#allocation9 + $0x30] sm:$0xff] }
 0x8e1   : > { %14761 = vmatprep.subr.bf16.mxu0 %v14760_v36  ;;  %v3299_v36 = vld [vmem:[#allocation9 + $0xf8] sm:$0xff] }
 0x8e2   : > { %v14808_v46 = vpack.c.bf16 %v3302_v38, %v3299_v36  ;;  %v3813_v36 = vld [vmem:[#allocation9 + $0x378] sm:$0xff]  ;;  %v3818_v38 = vld [vmem:[#allocation9 + $0x3a0] sm:$0xff] }
 0x8e4   : > { %14763 = vmatpush1.bf16.msra.mxu0 %v14762_v10  ;;  %v3298_v10 = vld [vmem:[#allocation9 + $0xf0] sm:$0xff] }
 0x8e5   : > { %14789 = vmatprep.subr.bf16.mxu0 %v14788_v50  ;;  %v3305_v50 = vld [vmem:[#allocation9 + $0x128] sm:$0xff] }
 0x8e6   : > { %v14812_v57 = vpack.c.bf16 %v3308_v15, %v3305_v50  ;;  %v3824_v50 = vld [vmem:[#allocation9 + $0x3d0] sm:$0xff]  ;;  %v3827_v15 = vld [vmem:[#allocation9 + $0x3e8] sm:$0xff] }
 0x99a   : > { %v3176_v39 = vpop.f32.mrb[36].mxu0 }
 0x99b   : > { %v13016_v61 = vpop.f32.mrb[37].mxu0  ;;  %v3190_v62 = vmax.f32 %v3176_v39, 0.0  ;;  %v14792_v39 = vpack.c.bf16 %v3278_v35, %v3275_v58  ;;  %v3307_v58 = vld [vmem:[#allocation9 + $0x138] sm:$0xff]  ;;  %v3306_v35 = vld [vmem:[#allocation9 + $0x130] sm:$0xff] }
 0x99c   : > { %v3277_v61 = vld [vmem:[#allocation9 + $0x48] sm:$0xff] }
 0x99e   : > { %v3181_v40 = vpop.f32.mrb[38].mxu0 }
 0x99f   : > { %v3191_v41 = vmax.f32 %v3181_v40, 0.0  ;;  %v13019_v63 = vpop.f32.mrb[39].mxu0  ;;  %v3276_v40 = vld [vmem:[#allocation9 + $0x40] sm:$0xff] }
 0x9a0   : > { %v3281_v63 = vld [vmem:[#allocation9 + $0x68] sm:$0xff] }
 0x9a1   : > { %v18106_v51 = vpack.c.bf16 %v3191_v41, %v3190_v62  ;;  %v3279_v62 = vld [vmem:[#allocation9 + $0x58] sm:$0xff] }
 0x9a2   : > { %v3186_v0 = vpop.f32.mrb[40].mxu0  ;;  %v14824_v4 = vpack.c.bf16 %v3279_v62, %v3276_v40  ;;  %v3310_v40 = vld [vmem:[#allocation9 + $0x150] sm:$0xff] }
 0x9a3   : > { %v13022_v1 = vpop.f32.mrb[41].mxu0  ;;  %14728 = vmatpush3.bf16.msra.mxu1 %v18106_v51  ;;  %v18110_v2 = vmax.f32 %v3186_v0, 0.0  ;;  %v3284_v0 = vld [vmem:[#allocation9 + $0x80] sm:$0xff] }
 0x9a4   : > { %13027 = vmatprep.subr.mxu1 %v17346_v14 }
 0x9a7   : > { %13028 = vmatpush3.msra.mxu1 %v18110_v2 }
 0x9a8   : > { %13030 = vmatmul.mubr.msk.f32.vlgmr.msra.gmra.mrb[48].mxu1 %vm3194_vm3, %v3193_v3  ;;  %14729 = vmatprep.subr.bf16.mxu1 %v17344_v53  ;;  %v14794_v3 = vpack.c.bf16 %v3277_v61, %v3274_v60  ;;  %v3314_v60 = vld [vmem:[#allocation9 + $0x170] sm:$0xff] }
 0x9a9   : > { %14731 = vmatpush3.bf16.msra.mxu1 %v18106_v51  ;;  %13038 = vmatprep.mubr.msk.f32.mxu1 %vm17345_vm2, %v17346_v14 }
 0x9aa   : > { %13036 = vmatprep.subr.mxu1 %v17346_v14 }
 0x9ad   : > { %13037 = vmatpush3.msra.mxu1 %v18110_v2 }
 0x9ae   : > { %13039 = vmatmul.mubr.msk.f32.vlgmr.msra.gmra.mrb[50].mxu1 %vm3194_vm3, %v3317_v6  ;;  %14764 = vmatprep.subr.bf16.mxu1 %v17344_v53  ;;  %v14796_v6 = vpack.c.bf16 %v3284_v0, %v3281_v63  ;;  %v3312_v63 = vld [vmem:[#allocation9 + $0x160] sm:$0xff]  ;;  %v3315_v0 = vld [vmem:[#allocation9 + $0x178] sm:$0xff] }
 0x9af   : > { %14766 = vmatpush3.bf16.msra.mxu1 %v14765_v7  ;;  %13073 = vmatprep.mubr.msk.f32.mxu1 %vm17345_vm2, %v17346_v14  ;;  %v3283_v7 = vld [vmem:[#allocation9 + $0x78] sm:$0xff] }
 0x9b0   : > { %14767 = vmatprep.subr.bf16.mxu1 %v17344_v53  ;;  %v14798_v32 = vpack.c.bf16 %v3283_v7, %v3280_v5  ;;  %v3803_v5 = vld [vmem:[#allocation9 + $0x328] sm:$0xff] }
 0x9b1   : > { %v3799_v7 = vld [vmem:[#allocation9 + $0x308] sm:$0xff] }
 0x9b3   : > { %14769 = vmatpush3.bf16.msra.mxu1 %v14768_v12  ;;  %v3287_v12 = vld [vmem:[#allocation9 + $0x98] sm:$0xff] }
 0x9b4   : > { %14770 = vmatprep.subr.bf16.mxu1 %v17344_v53  ;;  %v14800_v17 = vpack.c.bf16 %v3290_v8, %v3287_v12  ;;  %v3801_v12 = vld [vmem:[#allocation9 + $0x318] sm:$0xff]  ;;  %v3806_v8 = vld [vmem:[#allocation9 + $0x340] sm:$0xff] }
 0x9b7   : > { %14772 = vmatpush3.bf16.msra.mxu1 %v14771_v16  ;;  %v14827_v16 = vpack.c.bf16 %v3285_v29, %v3282_v27  ;;  %v3802_v27 = vld [vmem:[#allocation9 + $0x320] sm:$0xff] }
 0x9b8   : > { %14773 = vmatprep.subr.bf16.mxu1 %v17344_v53  ;;  %v3798_v29 = vld [vmem:[#allocation9 + $0x300] sm:$0xff] }
 0x9bb   : > { %14775 = vmatpush3.bf16.msra.mxu1 %v14774_v18  ;;  %v3289_v18 = vld [vmem:[#allocation9 + $0xa8] sm:$0xff] }
 0x9bc   : > { %14776 = vmatprep.subr.bf16.mxu1 %v17344_v53  ;;  %v14802_v22 = vpack.c.bf16 %v3289_v18, %v3286_v34  ;;  %v3808_v34 = vld [vmem:[#allocation9 + $0x350] sm:$0xff]  ;;  %v3723_v18 = vld [vmem:[#allocation21 + $0x10] sm:$0xff] }
 0x9bf   : > { %14778 = vmatpush3.bf16.msra.mxu1 %v14777_v20  ;;  %v3293_v20 = vld [vmem:[#allocation9 + $0xc8] sm:$0xff] }
 0x9c0   : > { %14779 = vmatprep.subr.bf16.mxu1 %v17344_v53  ;;  %v14804_v25 = vpack.c.bf16 %v3296_v21, %v3293_v20  ;;  %v3812_v21 = vld [vmem:[#allocation9 + $0x370] sm:$0xff] }
 0x9c3   : > { %14781 = vmatpush3.bf16.msra.mxu1 %v14780_v23  ;;  %v14830_v23 = vpack.c.bf16 %v3291_v44, %v3288_v19  ;;  %v14849_v19 = vpack.c.bf16 %v3801_v12, %v3798_v29  ;;  %v3804_v44 = vld [vmem:[#allocation9 + $0x330] sm:$0xff]  ;;  %v3837_v12 = vld [vmem:[#allocation9 + $0x438] sm:$0xff] }
 0x9c4   : > { %14782 = vmatprep.subr.bf16.mxu1 %v17344_v53 }
 0x9c7   : > { %14784 = vmatpush3.bf16.msra.mxu1 %v14783_v26  ;;  %v3295_v26 = vld [vmem:[#allocation9 + $0xd8] sm:$0xff] }
 0x9c8   : > { %14785 = vmatprep.subr.bf16.mxu1 %v17344_v53  ;;  %v14806_v42 = vpack.c.bf16 %v3295_v26, %v3292_v24  ;;  %v3814_v24 = vld [vmem:[#allocation9 + $0x380] sm:$0xff] }
 0x9c9   : > { %v3810_v26 = vld [vmem:[#allocation9 + $0x360] sm:$0xff] }
 0x9cb   : > { %14787 = vmatpush3.bf16.msra.mxu1 %v14786_v47  ;;  %v3301_v47 = vld [vmem:[#allocation9 + $0x108] sm:$0xff] }
 0x9cc   : > { %14820 = vmatprep.subr.bf16.mxu1 %v17344_v53 }
 0xa7b   : > { %v18132_v52 = vpop.f32.mrb[48].mxu1 }
 0xa7c   : > { %v13031_v54 = vpop.f32.mrb[49].mxu1 }
 0xa7d   : > { %v14810_v54 = vpack.c.bf16 %v3301_v47, %v3298_v10  ;;  %v3820_v10 = vld [vmem:[#allocation9 + $0x3b0] sm:$0xff] }
 0xa81   : > { %v3387_v41 = vpop.f32.mrb[50].mxu1 }
 0xa82   : > { %v13040_v1 = vpop.f32.mrb[51].mxu1  ;;  %3505 = vmatmul.mubr.f32.vlgmr.msra.gmra.mrb[42].mxu0 %v3387_v41  ;;  %13074 = vmatmul.mubr.f32.vlgmr.msra.gmra.mrb[52].mxu1 %v3387_v41  ;;  %v3313_v41 = vld [vmem:[#allocation9 + $0x168] sm:$0xff] }
 0xa83   : > { %14791 = vmatpush1.bf16.msra.mxu0 %v14790_v37  ;;  %14822 = vmatpush3.bf16.msra.mxu1 %v14821_v59  ;;  %v3309_v37 = vld [vmem:[#allocation9 + $0x148] sm:$0xff]  ;;  %v3311_v59 = vld [vmem:[#allocation9 + $0x158] sm:$0xff]  ;;  %v14818_v1 = vpack.c.bf16 %v3313_v41, %v3310_v40 }
 0xa84   : > { %14793 = vmatprep.subr.bf16.mxu0 %v14792_v39  ;;  %14823 = vmatprep.subr.bf16.mxu1 %v17344_v53  ;;  %v14814_v39 = vpack.c.bf16 %v3307_v58, %v3304_v56  ;;  %v14839_v61 = vpack.c.bf16 %v3309_v37, %v3306_v35  ;;  %v14816_v62 = vpack.c.bf16 %v3314_v60, %v3311_v59  ;;  %v3825_v37 = vld [vmem:[#allocation9 + $0x3d8] sm:$0xff]  ;;  %v3830_v59 = vld [vmem:[#allocation9 + $0x400] sm:$0xff] }
 0xa85   : > { %3645 = vmatprep.mubr.f32.mxu0 %v17346_v14  ;;  %13108 = vmatprep.mubr.msk.f32.mxu1 %vm17345_vm2, %v17346_v14  ;;  %v14892_v58 = vpack.c.bf16 %v3827_v15, %v3824_v50  ;;  %v3833_v60 = vld [vmem:[#allocation9 + $0x418] sm:$0xff]  ;;  %v4003_v50 = vld [vmem:[#allocation10 + $0x68] sm:$0xff] }
 0xa86   : > { %v14895_v41 = vpack.c.bf16 %v3833_v60, %v3830_v59  ;;  %v4002_v60 = vld [vmem:[#allocation10 + $0x60] sm:$0xff] }
 0xa87   : > { %14795 = vmatpush1.bf16.msra.mxu0 %v14794_v3  ;;  %14825 = vmatpush3.bf16.msra.mxu1 %v14824_v4  ;;  %v14842_v3 = vpack.c.bf16 %v3315_v0, %v3312_v63  ;;  %v3800_v4 = vld [vmem:[#allocation9 + $0x310] sm:$0xff]  ;;  %v3831_v0 = vld [vmem:[#allocation9 + $0x408] sm:$0xff] }
 0xa88   : > { %14797 = vmatprep.subr.bf16.mxu0 %v14796_v6  ;;  %14826 = vmatprep.subr.bf16.mxu1 %v17344_v53  ;;  %v14880_v6 = vpack.c.bf16 %v3803_v5, %v3800_v4  ;;  %v3835_v4 = vld [vmem:[#allocation9 + $0x428] sm:$0xff]  ;;  %v3838_v5 = vld [vmem:[#allocation9 + $0x440] sm:$0xff] }
 0xa89   : > { %v14871_v29 = vpack.c.bf16 %v3838_v5, %v3835_v4  ;;  %v4061_v4 = vld [vmem:[#allocation10 + $0x238] sm:$0xff] }
 0xa8b   : > { %14799 = vmatpush1.bf16.msra.mxu0 %v14798_v32  ;;  %14828 = vmatpush3.bf16.msra.mxu1 %v14827_v16  ;;  %v3809_v32 = vld [vmem:[#allocation9 + $0x358] sm:$0xff] }
 0xa8c   : > { %14801 = vmatprep.subr.bf16.mxu0 %v14800_v17  ;;  %14829 = vmatprep.subr.bf16.mxu1 %v17344_v53  ;;  %v3805_v16 = vld [vmem:[#allocation9 + $0x338] sm:$0xff]  ;;  %v14847_v17 = vpack.c.bf16 %v3802_v27, %v3799_v7  ;;  %v3834_v7 = vld [vmem:[#allocation9 + $0x420] sm:$0xff] }
 0xa8d   : > { %v14851_v20 = vpack.c.bf16 %v3808_v34, %v3805_v16  ;;  %v3841_v16 = vld [vmem:[#allocation9 + $0x458] sm:$0xff]  ;;  %v3844_v34 = vld [vmem:[#allocation9 + $0x470] sm:$0xff] }
 0xa8f   : > { %14803 = vmatpush1.bf16.msra.mxu0 %v14802_v22  ;;  %14831 = vmatpush3.bf16.msra.mxu1 %v14830_v23  ;;  %v3815_v22 = vld [vmem:[#allocation9 + $0x388] sm:$0xff] }
 0xa90   : > { %14805 = vmatprep.subr.bf16.mxu0 %v14804_v25  ;;  %14832 = vmatprep.subr.bf16.mxu1 %v17344_v53  ;;  %v3811_v23 = vld [vmem:[#allocation9 + $0x368] sm:$0xff]  ;;  %v14886_v30 = vpack.c.bf16 %v3815_v22, %v3812_v21  ;;  %v3994_v21 = vld [vmem:[#allocation10 + $0x20] sm:$0xff] }
 0xa91   : > { %v14855_v33 = vpack.c.bf16 %v3814_v24, %v3811_v23  ;;  %v4040_v23 = vld [vmem:[#allocation10 + $0x190] sm:$0xff]  ;;  %v4043_v24 = vld [vmem:[#allocation10 + $0x1a8] sm:$0xff] }
 0xa93   : > { %14807 = vmatpush1.bf16.msra.mxu0 %v14806_v42  ;;  %14834 = vmatpush3.bf16.msra.mxu1 %v14833_v45  ;;  %v3821_v42 = vld [vmem:[#allocation9 + $0x3b8] sm:$0xff] }
 0xa94   : > { %14809 = vmatprep.subr.bf16.mxu0 %v14808_v46  ;;  %14835 = vmatprep.subr.bf16.mxu1 %v17344_v53  ;;  %v3817_v45 = vld [vmem:[#allocation9 + $0x398] sm:$0xff]  ;;  %v3816_v46 = vld [vmem:[#allocation9 + $0x390] sm:$0xff]  ;;  %v14889_v47 = vpack.c.bf16 %v3821_v42, %v3818_v38  ;;  %v3995_v38 = vld [vmem:[#allocation10 + $0x28] sm:$0xff] }
 0xa95   : > { %v14859_v48 = vpack.c.bf16 %v3820_v10, %v3817_v45  ;;  %v14861_v56 = vpack.c.bf16 %v3819_v49, %v3816_v46  ;;  %v4000_v42 = vld [vmem:[#allocation10 + $0x50] sm:$0xff]  ;;  %v4046_v45 = vld [vmem:[#allocation10 + $0x1c0] sm:$0xff]  ;;  %v4049_v10 = vld [vmem:[#allocation10 + $0x1d8] sm:$0xff] }
 0xa96   : > { %v3996_v46 = vld [vmem:[#allocation10 + $0x30] sm:$0xff]  ;;  %v15003_v15 = vpack.c.bf16 %v4049_v10, %v4046_v45  ;;  %v4027_v10 = vld [vmem:[#allocation10 + $0x128] sm:$0xff] }
 0xa97   : > { %14811 = vmatpush1.bf16.msra.mxu0 %v14810_v54  ;;  %14837 = vmatpush3.bf16.msra.mxu1 %v14836_v55  ;;  %v3823_v54 = vld [vmem:[#allocation9 + $0x3c8] sm:$0xff]  ;;  %v3826_v55 = vld [vmem:[#allocation9 + $0x3e0] sm:$0xff] }
 0xa98   : > { %14813 = vmatprep.subr.bf16.mxu0 %v14812_v57  ;;  %14838 = vmatprep.subr.bf16.mxu1 %v17344_v53  ;;  %v3822_v57 = vld [vmem:[#allocation9 + $0x3c0] sm:$0xff]  ;;  %v14863_v35 = vpack.c.bf16 %v3826_v55, %v3823_v54  ;;  %v4001_v55 = vld [vmem:[#allocation10 + $0x58] sm:$0xff] }
 0xa99   : > { %v14865_v40 = vpack.c.bf16 %v3825_v37, %v3822_v57  ;;  %v3998_v54 = vld [vmem:[#allocation10 + $0x40] sm:$0xff] }
 0xa9a   : > { %v4006_v57 = vld [vmem:[#allocation10 + $0x80] sm:$0xff] }
 0xa9b   : > { %14815 = vmatpush1.bf16.msra.mxu0 %v14814_v39  ;;  %14840 = vmatpush3.bf16.msra.mxu1 %v14839_v61  ;;  %v3829_v39 = vld [vmem:[#allocation9 + $0x3f8] sm:$0xff]  ;;  %v3832_v61 = vld [vmem:[#allocation9 + $0x410] sm:$0xff] }
 0xa9c   : > { %14817 = vmatprep.subr.bf16.mxu0 %v14816_v62  ;;  %14841 = vmatprep.subr.bf16.mxu1 %v17344_v53  ;;  %v3828_v62 = vld [vmem:[#allocation9 + $0x3f0] sm:$0xff]  ;;  %v14867_v63 = vpack.c.bf16 %v3832_v61, %v3829_v39  ;;  %v4005_v39 = vld [vmem:[#allocation10 + $0x78] sm:$0xff]  ;;  %v15005_v61 = vpack.c.bf16 %v4001_v55, %v3998_v54  ;;  %v4026_v54 = vld [vmem:[#allocation10 + $0x120] sm:$0xff] }
 0xa9d   : > { %v14913_v5 = vpack.c.bf16 %v4005_v39, %v4002_v60  ;;  %v4029_v55 = vld [vmem:[#allocation10 + $0x138] sm:$0xff]  ;;  %v4036_v60 = vld [vmem:[#allocation10 + $0x170] sm:$0xff]  ;;  %v4082_v39 = vld [vmem:[#allocation10 + $0x2e0] sm:$0xff] }
 0xa9f   : > { %14819 = vmatpush1.bf16.msra.mxu0 %v14818_v1  ;;  %14843 = vmatpush3.bf16.msra.mxu1 %v14842_v3  ;;  %v3836_v1 = vld [vmem:[#allocation9 + $0x430] sm:$0xff]  ;;  %v3839_v3 = vld [vmem:[#allocation9 + $0x448] sm:$0xff] }
 0xaa0   : > { %14844 = vmatprep.subr.bf16.mxu0 %v17344_v53  ;;  %14879 = vmatprep.subr.bf16.mxu1 %v17344_v53  ;;  %v14898_v27 = vpack.c.bf16 %v3839_v3, %v3836_v1  ;;  %v4012_v1 = vld [vmem:[#allocation10 + $0xb0] sm:$0xff]  ;;  %v4058_v3 = vld [vmem:[#allocation10 + $0x220] sm:$0xff] }
 0xaa2   : > { %3646 = vmatmul.mubr.f32.vlgmr.msra.gmra.mrb[42].mxu0 %v18132_v52  ;;  %13109 = vmatmul.mubr.f32.vlgmr.msra.gmra.mrb[52].mxu1 %v18132_v52  ;;  %v14883_v52 = vpack.c.bf16 %v3809_v32, %v3806_v8  ;;  %v3842_v8 = vld [vmem:[#allocation9 + $0x460] sm:$0xff]  ;;  %v3845_v32 = vld [vmem:[#allocation9 + $0x478] sm:$0xff] }
 0xaa3   : > { %14846 = vmatpush3.bf16.msra.mxu0 %v18106_v51  ;;  %13117 = vmatprep.mubr.msk.f32.mxu0 %vm17345_vm2, %v17346_v14  ;;  %v3807_v51 = vld [vmem:[#allocation9 + $0x348] sm:$0xff] }
 0xaa4   : > { %13115 = vmatprep.subr.mxu0 %v17346_v14  ;;  %14881 = vmatpush3.bf16.msra.mxu1 %v14880_v6  ;;  %v14853_v25 = vpack.c.bf16 %v3807_v51, %v3804_v44  ;;  %v14869_v6 = vpack.c.bf16 %v3831_v0, %v3828_v62  ;;  %v3840_v44 = vld [vmem:[#allocation9 + $0x450] sm:$0xff]  ;;  %v3991_v51 = vld [vmem:[#allocation10 + $0x8] sm:$0xff]  ;;  %v4009_v62 = vld [vmem:[#allocation10 + $0x98] sm:$0xff] }
 0xaa5   : > { %14882 = vmatprep.subr.bf16.mxu1 %v17344_v53  ;;  %13152 = vmatprep.mubr.msk.f32.mxu1 %vm17345_vm2, %v17346_v14  ;;  %v14903_v22 = vpack.c.bf16 %v3994_v21, %v3991_v51  ;;  %v4007_v0 = vld [vmem:[#allocation10 + $0x88] sm:$0xff]  ;;  %v4021_v21 = vld [vmem:[#allocation10 + $0xf8] sm:$0xff] }
 0xaa7   : > { %13116 = vmatpush3.msra.mxu0 %v18110_v2  ;;  %v14857_v2 = vpack.c.bf16 %v3813_v36, %v3810_v26  ;;  %v3990_v26 = vld [vmem:[#allocation10] sm:$0xff]  ;;  %v3992_v36 = vld [vmem:[#allocation10 + $0x10] sm:$0xff] }
 0xaa8   : > { %13118 = vmatmul.mubr.msk.f32.vlgmr.msra.gmra.mrb[44].mxu0 %vm3194_vm3, %v3723_v18  ;;  %14848 = vmatprep.subr.bf16.mxu0 %v14847_v17  ;;  %v14873_v17 = vpack.c.bf16 %v3837_v12, %v3834_v7  ;;  %v14901_v18 = vpack.c.bf16 %v3845_v32, %v3842_v8  ;;  %v4011_v7 = vld [vmem:[#allocation10 + $0xa8] sm:$0xff]  ;;  %v15011_v8 = vpack.c.bf16 %v4061_v4, %v4058_v3  ;;  %v4010_v32 = vld [vmem:[#allocation10 + $0xa0] sm:$0xff]  ;;  %v4037_v4 = vld [vmem:[#allocation10 + $0x178] sm:$0xff] }
 0xaa9   : > { %14850 = vmatpush1.bf16.msra.mxu0 %v14849_v19  ;;  %14884 = vmatpush3.bf16.msra.mxu1 %v14883_v52  ;;  %v14875_v19 = vpack.c.bf16 %v3844_v34, %v3841_v16  ;;  %v3843_v52 = vld [vmem:[#allocation9 + $0x468] sm:$0xff]  ;;  %v4013_v16 = vld [vmem:[#allocation10 + $0xb8] sm:$0xff]  ;;  %v4018_v34 = vld [vmem:[#allocation10 + $0xe0] sm:$0xff] }
 0xaaa   : > { %14852 = vmatprep.subr.bf16.mxu0 %v14851_v20  ;;  %14885 = vmatprep.subr.bf16.mxu1 %v17344_v53  ;;  %v14877_v20 = vpack.c.bf16 %v3843_v52, %v3840_v44  ;;  %v4015_v12 = vld [vmem:[#allocation10 + $0xc8] sm:$0xff]  ;;  %v4014_v44 = vld [vmem:[#allocation10 + $0xc0] sm:$0xff]  ;;  %v4017_v52 = vld [vmem:[#allocation10 + $0xd8] sm:$0xff] }
 0xaab   : > { %3910 = vmatprep.mubr.f32.mxu0 %v17346_v14  ;;  %v14919_v51 = vpack.c.bf16 %v4018_v34, %v4015_v12  ;;  %v4034_v3 = vld [vmem:[#allocation10 + $0x160] sm:$0xff] }
 0xaac   : > { %v4038_v12 = vld [vmem:[#allocation10 + $0x180] sm:$0xff] }
 0xaad   : > { %14854 = vmatpush1.bf16.msra.mxu0 %v14853_v25  ;;  %14887 = vmatpush3.bf16.msra.mxu1 %v14886_v30  ;;  %v14999_v25 = vpack.c.bf16 %v4043_v24, %v4040_v23  ;;  %v3993_v30 = vld [vmem:[#allocation10 + $0x18] sm:$0xff]  ;;  %v4016_v23 = vld [vmem:[#allocation10 + $0xd0] sm:$0xff]  ;;  %v4019_v24 = vld [vmem:[#allocation10 + $0xe8] sm:$0xff] }
 0xaae   : > { %14856 = vmatprep.subr.bf16.mxu0 %v14855_v33  ;;  %14888 = vmatprep.subr.bf16.mxu1 %v17344_v53  ;;  %v3997_v33 = vld [vmem:[#allocation10 + $0x38] sm:$0xff] }
 0xaaf   : > { %v14907_v49 = vpack.c.bf16 %v4000_v42, %v3997_v33  ;;  %v14921_v33 = vpack.c.bf16 %v4017_v52, %v4014_v44  ;;  %v15017_v42 = vpack.c.bf16 %v4019_v24, %v4016_v23  ;;  %v4051_v44 = vld [vmem:[#allocation10 + $0x1e8] sm:$0xff]  ;;  %v4054_v52 = vld [vmem:[#allocation10 + $0x200] sm:$0xff]  ;;  %v4057_v23 = vld [vmem:[#allocation10 + $0x218] sm:$0xff] }
 0xab0   : > { %v4060_v24 = vld [vmem:[#allocation10 + $0x230] sm:$0xff] }
 0xab1   : > { %14858 = vmatpush1.bf16.msra.mxu0 %v14857_v2  ;;  %14890 = vmatpush3.bf16.msra.mxu1 %v14889_v47  ;;  %v14905_v2 = vpack.c.bf16 %v3993_v30, %v3990_v26  ;;  %v3999_v47 = vld [vmem:[#allocation10 + $0x48] sm:$0xff]  ;;  %v4070_v26 = vld [vmem:[#allocation10 + $0x280] sm:$0xff]  ;;  %v4073_v30 = vld [vmem:[#allocation10 + $0x298] sm:$0xff] }
 0xab2   : > { %14860 = vmatprep.subr.bf16.mxu0 %v14859_v48  ;;  %14891 = vmatprep.subr.bf16.mxu1 %v17344_v53  ;;  %v15001_v48 = vpack.c.bf16 %v3995_v38, %v3992_v36  ;;  %v14909_v59 = vpack.c.bf16 %v3999_v47, %v3996_v46  ;;  %v4020_v36 = vld [vmem:[#allocation10 + $0xf0] sm:$0xff]  ;;  %v4023_v38 = vld [vmem:[#allocation10 + $0x108] sm:$0xff]  ;;  %v4022_v46 = vld [vmem:[#allocation10 + $0x100] sm:$0xff] }
 0xab3   : > { %v4025_v47 = vld [vmem:[#allocation10 + $0x118] sm:$0xff] }
 0xab5   : > { %14862 = vmatpush1.bf16.msra.mxu0 %v14861_v56  ;;  %14893 = vmatpush3.bf16.msra.mxu1 %v14892_v58  ;;  %v4052_v58 = vld [vmem:[#allocation10 + $0x1f0] sm:$0xff] }
 0xab6   : > { %14864 = vmatprep.subr.bf16.mxu0 %v14863_v35  ;;  %14894 = vmatprep.subr.bf16.mxu1 %v17344_v53  ;;  %v4055_v35 = vld [vmem:[#allocation10 + $0x208] sm:$0xff] }
 0xab9   : > { %14866 = vmatpush1.bf16.msra.mxu0 %v14865_v40  ;;  %14896 = vmatpush3.bf16.msra.mxu1 %v14895_v41  ;;  %v14911_v40 = vpack.c.bf16 %v4006_v57, %v4003_v50  ;;  %v15007_v41 = vpack.c.bf16 %v4055_v35, %v4052_v58  ;;  %v4079_v50 = vld [vmem:[#allocation10 + $0x2c8] sm:$0xff]  ;;  %v4033_v58 = vld [vmem:[#allocation10 + $0x158] sm:$0xff] }
 0xaba   : > { %14868 = vmatprep.subr.bf16.mxu0 %v14867_v63  ;;  %14897 = vmatprep.subr.bf16.mxu1 %v17344_v53  ;;  %v4004_v63 = vld [vmem:[#allocation10 + $0x70] sm:$0xff] }
 0xabd   : > { %14870 = vmatpush1.bf16.msra.mxu0 %v14869_v6  ;;  %14899 = vmatpush3.bf16.msra.mxu1 %v14898_v27  ;;  %v4008_v6 = vld [vmem:[#allocation10 + $0x90] sm:$0xff]  ;;  %v15009_v27 = vpack.c.bf16 %v4007_v0, %v4004_v63  ;;  %v14931_v63 = vpack.c.bf16 %v4036_v60, %v4033_v58  ;;  %v4035_v0 = vld [vmem:[#allocation10 + $0x168] sm:$0xff]  ;;  %v4074_v58 = vld [vmem:[#allocation10 + $0x2a0] sm:$0xff] }
 0xabe   : > { %14872 = vmatprep.subr.bf16.mxu0 %v14871_v29  ;;  %14900 = vmatprep.subr.bf16.mxu1 %v17344_v53  ;;  %v14915_v29 = vpack.c.bf16 %v4012_v1, %v4009_v62  ;;  %v4032_v62 = vld [vmem:[#allocation10 + $0x150] sm:$0xff] }
 0xac1   : > { %14874 = vmatpush1.bf16.msra.mxu0 %v14873_v17  ;;  %14902 = vmatpush3.bf16.msra.mxu1 %v14901_v18  ;;  %v4064_v17 = vld [vmem:[#allocation10 + $0x250] sm:$0xff]  ;;  %v4067_v18 = vld [vmem:[#allocation10 + $0x268] sm:$0xff] }
 0xac2   : > { %14876 = vmatprep.subr.bf16.mxu0 %v14875_v19  ;;  %15000 = vmatprep.subr.bf16.mxu1 %v14999_v25  ;;  %v14917_v19 = vpack.c.bf16 %v4011_v7, %v4008_v6  ;;  %v4024_v25 = vld [vmem:[#allocation10 + $0x110] sm:$0xff]  ;;  %v4042_v6 = vld [vmem:[#allocation10 + $0x1a0] sm:$0xff]  ;;  %v14933_v7 = vpack.c.bf16 %v4035_v0, %v4032_v62 }
 0xac3   : > { %v14923_v45 = vpack.c.bf16 %v4024_v25, %v4021_v21  ;;  %v4050_v21 = vld [vmem:[#allocation10 + $0x1e0] sm:$0xff] }
 0xac5   : > { %14878 = vmatpush1.bf16.msra.mxu0 %v14877_v20  ;;  %v15013_v20 = vpack.c.bf16 %v4013_v16, %v4010_v32  ;;  %v4045_v32 = vld [vmem:[#allocation10 + $0x1b8] sm:$0xff]  ;;  %v4048_v16 = vld [vmem:[#allocation10 + $0x1d0] sm:$0xff] }
 0xac6   : > { %14904 = vmatprep.subr.bf16.mxu0 %v14903_v22  ;;  %v15015_v22 = vpack.c.bf16 %v4067_v18, %v4064_v17  ;;  %v14939_v17 = vpack.c.bf16 %v4048_v16, %v4045_v32  ;;  %v4044_v18 = vld [vmem:[#allocation10 + $0x1b0] sm:$0xff] }
 0xac7   : > { %v4092_v32 = vld [vmem:[#allocation10 + $0x330] sm:$0xff] }
 0xb7b   : > { %v3793_v56 = vpop.f32.mrb[44].mxu0 }
 0xb7c   : > { %v13119_v37 = vpop.f32.mrb[45].mxu0  ;;  %3911 = vmatmul.mubr.f32.vlgmr.msra.gmra.mrb[42].mxu0 %v3793_v56  ;;  %13153 = vmatmul.mubr.f32.vlgmr.msra.gmra.mrb[52].mxu1 %v3793_v56  ;;  %v15021_v56 = vpack.c.bf16 %v4025_v47, %v4022_v46  ;;  %v4069_v46 = vld [vmem:[#allocation10 + $0x278] sm:$0xff]  ;;  %v4072_v47 = vld [vmem:[#allocation10 + $0x290] sm:$0xff] }
 0xb7d   : > { %14906 = vmatpush1.bf16.msra.mxu0 %v14905_v2  ;;  %15002 = vmatpush3.bf16.msra.mxu1 %v15001_v48  ;;  %v15019_v2 = vpack.c.bf16 %v4073_v30, %v4070_v26  ;;  %v4030_v48 = vld [vmem:[#allocation10 + $0x140] sm:$0xff]  ;;  %v4028_v37 = vld [vmem:[#allocation10 + $0x130] sm:$0xff]  ;;  %v14947_v26 = vpack.c.bf16 %v4060_v24, %v4057_v23  ;;  %v4101_v24 = vld [vmem:[#allocation10 + $0x378] sm:$0xff] }
 0xb7e   : > { %14908 = vmatprep.subr.bf16.mxu0 %v14907_v49  ;;  %15004 = vmatprep.subr.bf16.mxu1 %v15003_v15  ;;  %v4076_v49 = vld [vmem:[#allocation10 + $0x2b0] sm:$0xff]  ;;  %v14925_v15 = vpack.c.bf16 %v4023_v38, %v4020_v36  ;;  %v14927_v57 = vpack.c.bf16 %v4030_v48, %v4027_v10  ;;  %v4063_v36 = vld [vmem:[#allocation10 + $0x248] sm:$0xff]  ;;  %v4066_v38 = vld [vmem:[#allocation10 + $0x260] sm:$0xff] }
 0xb7f   : > { %v15023_v35 = vpack.c.bf16 %v4079_v50, %v4076_v49  ;;  %v4056_v30 = vld [vmem:[#allocation10 + $0x210] sm:$0xff]  ;;  %v4062_v10 = vld [vmem:[#allocation10 + $0x240] sm:$0xff]  ;;  %v14955_v49 = vpack.c.bf16 %v4072_v47, %v4069_v46  ;;  %v4109_v46 = vld [vmem:[#allocation10 + $0x3b8] sm:$0xff] }
 0xb80   : > { %v4068_v50 = vld [vmem:[#allocation10 + $0x270] sm:$0xff]  ;;  %v4111_v47 = vld [vmem:[#allocation10 + $0x3c8] sm:$0xff] }
 0xb81   : > { %14910 = vmatpush1.bf16.msra.mxu0 %v14909_v59  ;;  %15006 = vmatpush3.bf16.msra.mxu1 %v15005_v61  ;;  %v4031_v59 = vld [vmem:[#allocation10 + $0x148] sm:$0xff]  ;;  %v4085_v61 = vld [vmem:[#allocation10 + $0x2f8] sm:$0xff] }
 0xb82   : > { %14912 = vmatprep.subr.bf16.mxu0 %v14911_v40  ;;  %15008 = vmatprep.subr.bf16.mxu1 %v15007_v41  ;;  %v14929_v40 = vpack.c.bf16 %v4029_v55, %v4026_v54  ;;  %v15025_v41 = vpack.c.bf16 %v4031_v59, %v4028_v37  ;;  %v15027_v1 = vpack.c.bf16 %v4085_v61, %v4082_v39  ;;  %v4075_v54 = vld [vmem:[#allocation10 + $0x2a8] sm:$0xff]  ;;  %v4078_v55 = vld [vmem:[#allocation10 + $0x2c0] sm:$0xff]  ;;  %v4081_v37 = vld [vmem:[#allocation10 + $0x2d8] sm:$0xff] }
 0xb83   : > { %v4084_v59 = vld [vmem:[#allocation10 + $0x2f0] sm:$0xff] }
 0xb84   : > { %v14963_v39 = vpack.c.bf16 %v4084_v59, %v4081_v37  ;;  %v4080_v61 = vld [vmem:[#allocation10 + $0x2d0] sm:$0xff] }
 0xb85   : > { %14914 = vmatpush1.bf16.msra.mxu0 %v14913_v5  ;;  %15010 = vmatpush3.bf16.msra.mxu1 %v15009_v27  ;;  %v4039_v5 = vld [vmem:[#allocation10 + $0x188] sm:$0xff]  ;;  %v15029_v27 = vpack.c.bf16 %v4037_v4, %v4034_v3  ;;  %v4089_v3 = vld [vmem:[#allocation10 + $0x318] sm:$0xff]  ;;  %v4088_v4 = vld [vmem:[#allocation10 + $0x310] sm:$0xff] }
 0xb86   : > { %14916 = vmatprep.subr.bf16.mxu0 %v14915_v29  ;;  %15012 = vmatprep.subr.bf16.mxu1 %v15011_v8  ;;  %v14935_v29 = vpack.c.bf16 %v4042_v6, %v4039_v5  ;;  %v4041_v8 = vld [vmem:[#allocation10 + $0x198] sm:$0xff]  ;;  %v4091_v5 = vld [vmem:[#allocation10 + $0x328] sm:$0xff] }
 0xb87   : > { %v14937_v34 = vpack.c.bf16 %v4041_v8, %v4038_v12  ;;  %v4093_v6 = vld [vmem:[#allocation10 + $0x338] sm:$0xff]  ;;  %v15032_v8 = vpack.c.bf16 %v4091_v5, %v4088_v4 }
 0xb88   : > { %v4125_v5 = vld [vmem:[#allocation10 + $0x438] sm:$0xff] }
 0xb89   : > { %14918 = vmatpush1.bf16.msra.mxu0 %v14917_v19  ;;  %15014 = vmatpush3.bf16.msra.mxu1 %v15013_v20  ;;  %v4047_v19 = vld [vmem:[#allocation10 + $0x1c8] sm:$0xff] }
 0xb8a   : > { %14920 = vmatprep.subr.bf16.mxu0 %v14919_v51  ;;  %15016 = vmatprep.subr.bf16.mxu1 %v15015_v22  ;;  %v14941_v20 = vpack.c.bf16 %v4047_v19, %v4044_v18  ;;  %v14943_v51 = vpack.c.bf16 %v4054_v52, %v4051_v44  ;;  %v4053_v22 = vld [vmem:[#allocation10 + $0x1f8] sm:$0xff]  ;;  %v4095_v18 = vld [vmem:[#allocation10 + $0x348] sm:$0xff]  ;;  %v4094_v19 = vld [vmem:[#allocation10 + $0x340] sm:$0xff] }
 0xb8b   : > { %v14945_v25 = vpack.c.bf16 %v4053_v22, %v4050_v21  ;;  %v4097_v44 = vld [vmem:[#allocation10 + $0x358] sm:$0xff]  ;;  %v4099_v52 = vld [vmem:[#allocation10 + $0x368] sm:$0xff]  ;;  %v4098_v22 = vld [vmem:[#allocation10 + $0x360] sm:$0xff] }
 0xb8c   : > { %v15035_v21 = vpack.c.bf16 %v4097_v44, %v4094_v19  ;;  %v4130_v44 = vld [vmem:[#allocation10 + $0x460] sm:$0xff] }
 0xb8d   : > { %14922 = vmatpush1.bf16.msra.mxu0 %v14921_v33  ;;  %15018 = vmatpush3.bf16.msra.mxu1 %v15017_v42  ;;  %v4059_v33 = vld [vmem:[#allocation10 + $0x228] sm:$0xff] }
 0xb8e   : > { %14924 = vmatprep.subr.bf16.mxu0 %v14923_v45  ;;  %15020 = vmatprep.subr.bf16.mxu1 %v15019_v2  ;;  %v14949_v42 = vpack.c.bf16 %v4059_v33, %v4056_v30  ;;  %v14951_v45 = vpack.c.bf16 %v4066_v38, %v4063_v36  ;;  %v4065_v2 = vld [vmem:[#allocation10 + $0x258] sm:$0xff]  ;;  %v4108_v33 = vld [vmem:[#allocation10 + $0x3b0] sm:$0xff]  ;;  %v14977_v36 = vpack.c.bf16 %v4101_v24, %v4098_v22  ;;  %v4471_v22 = vld [vmem:[#allocation10 + $0x628] sm:$0xff] }
 0xb8f   : > { %v14953_v48 = vpack.c.bf16 %v4065_v2, %v4062_v10  ;;  %v4105_v30 = vld [vmem:[#allocation10 + $0x398] sm:$0xff]  ;;  %v4107_v10 = vld [vmem:[#allocation10 + $0x3a8] sm:$0xff]  ;;  %v4106_v2 = vld [vmem:[#allocation10 + $0x3a0] sm:$0xff] }
 0xb91   : > { %14926 = vmatpush1.bf16.msra.mxu0 %v14925_v15  ;;  %15022 = vmatpush3.bf16.msra.mxu1 %v15021_v56  ;;  %v4071_v15 = vld [vmem:[#allocation10 + $0x288] sm:$0xff] }
 0xb92   : > { %14928 = vmatprep.subr.bf16.mxu0 %v14927_v57  ;;  %15024 = vmatprep.subr.bf16.mxu1 %v15023_v35  ;;  %v14957_v56 = vpack.c.bf16 %v4071_v15, %v4068_v50  ;;  %v14959_v57 = vpack.c.bf16 %v4078_v55, %v4075_v54  ;;  %v4077_v35 = vld [vmem:[#allocation10 + $0x2b8] sm:$0xff]  ;;  %v15041_v50 = vpack.c.bf16 %v4109_v46, %v4106_v2  ;;  %v4110_v15 = vld [vmem:[#allocation10 + $0x3c0] sm:$0xff] }
 0xb93   : > { %v14961_v60 = vpack.c.bf16 %v4077_v35, %v4074_v58  ;;  %v4113_v55 = vld [vmem:[#allocation10 + $0x3d8] sm:$0xff]  ;;  %v4120_v35 = vld [vmem:[#allocation10 + $0x410] sm:$0xff] }
 0xb94   : > { %v4117_v58 = vld [vmem:[#allocation10 + $0x3f8] sm:$0xff]  ;;  %v14985_v37 = vpack.c.bf16 %v4113_v55, %v4110_v15 }
 0xb95   : > { %14930 = vmatpush1.bf16.msra.mxu0 %v14929_v40  ;;  %15026 = vmatpush3.bf16.msra.mxu1 %v15025_v41  ;;  %v4083_v40 = vld [vmem:[#allocation10 + $0x2e8] sm:$0xff]  ;;  %v4477_v2 = vld [vmem:[#allocation10 + $0x658] sm:$0xff] }
 0xb96   : > { %14932 = vmatprep.subr.bf16.mxu0 %v14931_v63  ;;  %15028 = vmatprep.subr.bf16.mxu1 %v15027_v1  ;;  %v14965_v62 = vpack.c.bf16 %v4083_v40, %v4080_v61  ;;  %v4087_v41 = vld [vmem:[#allocation10 + $0x308] sm:$0xff]  ;;  %v4090_v63 = vld [vmem:[#allocation10 + $0x320] sm:$0xff]  ;;  %v4429_v55 = vld [vmem:[#allocation10 + $0x4d8] sm:$0xff] }
 0xb97   : > { %v14967_v0 = vpack.c.bf16 %v4090_v63, %v4087_v41  ;;  %v4086_v1 = vld [vmem:[#allocation10 + $0x300] sm:$0xff]  ;;  %v4119_v61 = vld [vmem:[#allocation10 + $0x408] sm:$0xff] }
 0xb98   : > { %v14969_v12 = vpack.c.bf16 %v4089_v3, %v4086_v1  ;;  %v4118_v40 = vld [vmem:[#allocation10 + $0x400] sm:$0xff]  ;;  %v4123_v41 = vld [vmem:[#allocation10 + $0x428] sm:$0xff] }
 0xb99   : > { %14934 = vmatpush1.bf16.msra.mxu0 %v14933_v7  ;;  %15030 = vmatpush3.bf16.msra.mxu1 %v15029_v27  ;;  %v4096_v7 = vld [vmem:[#allocation10 + $0x350] sm:$0xff]  ;;  %v4126_v63 = vld [vmem:[#allocation10 + $0x440] sm:$0xff] }
 0xb9a   : > { %14936 = vmatprep.subr.bf16.mxu0 %v14935_v29  ;;  %15031 = vmatprep.subr.bf16.mxu1 %v17344_v53  ;;  %v4122_v3 = vld [vmem:[#allocation10 + $0x420] sm:$0xff]  ;;  %v14991_v4 = vpack.c.bf16 %v4126_v63, %v4123_v41  ;;  %v4435_v41 = vld [vmem:[#allocation10 + $0x508] sm:$0xff]  ;;  %v4437_v63 = vld [vmem:[#allocation10 + $0x518] sm:$0xff] }
 0xb9d   : > { %14938 = vmatpush1.bf16.msra.mxu0 %v14937_v34 }
 0xb9e   : > { %14940 = vmatprep.subr.bf16.mxu0 %v14939_v17  ;;  %v14971_v17 = vpack.c.bf16 %v4096_v7, %v4093_v6  ;;  %v4124_v6 = vld [vmem:[#allocation10 + $0x430] sm:$0xff]  ;;  %v4127_v7 = vld [vmem:[#allocation10 + $0x448] sm:$0xff] }
 0xba1   : > { %14942 = vmatpush1.bf16.msra.mxu0 %v14941_v20  ;;  %v4102_v20 = vld [vmem:[#allocation10 + $0x380] sm:$0xff] }
 0xba2   : > { %14944 = vmatprep.subr.bf16.mxu0 %v14943_v51  ;;  %v14973_v51 = vpack.c.bf16 %v4095_v18, %v4092_v32  ;;  %v14975_v23 = vpack.c.bf16 %v4102_v20, %v4099_v52  ;;  %v14993_v32 = vpack.c.bf16 %v4125_v5, %v4122_v3  ;;  %v4131_v18 = vld [vmem:[#allocation10 + $0x468] sm:$0xff]  ;;  %v4133_v52 = vld [vmem:[#allocation10 + $0x478] sm:$0xff] }
 0xba3   : > { %v4419_v20 = vld [vmem:[#allocation10 + $0x488] sm:$0xff]  ;;  %v15053_v24 = vpack.c.bf16 %v4133_v52, %v4130_v44  ;;  %v4489_v3 = vld [vmem:[#allocation10 + $0x6b8] sm:$0xff] }
 0xba4   : > { %v4495_v44 = vld [vmem:[#allocation10 + $0x6e8] sm:$0xff] }
 0xba5   : > { %14946 = vmatpush1.bf16.msra.mxu0 %v14945_v25  ;;  %v4100_v25 = vld [vmem:[#allocation10 + $0x370] sm:$0xff] }
 0xba6   : > { %14948 = vmatprep.subr.bf16.mxu0 %v14947_v26  ;;  %v4103_v26 = vld [vmem:[#allocation10 + $0x388] sm:$0xff] }
 0xba7   : > { %v15038_v38 = vpack.c.bf16 %v4103_v26, %v4100_v25 }
 0xba9   : > { %14950 = vmatpush1.bf16.msra.mxu0 %v14949_v42  ;;  %v4104_v42 = vld [vmem:[#allocation10 + $0x390] sm:$0xff] }
 0xbaa   : > { %14952 = vmatprep.subr.bf16.mxu0 %v14951_v45  ;;  %v14979_v45 = vpack.c.bf16 %v4108_v33, %v4105_v30  ;;  %v4418_v30 = vld [vmem:[#allocation10 + $0x480] sm:$0xff]  ;;  %v4421_v33 = vld [vmem:[#allocation10 + $0x498] sm:$0xff] }
 0xbab   : > { %v15057_v46 = vpack.c.bf16 %v4421_v33, %v4418_v30  ;;  %v4452_v30 = vld [vmem:[#allocation10 + $0x590] sm:$0xff]  ;;  %v4498_v33 = vld [vmem:[#allocation10 + $0x700] sm:$0xff] }
 0xbad   : > { %14954 = vmatpush1.bf16.msra.mxu0 %v14953_v48  ;;  %v4114_v48 = vld [vmem:[#allocation10 + $0x3e0] sm:$0xff] }
 0xbae   : > { %14956 = vmatprep.subr.bf16.mxu0 %v14955_v49  ;;  %v14981_v49 = vpack.c.bf16 %v4107_v10, %v4104_v42  ;;  %v14983_v54 = vpack.c.bf16 %v4114_v48, %v4111_v47  ;;  %v4425_v42 = vld [vmem:[#allocation10 + $0x4b8] sm:$0xff]  ;;  %v4474_v10 = vld [vmem:[#allocation10 + $0x640] sm:$0xff]  ;;  %v4424_v48 = vld [vmem:[#allocation10 + $0x4b0] sm:$0xff] }
 0xbb1   : > { %14958 = vmatpush1.bf16.msra.mxu0 %v14957_v56  ;;  %v4112_v56 = vld [vmem:[#allocation10 + $0x3d0] sm:$0xff] }
 0xbb2   : > { %14960 = vmatprep.subr.bf16.mxu0 %v14959_v57  ;;  %v4115_v57 = vld [vmem:[#allocation10 + $0x3e8] sm:$0xff] }
 0xbb3   : > { %v15044_v59 = vpack.c.bf16 %v4115_v57, %v4112_v56  ;;  %v4431_v56 = vld [vmem:[#allocation10 + $0x4e8] sm:$0xff]  ;;  %v4434_v57 = vld [vmem:[#allocation10 + $0x500] sm:$0xff] }
 0xbb5   : > { %14962 = vmatpush1.bf16.msra.mxu0 %v14961_v60  ;;  %v4116_v60 = vld [vmem:[#allocation10 + $0x3f0] sm:$0xff] }
 0xbb6   : > { %14964 = vmatprep.subr.bf16.mxu0 %v14963_v39  ;;  %v14987_v39 = vpack.c.bf16 %v4120_v35, %v4117_v58  ;;  %v4480_v58 = vld [vmem:[#allocation10 + $0x670] sm:$0xff]  ;;  %v4483_v35 = vld [vmem:[#allocation10 + $0x688] sm:$0xff] }
 0xbb9   : > { %14966 = vmatpush1.bf16.msra.mxu0 %v14965_v62  ;;  %v4121_v62 = vld [vmem:[#allocation10 + $0x418] sm:$0xff] }
 0xbba   : > { %14968 = vmatprep.subr.bf16.mxu0 %v14967_v0  ;;  %v14989_v0 = vpack.c.bf16 %v4119_v61, %v4116_v60  ;;  %v15047_v1 = vpack.c.bf16 %v4121_v62, %v4118_v40  ;;  %v15063_v60 = vpack.c.bf16 %v4434_v57, %v4431_v56  ;;  %v4433_v61 = vld [vmem:[#allocation10 + $0x4f8] sm:$0xff]  ;;  %v4432_v40 = vld [vmem:[#allocation10 + $0x4f0] sm:$0xff]  ;;  %v15159_v62 = vpack.c.bf16 %v4483_v35, %v4480_v58  ;;  %v4454_v58 = vld [vmem:[#allocation10 + $0x5a0] sm:$0xff] }
 0xbbb   : > { %v15161_v5 = vpack.c.bf16 %v4435_v41, %v4432_v40  ;;  %v4457_v35 = vld [vmem:[#allocation10 + $0x5b8] sm:$0xff]  ;;  %v4510_v40 = vld [vmem:[#allocation10 + $0x760] sm:$0xff] }
 0xbbc   : > { %v15081_v41 = vpack.c.bf16 %v4457_v35, %v4454_v58  ;;  %v4491_v58 = vld [vmem:[#allocation10 + $0x6c8] sm:$0xff]  ;;  %v4494_v35 = vld [vmem:[#allocation10 + $0x6e0] sm:$0xff] }
 0xc4f   : > { %v18165_v27 = vpop.f32.mrb[42].mxu0  ;;  %v18167_v29 = vpop.f32.mrb[52].mxu1 }
 0xc50   : > { %v18169_v16 = vpop.f32.mrb[43].mxu0  ;;  %v13154_v34 = vpop.f32.mrb[53].mxu1 }
 0xc51   : > { %4198 = vmatprep.mubr.f32.mxu0 %v18169_v16  ;;  %4340 = vmatprep.mubr.f32.mxu1 %v18169_v16  ;;  %v15050_v34 = vpack.c.bf16 %v4127_v7, %v4124_v6  ;;  %v4436_v7 = vld [vmem:[#allocation10 + $0x510] sm:$0xff] }
 0xc52   : > { %4199 = vmatmul.mubr.f32.vlgmr.msra.gmra.mrb[46].mxu0 %v18165_v27  ;;  %4341 = vmatmul.mubr.f32.vlgmr.msra.gmra.mrb[54].mxu1 %v18165_v27 }
 0xc53   : > { %14970 = vmatpush1.bf16.msra.mxu0 %v14969_v12  ;;  %15033 = vmatpush3.bf16.msra.mxu1 %v15032_v8  ;;  %v4129_v12 = vld [vmem:[#allocation10 + $0x458] sm:$0xff]  ;;  %v4132_v8 = vld [vmem:[#allocation10 + $0x470] sm:$0xff] }
 0xc54   : > { %14972 = vmatprep.subr.bf16.mxu0 %v14971_v17  ;;  %15034 = vmatprep.subr.bf16.mxu1 %v17344_v53  ;;  %v4128_v17 = vld [vmem:[#allocation10 + $0x450] sm:$0xff]  ;;  %v14995_v19 = vpack.c.bf16 %v4132_v8, %v4129_v12  ;;  %v4439_v12 = vld [vmem:[#allocation10 + $0x528] sm:$0xff]  ;;  %v4438_v8 = vld [vmem:[#allocation10 + $0x520] sm:$0xff] }
 0xc55   : > { %4269 = vmatprep.mubr.f32.mxu0 %v17346_v14  ;;  %13187 = vmatprep.mubr.msk.f32.mxu1 %vm17345_vm2, %v17346_v14  ;;  %v15069_v52 = vpack.c.bf16 %v4439_v12, %v4436_v7  ;;  %v4467_v7 = vld [vmem:[#allocation10 + $0x608] sm:$0xff]  ;;  %v4470_v12 = vld [vmem:[#allocation10 + $0x620] sm:$0xff] }
 0xc57   : > { %14974 = vmatpush1.bf16.msra.mxu0 %v14973_v51  ;;  %15036 = vmatpush3.bf16.msra.mxu1 %v15035_v21  ;;  %v4422_v51 = vld [vmem:[#allocation10 + $0x4a0] sm:$0xff]  ;;  %v4468_v21 = vld [vmem:[#allocation10 + $0x610] sm:$0xff] }
 0xc58   : > { %14976 = vmatprep.subr.bf16.mxu0 %v14975_v23  ;;  %15037 = vmatprep.subr.bf16.mxu1 %v17344_v53  ;;  %v14997_v23 = vpack.c.bf16 %v4131_v18, %v4128_v17  ;;  %v15055_v25 = vpack.c.bf16 %v4422_v51, %v4419_v20  ;;  %v15151_v26 = vpack.c.bf16 %v4471_v22, %v4468_v21  ;;  %v4443_v17 = vld [vmem:[#allocation10 + $0x548] sm:$0xff]  ;;  %v4446_v18 = vld [vmem:[#allocation10 + $0x560] sm:$0xff]  ;;  %v4445_v22 = vld [vmem:[#allocation10 + $0x558] sm:$0xff] }
 0xc59   : > { %v15071_v51 = vpack.c.bf16 %v4446_v18, %v4443_v17  ;;  %v4442_v21 = vld [vmem:[#allocation10 + $0x540] sm:$0xff]  ;;  %v4469_v18 = vld [vmem:[#allocation10 + $0x618] sm:$0xff] }
 0xc5a   : > { %v4466_v17 = vld [vmem:[#allocation10 + $0x600] sm:$0xff] }
 0xc5b   : > { %14978 = vmatpush1.bf16.msra.mxu0 %v14977_v36  ;;  %15039 = vmatpush3.bf16.msra.mxu1 %v15038_v38  ;;  %v4420_v36 = vld [vmem:[#allocation10 + $0x490] sm:$0xff]  ;;  %v4423_v38 = vld [vmem:[#allocation10 + $0x4a8] sm:$0xff] }
 0xc5c   : > { %14980 = vmatprep.subr.bf16.mxu0 %v14979_v45  ;;  %15040 = vmatprep.subr.bf16.mxu1 %v17344_v53  ;;  %v4428_v45 = vld [vmem:[#allocation10 + $0x4d0] sm:$0xff]  ;;  %v15153_v47 = vpack.c.bf16 %v4423_v38, %v4420_v36  ;;  %v4501_v36 = vld [vmem:[#allocation10 + $0x718] sm:$0xff]  ;;  %v15073_v38 = vpack.c.bf16 %v4445_v22, %v4442_v21 }
 0xc5d   : > { %v15059_v15 = vpack.c.bf16 %v4428_v45, %v4425_v42 }
 0xc5f   : > { %14982 = vmatpush1.bf16.msra.mxu0 %v14981_v49  ;;  %15042 = vmatpush3.bf16.msra.mxu1 %v15041_v50  ;;  %v4427_v49 = vld [vmem:[#allocation10 + $0x4c8] sm:$0xff]  ;;  %v4426_v50 = vld [vmem:[#allocation10 + $0x4c0] sm:$0xff] }
 0xc60   : > { %14984 = vmatprep.subr.bf16.mxu0 %v14983_v54  ;;  %15043 = vmatprep.subr.bf16.mxu1 %v17344_v53  ;;  %v15155_v54 = vpack.c.bf16 %v4477_v2, %v4474_v10  ;;  %v4448_v10 = vld [vmem:[#allocation10 + $0x570] sm:$0xff]  ;;  %v4451_v2 = vld [vmem:[#allocation10 + $0x588] sm:$0xff] }
 0xc63   : > { %14986 = vmatpush1.bf16.msra.mxu0 %v14985_v37  ;;  %15045 = vmatpush3.bf16.msra.mxu1 %v15044_v59  ;;  %v15061_v37 = vpack.c.bf16 %v4427_v49, %v4424_v48  ;;  %v15157_v59 = vpack.c.bf16 %v4429_v55, %v4426_v50  ;;  %v4453_v48 = vld [vmem:[#allocation10 + $0x598] sm:$0xff]  ;;  %v4455_v49 = vld [vmem:[#allocation10 + $0x5a8] sm:$0xff]  ;;  %v4458_v50 = vld [vmem:[#allocation10 + $0x5c0] sm:$0xff]  ;;  %v15077_v55 = vpack.c.bf16 %v4451_v2, %v4448_v10 }
 0xc64   : > { %14988 = vmatprep.subr.bf16.mxu0 %v14987_v39  ;;  %15046 = vmatprep.subr.bf16.mxu1 %v17344_v53  ;;  %v4430_v39 = vld [vmem:[#allocation10 + $0x4e0] sm:$0xff]  ;;  %v15079_v57 = vpack.c.bf16 %v4458_v50, %v4455_v49  ;;  %v4481_v10 = vld [vmem:[#allocation10 + $0x678] sm:$0xff]  ;;  %v4528_v2 = vld [vmem:[#allocation10 + $0x7f0] sm:$0xff] }
 0xc67   : > { %14990 = vmatpush1.bf16.msra.mxu0 %v14989_v0  ;;  %15048 = vmatpush3.bf16.msra.mxu1 %v15047_v1  ;;  %v4440_v0 = vld [vmem:[#allocation10 + $0x530] sm:$0xff]  ;;  %v4486_v1 = vld [vmem:[#allocation10 + $0x6a0] sm:$0xff] }
 0xc68   : > { %14992 = vmatprep.subr.bf16.mxu0 %v14991_v4  ;;  %15049 = vmatprep.subr.bf16.mxu1 %v17344_v53  ;;  %v15065_v4 = vpack.c.bf16 %v4433_v61, %v4430_v39  ;;  %v15067_v6 = vpack.c.bf16 %v4440_v0, %v4437_v63  ;;  %v4461_v39 = vld [vmem:[#allocation10 + $0x5d8] sm:$0xff]  ;;  %v4464_v61 = vld [vmem:[#allocation10 + $0x5f0] sm:$0xff] }
 0xc69   : > { %v15083_v0 = vpack.c.bf16 %v4464_v61, %v4461_v39  ;;  %v4490_v39 = vld [vmem:[#allocation10 + $0x6c0] sm:$0xff]  ;;  %v4493_v61 = vld [vmem:[#allocation10 + $0x6d8] sm:$0xff] }
 0xc6b   : > { %14994 = vmatpush1.bf16.msra.mxu0 %v14993_v32  ;;  %15051 = vmatpush3.bf16.msra.mxu1 %v15050_v34  ;;  %v15163_v32 = vpack.c.bf16 %v4489_v3, %v4486_v1  ;;  %v4441_v34 = vld [vmem:[#allocation10 + $0x538] sm:$0xff]  ;;  %v4460_v1 = vld [vmem:[#allocation10 + $0x5d0] sm:$0xff]  ;;  %v4463_v3 = vld [vmem:[#allocation10 + $0x5e8] sm:$0xff] }
 0xc6c   : > { %14996 = vmatprep.subr.bf16.mxu0 %v14995_v19  ;;  %15052 = vmatprep.subr.bf16.mxu1 %v17344_v53  ;;  %v4492_v19 = vld [vmem:[#allocation10 + $0x6d0] sm:$0xff]  ;;  %v15165_v20 = vpack.c.bf16 %v4441_v34, %v4438_v8  ;;  %v15085_v8 = vpack.c.bf16 %v4463_v3, %v4460_v1  ;;  %v15087_v34 = vpack.c.bf16 %v4470_v12, %v4467_v7  ;;  %v4549_v7 = vld [vmem:[#allocation10 + $0x898] sm:$0xff]  ;;  %v4503_v12 = vld [vmem:[#allocation10 + $0x728] sm:$0xff] }
 0xc6f   : > { %14998 = vmatpush1.bf16.msra.mxu0 %v14997_v23  ;;  %15054 = vmatpush3.bf16.msra.mxu1 %v15053_v24  ;;  %v4444_v23 = vld [vmem:[#allocation10 + $0x550] sm:$0xff]  ;;  %v15167_v24 = vpack.c.bf16 %v4495_v44, %v4492_v19  ;;  %v4519_v44 = vld [vmem:[#allocation10 + $0x7a8] sm:$0xff] }
 0xc70   : > { %15056 = vmatprep.subr.bf16.mxu1 %v15055_v25  ;;  %15152 = vmatprep.subr.bf16.mxu0 %v15151_v26  ;;  %v4447_v25 = vld [vmem:[#allocation10 + $0x568] sm:$0xff]  ;;  %v4449_v26 = vld [vmem:[#allocation10 + $0x578] sm:$0xff]  ;;  %v4516_v19 = vld [vmem:[#allocation10 + $0x790] sm:$0xff] }
 0xc71   : > { %v15169_v42 = vpack.c.bf16 %v4447_v25, %v4444_v23  ;;  %v15075_v45 = vpack.c.bf16 %v4452_v30, %v4449_v26  ;;  %v15184_v21 = vpack.c.bf16 %v4519_v44, %v4516_v19  ;;  %v4472_v23 = vld [vmem:[#allocation10 + $0x630] sm:$0xff]  ;;  %v4522_v25 = vld [vmem:[#allocation10 + $0x7c0] sm:$0xff]  ;;  %v4525_v26 = vld [vmem:[#allocation10 + $0x7d8] sm:$0xff] }
 0xc72   : > { %4270 = vmatmul.mubr.f32.vlgmr.msra.gmra.mrb[46].mxu0 %v18167_v29  ;;  %13188 = vmatmul.mubr.f32.vlgmr.msra.gmra.mrb[56].mxu1 %v18167_v29  ;;  %v4479_v30 = vld [vmem:[#allocation10 + $0x668] sm:$0xff]  ;;  %v4505_v19 = vld [vmem:[#allocation10 + $0x738] sm:$0xff]  ;;  %v4552_v44 = vld [vmem:[#allocation10 + $0x8b0] sm:$0xff] }
 0xc73   : > { %15058 = vmatpush1.bf16.msra.mxu1 %v15057_v46  ;;  %4626 = vmatprep.mubr.f32.mxu1 %v18169_v16  ;;  %v4450_v46 = vld [vmem:[#allocation10 + $0x580] sm:$0xff] }
 0xc74   : > { %15154 = vmatpush3.bf16.msra.mxu0 %v15153_v47  ;;  %4768 = vmatprep.mubr.f32.mxu0 %v18169_v16  ;;  %v15171_v47 = vpack.c.bf16 %v4501_v36, %v4498_v33  ;;  %v15173_v56 = vpack.c.bf16 %v4453_v48, %v4450_v46  ;;  %v4482_v33 = vld [vmem:[#allocation10 + $0x680] sm:$0xff]  ;;  %v4531_v46 = vld [vmem:[#allocation10 + $0x808] sm:$0xff]  ;;  %v4488_v48 = vld [vmem:[#allocation10 + $0x6b0] sm:$0xff] }
 0xc75   : > { %15060 = vmatprep.subr.bf16.mxu1 %v15059_v15  ;;  %15156 = vmatprep.subr.bf16.mxu0 %v15155_v54  ;;  %v4504_v15 = vld [vmem:[#allocation10 + $0x730] sm:$0xff]  ;;  %v4507_v54 = vld [vmem:[#allocation10 + $0x748] sm:$0xff]  ;;  %v15190_v50 = vpack.c.bf16 %v4531_v46, %v4528_v2  ;;  %v4517_v2 = vld [vmem:[#allocation10 + $0x798] sm:$0xff] }
 0xc76   : > { %v4521_v46 = vld [vmem:[#allocation10 + $0x7b8] sm:$0xff] }
 0xc77   : > { %15062 = vmatpush1.bf16.msra.mxu1 %v15061_v37  ;;  %v4456_v37 = vld [vmem:[#allocation10 + $0x5b0] sm:$0xff] }
 0xc78   : > { %15158 = vmatpush3.bf16.msra.mxu0 %v15157_v59  ;;  %15064 = vmatprep.subr.bf16.mxu1 %v15063_v60  ;;  %v15175_v59 = vpack.c.bf16 %v4507_v54, %v4504_v15  ;;  %v4459_v60 = vld [vmem:[#allocation10 + $0x5c8] sm:$0xff]  ;;  %v4484_v54 = vld [vmem:[#allocation10 + $0x690] sm:$0xff] }
 0xc79   : > { %15160 = vmatprep.subr.bf16.mxu0 %v15159_v62  ;;  %v4513_v62 = vld [vmem:[#allocation10 + $0x778] sm:$0xff]  ;;  %v15177_v63 = vpack.c.bf16 %v4459_v60, %v4456_v37  ;;  %v15103_v60 = vpack.c.bf16 %v4494_v35, %v4491_v58  ;;  %v4526_v58 = vld [vmem:[#allocation10 + $0x7e0] sm:$0xff] }
 0xc7a   : > { %v4529_v35 = vld [vmem:[#allocation10 + $0x7f8] sm:$0xff] }
 0xc7b   : > { %15066 = vmatpush1.bf16.msra.mxu1 %v15065_v4  ;;  %v4462_v4 = vld [vmem:[#allocation10 + $0x5e0] sm:$0xff] }
 0xc7c   : > { %15162 = vmatpush3.bf16.msra.mxu0 %v15161_v5  ;;  %15068 = vmatprep.subr.bf16.mxu1 %v15067_v6  ;;  %v15179_v5 = vpack.c.bf16 %v4513_v62, %v4510_v40  ;;  %v4465_v6 = vld [vmem:[#allocation10 + $0x5f8] sm:$0xff]  ;;  %v4540_v40 = vld [vmem:[#allocation10 + $0x850] sm:$0xff]  ;;  %v4543_v62 = vld [vmem:[#allocation10 + $0x868] sm:$0xff] }
 0xc7d   : > { %15164 = vmatprep.subr.bf16.mxu0 %v15163_v32  ;;  %v15181_v32 = vpack.c.bf16 %v4465_v6, %v4462_v4  ;;  %v15196_v1 = vpack.c.bf16 %v4543_v62, %v4540_v40  ;;  %v4496_v4 = vld [vmem:[#allocation10 + $0x6f0] sm:$0xff]  ;;  %v4546_v6 = vld [vmem:[#allocation10 + $0x880] sm:$0xff]  ;;  %v4535_v40 = vld [vmem:[#allocation10 + $0x828] sm:$0xff] }
 0xc7e   : > { %v4539_v62 = vld [vmem:[#allocation10 + $0x848] sm:$0xff] }
 0xc7f   : > { %15070 = vmatpush1.bf16.msra.mxu1 %v15069_v52  ;;  %v4473_v52 = vld [vmem:[#allocation10 + $0x638] sm:$0xff] }
 0xc80   : > { %15166 = vmatpush3.bf16.msra.mxu0 %v15165_v20  ;;  %15072 = vmatprep.subr.bf16.mxu1 %v15071_v51  ;;  %v4476_v20 = vld [vmem:[#allocation10 + $0x650] sm:$0xff]  ;;  %v15089_v51 = vpack.c.bf16 %v4469_v18, %v4466_v17  ;;  %v4502_v18 = vld [vmem:[#allocation10 + $0x720] sm:$0xff] }
 0xc81   : > { %15168 = vmatprep.subr.bf16.mxu0 %v15167_v24  ;;  %v15091_v22 = vpack.c.bf16 %v4476_v20, %v4473_v52  ;;  %v4475_v24 = vld [vmem:[#allocation10 + $0x648] sm:$0xff]  ;;  %v4509_v20 = vld [vmem:[#allocation10 + $0x758] sm:$0xff] }
 0xc82   : > { %v15093_v36 = vpack.c.bf16 %v4475_v24, %v4472_v23  ;;  %v4555_v52 = vld [vmem:[#allocation10 + $0x8c8] sm:$0xff]  ;;  %v4508_v24 = vld [vmem:[#allocation10 + $0x750] sm:$0xff] }
 0xc83   : > { %15074 = vmatpush1.bf16.msra.mxu1 %v15073_v38  ;;  %v15187_v38 = vpack.c.bf16 %v4525_v26, %v4522_v25  ;;  %v4511_v25 = vld [vmem:[#allocation10 + $0x768] sm:$0xff]  ;;  %v4558_v26 = vld [vmem:[#allocation10 + $0x8e0] sm:$0xff] }
 0xc84   : > { %15170 = vmatpush3.bf16.msra.mxu0 %v15169_v42  ;;  %15076 = vmatprep.subr.bf16.mxu1 %v15075_v45  ;;  %v15095_v42 = vpack.c.bf16 %v4482_v33, %v4479_v30  ;;  %v4478_v45 = vld [vmem:[#allocation10 + $0x660] sm:$0xff]  ;;  %v4561_v30 = vld [vmem:[#allocation10 + $0x8f8] sm:$0xff]  ;;  %v4515_v33 = vld [vmem:[#allocation10 + $0x788] sm:$0xff] }
 0xc85   : > { %15172 = vmatprep.subr.bf16.mxu0 %v15171_v47  ;;  %v4485_v47 = vld [vmem:[#allocation10 + $0x698] sm:$0xff]  ;;  %v15097_v49 = vpack.c.bf16 %v4481_v10, %v4478_v45  ;;  %v4514_v10 = vld [vmem:[#allocation10 + $0x780] sm:$0xff] }
 0xc86   : > { %v15099_v15 = vpack.c.bf16 %v4488_v48, %v4485_v47  ;;  %v4524_v47 = vld [vmem:[#allocation10 + $0x7d0] sm:$0xff]  ;;  %v15121_v48 = vpack.c.bf16 %v4517_v2, %v4514_v10  ;;  %v4990_v10 = vld [vmem:[#allocation10 + $0x900] sm:$0xff]  ;;  %v4993_v2 = vld [vmem:[#allocation10 + $0x918] sm:$0xff] }
 0xc87   : > { %15078 = vmatpush1.bf16.msra.mxu1 %v15077_v55  ;;  %v4487_v55 = vld [vmem:[#allocation10 + $0x6a8] sm:$0xff] }
 0xc88   : > { %15174 = vmatpush3.bf16.msra.mxu0 %v15173_v56  ;;  %15080 = vmatprep.subr.bf16.mxu1 %v15079_v57  ;;  %v4534_v56 = vld [vmem:[#allocation10 + $0x820] sm:$0xff]  ;;  %v4537_v57 = vld [vmem:[#allocation10 + $0x838] sm:$0xff]  ;;  %v15101_v37 = vpack.c.bf16 %v4487_v55, %v4484_v54  ;;  %v4527_v54 = vld [vmem:[#allocation10 + $0x7e8] sm:$0xff] }
 0xc89   : > { %15176 = vmatprep.subr.bf16.mxu0 %v15175_v59  ;;  %v15193_v59 = vpack.c.bf16 %v4537_v57, %v4534_v56  ;;  %v4530_v55 = vld [vmem:[#allocation10 + $0x800] sm:$0xff] }
 0xc8a   : > { %v15127_v57 = vpack.c.bf16 %v4530_v55, %v4527_v54 }
 0xc8b   : > { %15082 = vmatpush1.bf16.msra.mxu1 %v15081_v41  ;;  %v4497_v41 = vld [vmem:[#allocation10 + $0x6f8] sm:$0xff] }
 0xc8c   : > { %15178 = vmatpush3.bf16.msra.mxu0 %v15177_v63  ;;  %15084 = vmatprep.subr.bf16.mxu1 %v15083_v0  ;;  %v4500_v63 = vld [vmem:[#allocation10 + $0x710] sm:$0xff]  ;;  %v15105_v0 = vpack.c.bf16 %v4493_v61, %v4490_v39 }
 0xc8d   : > { %15180 = vmatprep.subr.bf16.mxu0 %v15179_v5  ;;  %v15107_v3 = vpack.c.bf16 %v4500_v63, %v4497_v41  ;;  %v4499_v5 = vld [vmem:[#allocation10 + $0x708] sm:$0xff]  ;;  %v4532_v61 = vld [vmem:[#allocation10 + $0x810] sm:$0xff]  ;;  %v4542_v41 = vld [vmem:[#allocation10 + $0x860] sm:$0xff] }
 0xc8e   : > { %v15133_v63 = vpack.c.bf16 %v4535_v40, %v4532_v61  ;;  %v4999_v61 = vld [vmem:[#allocation10 + $0x948] sm:$0xff]  ;;  %v4998_v40 = vld [vmem:[#allocation10 + $0x940] sm:$0xff] }
 0xc8f   : > { %15086 = vmatpush1.bf16.msra.mxu1 %v15085_v8  ;;  %v4506_v8 = vld [vmem:[#allocation10 + $0x740] sm:$0xff] }
 0xc90   : > { %15182 = vmatpush3.bf16.msra.mxu0 %v15181_v32  ;;  %15088 = vmatprep.subr.bf16.mxu1 %v15087_v34  ;;  %v15109_v32 = vpack.c.bf16 %v4499_v5, %v4496_v4  ;;  %v15199_v34 = vpack.c.bf16 %v4549_v7, %v4546_v6  ;;  %v15111_v17 = vpack.c.bf16 %v4506_v8, %v4503_v12  ;;  %v4545_v4 = vld [vmem:[#allocation10 + $0x878] sm:$0xff]  ;;  %v4548_v5 = vld [vmem:[#allocation10 + $0x890] sm:$0xff]  ;;  %v4547_v8 = vld [vmem:[#allocation10 + $0x888] sm:$0xff] }
 0xc91   : > { %15183 = vmatprep.subr.bf16.mxu0 %v17344_v53  ;;  %v15139_v7 = vpack.c.bf16 %v4548_v5, %v4545_v4  ;;  %v4544_v12 = vld [vmem:[#allocation10 + $0x870] sm:$0xff]  ;;  %v5055_v4 = vld [vmem:[#allocation10 + $0xb08] sm:$0xff] }
 0xc93   : > { %4769 = vmatmul.mubr.f32.vlgmr.msra.gmra.mrb[48].mxu0 %v18165_v27  ;;  %15090 = vmatpush1.bf16.msra.mxu1 %v15089_v51  ;;  %v4512_v51 = vld [vmem:[#allocation10 + $0x770] sm:$0xff] }
 0xc94   : > { %15185 = vmatpush3.bf16.msra.mxu0 %v15184_v21  ;;  %15092 = vmatprep.subr.bf16.mxu1 %v15091_v22  ;;  %v15113_v21 = vpack.c.bf16 %v4505_v19, %v4502_v18  ;;  %v15202_v22 = vpack.c.bf16 %v4555_v52, %v4552_v44  ;;  %v15115_v23 = vpack.c.bf16 %v4512_v51, %v4509_v20  ;;  %v4550_v19 = vld [vmem:[#allocation10 + $0x8a0] sm:$0xff]  ;;  %v4553_v44 = vld [vmem:[#allocation10 + $0x8b8] sm:$0xff]  ;;  %v4560_v20 = vld [vmem:[#allocation10 + $0x8f0] sm:$0xff] }
 0xc95   : > { %15186 = vmatprep.subr.bf16.mxu0 %v17344_v53  ;;  %13222 = vmatprep.mubr.msk.f32.mxu0 %vm17345_vm2, %v17346_v14  ;;  %v4557_v52 = vld [vmem:[#allocation10 + $0x8d8] sm:$0xff]  ;;  %v15145_v51 = vpack.c.bf16 %v4553_v44, %v4550_v19  ;;  %v5012_v19 = vld [vmem:[#allocation10 + $0x9b0] sm:$0xff]  ;;  %v5058_v44 = vld [vmem:[#allocation10 + $0xb20] sm:$0xff] }
 0xc97   : > { %15094 = vmatpush1.bf16.msra.mxu1 %v15093_v36  ;;  %v4518_v36 = vld [vmem:[#allocation10 + $0x7a0] sm:$0xff] }
 0xc98   : > { %15188 = vmatpush3.bf16.msra.mxu0 %v15187_v38  ;;  %15096 = vmatprep.subr.bf16.mxu1 %v15095_v42  ;;  %v15117_v38 = vpack.c.bf16 %v4511_v25, %v4508_v24  ;;  %v15205_v42 = vpack.c.bf16 %v4561_v30, %v4558_v26  ;;  %v15119_v45 = vpack.c.bf16 %v4518_v36, %v4515_v33  ;;  %v4991_v33 = vld [vmem:[#allocation10 + $0x908] sm:$0xff]  ;;  %v4994_v36 = vld [vmem:[#allocation10 + $0x920] sm:$0xff] }
 0xc99   : > { %15189 = vmatprep.subr.bf16.mxu0 %v17344_v53 }
 0xc9b   : > { %15098 = vmatpush1.bf16.msra.mxu1 %v15097_v49  ;;  %v15123_v49 = vpack.c.bf16 %v4524_v47, %v4521_v46 }
 0xc9c   : > { %15191 = vmatpush3.bf16.msra.mxu0 %v15190_v50  ;;  %15100 = vmatprep.subr.bf16.mxu1 %v15099_v15  ;;  %v4520_v50 = vld [vmem:[#allocation10 + $0x7b0] sm:$0xff]  ;;  %v4523_v15 = vld [vmem:[#allocation10 + $0x7c8] sm:$0xff] }
 0xc9d   : > { %15192 = vmatprep.subr.bf16.mxu0 %v17344_v53  ;;  %v15125_v56 = vpack.c.bf16 %v4523_v15, %v4520_v50  ;;  %v4997_v50 = vld [vmem:[#allocation10 + $0x938] sm:$0xff] }
 0xc9f   : > { %15102 = vmatpush1.bf16.msra.mxu1 %v15101_v37  ;;  %v4533_v37 = vld [vmem:[#allocation10 + $0x818] sm:$0xff] }
 0xca0   : > { %15194 = vmatpush3.bf16.msra.mxu0 %v15193_v59  ;;  %15104 = vmatprep.subr.bf16.mxu1 %v15103_v60  ;;  %v4536_v59 = vld [vmem:[#allocation10 + $0x830] sm:$0xff]  ;;  %v15129_v60 = vpack.c.bf16 %v4529_v35, %v4526_v58  ;;  %v5046_v35 = vld [vmem:[#allocation10 + $0xac0] sm:$0xff] }
 0xca1   : > { %15195 = vmatprep.subr.bf16.mxu0 %v17344_v53  ;;  %v15131_v39 = vpack.c.bf16 %v4536_v59, %v4533_v37  ;;  %v5000_v58 = vld [vmem:[#allocation10 + $0x950] sm:$0xff]  ;;  %v5049_v37 = vld [vmem:[#allocation10 + $0xad8] sm:$0xff]  ;;  %v15209_v59 = vpack.c.bf16 %v4993_v2, %v4990_v10  ;;  %v5014_v2 = vld [vmem:[#allocation10 + $0x9c0] sm:$0xff] }
 0xca3   : > { %15106 = vmatpush1.bf16.msra.mxu1 %v15105_v0  ;;  %v15135_v0 = vpack.c.bf16 %v4542_v41, %v4539_v62  ;;  %v15211_v62 = vpack.c.bf16 %v5000_v58, %v4997_v50  ;;  %v15307_v41 = vpack.c.bf16 %v5049_v37, %v5046_v35  ;;  %v5021_v50 = vld [vmem:[#allocation10 + $0x9f8] sm:$0xff]  ;;  %v5020_v35 = vld [vmem:[#allocation10 + $0x9f0] sm:$0xff]  ;;  %v5023_v37 = vld [vmem:[#allocation10 + $0xa08] sm:$0xff] }
 0xca4   : > { %15197 = vmatpush3.bf16.msra.mxu0 %v15196_v1  ;;  %15108 = vmatprep.subr.bf16.mxu1 %v15107_v3  ;;  %v4538_v1 = vld [vmem:[#allocation10 + $0x840] sm:$0xff]  ;;  %v4541_v3 = vld [vmem:[#allocation10 + $0x858] sm:$0xff] }
 0xca5   : > { %15198 = vmatprep.subr.bf16.mxu0 %v17344_v53  ;;  %v15137_v6 = vpack.c.bf16 %v4541_v3, %v4538_v1  ;;  %v5006_v1 = vld [vmem:[#allocation10 + $0x980] sm:$0xff]  ;;  %v5052_v3 = vld [vmem:[#allocation10 + $0xaf0] sm:$0xff] }
 0xca7   : > { %15110 = vmatpush1.bf16.msra.mxu1 %v15109_v32  ;;  %v4551_v32 = vld [vmem:[#allocation10 + $0x8a8] sm:$0xff] }
 0xca8   : > { %15200 = vmatpush3.bf16.msra.mxu0 %v15199_v34  ;;  %15112 = vmatprep.subr.bf16.mxu1 %v15111_v17  ;;  %v4554_v34 = vld [vmem:[#allocation10 + $0x8c0] sm:$0xff]  ;;  %v15141_v17 = vpack.c.bf16 %v4547_v8, %v4544_v12  ;;  %v5005_v8 = vld [vmem:[#allocation10 + $0x978] sm:$0xff] }
 0xca9   : > { %15201 = vmatprep.subr.bf16.mxu0 %v17344_v53  ;;  %v15143_v18 = vpack.c.bf16 %v4554_v34, %v4551_v32  ;;  %v5002_v12 = vld [vmem:[#allocation10 + $0x960] sm:$0xff]  ;;  %v5004_v32 = vld [vmem:[#allocation10 + $0x970] sm:$0xff]  ;;  %v15311_v34 = vpack.c.bf16 %v5055_v4, %v5052_v3  ;;  %v5029_v4 = vld [vmem:[#allocation10 + $0xa38] sm:$0xff] }
 0xcaa   : > { %v5026_v3 = vld [vmem:[#allocation10 + $0xa20] sm:$0xff] }
 0xcab   : > { %15114 = vmatpush1.bf16.msra.mxu1 %v15113_v21  ;;  %v15147_v21 = vpack.c.bf16 %v4560_v20, %v4557_v52  ;;  %v5061_v52 = vld [vmem:[#allocation10 + $0xb38] sm:$0xff]  ;;  %v15217_v20 = vpack.c.bf16 %v5005_v8, %v5002_v12  ;;  %v5036_v8 = vld [vmem:[#allocation10 + $0xa70] sm:$0xff] }
 0xcac   : > { %15203 = vmatpush3.bf16.msra.mxu0 %v15202_v22  ;;  %15116 = vmatprep.subr.bf16.mxu1 %v15115_v23  ;;  %v4556_v22 = vld [vmem:[#allocation10 + $0x8d0] sm:$0xff]  ;;  %v4559_v23 = vld [vmem:[#allocation10 + $0x8e8] sm:$0xff]  ;;  %v5033_v12 = vld [vmem:[#allocation10 + $0xa58] sm:$0xff] }
 0xcad   : > { %15204 = vmatprep.subr.bf16.mxu0 %v17344_v53  ;;  %v15149_v24 = vpack.c.bf16 %v4559_v23, %v4556_v22  ;;  %v5008_v22 = vld [vmem:[#allocation10 + $0x990] sm:$0xff]  ;;  %v5011_v23 = vld [vmem:[#allocation10 + $0x9a8] sm:$0xff] }
 0xcaf   : > { %15118 = vmatpush1.bf16.msra.mxu1 %v15117_v38  ;;  %v5040_v38 = vld [vmem:[#allocation10 + $0xa90] sm:$0xff] }
 0xcb0   : > { %15206 = vmatpush3.bf16.msra.mxu0 %v15205_v42  ;;  %15120 = vmatprep.subr.bf16.mxu1 %v15119_v45  ;;  %v5043_v42 = vld [vmem:[#allocation10 + $0xaa8] sm:$0xff]  ;;  %v4416_v45 = vld [vmem:[#allocation18] sm:$0xff] }
 0xcb1   : > { %13225 = vmatprep.subr.mxu0 %v17346_v14 }
 0xcb2   : > { %4627 = vmatmul.mubr.f32.vlgmr.msra.gmra.mrb[58].mxu1 %v18165_v27 }
 0xcb3   : > { %13223 = vmatmul.mubr.f32.vlgmr.msra.gmra.mrb[50].mxu0 %v18167_v29  ;;  %15122 = vmatpush1.bf16.msra.mxu1 %v15121_v48  ;;  %v4992_v48 = vld [vmem:[#allocation10 + $0x910] sm:$0xff] }
 0xcb4   : > { %15124 = vmatprep.subr.bf16.mxu1 %v15123_v49  ;;  %4697 = vmatprep.mubr.f32.mxu1 %v17346_v14  ;;  %v4995_v49 = vld [vmem:[#allocation10 + $0x928] sm:$0xff] }
 0xcb5   : > { %13227 = vmatprep.mubr.msk.f32.mxu0 %vm17345_vm2, %v17346_v14 }
 0xcb7   : > { %15126 = vmatpush1.bf16.msra.mxu1 %v15125_v56  ;;  %v15207_v56 = vpack.c.bf16 %v4994_v36, %v4991_v33  ;;  %v5018_v33 = vld [vmem:[#allocation10 + $0x9e0] sm:$0xff]  ;;  %v5064_v36 = vld [vmem:[#allocation10 + $0xb50] sm:$0xff] }
 0xcb8   : > { %15128 = vmatprep.subr.bf16.mxu1 %v15127_v57  ;;  %v15303_v57 = vpack.c.bf16 %v5043_v42, %v5040_v38  ;;  %v5067_v38 = vld [vmem:[#allocation10 + $0xb68] sm:$0xff]  ;;  %v15221_v42 = vpack.c.bf16 %v5011_v23, %v5008_v22  ;;  %v5042_v23 = vld [vmem:[#allocation10 + $0xaa0] sm:$0xff] }
 0xcb9   : > { %v5039_v22 = vld [vmem:[#allocation10 + $0xa88] sm:$0xff] }
 0xcbb   : > { %15130 = vmatpush1.bf16.msra.mxu1 %v15129_v60  ;;  %v15305_v60 = vpack.c.bf16 %v4995_v49, %v4992_v48  ;;  %v15319_v48 = vpack.c.bf16 %v5067_v38, %v5064_v36  ;;  %v5019_v49 = vld [vmem:[#allocation10 + $0x9e8] sm:$0xff]  ;;  %v5088_v36 = vld [vmem:[#allocation10 + $0xc10] sm:$0xff] }
 0xcbc   : > { %15132 = vmatprep.subr.bf16.mxu1 %v15131_v39  ;;  %v4996_v39 = vld [vmem:[#allocation10 + $0x930] sm:$0xff]  ;;  %v5091_v38 = vld [vmem:[#allocation10 + $0xc28] sm:$0xff] }
 0xcbd   : > { %v15213_v5 = vpack.c.bf16 %v4999_v61, %v4996_v39  ;;  %v5025_v39 = vld [vmem:[#allocation10 + $0xa18] sm:$0xff]  ;;  %v5027_v61 = vld [vmem:[#allocation10 + $0xa28] sm:$0xff] }
 0xcbf   : > { %15134 = vmatpush1.bf16.msra.mxu1 %v15133_v63  ;;  %v5001_v63 = vld [vmem:[#allocation10 + $0x958] sm:$0xff] }
 0xcc0   : > { %15136 = vmatprep.subr.bf16.mxu1 %v15135_v0  ;;  %v5003_v0 = vld [vmem:[#allocation10 + $0x968] sm:$0xff] }
 0xcc3   : > { %15138 = vmatpush1.bf16.msra.mxu1 %v15137_v6  ;;  %v15309_v6 = vpack.c.bf16 %v5001_v63, %v4998_v40  ;;  %v5030_v40 = vld [vmem:[#allocation10 + $0xa40] sm:$0xff]  ;;  %v15229_v63 = vpack.c.bf16 %v5023_v37, %v5020_v35 }
 0xcc4   : > { %15140 = vmatprep.subr.bf16.mxu1 %v15139_v7  ;;  %v15215_v7 = vpack.c.bf16 %v5006_v1, %v5003_v0  ;;  %v15231_v1 = vpack.c.bf16 %v5030_v40, %v5027_v61  ;;  %v5103_v61 = vld [vmem:[#allocation10 + $0xc88] sm:$0xff]  ;;  %v5057_v40 = vld [vmem:[#allocation10 + $0xb18] sm:$0xff] }
 0xcc7   : > { %15142 = vmatpush1.bf16.msra.mxu1 %v15141_v17  ;;  %v5007_v17 = vld [vmem:[#allocation10 + $0x988] sm:$0xff] }
 0xcc8   : > { %15144 = vmatprep.subr.bf16.mxu1 %v15143_v18  ;;  %v5009_v18 = vld [vmem:[#allocation10 + $0x998] sm:$0xff] }
 0xccb   : > { %15146 = vmatpush1.bf16.msra.mxu1 %v15145_v51  ;;  %v15313_v51 = vpack.c.bf16 %v5007_v17, %v5004_v32  ;;  %v5082_v32 = vld [vmem:[#allocation10 + $0xbe0] sm:$0xff]  ;;  %v15233_v17 = vpack.c.bf16 %v5029_v4, %v5026_v3  ;;  %v5059_v3 = vld [vmem:[#allocation10 + $0xb28] sm:$0xff] }
 0xccc   : > { %15148 = vmatprep.subr.bf16.mxu1 %v15147_v21  ;;  %v15219_v21 = vpack.c.bf16 %v5012_v19, %v5009_v18  ;;  %v15235_v19 = vpack.c.bf16 %v5036_v8, %v5033_v12  ;;  %v5106_v4 = vld [vmem:[#allocation10 + $0xca0] sm:$0xff] }
 0xccf   : > { %15150 = vmatpush1.bf16.msra.mxu1 %v15149_v24  ;;  %v5010_v24 = vld [vmem:[#allocation10 + $0x9a0] sm:$0xff] }
 0xcd2   : > { %4698 = vmatmul.mubr.f32.vlgmr.msra.gmra.mrb[58].mxu1 %v18167_v29 }
 0xcd3   : > { %4912 = vmatprep.mubr.f32.mxu1 %v17346_v14 }
 0xd25   : > { %v11526_v25 = vpop.f32.mrb[54].mxu1 }
 0xd26   : > { %v11527_v26 = vpop.f32.mrb[55].mxu1 }
 0xd27   : > { %v11528_v30 = vadd.f32 %v11527_v26, %v11526_v25  ;;  %v15315_v25 = vpack.c.bf16 %v5061_v52, %v5058_v44  ;;  %v5013_v26 = vld [vmem:[#allocation10 + $0x9b8] sm:$0xff]  ;;  %v5032_v44 = vld [vmem:[#allocation10 + $0xa50] sm:$0xff]  ;;  %v5035_v52 = vld [vmem:[#allocation10 + $0xa68] sm:$0xff] }
 0xd45   : > { %v4271_v46 = vpop.f32.mrb[46].mxu0  ;;  %v4412_v47 = vpop.f32.mrb[56].mxu1 }
 0xd46   : > { %v4413_v15 = vadd.f32 %v11528_v30, %v4412_v47  ;;  %v4273_v54 = vpop.f32.mrb[47].mxu0  ;;  %v13189_v55 = vpop.f32.mrb[57].mxu1  ;;  %v5015_v30 = vld [vmem:[#allocation10 + $0x9c8] sm:$0xff]  ;;  %v5016_v47 = vld [vmem:[#allocation10 + $0x9d0] sm:$0xff] }
 0xd47   : > { %4848 = vmatprep.subr.mxu1 %v4273_v54  ;;  %v15223_v10 = vpack.c.bf16 %v5018_v33, %v5015_v30  ;;  %v5070_v54 = vld [vmem:[#allocation10 + $0xb80] sm:$0xff]  ;;  %v5073_v55 = vld [vmem:[#allocation10 + $0xb98] sm:$0xff] }
 0xd48   : > { %4849 = vmatpush1.msra.mxu1 %v4271_v46  ;;  %13226 = vmatpush3.msra.mxu0 %v4413_v15  ;;  %v5017_v46 = vld [vmem:[#allocation10 + $0x9d8] sm:$0xff]  ;;  %v5024_v15 = vld [vmem:[#allocation10 + $0xa10] sm:$0xff]  ;;  %v5038_v30 = vld [vmem:[#allocation10 + $0xa80] sm:$0xff] }
 0xd49   : > { %11010 = vmatmul.mubr.msk.f32.vlgmr.msra.gmra.mrb[58].mxu1 %vm4844_vm4, %v4416_v45  ;;  %13228 = vmatmul.mubr.msk.f32.vlgmr.msra.gmra.mrb[50].mxu0 %vm4844_vm4, %v4416_v45  ;;  %v15317_v45 = vpack.c.bf16 %v5013_v26, %v5010_v24  ;;  %v15227_v58 = vpack.c.bf16 %v5024_v15, %v5021_v50  ;;  %v15237_v24 = vpack.c.bf16 %v5035_v52, %v5032_v44  ;;  %v5041_v33 = vld [vmem:[#allocation10 + $0xa98] sm:$0xff]  ;;  %v5044_v50 = vld [vmem:[#allocation10 + $0xab0] sm:$0xff]  ;;  %v5047_v15 = vld [vmem:[#allocation10 + $0xac8] sm:$0xff] }
 0xd4a   : > { %15208 = vmatprep.subr.bf16.mxu0 %v15207_v56  ;;  %15304 = vmatprep.subr.bf16.mxu1 %v15303_v57  ;;  %v15225_v56 = vpack.c.bf16 %v5017_v46, %v5014_v2  ;;  %v15321_v57 = vpack.c.bf16 %v5019_v49, %v5016_v47  ;;  %v15239_v26 = vpack.c.bf16 %v5042_v23, %v5039_v22  ;;  %v5069_v44 = vld [vmem:[#allocation10 + $0xb78] sm:$0xff]  ;;  %v5072_v52 = vld [vmem:[#allocation10 + $0xb90] sm:$0xff]  ;;  %v5071_v23 = vld [vmem:[#allocation10 + $0xb88] sm:$0xff] }
 0xd4b   : > { %15210 = vmatpush1.bf16.msra.mxu0 %v15209_v59  ;;  %5198 = vmatprep.mubr.f32.mxu0 %v18169_v16  ;;  %v5022_v59 = vld [vmem:[#allocation10 + $0xa00] sm:$0xff]  ;;  %v15241_v46 = vpack.c.bf16 %v5041_v33, %v5038_v30  ;;  %v5068_v22 = vld [vmem:[#allocation10 + $0xb70] sm:$0xff] }
 0xd4c   : > { %15306 = vmatpush3.bf16.msra.mxu1 %v15305_v60  ;;  %5340 = vmatprep.mubr.f32.mxu1 %v18169_v16  ;;  %v15323_v60 = vpack.c.bf16 %v5073_v55, %v5070_v54  ;;  %v15325_v0 = vpack.c.bf16 %v5025_v39, %v5022_v59  ;;  %v5094_v54 = vld [vmem:[#allocation10 + $0xc40] sm:$0xff]  ;;  %v5097_v55 = vld [vmem:[#allocation10 + $0xc58] sm:$0xff]  ;;  %v5100_v39 = vld [vmem:[#allocation10 + $0xc70] sm:$0xff]  ;;  %v15261_v33 = vpack.c.bf16 %v5071_v23, %v5068_v22 }
 0xd4d   : > { %15212 = vmatprep.subr.bf16.mxu0 %v15211_v62  ;;  %15308 = vmatprep.subr.bf16.mxu1 %v15307_v41  ;;  %v5076_v62 = vld [vmem:[#allocation10 + $0xbb0] sm:$0xff]  ;;  %v5079_v41 = vld [vmem:[#allocation10 + $0xbc8] sm:$0xff]  ;;  %v15339_v35 = vpack.c.bf16 %v5097_v55, %v5094_v54  ;;  %v5050_v59 = vld [vmem:[#allocation10 + $0xae0] sm:$0xff] }
 0xd4e   : > { %v5078_v30 = vld [vmem:[#allocation10 + $0xbc0] sm:$0xff]  ;;  %v5080_v54 = vld [vmem:[#allocation10 + $0xbd0] sm:$0xff]  ;;  %v5083_v55 = vld [vmem:[#allocation10 + $0xbe8] sm:$0xff] }
 0xd4f   : > { %15214 = vmatpush1.bf16.msra.mxu0 %v15213_v5  ;;  %v5028_v5 = vld [vmem:[#allocation10 + $0xa30] sm:$0xff]  ;;  %v5113_v22 = vld [vmem:[#allocation10 + $0xcd8] sm:$0xff] }
 0xd50   : > { %15310 = vmatpush3.bf16.msra.mxu1 %v15309_v6  ;;  %15216 = vmatprep.subr.bf16.mxu0 %v15215_v7  ;;  %v15327_v6 = vpack.c.bf16 %v5079_v41, %v5076_v62  ;;  %v5031_v7 = vld [vmem:[#allocation10 + $0xa48] sm:$0xff]  ;;  %v5060_v62 = vld [vmem:[#allocation10 + $0xb30] sm:$0xff]  ;;  %v5117_v23 = vld [vmem:[#allocation10 + $0xcf8] sm:$0xff] }
 0xd51   : > { %15312 = vmatprep.subr.bf16.mxu1 %v15311_v34  ;;  %v5085_v34 = vld [vmem:[#allocation10 + $0xbf8] sm:$0xff]  ;;  %v15329_v18 = vpack.c.bf16 %v5031_v7, %v5028_v5  ;;  %v5066_v7 = vld [vmem:[#allocation10 + $0xb60] sm:$0xff] }
 0xd52   : > { %v5109_v5 = vld [vmem:[#allocation10 + $0xcb8] sm:$0xff] }
 0xd53   : > { %15218 = vmatpush1.bf16.msra.mxu0 %v15217_v20  ;;  %v5034_v20 = vld [vmem:[#allocation10 + $0xa60] sm:$0xff]  ;;  %v15345_v8 = vpack.c.bf16 %v5109_v5, %v5106_v4 }
 0xd54   : > { %15314 = vmatpush3.bf16.msra.mxu1 %v15313_v51  ;;  %15220 = vmatprep.subr.bf16.mxu0 %v15219_v21  ;;  %v15331_v51 = vpack.c.bf16 %v5085_v34, %v5082_v32  ;;  %v5037_v21 = vld [vmem:[#allocation10 + $0xa78] sm:$0xff]  ;;  %v5062_v34 = vld [vmem:[#allocation10 + $0xb40] sm:$0xff] }
 0xd55   : > { %15316 = vmatprep.subr.bf16.mxu1 %v15315_v25  ;;  %v15333_v25 = vpack.c.bf16 %v5037_v21, %v5034_v20  ;;  %v15259_v21 = vpack.c.bf16 %v5072_v52, %v5069_v44  ;;  %v5102_v4 = vld [vmem:[#allocation10 + $0xc80] sm:$0xff]  ;;  %v5111_v44 = vld [vmem:[#allocation10 + $0xcc8] sm:$0xff] }
 0xd56   : > { %v5114_v52 = vld [vmem:[#allocation10 + $0xce0] sm:$0xff] }
 0xd57   : > { %15222 = vmatpush1.bf16.msra.mxu0 %v15221_v42  ;;  %v5045_v42 = vld [vmem:[#allocation10 + $0xab8] sm:$0xff] }
 0xd58   : > { %15318 = vmatpush3.bf16.msra.mxu1 %v15317_v45  ;;  %15224 = vmatprep.subr.bf16.mxu0 %v15223_v10  ;;  %v5048_v45 = vld [vmem:[#allocation10 + $0xad0] sm:$0xff] }
 0xd59   : > { %15320 = vmatprep.subr.bf16.mxu1 %v15319_v48  ;;  %v15336_v48 = vpack.c.bf16 %v5091_v38, %v5088_v36  ;;  %v15243_v49 = vpack.c.bf16 %v5048_v45, %v5045_v42  ;;  %v5074_v42 = vld [vmem:[#allocation10 + $0xba0] sm:$0xff]  ;;  %v5077_v45 = vld [vmem:[#allocation10 + $0xbb8] sm:$0xff] }
 0xd5b   : > { %15226 = vmatpush1.bf16.msra.mxu0 %v15225_v56  ;;  %v5051_v56 = vld [vmem:[#allocation10 + $0xae8] sm:$0xff] }
 0xd5c   : > { %15322 = vmatpush3.bf16.msra.mxu1 %v15321_v57  ;;  %15228 = vmatprep.subr.bf16.mxu0 %v15227_v58  ;;  %v5054_v57 = vld [vmem:[#allocation10 + $0xb00] sm:$0xff]  ;;  %v15245_v58 = vpack.c.bf16 %v5047_v15, %v5044_v50 }
 0xd5d   : > { %15324 = vmatprep.subr.bf16.mxu1 %v15323_v60  ;;  %v15247_v37 = vpack.c.bf16 %v5054_v57, %v5051_v56  ;;  %v5053_v60 = vld [vmem:[#allocation10 + $0xaf8] sm:$0xff]  ;;  %v5130_v56 = vld [vmem:[#allocation10 + $0xd60] sm:$0xff] }
 0xd5e   : > { %v15249_v41 = vpack.c.bf16 %v5053_v60, %v5050_v59  ;;  %v5133_v57 = vld [vmem:[#allocation10 + $0xd78] sm:$0xff] }
 0xd5f   : > { %15230 = vmatpush1.bf16.msra.mxu0 %v15229_v63  ;;  %v15342_v63 = vpack.c.bf16 %v5103_v61, %v5100_v39  ;;  %v15357_v59 = vpack.c.bf16 %v5133_v57, %v5130_v56  ;;  %v5086_v39 = vld [vmem:[#allocation10 + $0xc00] sm:$0xff]  ;;  %v5089_v61 = vld [vmem:[#allocation10 + $0xc18] sm:$0xff] }
 0xd60   : > { %15326 = vmatpush3.bf16.msra.mxu1 %v15325_v0  ;;  %15232 = vmatprep.subr.bf16.mxu0 %v15231_v1  ;;  %v15251_v0 = vpack.c.bf16 %v5060_v62, %v5057_v40  ;;  %v5056_v1 = vld [vmem:[#allocation10 + $0xb10] sm:$0xff]  ;;  %v5093_v40 = vld [vmem:[#allocation10 + $0xc38] sm:$0xff] }
 0xd61   : > { %15328 = vmatprep.subr.bf16.mxu1 %v15327_v6  ;;  %v5063_v6 = vld [vmem:[#allocation10 + $0xb48] sm:$0xff]  ;;  %v15253_v12 = vpack.c.bf16 %v5059_v3, %v5056_v1  ;;  %v5096_v62 = vld [vmem:[#allocation10 + $0xc50] sm:$0xff] }
 0xd62   : > { %v15255_v32 = vpack.c.bf16 %v5066_v7, %v5063_v6  ;;  %v5095_v1 = vld [vmem:[#allocation10 + $0xc48] sm:$0xff]  ;;  %v5098_v7 = vld [vmem:[#allocation10 + $0xc60] sm:$0xff] }
 0xd63   : > { %15234 = vmatpush1.bf16.msra.mxu0 %v15233_v17  ;;  %v5065_v17 = vld [vmem:[#allocation10 + $0xb58] sm:$0xff]  ;;  %v5099_v3 = vld [vmem:[#allocation10 + $0xc68] sm:$0xff] }
 0xd64   : > { %15330 = vmatpush3.bf16.msra.mxu1 %v15329_v18  ;;  %15236 = vmatprep.subr.bf16.mxu0 %v15235_v19  ;;  %v5112_v18 = vld [vmem:[#allocation10 + $0xcd0] sm:$0xff]  ;;  %v5115_v19 = vld [vmem:[#allocation10 + $0xce8] sm:$0xff]  ;;  %v15257_v20 = vpack.c.bf16 %v5065_v17, %v5062_v34  ;;  %v15279_v6 = vpack.c.bf16 %v5102_v4, %v5099_v3 }
 0xd65   : > { %15332 = vmatprep.subr.bf16.mxu1 %v15331_v51  ;;  %v15348_v51 = vpack.c.bf16 %v5115_v19, %v5112_v18  ;;  %v5104_v18 = vld [vmem:[#allocation10 + $0xc90] sm:$0xff]  ;;  %v5107_v19 = vld [vmem:[#allocation10 + $0xca8] sm:$0xff] }
 0xd66   : > { %v11578_v10 = vpop.f32.mrb[48].mxu0 }
 0xd67   : > { %v11579_v2 = vpop.f32.mrb[49].mxu0  ;;  %15238 = vmatpush1.bf16.msra.mxu0 %v15237_v24  ;;  %v5118_v24 = vld [vmem:[#allocation10 + $0xd00] sm:$0xff] }
 0xd68   : > { %v18212_v47 = vadd.f32 %v11579_v2, %v11578_v10  ;;  %15334 = vmatpush3.bf16.msra.mxu1 %v15333_v25  ;;  %15240 = vmatprep.subr.bf16.mxu0 %v15239_v26  ;;  %v5121_v25 = vld [vmem:[#allocation10 + $0xd18] sm:$0xff]  ;;  %v5075_v26 = vld [vmem:[#allocation10 + $0xba8] sm:$0xff]  ;;  %v5124_v10 = vld [vmem:[#allocation10 + $0xd30] sm:$0xff] }
 0xd69   : > { %15335 = vmatprep.subr.bf16.mxu1 %v17344_v53  ;;  %v15351_v36 = vpack.c.bf16 %v5121_v25, %v5118_v24  ;;  %v15263_v38 = vpack.c.bf16 %v5078_v30, %v5075_v26  ;;  %v5127_v2 = vld [vmem:[#allocation10 + $0xd48] sm:$0xff]  ;;  %v5120_v24 = vld [vmem:[#allocation10 + $0xd10] sm:$0xff] }
 0xd6a   : > { %v15354_v50 = vpack.c.bf16 %v5127_v2, %v5124_v10  ;;  %v15291_v26 = vpack.c.bf16 %v5120_v24, %v5117_v23  ;;  %v5116_v30 = vld [vmem:[#allocation10 + $0xcf0] sm:$0xff]  ;;  %v5122_v10 = vld [vmem:[#allocation10 + $0xd20] sm:$0xff]  ;;  %v5125_v2 = vld [vmem:[#allocation10 + $0xd38] sm:$0xff] }
 0xd6b   : > { %5341 = vmatmul.mubr.f32.vlgmr.msra.gmra.mrb[60].mxu1 %v18165_v27  ;;  %15242 = vmatpush1.bf16.msra.mxu0 %v15241_v46  ;;  %v5081_v46 = vld [vmem:[#allocation10 + $0xbd8] sm:$0xff]  ;;  %v5597_v23 = vld [vmem:[#allocation10 + $0xe60] sm:$0xff] }
 0xd6c   : > { %15337 = vmatpush3.bf16.msra.mxu1 %v15336_v48  ;;  %15244 = vmatprep.subr.bf16.mxu0 %v15243_v49  ;;  %v5084_v48 = vld [vmem:[#allocation10 + $0xbf0] sm:$0xff]  ;;  %v15265_v49 = vpack.c.bf16 %v5077_v45, %v5074_v42 }
 0xd6d   : > { %15338 = vmatprep.subr.bf16.mxu1 %v17344_v53  ;;  %13262 = vmatprep.mubr.msk.f32.mxu1 %vm17345_vm2, %v17346_v14  ;;  %v15267_v15 = vpack.c.bf16 %v5084_v48, %v5081_v46  ;;  %v5129_v46 = vld [vmem:[#allocation10 + $0xd58] sm:$0xff]  ;;  %v5132_v48 = vld [vmem:[#allocation10 + $0xd70] sm:$0xff] }
 0xd6f   : > { %15246 = vmatpush1.bf16.msra.mxu0 %v15245_v58  ;;  %v5087_v58 = vld [vmem:[#allocation10 + $0xc08] sm:$0xff] }
 0xd70   : > { %15340 = vmatpush3.bf16.msra.mxu1 %v15339_v35  ;;  %15248 = vmatprep.subr.bf16.mxu0 %v15247_v37  ;;  %v5090_v35 = vld [vmem:[#allocation10 + $0xc20] sm:$0xff]  ;;  %v15269_v37 = vpack.c.bf16 %v5083_v55, %v5080_v54  ;;  %v5131_v54 = vld [vmem:[#allocation10 + $0xd68] sm:$0xff] }
 0xd71   : > { %15341 = vmatprep.subr.bf16.mxu1 %v17344_v53  ;;  %v15271_v60 = vpack.c.bf16 %v5090_v35, %v5087_v58 }
 0xd73   : > { %15250 = vmatpush1.bf16.msra.mxu0 %v15249_v41  ;;  %v15273_v41 = vpack.c.bf16 %v5089_v61, %v5086_v39  ;;  %v5570_v39 = vld [vmem:[#allocation10 + $0xd88] sm:$0xff]  ;;  %v5573_v61 = vld [vmem:[#allocation10 + $0xda0] sm:$0xff] }
 0xd74   : > { %15343 = vmatpush3.bf16.msra.mxu1 %v15342_v63  ;;  %15252 = vmatprep.subr.bf16.mxu0 %v15251_v0  ;;  %v15275_v63 = vpack.c.bf16 %v5096_v62, %v5093_v40  ;;  %v5092_v0 = vld [vmem:[#allocation10 + $0xc30] sm:$0xff]  ;;  %v5569_v40 = vld [vmem:[#allocation10 + $0xd80] sm:$0xff]  ;;  %v5572_v62 = vld [vmem:[#allocation10 + $0xd98] sm:$0xff] }
 0xd75   : > { %15344 = vmatprep.subr.bf16.mxu1 %v17344_v53  ;;  %v15277_v5 = vpack.c.bf16 %v5095_v1, %v5092_v0  ;;  %v15359_v1 = vpack.c.bf16 %v5573_v61, %v5570_v39  ;;  %v15361_v4 = vpack.c.bf16 %v5572_v62, %v5569_v40  ;;  %v5619_v39 = vld [vmem:[#allocation10 + $0xf10] sm:$0xff]  ;;  %v5622_v40 = vld [vmem:[#allocation10 + $0xf28] sm:$0xff]  ;;  %v5617_v62 = vld [vmem:[#allocation10 + $0xf00] sm:$0xff] }
 0xd77   : > { %15254 = vmatpush1.bf16.msra.mxu0 %v15253_v12  ;;  %v5101_v12 = vld [vmem:[#allocation10 + $0xc78] sm:$0xff] }
 0xd78   : > { %15346 = vmatpush3.bf16.msra.mxu1 %v15345_v8  ;;  %15256 = vmatprep.subr.bf16.mxu0 %v15255_v32  ;;  %v5105_v8 = vld [vmem:[#allocation10 + $0xc98] sm:$0xff]  ;;  %v5108_v32 = vld [vmem:[#allocation10 + $0xcb0] sm:$0xff]  ;;  %v15281_v34 = vpack.c.bf16 %v5101_v12, %v5098_v7  ;;  %v5578_v7 = vld [vmem:[#allocation10 + $0xdc8] sm:$0xff] }
 0xd79   : > { %15347 = vmatprep.subr.bf16.mxu1 %v17344_v53  ;;  %v15283_v17 = vpack.c.bf16 %v5108_v32, %v5105_v8  ;;  %v5582_v12 = vld [vmem:[#allocation10 + $0xde8] sm:$0xff]  ;;  %v5585_v8 = vld [vmem:[#allocation10 + $0xe00] sm:$0xff] }
 0xd7b   : > { %15258 = vmatpush1.bf16.msra.mxu0 %v15257_v20  ;;  %v15285_v20 = vpack.c.bf16 %v5107_v19, %v5104_v18  ;;  %v5584_v18 = vld [vmem:[#allocation10 + $0xdf8] sm:$0xff] }
 0xd7c   : > { %15349 = vmatpush3.bf16.msra.mxu1 %v15348_v51  ;;  %15260 = vmatprep.subr.bf16.mxu0 %v15259_v21  ;;  %v15287_v51 = vpack.c.bf16 %v5114_v52, %v5111_v44  ;;  %v5110_v21 = vld [vmem:[#allocation10 + $0xcc0] sm:$0xff]  ;;  %v5588_v19 = vld [vmem:[#allocation10 + $0xe18] sm:$0xff]  ;;  %v5591_v44 = vld [vmem:[#allocation10 + $0xe30] sm:$0xff] }
 0xd7d   : > { %15350 = vmatprep.subr.bf16.mxu1 %v17344_v53  ;;  %v15289_v25 = vpack.c.bf16 %v5113_v22, %v5110_v21  ;;  %v5590_v21 = vld [vmem:[#allocation10 + $0xe28] sm:$0xff] }
 0xd7e   : > { %v5594_v22 = vld [vmem:[#allocation10 + $0xe48] sm:$0xff] }
 0xd7f   : > { %15262 = vmatpush1.bf16.msra.mxu0 %v15261_v33  ;;  %v5119_v33 = vld [vmem:[#allocation10 + $0xd08] sm:$0xff] }
 0xd80   : > { %15352 = vmatpush3.bf16.msra.mxu1 %v15351_v36  ;;  %15264 = vmatprep.subr.bf16.mxu0 %v15263_v38  ;;  %v5123_v36 = vld [vmem:[#allocation10 + $0xd28] sm:$0xff]  ;;  %v5126_v38 = vld [vmem:[#allocation10 + $0xd40] sm:$0xff]  ;;  %v15293_v42 = vpack.c.bf16 %v5119_v33, %v5116_v30  ;;  %v5596_v30 = vld [vmem:[#allocation10 + $0xe58] sm:$0xff] }
 0xd81   : > { %15353 = vmatprep.subr.bf16.mxu1 %v17344_v53  ;;  %v15295_v45 = vpack.c.bf16 %v5126_v38, %v5123_v36  ;;  %v5600_v33 = vld [vmem:[#allocation10 + $0xe78] sm:$0xff]  ;;  %v5603_v36 = vld [vmem:[#allocation10 + $0xe90] sm:$0xff] }
 0xd83   : > { %15266 = vmatpush1.bf16.msra.mxu0 %v15265_v49  ;;  %v15297_v49 = vpack.c.bf16 %v5125_v2, %v5122_v10  ;;  %v5602_v10 = vld [vmem:[#allocation10 + $0xe88] sm:$0xff] }
 0xd84   : > { %15355 = vmatpush3.bf16.msra.mxu1 %v15354_v50  ;;  %15268 = vmatprep.subr.bf16.mxu0 %v15267_v15  ;;  %v15299_v50 = vpack.c.bf16 %v5132_v48, %v5129_v46  ;;  %v5128_v15 = vld [vmem:[#allocation10 + $0xd50] sm:$0xff]  ;;  %v5606_v2 = vld [vmem:[#allocation10 + $0xea8] sm:$0xff]  ;;  %v5609_v46 = vld [vmem:[#allocation10 + $0xec0] sm:$0xff] }
 0xd85   : > { %15356 = vmatprep.subr.bf16.mxu1 %v17344_v53  ;;  %v15301_v55 = vpack.c.bf16 %v5131_v54, %v5128_v15  ;;  %v5608_v15 = vld [vmem:[#allocation10 + $0xeb8] sm:$0xff] }
 0xd87   : > { %15270 = vmatpush1.bf16.msra.mxu0 %v15269_v37 }
 0xd88   : > { %15358 = vmatpush3.bf16.msra.mxu1 %v15357_v59  ;;  %15272 = vmatprep.subr.bf16.mxu0 %v15271_v60  ;;  %v5417_v60 = vld [vmem:[#allocation18 + $0x10] sm:$0xff] }
 0xd8a   : > { %5199 = vmatmul.mubr.f32.vlgmr.msra.gmra.mrb[52].mxu0 %v18165_v27 }
 0xd8b   : > { %13263 = vmatmul.mubr.f32.vlgmr.msra.gmra.mrb[62].mxu1 %v18167_v29  ;;  %15274 = vmatpush1.bf16.msra.mxu0 %v15273_v41  ;;  %v5576_v41 = vld [vmem:[#allocation10 + $0xdb8] sm:$0xff] }
 0xd8c   : > { %15276 = vmatprep.subr.bf16.mxu0 %v15275_v63  ;;  %5269 = vmatprep.mubr.f32.mxu0 %v17346_v14  ;;  %v5579_v63 = vld [vmem:[#allocation10 + $0xdd0] sm:$0xff] }
 0xd8d   : > { %5485 = vmatprep.mubr.f32.mxu1 %v17346_v14 }
 0xd8f   : > { %15278 = vmatpush1.bf16.msra.mxu0 %v15277_v5  ;;  %v15363_v5 = vpack.c.bf16 %v5579_v63, %v5576_v41  ;;  %v5620_v41 = vld [vmem:[#allocation10 + $0xf18] sm:$0xff]  ;;  %v15455_v63 = vpack.c.bf16 %v5622_v40, %v5619_v39 }
 0xd90   : > { %15280 = vmatprep.subr.bf16.mxu0 %v15279_v6  ;;  %v5575_v6 = vld [vmem:[#allocation10 + $0xdb0] sm:$0xff]  ;;  %v5644_v39 = vld [vmem:[#allocation10 + $0xfd8] sm:$0xff] }
 0xd91   : > { %v15365_v32 = vpack.c.bf16 %v5578_v7, %v5575_v6  ;;  %v5627_v6 = vld [vmem:[#allocation10 + $0xf50] sm:$0xff]  ;;  %v5625_v7 = vld [vmem:[#allocation10 + $0xf40] sm:$0xff] }
 0xd93   : > { %15282 = vmatpush1.bf16.msra.mxu0 %v15281_v34  ;;  %v15367_v34 = vpack.c.bf16 %v5585_v8, %v5582_v12  ;;  %v5628_v12 = vld [vmem:[#allocation10 + $0xf58] sm:$0xff] }
 0xd94   : > { %15284 = vmatprep.subr.bf16.mxu0 %v15283_v17  ;;  %v5581_v17 = vld [vmem:[#allocation10 + $0xde0] sm:$0xff] }
 0xd95   : > { %v15369_v52 = vpack.c.bf16 %v5584_v18, %v5581_v17  ;;  %v5626_v17 = vld [vmem:[#allocation10 + $0xf48] sm:$0xff]  ;;  %v5577_v18 = vld [vmem:[#allocation10 + $0xdc0] sm:$0xff] }
 0xd97   : > { %15286 = vmatpush1.bf16.msra.mxu0 %v15285_v20  ;;  %v15371_v20 = vpack.c.bf16 %v5591_v44, %v5588_v19  ;;  %v5580_v44 = vld [vmem:[#allocation10 + $0xdd8] sm:$0xff] }
 0xd98   : > { %15288 = vmatprep.subr.bf16.mxu0 %v15287_v51  ;;  %v5587_v51 = vld [vmem:[#allocation10 + $0xe10] sm:$0xff] }
 0xd99   : > { %v15373_v24 = vpack.c.bf16 %v5590_v21, %v5587_v51  ;;  %v15461_v51 = vpack.c.bf16 %v5580_v44, %v5577_v18  ;;  %v5655_v18 = vld [vmem:[#allocation10 + $0x1030] sm:$0xff] }
 0xd9b   : > { %15290 = vmatpush1.bf16.msra.mxu0 %v15289_v25  ;;  %v15375_v25 = vpack.c.bf16 %v5597_v23, %v5594_v22  ;;  %v5631_v22 = vld [vmem:[#allocation10 + $0xf70] sm:$0xff]  ;;  %v5634_v23 = vld [vmem:[#allocation10 + $0xf88] sm:$0xff] }
 0xd9c   : > { %15292 = vmatprep.subr.bf16.mxu0 %v15291_v26  ;;  %v5593_v26 = vld [vmem:[#allocation10 + $0xe40] sm:$0xff] }
 0xd9d   : > { %v15377_v38 = vpack.c.bf16 %v5596_v30, %v5593_v26  ;;  %v5632_v26 = vld [vmem:[#allocation10 + $0xf78] sm:$0xff]  ;;  %v5583_v30 = vld [vmem:[#allocation10 + $0xdf0] sm:$0xff] }
 0xd9f   : > { %15294 = vmatpush1.bf16.msra.mxu0 %v15293_v42  ;;  %v15379_v42 = vpack.c.bf16 %v5603_v36, %v5600_v33  ;;  %v5586_v33 = vld [vmem:[#allocation10 + $0xe08] sm:$0xff] }
 0xda0   : > { %15296 = vmatprep.subr.bf16.mxu0 %v15295_v45  ;;  %v5599_v45 = vld [vmem:[#allocation10 + $0xe70] sm:$0xff] }
 0xda1   : > { %v15381_v48 = vpack.c.bf16 %v5602_v10, %v5599_v45  ;;  %v5637_v45 = vld [vmem:[#allocation10 + $0xfa0] sm:$0xff]  ;;  %v15465_v10 = vpack.c.bf16 %v5586_v33, %v5583_v30  ;;  %v5660_v30 = vld [vmem:[#allocation10 + $0x1058] sm:$0xff]  ;;  %v5663_v33 = vld [vmem:[#allocation10 + $0x1070] sm:$0xff] }
 0xda3   : > { %15298 = vmatpush1.bf16.msra.mxu0 %v15297_v49  ;;  %v15383_v49 = vpack.c.bf16 %v5609_v46, %v5606_v2  ;;  %v5640_v46 = vld [vmem:[#allocation10 + $0xfb8] sm:$0xff] }
 0xda4   : > { %15300 = vmatprep.subr.bf16.mxu0 %v15299_v50  ;;  %v5605_v50 = vld [vmem:[#allocation10 + $0xea0] sm:$0xff] }
 0xda5   : > { %v15385_v54 = vpack.c.bf16 %v5608_v15, %v5605_v50  ;;  %v15467_v50 = vpack.c.bf16 %v5640_v46, %v5637_v45  ;;  %v5589_v15 = vld [vmem:[#allocation10 + $0xe20] sm:$0xff]  ;;  %v5659_v45 = vld [vmem:[#allocation10 + $0x1050] sm:$0xff] }
 0xda7   : > { %15302 = vmatpush1.bf16.msra.mxu0 %v15301_v55  ;;  %v5612_v55 = vld [vmem:[#allocation10 + $0xed8] sm:$0xff] }
 0xda8   : > { %13265 = vmatprep.subr.mxu0 %v17346_v14 }
 0xdaa   : > { %5270 = vmatmul.mubr.f32.vlgmr.msra.gmra.mrb[52].mxu0 %v18167_v29 }
 0xdab   : > { %13267 = vmatprep.mubr.msk.f32.mxu0 %vm17345_vm2, %v17346_v14 }
 0xe3e   : > { %v11632_v56 = vpop.f32.mrb[60].mxu1 }
 0xe3f   : > { %v11633_v57 = vpop.f32.mrb[61].mxu1 }
 0xe40   : > { %v11634_v58 = vadd.f32 %v11633_v57, %v11632_v56  ;;  %v5615_v56 = vld [vmem:[#allocation10 + $0xef0] sm:$0xff] }
 0xe41   : > { %v15387_v57 = vpack.c.bf16 %v5615_v56, %v5612_v55  ;;  %v5642_v55 = vld [vmem:[#allocation10 + $0xfc8] sm:$0xff]  ;;  %v5645_v56 = vld [vmem:[#allocation10 + $0xfe0] sm:$0xff] }
 0xe5e   : > { %v5412_v35 = vpop.f32.mrb[62].mxu1 }
 0xe5f   : > { %v5413_v37 = vadd.f32 %v11634_v58, %v5412_v35  ;;  %v13264_v59 = vpop.f32.mrb[63].mxu1  ;;  %v5611_v58 = vld [vmem:[#allocation10 + $0xed0] sm:$0xff]  ;;  %v5614_v35 = vld [vmem:[#allocation10 + $0xee8] sm:$0xff] }
 0xe60   : > { %v5618_v59 = vld [vmem:[#allocation10 + $0xf08] sm:$0xff] }
 0xe61   : > { %13266 = vmatpush3.msra.mxu0 %v5413_v37  ;;  %v15389_v37 = vpack.c.bf16 %v5614_v35, %v5611_v58  ;;  %v5646_v58 = vld [vmem:[#allocation10 + $0xfe8] sm:$0xff] }
 0xe62   : > { %13268 = vmatmul.mubr.msk.f32.vlgmr.msra.gmra.mrb[50].mxu0 %vm4844_vm4, %v5417_v60  ;;  %15456 = vmatprep.subr.bf16.mxu0 %v15455_v63  ;;  %v5651_v63 = vld [vmem:[#allocation10 + $0x1010] sm:$0xff] }
 0xe7d   : > { %v5271_v0 = vpop.f32.mrb[52].mxu0 }
 0xe7e   : > { %v5273_v3 = vpop.f32.mrb[53].mxu0 }
 0xe7f   : > { %5421 = vmatprep.subr.mxu1 %v5273_v3  ;;  %v5574_v3 = vld [vmem:[#allocation10 + $0xda8] sm:$0xff] }
 0xe80   : > { %5422 = vmatpush1.msra.mxu1 %v5271_v0  ;;  %v15393_v0 = vpack.c.bf16 %v5620_v41, %v5617_v62  ;;  %v5598_v62 = vld [vmem:[#allocation10 + $0xe68] sm:$0xff]  ;;  %v5648_v41 = vld [vmem:[#allocation10 + $0xff8] sm:$0xff] }
 0xe81   : > { %11012 = vmatmul.mubr.msk.f32.vlgmr.msra.gmra.mrb[58].mxu1 %vm4844_vm4, %v5417_v60  ;;  %15360 = vmatprep.subr.bf16.mxu1 %v15359_v1  ;;  %v5621_v60 = vld [vmem:[#allocation10 + $0xf20] sm:$0xff]  ;;  %v5571_v1 = vld [vmem:[#allocation10 + $0xd90] sm:$0xff] }
 0xe82   : > { %15362 = vmatpush1.bf16.msra.mxu1 %v15361_v4  ;;  %v15391_v61 = vpack.c.bf16 %v5621_v60, %v5618_v59  ;;  %v5624_v4 = vld [vmem:[#allocation10 + $0xf38] sm:$0xff]  ;;  %v15407_v59 = vpack.c.bf16 %v5645_v56, %v5642_v55  ;;  %v5641_v60 = vld [vmem:[#allocation10 + $0xfc0] sm:$0xff] }
 0xe83   : > { %15364 = vmatprep.subr.bf16.mxu1 %v15363_v5  ;;  %v15457_v5 = vpack.c.bf16 %v5574_v3, %v5571_v1  ;;  %v15395_v8 = vpack.c.bf16 %v5627_v6, %v5624_v4  ;;  %v5652_v1 = vld [vmem:[#allocation10 + $0x1018] sm:$0xff]  ;;  %v15409_v3 = vpack.c.bf16 %v5644_v39, %v5641_v60  ;;  %v5647_v6 = vld [vmem:[#allocation10 + $0xff0] sm:$0xff]  ;;  %v5670_v60 = vld [vmem:[#allocation10 + $0x10a8] sm:$0xff] }
 0xe85   : > { %15458 = vmatpush3.bf16.msra.mxu0 %v15457_v5  ;;  %v15411_v5 = vpack.c.bf16 %v5651_v63, %v5648_v41 }
 0xe86   : > { %15366 = vmatpush1.bf16.msra.mxu1 %v15365_v32  ;;  %v15459_v32 = vpack.c.bf16 %v5628_v12, %v5625_v7  ;;  %v5650_v7 = vld [vmem:[#allocation10 + $0x1008] sm:$0xff]  ;;  %v5601_v12 = vld [vmem:[#allocation10 + $0xe80] sm:$0xff] }
 0xe87   : > { %15368 = vmatprep.subr.bf16.mxu1 %v15367_v34  ;;  %v5623_v34 = vld [vmem:[#allocation10 + $0xf30] sm:$0xff]  ;;  %v15413_v44 = vpack.c.bf16 %v5650_v7, %v5647_v6  ;;  %v5676_v6 = vld [vmem:[#allocation10 + $0x10d8] sm:$0xff]  ;;  %v5678_v7 = vld [vmem:[#allocation10 + $0x10e8] sm:$0xff] }
 0xe88   : > { %v15397_v19 = vpack.c.bf16 %v5626_v17, %v5623_v34  ;;  %15460 = vmatprep.subr.bf16.mxu0 %v15459_v32  ;;  %v5604_v32 = vld [vmem:[#allocation10 + $0xe98] sm:$0xff]  ;;  %v5654_v34 = vld [vmem:[#allocation10 + $0x1028] sm:$0xff]  ;;  %v5657_v17 = vld [vmem:[#allocation10 + $0x1040] sm:$0xff] }
 0xe89   : > { %15462 = vmatpush3.bf16.msra.mxu0 %v15461_v51  ;;  %v5653_v51 = vld [vmem:[#allocation10 + $0x1020] sm:$0xff] }
 0xe8a   : > { %15370 = vmatpush1.bf16.msra.mxu1 %v15369_v52  ;;  %v5630_v52 = vld [vmem:[#allocation10 + $0xf68] sm:$0xff] }
 0xe8b   : > { %15372 = vmatprep.subr.bf16.mxu1 %v15371_v20  ;;  %v5633_v20 = vld [vmem:[#allocation10 + $0xf80] sm:$0xff] }
 0xe8c   : > { %v15399_v21 = vpack.c.bf16 %v5633_v20, %v5630_v52  ;;  %v15477_v52 = vpack.c.bf16 %v5604_v32, %v5601_v12  ;;  %v15415_v20 = vpack.c.bf16 %v5657_v17, %v5654_v34  ;;  %v5681_v12 = vld [vmem:[#allocation10 + $0x1100] sm:$0xff] }
 0xe8d   : > { %v5677_v34 = vld [vmem:[#allocation10 + $0x10e0] sm:$0xff]  ;;  %v15431_v17 = vpack.c.bf16 %v5681_v12, %v5678_v7  ;;  %v5710_v7 = vld [vmem:[#allocation10 + $0x11e8] sm:$0xff] }
 0xe8e   : > { %15374 = vmatpush1.bf16.msra.mxu1 %v15373_v24  ;;  %v5629_v24 = vld [vmem:[#allocation10 + $0xf60] sm:$0xff] }
 0xe8f   : > { %15376 = vmatprep.subr.bf16.mxu1 %v15375_v25  ;;  %v15463_v25 = vpack.c.bf16 %v5634_v23, %v5631_v22  ;;  %v15401_v36 = vpack.c.bf16 %v5632_v26, %v5629_v24  ;;  %v5607_v23 = vld [vmem:[#allocation10 + $0xeb0] sm:$0xff]  ;;  %v5610_v24 = vld [vmem:[#allocation10 + $0xec8] sm:$0xff] }
 0xe90   : > { %v15481_v26 = vpack.c.bf16 %v5610_v24, %v5607_v23  ;;  %v5686_v24 = vld [vmem:[#allocation10 + $0x1128] sm:$0xff] }
 0xe91   : > { %15464 = vmatprep.subr.bf16.mxu0 %v15463_v25 }
 0xe92   : > { %15378 = vmatpush1.bf16.msra.mxu1 %v15377_v38  ;;  %v5636_v38 = vld [vmem:[#allocation10 + $0xf98] sm:$0xff]  ;;  %15466 = vmatpush3.bf16.msra.mxu0 %v15465_v10  ;;  %v5662_v10 = vld [vmem:[#allocation10 + $0x1068] sm:$0xff] }
 0xe93   : > { %15380 = vmatprep.subr.bf16.mxu1 %v15379_v42  ;;  %v5639_v42 = vld [vmem:[#allocation10 + $0xfb0] sm:$0xff]  ;;  %15468 = vmatprep.subr.bf16.mxu0 %v15467_v50  ;;  %v15421_v46 = vpack.c.bf16 %v5662_v10, %v5659_v45  ;;  %v5692_v10 = vld [vmem:[#allocation10 + $0x1158] sm:$0xff] }
 0xe94   : > { %v15403_v2 = vpack.c.bf16 %v5639_v42, %v5636_v38  ;;  %v15419_v38 = vpack.c.bf16 %v5663_v33, %v5660_v30  ;;  %v5664_v42 = vld [vmem:[#allocation10 + $0x1078] sm:$0xff]  ;;  %v5690_v30 = vld [vmem:[#allocation10 + $0x1148] sm:$0xff]  ;;  %v5693_v33 = vld [vmem:[#allocation10 + $0x1160] sm:$0xff] }
 0xe95   : > { %v15439_v45 = vpack.c.bf16 %v5693_v33, %v5690_v30  ;;  %v6052_v30 = vld [vmem:[#allocation10 + $0x13c0] sm:$0xff]  ;;  %v6055_v33 = vld [vmem:[#allocation10 + $0x13d8] sm:$0xff] }
 0xe96   : > { %15382 = vmatpush1.bf16.msra.mxu1 %v15381_v48  ;;  %v5635_v48 = vld [vmem:[#allocation10 + $0xf90] sm:$0xff] }
 0xe97   : > { %15384 = vmatprep.subr.bf16.mxu1 %v15383_v49  ;;  %v5638_v49 = vld [vmem:[#allocation10 + $0xfa8] sm:$0xff] }
 0xe98   : > { %v15405_v35 = vpack.c.bf16 %v5638_v49, %v5635_v48  ;;  %v5613_v48 = vld [vmem:[#allocation10 + $0xee0] sm:$0xff]  ;;  %v5616_v49 = vld [vmem:[#allocation10 + $0xef8] sm:$0xff] }
 0xe99   : > { %v15485_v50 = vpack.c.bf16 %v5616_v49, %v5613_v48  ;;  %v5696_v48 = vld [vmem:[#allocation10 + $0x1178] sm:$0xff]  ;;  %v5699_v49 = vld [vmem:[#allocation10 + $0x1190] sm:$0xff] }
 0xe9a   : > { %15386 = vmatpush1.bf16.msra.mxu1 %v15385_v54  ;;  %v5592_v54 = vld [vmem:[#allocation10 + $0xe38] sm:$0xff] }
 0xe9b   : > { %15388 = vmatprep.subr.bf16.mxu1 %v15387_v57  ;;  %v5643_v57 = vld [vmem:[#allocation10 + $0xfd0] sm:$0xff] }
 0xe9c   : > { %v15471_v40 = vpack.c.bf16 %v5646_v58, %v5643_v57 }
 0xe9e   : > { %15390 = vmatpush1.bf16.msra.mxu1 %v15389_v37  ;;  %v15469_v37 = vpack.c.bf16 %v5592_v54, %v5589_v15  ;;  %v5666_v15 = vld [vmem:[#allocation10 + $0x1088] sm:$0xff]  ;;  %v5669_v54 = vld [vmem:[#allocation10 + $0x10a0] sm:$0xff] }
 0xe9f   : > { %15392 = vmatprep.subr.bf16.mxu1 %v15391_v61  ;;  %v5595_v61 = vld [vmem:[#allocation10 + $0xe50] sm:$0xff]  ;;  %v15423_v55 = vpack.c.bf16 %v5669_v54, %v5666_v15 }
 0xea0   : > { %15470 = vmatpush3.bf16.msra.mxu0 %v15469_v37  ;;  %v15473_v4 = vpack.c.bf16 %v5598_v62, %v5595_v61  ;;  %v5668_v37 = vld [vmem:[#allocation10 + $0x1098] sm:$0xff]  ;;  %v5695_v54 = vld [vmem:[#allocation10 + $0x1170] sm:$0xff] }
 0xea1   : > { %15472 = vmatprep.subr.bf16.mxu0 %v15471_v40  ;;  %v5672_v61 = vld [vmem:[#allocation10 + $0x10b8] sm:$0xff]  ;;  %v5675_v40 = vld [vmem:[#allocation10 + $0x10d0] sm:$0xff] }
 0xea2   : > { %15394 = vmatpush1.bf16.msra.mxu1 %v15393_v0  ;;  %v5649_v0 = vld [vmem:[#allocation10 + $0x1000] sm:$0xff] }
 0xea3   : > { %15396 = vmatprep.subr.bf16.mxu1 %v15395_v8  ;;  %v15475_v8 = vpack.c.bf16 %v5652_v1, %v5649_v0  ;;  %v5671_v1 = vld [vmem:[#allocation10 + $0x10b0] sm:$0xff] }
 0xea4   : > { %15474 = vmatpush3.bf16.msra.mxu0 %v15473_v4  ;;  %v15427_v4 = vpack.c.bf16 %v5675_v40, %v5672_v61  ;;  %v5701_v61 = vld [vmem:[#allocation10 + $0x11a0] sm:$0xff] }
 0xea5   : > { %15476 = vmatprep.subr.bf16.mxu0 %v15475_v8 }
 0xea6   : > { %15398 = vmatpush1.bf16.msra.mxu1 %v15397_v19  ;;  %v5658_v19 = vld [vmem:[#allocation10 + $0x1048] sm:$0xff] }
 0xea7   : > { %15400 = vmatprep.subr.bf16.mxu1 %v15399_v21  ;;  %v5656_v21 = vld [vmem:[#allocation10 + $0x1038] sm:$0xff]  ;;  %v15479_v22 = vpack.c.bf16 %v5658_v19, %v5655_v18  ;;  %v5679_v19 = vld [vmem:[#allocation10 + $0x10f0] sm:$0xff] }
 0xea8   : > { %v15417_v25 = vpack.c.bf16 %v5656_v21, %v5653_v51  ;;  %15478 = vmatpush3.bf16.msra.mxu0 %v15477_v52  ;;  %v5680_v18 = vld [vmem:[#allocation10 + $0x10f8] sm:$0xff] }
 0xea9   : > { %15480 = vmatprep.subr.bf16.mxu0 %v15479_v22  ;;  %v5684_v52 = vld [vmem:[#allocation10 + $0x1118] sm:$0xff]  ;;  %v15433_v51 = vpack.c.bf16 %v5680_v18, %v5677_v34  ;;  %v5683_v22 = vld [vmem:[#allocation10 + $0x1110] sm:$0xff]  ;;  %v5997_v34 = vld [vmem:[#allocation10 + $0x1208] sm:$0xff] }
 0xeaa   : > { %15402 = vmatpush1.bf16.msra.mxu1 %v15401_v36  ;;  %v5661_v36 = vld [vmem:[#allocation10 + $0x1060] sm:$0xff]  ;;  %v6046_v18 = vld [vmem:[#allocation10 + $0x1390] sm:$0xff] }
 0xeab   : > { %15404 = vmatprep.subr.bf16.mxu1 %v15403_v2  ;;  %v15483_v2 = vpack.c.bf16 %v5664_v42, %v5661_v36  ;;  %v15437_v36 = vpack.c.bf16 %v5686_v24, %v5683_v22  ;;  %v5689_v42 = vld [vmem:[#allocation10 + $0x1140] sm:$0xff]  ;;  %v5999_v22 = vld [vmem:[#allocation10 + $0x1218] sm:$0xff]  ;;  %v6001_v24 = vld [vmem:[#allocation10 + $0x1228] sm:$0xff] }
 0xeac   : > { %15482 = vmatpush3.bf16.msra.mxu0 %v15481_v26  ;;  %v5688_v26 = vld [vmem:[#allocation10 + $0x1138] sm:$0xff] }
 0xead   : > { %15484 = vmatprep.subr.bf16.mxu0 %v15483_v2  ;;  %v5691_v2 = vld [vmem:[#allocation10 + $0x1150] sm:$0xff] }
 0xeae   : > { %15406 = vmatpush1.bf16.msra.mxu1 %v15405_v35  ;;  %v5665_v35 = vld [vmem:[#allocation10 + $0x1080] sm:$0xff] }
 0xeaf   : > { %15408 = vmatprep.subr.bf16.mxu1 %v15407_v59  ;;  %v5667_v59 = vld [vmem:[#allocation10 + $0x1090] sm:$0xff]  ;;  %v15425_v63 = vpack.c.bf16 %v5668_v37, %v5665_v35  ;;  %v5700_v35 = vld [vmem:[#allocation10 + $0x1198] sm:$0xff]  ;;  %v5702_v37 = vld [vmem:[#allocation10 + $0x11a8] sm:$0xff] }
 0xeb0   : > { %15486 = vmatpush3.bf16.msra.mxu0 %v15485_v50  ;;  %v15488_v0 = vpack.c.bf16 %v5670_v60, %v5667_v59  ;;  %v15441_v50 = vpack.c.bf16 %v5692_v10, %v5689_v42  ;;  %v5705_v59 = vld [vmem:[#allocation10 + $0x11c0] sm:$0xff]  ;;  %v6005_v10 = vld [vmem:[#allocation10 + $0x1248] sm:$0xff] }
 0xeb1   : > { %15487 = vmatprep.subr.bf16.mxu0 %v17344_v53  ;;  %v15447_v40 = vpack.c.bf16 %v5705_v59, %v5702_v37  ;;  %v6011_v37 = vld [vmem:[#allocation10 + $0x1278] sm:$0xff]  ;;  %v6010_v59 = vld [vmem:[#allocation10 + $0x1270] sm:$0xff] }
 0xeb2   : > { %15410 = vmatpush1.bf16.msra.mxu1 %v15409_v3 }
 0xeb3   : > { %15412 = vmatprep.subr.bf16.mxu1 %v15411_v5  ;;  %v5674_v5 = vld [vmem:[#allocation10 + $0x10c8] sm:$0xff] }
 0xeb4   : > { %v15429_v8 = vpack.c.bf16 %v5674_v5, %v5671_v1  ;;  %v5708_v1 = vld [vmem:[#allocation10 + $0x11d8] sm:$0xff] }
 0xeb6   : > { %15414 = vmatpush1.bf16.msra.mxu1 %v15413_v44  ;;  %v5682_v44 = vld [vmem:[#allocation10 + $0x1108] sm:$0xff] }
 0xeb7   : > { %15416 = vmatprep.subr.bf16.mxu1 %v15415_v20  ;;  %v5687_v20 = vld [vmem:[#allocation10 + $0x1130] sm:$0xff]  ;;  %v15494_v21 = vpack.c.bf16 %v5682_v44, %v5679_v19  ;;  %v6049_v19 = vld [vmem:[#allocation10 + $0x13a8] sm:$0xff] }
 0xeb8   : > { %v15435_v23 = vpack.c.bf16 %v5687_v20, %v5684_v52 }
 0xeba   : > { %15418 = vmatpush1.bf16.msra.mxu1 %v15417_v25  ;;  %v5685_v25 = vld [vmem:[#allocation10 + $0x1120] sm:$0xff] }
 0xebb   : > { %15420 = vmatprep.subr.bf16.mxu1 %v15419_v38  ;;  %v15497_v38 = vpack.c.bf16 %v5688_v26, %v5685_v25  ;;  %v6003_v25 = vld [vmem:[#allocation10 + $0x1238] sm:$0xff]  ;;  %v6006_v26 = vld [vmem:[#allocation10 + $0x1250] sm:$0xff] }
 0xebe   : > { %15422 = vmatpush1.bf16.msra.mxu1 %v15421_v46  ;;  %v5694_v46 = vld [vmem:[#allocation10 + $0x1168] sm:$0xff] }
 0xebf   : > { %15424 = vmatprep.subr.bf16.mxu1 %v15423_v55  ;;  %v15500_v15 = vpack.c.bf16 %v5694_v46, %v5691_v2  ;;  %v15443_v55 = vpack.c.bf16 %v5699_v49, %v5696_v48  ;;  %v6004_v2 = vld [vmem:[#allocation10 + $0x1240] sm:$0xff]  ;;  %v15515_v46 = vpack.c.bf16 %v6006_v26, %v6003_v25  ;;  %v15611_v48 = vpack.c.bf16 %v6055_v33, %v6052_v30  ;;  %v6007_v49 = vld [vmem:[#allocation10 + $0x1258] sm:$0xff] }
 0xec0   : > { %v6076_v25 = vld [vmem:[#allocation10 + $0x1480] sm:$0xff]  ;;  %v6079_v26 = vld [vmem:[#allocation10 + $0x1498] sm:$0xff] }
 0xf35   : > { %v5558_v56 = vpop.f32.mrb[50].mxu0 }
 0xf36   : > { %v18237_v57 = vadd.f32 %v18212_v47, %v5558_v56  ;;  %v13269_v58 = vpop.f32.mrb[51].mxu0  ;;  %v5673_v47 = vld [vmem:[#allocation10 + $0x10c0] sm:$0xff]  ;;  %v5698_v56 = vld [vmem:[#allocation10 + $0x1188] sm:$0xff] }
 0xf37   : > { %v15491_v32 = vpack.c.bf16 %v5676_v6, %v5673_v47  ;;  %v5697_v58 = vld [vmem:[#allocation10 + $0x1180] sm:$0xff]  ;;  %v15445_v60 = vpack.c.bf16 %v5698_v56, %v5695_v54  ;;  %v5707_v6 = vld [vmem:[#allocation10 + $0x11d0] sm:$0xff]  ;;  %v15613_v56 = vpack.c.bf16 %v6007_v49, %v6004_v2  ;;  %v15627_v2 = vpack.c.bf16 %v6079_v26, %v6076_v25  ;;  %v6103_v26 = vld [vmem:[#allocation10 + $0x1558] sm:$0xff] }
 0xf38   : > { %v15453_v44 = vpack.c.bf16 %v5710_v7, %v5707_v6  ;;  %v6058_v54 = vld [vmem:[#allocation10 + $0x13f0] sm:$0xff]  ;;  %v6016_v6 = vld [vmem:[#allocation10 + $0x12a0] sm:$0xff] }
 0xf39   : > { %v6036_v49 = vld [vmem:[#allocation10 + $0x1340] sm:$0xff] }
 0xf3a   : > { %v6100_v25 = vld [vmem:[#allocation10 + $0x1540] sm:$0xff] }
 0xf54   : > { %v5487_v39 = vpop.f32.mrb[58].mxu1 }
 0xf55   : > { %v5489_v62 = vpop.f32.mrb[59].mxu1  ;;  %v18241_v3 = vmax.f32 %v5487_v39, 0.0  ;;  %v15503_v39 = vpack.c.bf16 %v5700_v35, %v5697_v58  ;;  %v6008_v35 = vld [vmem:[#allocation10 + $0x1260] sm:$0xff] }
 0xf56   : > { %v18239_v41 = vmax.f32 %v5489_v62, 0.0  ;;  %v5704_v62 = vld [vmem:[#allocation10 + $0x11b8] sm:$0xff] }
 0xf57   : > { %v15449_v5 = vpack.c.bf16 %v5704_v62, %v5701_v61  ;;  %v6015_v61 = vld [vmem:[#allocation10 + $0x1298] sm:$0xff]  ;;  %v6064_v62 = vld [vmem:[#allocation10 + $0x1420] sm:$0xff] }
 0xf58   : > { %5777 = vmatprep.mubr.f32.mxu1 %v18239_v41  ;;  %5919 = vmatprep.mubr.f32.mxu0 %v18239_v41 }
 0xf59   : > { %5778 = vmatmul.mubr.f32.vlgmr.msra.gmra.mrb[64].mxu1 %v18241_v3  ;;  %5920 = vmatmul.mubr.f32.vlgmr.msra.gmra.mrb[54].mxu0 %v18241_v3 }
 0xf5a   : > { %15426 = vmatpush1.bf16.msra.mxu1 %v15425_v63  ;;  %15489 = vmatpush3.bf16.msra.mxu0 %v15488_v0  ;;  %v5703_v63 = vld [vmem:[#allocation10 + $0x11b0] sm:$0xff]  ;;  %v5706_v0 = vld [vmem:[#allocation10 + $0x11c8] sm:$0xff] }
 0xf5b   : > { %15428 = vmatprep.subr.bf16.mxu1 %v15427_v4  ;;  %15490 = vmatprep.subr.bf16.mxu0 %v17344_v53  ;;  %v5711_v4 = vld [vmem:[#allocation10 + $0x11f0] sm:$0xff]  ;;  %v15506_v47 = vpack.c.bf16 %v5706_v0, %v5703_v63  ;;  %v6067_v63 = vld [vmem:[#allocation10 + $0x1438] sm:$0xff]  ;;  %v15521_v0 = vpack.c.bf16 %v6011_v37, %v6008_v35 }
 0xf5c   : > { %5848 = vmatprep.mubr.f32.mxu1 %v17346_v14  ;;  %13302 = vmatprep.mubr.msk.f32.mxu0 %vm17345_vm2, %v17346_v14  ;;  %v15451_v12 = vpack.c.bf16 %v5711_v4, %v5708_v1  ;;  %v15619_v7 = vpack.c.bf16 %v6067_v63, %v6064_v62  ;;  %v6034_v35 = vld [vmem:[#allocation10 + $0x1330] sm:$0xff] }
 0xf5e   : > { %15430 = vmatpush1.bf16.msra.mxu1 %v15429_v8  ;;  %15492 = vmatpush3.bf16.msra.mxu0 %v15491_v32  ;;  %v5709_v8 = vld [vmem:[#allocation10 + $0x11e0] sm:$0xff]  ;;  %v5712_v32 = vld [vmem:[#allocation10 + $0x11f8] sm:$0xff] }
 0xf5f   : > { %15432 = vmatprep.subr.bf16.mxu1 %v15431_v17  ;;  %15493 = vmatprep.subr.bf16.mxu0 %v17344_v53  ;;  %v6000_v17 = vld [vmem:[#allocation10 + $0x1220] sm:$0xff]  ;;  %v15509_v52 = vpack.c.bf16 %v5712_v32, %v5709_v8  ;;  %v6021_v8 = vld [vmem:[#allocation10 + $0x12c8] sm:$0xff] }
 0xf60   : > { %v15511_v20 = vpack.c.bf16 %v6000_v17, %v5997_v34  ;;  %v6024_v32 = vld [vmem:[#allocation10 + $0x12e0] sm:$0xff]  ;;  %v6070_v34 = vld [vmem:[#allocation10 + $0x1450] sm:$0xff]  ;;  %v6073_v17 = vld [vmem:[#allocation10 + $0x1468] sm:$0xff] }
 0xf62   : > { %15434 = vmatpush1.bf16.msra.mxu1 %v15433_v51  ;;  %15495 = vmatpush3.bf16.msra.mxu0 %v15494_v21  ;;  %v15607_v51 = vpack.c.bf16 %v6049_v19, %v6046_v18  ;;  %v5996_v21 = vld [vmem:[#allocation10 + $0x1200] sm:$0xff] }
 0xf63   : > { %15436 = vmatprep.subr.bf16.mxu1 %v15435_v23  ;;  %15496 = vmatprep.subr.bf16.mxu0 %v17344_v53  ;;  %v5998_v23 = vld [vmem:[#allocation10 + $0x1210] sm:$0xff] }
 0xf64   : > { %v15609_v42 = vpack.c.bf16 %v6001_v24, %v5998_v23  ;;  %v6027_v23 = vld [vmem:[#allocation10 + $0x12f8] sm:$0xff]  ;;  %v6030_v24 = vld [vmem:[#allocation10 + $0x1310] sm:$0xff] }
 0xf66   : > { %15438 = vmatpush1.bf16.msra.mxu1 %v15437_v36  ;;  %15498 = vmatpush3.bf16.msra.mxu0 %v15497_v38  ;;  %v15513_v36 = vpack.c.bf16 %v5999_v22, %v5996_v21  ;;  %v18258_v38 = vmax.f32 %v18237_v57, 0.0  ;;  %v15623_v21 = vpack.c.bf16 %v6073_v17, %v6070_v34  ;;  %v6025_v22 = vld [vmem:[#allocation10 + $0x12e8] sm:$0xff]  ;;  %v6044_v17 = vld [vmem:[#allocation10 + $0x1380] sm:$0xff] }
 0xf67   : > { %15440 = vmatprep.subr.bf16.mxu1 %v15439_v45  ;;  %15499 = vmatprep.subr.bf16.mxu0 %v17344_v53  ;;  %v6002_v45 = vld [vmem:[#allocation10 + $0x1230] sm:$0xff] }
 0xf68   : > { %v15517_v57 = vpack.c.bf16 %v6005_v10, %v6002_v45  ;;  %v6029_v45 = vld [vmem:[#allocation10 + $0x1308] sm:$0xff]  ;;  %v6028_v10 = vld [vmem:[#allocation10 + $0x1300] sm:$0xff] }
 0xf6a   : > { %15442 = vmatpush1.bf16.msra.mxu1 %v15441_v50  ;;  %15501 = vmatpush3.bf16.msra.mxu0 %v15500_v15  ;;  %v6009_v50 = vld [vmem:[#allocation10 + $0x1268] sm:$0xff]  ;;  %v6012_v15 = vld [vmem:[#allocation10 + $0x1280] sm:$0xff] }
 0xf6b   : > { %15444 = vmatprep.subr.bf16.mxu1 %v15443_v55  ;;  %15502 = vmatprep.subr.bf16.mxu0 %v17344_v53  ;;  %v6061_v55 = vld [vmem:[#allocation10 + $0x1408] sm:$0xff]  ;;  %v15519_v58 = vpack.c.bf16 %v6012_v15, %v6009_v50  ;;  %v6082_v50 = vld [vmem:[#allocation10 + $0x14b0] sm:$0xff] }
 0xf6c   : > { %v6085_v15 = vld [vmem:[#allocation10 + $0x14c8] sm:$0xff] }
 0xf6d   : > { %v15631_v37 = vpack.c.bf16 %v6085_v15, %v6082_v50  ;;  %v6066_v50 = vld [vmem:[#allocation10 + $0x1430] sm:$0xff] }
 0xf6e   : > { %15446 = vmatpush1.bf16.msra.mxu1 %v15445_v60  ;;  %15504 = vmatpush3.bf16.msra.mxu0 %v15503_v39  ;;  %v15615_v60 = vpack.c.bf16 %v6061_v55, %v6058_v54  ;;  %v6013_v39 = vld [vmem:[#allocation10 + $0x1288] sm:$0xff] }
 0xf6f   : > { %15448 = vmatprep.subr.bf16.mxu1 %v15447_v40  ;;  %15505 = vmatprep.subr.bf16.mxu0 %v17344_v53  ;;  %v6018_v40 = vld [vmem:[#allocation10 + $0x12b0] sm:$0xff]  ;;  %v15617_v1 = vpack.c.bf16 %v6013_v39, %v6010_v59  ;;  %v6037_v59 = vld [vmem:[#allocation10 + $0x1348] sm:$0xff] }
 0xf70   : > { %v15523_v4 = vpack.c.bf16 %v6018_v40, %v6015_v61  ;;  %v6042_v39 = vld [vmem:[#allocation10 + $0x1370] sm:$0xff]  ;;  %v6088_v61 = vld [vmem:[#allocation10 + $0x14e0] sm:$0xff]  ;;  %v6091_v40 = vld [vmem:[#allocation10 + $0x14f8] sm:$0xff]  ;;  %v15633_v63 = vpack.c.bf16 %v6037_v59, %v6034_v35 }
 0xf71   : > { %v6115_v35 = vld [vmem:[#allocation10 + $0x15b8] sm:$0xff]  ;;  %v6072_v59 = vld [vmem:[#allocation10 + $0x1460] sm:$0xff] }
 0xf72   : > { %15450 = vmatpush1.bf16.msra.mxu1 %v15449_v5  ;;  %15507 = vmatpush3.bf16.msra.mxu0 %v15506_v47  ;;  %v6014_v5 = vld [vmem:[#allocation10 + $0x1290] sm:$0xff]  ;;  %v6017_v47 = vld [vmem:[#allocation10 + $0x12a8] sm:$0xff] }
 0xf73   : > { %15452 = vmatprep.subr.bf16.mxu1 %v15451_v12  ;;  %15508 = vmatprep.subr.bf16.mxu0 %v17344_v53  ;;  %v6019_v12 = vld [vmem:[#allocation10 + $0x12b8] sm:$0xff]  ;;  %v15525_v18 = vpack.c.bf16 %v6017_v47, %v6014_v5  ;;  %v6040_v5 = vld [vmem:[#allocation10 + $0x1360] sm:$0xff]  ;;  %v15635_v47 = vpack.c.bf16 %v6091_v40, %v6088_v61 }
 0xf74   : > { %v15621_v19 = vpack.c.bf16 %v6019_v12, %v6016_v6  ;;  %v6043_v6 = vld [vmem:[#allocation10 + $0x1378] sm:$0xff]  ;;  %v6048_v12 = vld [vmem:[#allocation10 + $0x13a0] sm:$0xff] }
 0xf75   : > { %v6068_v40 = vld [vmem:[#allocation10 + $0x1440] sm:$0xff] }
 0xf76   : > { %15454 = vmatpush1.bf16.msra.mxu1 %v15453_v44  ;;  %15510 = vmatpush3.bf16.msra.mxu0 %v15509_v52  ;;  %v15527_v44 = vpack.c.bf16 %v6024_v32, %v6021_v8  ;;  %v6020_v52 = vld [vmem:[#allocation10 + $0x12c0] sm:$0xff]  ;;  %v15637_v32 = vpack.c.bf16 %v6043_v6, %v6040_v5 }
 0xf77   : > { %15512 = vmatprep.subr.bf16.mxu0 %v15511_v20  ;;  %15608 = vmatprep.subr.bf16.mxu1 %v15607_v51  ;;  %v6023_v20 = vld [vmem:[#allocation10 + $0x12d8] sm:$0xff]  ;;  %v6022_v51 = vld [vmem:[#allocation10 + $0x12d0] sm:$0xff] }
 0xf78   : > { %v15529_v30 = vpack.c.bf16 %v6023_v20, %v6020_v52  ;;  %v15625_v33 = vpack.c.bf16 %v6025_v22, %v6022_v51  ;;  %v6051_v52 = vld [vmem:[#allocation10 + $0x13b8] sm:$0xff]  ;;  %v6054_v20 = vld [vmem:[#allocation10 + $0x13d0] sm:$0xff] }
 0xf79   : > { %5849 = vmatmul.mubr.f32.vlgmr.msra.gmra.mrb[64].mxu1 %v18258_v38  ;;  %13303 = vmatmul.mubr.f32.vlgmr.msra.gmra.mrb[56].mxu0 %v18258_v38  ;;  %v15547_v22 = vpack.c.bf16 %v6054_v20, %v6051_v52  ;;  %v6080_v52 = vld [vmem:[#allocation10 + $0x14a0] sm:$0xff]  ;;  %v6083_v20 = vld [vmem:[#allocation10 + $0x14b8] sm:$0xff] }
 0xf7a   : > { %15514 = vmatpush1.bf16.msra.mxu0 %v15513_v36  ;;  %6204 = vmatprep.mubr.f32.mxu0 %v18239_v41  ;;  %v15531_v36 = vpack.c.bf16 %v6030_v24, %v6027_v23  ;;  %v6050_v23 = vld [vmem:[#allocation10 + $0x13b0] sm:$0xff]  ;;  %v6053_v24 = vld [vmem:[#allocation10 + $0x13c8] sm:$0xff] }
 0xf7b   : > { %15610 = vmatpush3.bf16.msra.mxu1 %v15609_v42  ;;  %6346 = vmatprep.mubr.f32.mxu1 %v18239_v41  ;;  %v6026_v42 = vld [vmem:[#allocation10 + $0x12f0] sm:$0xff] }
 0xf7c   : > { %15516 = vmatprep.subr.bf16.mxu0 %v15515_v46  ;;  %15612 = vmatprep.subr.bf16.mxu1 %v15611_v48  ;;  %v6031_v46 = vld [vmem:[#allocation10 + $0x1318] sm:$0xff]  ;;  %v6033_v48 = vld [vmem:[#allocation10 + $0x1328] sm:$0xff]  ;;  %v15533_v54 = vpack.c.bf16 %v6029_v45, %v6026_v42  ;;  %v15643_v42 = vpack.c.bf16 %v6103_v26, %v6100_v25 }
 0xf7d   : > { %v15629_v55 = vpack.c.bf16 %v6031_v46, %v6028_v10  ;;  %v6056_v10 = vld [vmem:[#allocation10 + $0x13e0] sm:$0xff]  ;;  %v6106_v46 = vld [vmem:[#allocation10 + $0x1570] sm:$0xff] }
 0xf7e   : > { %15518 = vmatpush1.bf16.msra.mxu0 %v15517_v57  ;;  %v15535_v57 = vpack.c.bf16 %v6036_v49, %v6033_v48  ;;  %v6109_v48 = vld [vmem:[#allocation10 + $0x1588] sm:$0xff]  ;;  %v6063_v49 = vld [vmem:[#allocation10 + $0x1418] sm:$0xff] }
 0xf7f   : > { %15614 = vmatpush3.bf16.msra.mxu1 %v15613_v56  ;;  %15520 = vmatprep.subr.bf16.mxu0 %v15519_v58  ;;  %v6032_v56 = vld [vmem:[#allocation10 + $0x1320] sm:$0xff]  ;;  %v6035_v58 = vld [vmem:[#allocation10 + $0x1338] sm:$0xff] }
 0xf80   : > { %15616 = vmatprep.subr.bf16.mxu1 %v15615_v60  ;;  %v6039_v60 = vld [vmem:[#allocation10 + $0x1358] sm:$0xff]  ;;  %v15537_v62 = vpack.c.bf16 %v6035_v58, %v6032_v56  ;;  %v6065_v56 = vld [vmem:[#allocation10 + $0x1428] sm:$0xff]  ;;  %v6112_v58 = vld [vmem:[#allocation10 + $0x15a0] sm:$0xff] }
 0xf82   : > { %15522 = vmatpush1.bf16.msra.mxu0 %v15521_v0  ;;  %v15539_v0 = vpack.c.bf16 %v6042_v39, %v6039_v60  ;;  %v15649_v39 = vpack.c.bf16 %v6115_v35, %v6112_v58  ;;  %v6101_v58 = vld [vmem:[#allocation10 + $0x1548] sm:$0xff] }
 0xf83   : > { %15618 = vmatpush3.bf16.msra.mxu1 %v15617_v1  ;;  %15524 = vmatprep.subr.bf16.mxu0 %v15523_v4  ;;  %v6038_v1 = vld [vmem:[#allocation10 + $0x1350] sm:$0xff]  ;;  %v6041_v4 = vld [vmem:[#allocation10 + $0x1368] sm:$0xff] }
 0xf84   : > { %15620 = vmatprep.subr.bf16.mxu1 %v15619_v7  ;;  %v6045_v7 = vld [vmem:[#allocation10 + $0x1388] sm:$0xff]  ;;  %v15541_v8 = vpack.c.bf16 %v6041_v4, %v6038_v1  ;;  %v6075_v1 = vld [vmem:[#allocation10 + $0x1478] sm:$0xff]  ;;  %v6078_v4 = vld [vmem:[#allocation10 + $0x1490] sm:$0xff] }
 0xf85   : > { %v15543_v34 = vpack.c.bf16 %v6048_v12, %v6045_v7  ;;  %v15563_v6 = vpack.c.bf16 %v6078_v4, %v6075_v1  ;;  %v6074_v7 = vld [vmem:[#allocation10 + $0x1470] sm:$0xff]  ;;  %v6077_v12 = vld [vmem:[#allocation10 + $0x1488] sm:$0xff] }
 0xf86   : > { %15526 = vmatpush1.bf16.msra.mxu0 %v15525_v18  ;;  %v6047_v18 = vld [vmem:[#allocation10 + $0x1398] sm:$0xff]  ;;  %v6105_v35 = vld [vmem:[#allocation10 + $0x1568] sm:$0xff]  ;;  %v6110_v1 = vld [vmem:[#allocation10 + $0x1590] sm:$0xff] }
 0xf87   : > { %15622 = vmatpush3.bf16.msra.mxu1 %v15621_v19  ;;  %15528 = vmatprep.subr.bf16.mxu0 %v15527_v44  ;;  %v6094_v19 = vld [vmem:[#allocation10 + $0x1510] sm:$0xff]  ;;  %v6097_v44 = vld [vmem:[#allocation10 + $0x1528] sm:$0xff]  ;;  %v15545_v51 = vpack.c.bf16 %v6047_v18, %v6044_v17  ;;  %v6084_v17 = vld [vmem:[#allocation10 + $0x14c0] sm:$0xff]  ;;  %v15565_v18 = vpack.c.bf16 %v6077_v12, %v6074_v7 }
 0xf88   : > { %15624 = vmatprep.subr.bf16.mxu1 %v15623_v21  ;;  %v15640_v21 = vpack.c.bf16 %v6097_v44, %v6094_v19  ;;  %v6113_v4 = vld [vmem:[#allocation10 + $0x15a8] sm:$0xff]  ;;  %v6116_v12 = vld [vmem:[#allocation10 + $0x15c0] sm:$0xff] }
 0xf8a   : > { %15530 = vmatpush1.bf16.msra.mxu0 %v15529_v30  ;;  %v6057_v30 = vld [vmem:[#allocation10 + $0x13e8] sm:$0xff] }
 0xf8b   : > { %15626 = vmatpush3.bf16.msra.mxu1 %v15625_v33  ;;  %15532 = vmatprep.subr.bf16.mxu0 %v15531_v36  ;;  %v6060_v33 = vld [vmem:[#allocation10 + $0x1400] sm:$0xff]  ;;  %v15549_v36 = vpack.c.bf16 %v6053_v24, %v6050_v23  ;;  %v6090_v23 = vld [vmem:[#allocation10 + $0x14f0] sm:$0xff]  ;;  %v15569_v24 = vpack.c.bf16 %v6083_v20, %v6080_v52  ;;  %v6129_v52 = vld [vmem:[#allocation10 + $0x1628] sm:$0xff] }
 0xf8c   : > { %15628 = vmatprep.subr.bf16.mxu1 %v15627_v2  ;;  %v15551_v45 = vpack.c.bf16 %v6060_v33, %v6057_v30  ;;  %v6059_v2 = vld [vmem:[#allocation10 + $0x13f8] sm:$0xff]  ;;  %v6086_v30 = vld [vmem:[#allocation10 + $0x14d0] sm:$0xff]  ;;  %v6089_v33 = vld [vmem:[#allocation10 + $0x14e8] sm:$0xff] }
 0xf8d   : > { %v15553_v15 = vpack.c.bf16 %v6059_v2, %v6056_v10  ;;  %v6096_v10 = vld [vmem:[#allocation10 + $0x1520] sm:$0xff]  ;;  %v15573_v2 = vpack.c.bf16 %v6089_v33, %v6086_v30  ;;  %v6134_v33 = vld [vmem:[#allocation10 + $0x1650] sm:$0xff] }
 0xf8e   : > { %15534 = vmatpush1.bf16.msra.mxu0 %v15533_v54  ;;  %v15646_v54 = vpack.c.bf16 %v6109_v48, %v6106_v46  ;;  %v6132_v20 = vld [vmem:[#allocation10 + $0x1640] sm:$0xff] }
 0xf8f   : > { %15630 = vmatpush3.bf16.msra.mxu1 %v15629_v55  ;;  %15536 = vmatprep.subr.bf16.mxu0 %v15535_v57  ;;  %v15555_v55 = vpack.c.bf16 %v6066_v50, %v6063_v49  ;;  %v6062_v57 = vld [vmem:[#allocation10 + $0x1410] sm:$0xff]  ;;  %v6092_v49 = vld [vmem:[#allocation10 + $0x1500] sm:$0xff]  ;;  %v6095_v50 = vld [vmem:[#allocation10 + $0x1518] sm:$0xff] }
 0xf90   : > { %15632 = vmatprep.subr.bf16.mxu1 %v15631_v37  ;;  %v6069_v37 = vld [vmem:[#allocation10 + $0x1448] sm:$0xff]  ;;  %v15557_v60 = vpack.c.bf16 %v6065_v56, %v6062_v57  ;;  %v6098_v56 = vld [vmem:[#allocation10 + $0x1530] sm:$0xff] }
 0xf91   : > { %v15559_v61 = vpack.c.bf16 %v6072_v59, %v6069_v37  ;;  %v6108_v37 = vld [vmem:[#allocation10 + $0x1580] sm:$0xff]  ;;  %v15581_v59 = vpack.c.bf16 %v6101_v58, %v6098_v56  ;;  %v6566_v56 = vld [vmem:[#allocation10 + $0x1690] sm:$0xff]  ;;  %v6569_v58 = vld [vmem:[#allocation10 + $0x16a8] sm:$0xff] }
 0xf92   : > { %15538 = vmatpush1.bf16.msra.mxu0 %v15537_v62  ;;  %v6071_v62 = vld [vmem:[#allocation10 + $0x1458] sm:$0xff] }
 0xf93   : > { %15634 = vmatpush3.bf16.msra.mxu1 %v15633_v63  ;;  %15540 = vmatprep.subr.bf16.mxu0 %v15539_v0  ;;  %v6118_v63 = vld [vmem:[#allocation10 + $0x15d0] sm:$0xff]  ;;  %v6121_v0 = vld [vmem:[#allocation10 + $0x15e8] sm:$0xff]  ;;  %v15561_v5 = vpack.c.bf16 %v6071_v62, %v6068_v40  ;;  %v6111_v40 = vld [vmem:[#allocation10 + $0x1598] sm:$0xff] }
 0xf94   : > { %15636 = vmatprep.subr.bf16.mxu1 %v15635_v47  ;;  %v15652_v47 = vpack.c.bf16 %v6121_v0, %v6118_v63  ;;  %v6114_v62 = vld [vmem:[#allocation10 + $0x15b0] sm:$0xff] }
 0xf95   : > { %v15587_v0 = vpack.c.bf16 %v6114_v62, %v6111_v40  ;;  %v6574_v40 = vld [vmem:[#allocation10 + $0x16d0] sm:$0xff]  ;;  %v6620_v62 = vld [vmem:[#allocation10 + $0x1840] sm:$0xff] }
 0xf96   : > { %15542 = vmatpush1.bf16.msra.mxu0 %v15541_v8  ;;  %v6124_v8 = vld [vmem:[#allocation10 + $0x1600] sm:$0xff] }
 0xf97   : > { %15638 = vmatpush3.bf16.msra.mxu1 %v15637_v32  ;;  %15544 = vmatprep.subr.bf16.mxu0 %v15543_v34  ;;  %v6127_v32 = vld [vmem:[#allocation10 + $0x1618] sm:$0xff]  ;;  %v6081_v34 = vld [vmem:[#allocation10 + $0x14a8] sm:$0xff] }
 0xf98   : > { %15639 = vmatprep.subr.bf16.mxu1 %v17344_v53  ;;  %v15655_v19 = vpack.c.bf16 %v6127_v32, %v6124_v8  ;;  %v15567_v44 = vpack.c.bf16 %v6084_v17, %v6081_v34  ;;  %v6119_v8 = vld [vmem:[#allocation10 + $0x15d8] sm:$0xff]  ;;  %v6126_v34 = vld [vmem:[#allocation10 + $0x1610] sm:$0xff] }
 0xf99   : > { %v6123_v32 = vld [vmem:[#allocation10 + $0x15f8] sm:$0xff]  ;;  %v15593_v17 = vpack.c.bf16 %v6119_v8, %v6116_v12 }
 0xf9a   : > { %6347 = vmatmul.mubr.f32.vlgmr.msra.gmra.mrb[66].mxu1 %v18241_v3  ;;  %15546 = vmatpush1.bf16.msra.mxu0 %v15545_v51  ;;  %v6130_v51 = vld [vmem:[#allocation10 + $0x1630] sm:$0xff]  ;;  %v6575_v8 = vld [vmem:[#allocation10 + $0x16d8] sm:$0xff] }
 0xf9b   : > { %15641 = vmatpush3.bf16.msra.mxu1 %v15640_v21  ;;  %15548 = vmatprep.subr.bf16.mxu0 %v15547_v22  ;;  %v6133_v21 = vld [vmem:[#allocation10 + $0x1648] sm:$0xff]  ;;  %v6087_v22 = vld [vmem:[#allocation10 + $0x14d8] sm:$0xff] }
 0xf9c   : > { %15642 = vmatprep.subr.bf16.mxu1 %v17344_v53  ;;  %13337 = vmatprep.mubr.msk.f32.mxu1 %vm17345_vm2, %v17346_v14  ;;  %v15658_v25 = vpack.c.bf16 %v6133_v21, %v6130_v51  ;;  %v15571_v26 = vpack.c.bf16 %v6090_v23, %v6087_v22  ;;  %v15599_v21 = vpack.c.bf16 %v6132_v20, %v6129_v52  ;;  %v6128_v22 = vld [vmem:[#allocation10 + $0x1620] sm:$0xff]  ;;  %v6131_v23 = vld [vmem:[#allocation10 + $0x1638] sm:$0xff] }
 0xf9d   : > { %v6576_v20 = vld [vmem:[#allocation10 + $0x16e0] sm:$0xff] }
 0xf9e   : > { %15550 = vmatpush1.bf16.msra.mxu0 %v15549_v36  ;;  %v6136_v36 = vld [vmem:[#allocation10 + $0x1660] sm:$0xff] }
 0xf9f   : > { %15644 = vmatpush3.bf16.msra.mxu1 %v15643_v42  ;;  %15552 = vmatprep.subr.bf16.mxu0 %v15551_v45  ;;  %v6139_v42 = vld [vmem:[#allocation10 + $0x1678] sm:$0xff]  ;;  %v6093_v45 = vld [vmem:[#allocation10 + $0x1508] sm:$0xff] }
 0xfa0   : > { %15645 = vmatprep.subr.bf16.mxu1 %v17344_v53  ;;  %v15661_v46 = vpack.c.bf16 %v6139_v42, %v6136_v36  ;;  %v15575_v48 = vpack.c.bf16 %v6096_v10, %v6093_v45  ;;  %v6137_v36 = vld [vmem:[#allocation10 + $0x1668] sm:$0xff] }
 0xfa1   : > { %v15605_v42 = vpack.c.bf16 %v6137_v36, %v6134_v33 }
 0xfa2   : > { %15554 = vmatpush1.bf16.msra.mxu0 %v15553_v15  ;;  %v6099_v15 = vld [vmem:[#allocation10 + $0x1538] sm:$0xff] }
 0xfa3   : > { %15647 = vmatpush3.bf16.msra.mxu1 %v15646_v54  ;;  %15556 = vmatprep.subr.bf16.mxu0 %v15555_v55  ;;  %v6102_v54 = vld [vmem:[#allocation10 + $0x1550] sm:$0xff]  ;;  %v15577_v55 = vpack.c.bf16 %v6095_v50, %v6092_v49  ;;  %v6617_v50 = vld [vmem:[#allocation10 + $0x1828] sm:$0xff] }
 0xfa4   : > { %15648 = vmatprep.subr.bf16.mxu1 %v17344_v53  ;;  %v15579_v57 = vpack.c.bf16 %v6102_v54, %v6099_v15  ;;  %v6614_v49 = vld [vmem:[#allocation10 + $0x1810] sm:$0xff]  ;;  %v6564_v15 = vld [vmem:[#allocation10 + $0x1680] sm:$0xff]  ;;  %v6567_v54 = vld [vmem:[#allocation10 + $0x1698] sm:$0xff] }
 0xfa6   : > { %15558 = vmatpush1.bf16.msra.mxu0 %v15557_v60  ;;  %v15583_v60 = vpack.c.bf16 %v6108_v37, %v6105_v35  ;;  %v6571_v35 = vld [vmem:[#allocation10 + $0x16b8] sm:$0xff] }
 0xfa7   : > { %15650 = vmatpush3.bf16.msra.mxu1 %v15649_v39  ;;  %15560 = vmatprep.subr.bf16.mxu0 %v15559_v61  ;;  %v6104_v39 = vld [vmem:[#allocation10 + $0x1560] sm:$0xff]  ;;  %v6107_v61 = vld [vmem:[#allocation10 + $0x1578] sm:$0xff] }
 0xfa8   : > { %15651 = vmatprep.subr.bf16.mxu1 %v17344_v53  ;;  %v15585_v63 = vpack.c.bf16 %v6107_v61, %v6104_v39  ;;  %v15759_v61 = vpack.c.bf16 %v6617_v50, %v6614_v49  ;;  %v6592_v49 = vld [vmem:[#allocation10 + $0x1760] sm:$0xff]  ;;  %v6638_v50 = vld [vmem:[#allocation10 + $0x18d0] sm:$0xff] }
 0xfaa   : > { %15562 = vmatpush1.bf16.msra.mxu0 %v15561_v5  ;;  %v6117_v5 = vld [vmem:[#allocation10 + $0x15c8] sm:$0xff] }
 0xfab   : > { %15653 = vmatpush3.bf16.msra.mxu1 %v15652_v47  ;;  %15564 = vmatprep.subr.bf16.mxu0 %v15563_v6  ;;  %v6120_v47 = vld [vmem:[#allocation10 + $0x15e0] sm:$0xff]  ;;  %v15589_v6 = vpack.c.bf16 %v6113_v4, %v6110_v1  ;;  %v15761_v1 = vpack.c.bf16 %v6569_v58, %v6566_v56  ;;  %v6570_v4 = vld [vmem:[#allocation10 + $0x16b0] sm:$0xff]  ;;  %v6591_v58 = vld [vmem:[#allocation10 + $0x1758] sm:$0xff] }
 0xfac   : > { %15654 = vmatprep.subr.bf16.mxu1 %v17344_v53  ;;  %v15591_v7 = vpack.c.bf16 %v6120_v47, %v6117_v5  ;;  %v6573_v5 = vld [vmem:[#allocation10 + $0x16c8] sm:$0xff]  ;;  %v6572_v47 = vld [vmem:[#allocation10 + $0x16c0] sm:$0xff] }
 0xfad   : > { %v6588_v56 = vld [vmem:[#allocation10 + $0x1740] sm:$0xff] }
 0xfae   : > { %15566 = vmatpush1.bf16.msra.mxu0 %v15565_v18  ;;  %v15595_v18 = vpack.c.bf16 %v6126_v34, %v6123_v32  ;;  %v6577_v32 = vld [vmem:[#allocation10 + $0x16e8] sm:$0xff]  ;;  %v6580_v34 = vld [vmem:[#allocation10 + $0x1700] sm:$0xff] }
 0xfaf   : > { %15656 = vmatpush3.bf16.msra.mxu1 %v15655_v19  ;;  %15568 = vmatprep.subr.bf16.mxu0 %v15567_v44  ;;  %v6122_v19 = vld [vmem:[#allocation10 + $0x15f0] sm:$0xff]  ;;  %v6125_v44 = vld [vmem:[#allocation10 + $0x1608] sm:$0xff]  ;;  %v15671_v52 = vpack.c.bf16 %v6580_v34, %v6577_v32 }
 0xfb0   : > { %15657 = vmatprep.subr.bf16.mxu1 %v17344_v53  ;;  %v15597_v51 = vpack.c.bf16 %v6125_v44, %v6122_v19  ;;  %v15669_v19 = vpack.c.bf16 %v6573_v5, %v6570_v4  ;;  %v15765_v44 = vpack.c.bf16 %v6575_v8, %v6572_v47  ;;  %v6597_v4 = vld [vmem:[#allocation10 + $0x1788] sm:$0xff]  ;;  %v6596_v5 = vld [vmem:[#allocation10 + $0x1780] sm:$0xff]  ;;  %v6650_v8 = vld [vmem:[#allocation10 + $0x1930] sm:$0xff] }
 0xfb1   : > { %v6653_v32 = vld [vmem:[#allocation10 + $0x1948] sm:$0xff] }
 0xfb2   : > { %15570 = vmatpush1.bf16.msra.mxu0 %v15569_v24  ;;  %v6135_v24 = vld [vmem:[#allocation10 + $0x1658] sm:$0xff] }
 0xfb3   : > { %15659 = vmatpush3.bf16.msra.mxu1 %v15658_v25  ;;  %15572 = vmatprep.subr.bf16.mxu0 %v15571_v26  ;;  %v6138_v25 = vld [vmem:[#allocation10 + $0x1670] sm:$0xff]  ;;  %v15601_v26 = vpack.c.bf16 %v6131_v23, %v6128_v22  ;;  %v6581_v23 = vld [vmem:[#allocation10 + $0x1708] sm:$0xff] }
 0xfb4   : > { %15660 = vmatprep.subr.bf16.mxu1 %v17344_v53  ;;  %v15603_v30 = vpack.c.bf16 %v6138_v25, %v6135_v24  ;;  %v6583_v24 = vld [vmem:[#allocation10 + $0x1718] sm:$0xff]  ;;  %v6586_v25 = vld [vmem:[#allocation10 + $0x1730] sm:$0xff] }
 0xfb6   : > { %15574 = vmatpush1.bf16.msra.mxu0 %v15573_v2 }
 0xfb7   : > { %15662 = vmatpush3.bf16.msra.mxu1 %v15661_v46  ;;  %15576 = vmatprep.subr.bf16.mxu0 %v15575_v48  ;;  %v6565_v46 = vld [vmem:[#allocation10 + $0x1688] sm:$0xff]  ;;  %v6568_v48 = vld [vmem:[#allocation10 + $0x16a0] sm:$0xff] }
 0xfb8   : > { %13340 = vmatprep.subr.mxu1 %v17346_v14  ;;  %v15663_v39 = vpack.c.bf16 %v6568_v48, %v6565_v46  ;;  %v6587_v46 = vld [vmem:[#allocation10 + $0x1738] sm:$0xff]  ;;  %v6589_v48 = vld [vmem:[#allocation10 + $0x1748] sm:$0xff] }
 0xfb9   : > { %6205 = vmatmul.mubr.f32.vlgmr.msra.gmra.mrb[58].mxu0 %v18241_v3 }
 0xfba   : > { %13338 = vmatmul.mubr.f32.vlgmr.msra.gmra.mrb[68].mxu1 %v18258_v38  ;;  %15578 = vmatpush1.bf16.msra.mxu0 %v15577_v55 }
 0xfbb   : > { %15580 = vmatprep.subr.bf16.mxu0 %v15579_v57  ;;  %6275 = vmatprep.mubr.f32.mxu0 %v17346_v14 }
 0xfbc   : > { %13342 = vmatprep.mubr.msk.f32.mxu1 %vm17345_vm2, %v17346_v14 }
 0xfbe   : > { %15582 = vmatpush1.bf16.msra.mxu0 %v15581_v59 }
 0xfbf   : > { %15584 = vmatprep.subr.bf16.mxu0 %v15583_v60 }
 0xfc2   : > { %15586 = vmatpush1.bf16.msra.mxu0 %v15585_v63  ;;  %v6623_v63 = vld [vmem:[#allocation10 + $0x1858] sm:$0xff] }
 0xfc3   : > { %15588 = vmatprep.subr.bf16.mxu0 %v15587_v0  ;;  %v15665_v0 = vpack.c.bf16 %v6567_v54, %v6564_v15  ;;  %v15763_v12 = vpack.c.bf16 %v6623_v63, %v6620_v62  ;;  %v6641_v15 = vld [vmem:[#allocation10 + $0x18e8] sm:$0xff]  ;;  %v15681_v62 = vpack.c.bf16 %v6591_v58, %v6588_v56  ;;  %v6622_v56 = vld [vmem:[#allocation10 + $0x1850] sm:$0xff] }
 0xfc6   : > { %15590 = vmatpush1.bf16.msra.mxu0 %v15589_v6  ;;  %v16875_v6 = vld [vmem:[#allocation18] sm:$0xff] }
 0xfc7   : > { %15592 = vmatprep.subr.bf16.mxu0 %v15591_v7  ;;  %v15667_v7 = vpack.c.bf16 %v6574_v40, %v6571_v35  ;;  %v6590_v35 = vld [vmem:[#allocation10 + $0x1750] sm:$0xff]  ;;  %v6647_v40 = vld [vmem:[#allocation10 + $0x1918] sm:$0xff] }
 0xfca   : > { %15594 = vmatpush1.bf16.msra.mxu0 %v15593_v17  ;;  %v6626_v17 = vld [vmem:[#allocation10 + $0x1870] sm:$0xff] }
 0xfcb   : > { %15596 = vmatprep.subr.bf16.mxu0 %v15595_v18  ;;  %v6629_v18 = vld [vmem:[#allocation10 + $0x1888] sm:$0xff] }
 0xfcc   : > { %v15767_v22 = vpack.c.bf16 %v6629_v18, %v6626_v17 }
 0xfce   : > { %15598 = vmatpush1.bf16.msra.mxu0 %v15597_v51  ;;  %v6579_v51 = vld [vmem:[#allocation10 + $0x16f8] sm:$0xff] }
 0xfcf   : > { %15600 = vmatprep.subr.bf16.mxu0 %v15599_v21  ;;  %v6578_v21 = vld [vmem:[#allocation10 + $0x16f0] sm:$0xff]  ;;  %v15673_v33 = vpack.c.bf16 %v6579_v51, %v6576_v20  ;;  %v15783_v20 = vpack.c.bf16 %v6653_v32, %v6650_v8  ;;  %v6605_v51 = vld [vmem:[#allocation10 + $0x17c8] sm:$0xff]  ;;  %v6631_v32 = vld [vmem:[#allocation10 + $0x1898] sm:$0xff] }
 0xfd0   : > { %v15769_v36 = vpack.c.bf16 %v6581_v23, %v6578_v21  ;;  %v6607_v21 = vld [vmem:[#allocation10 + $0x17d8] sm:$0xff]  ;;  %v6656_v23 = vld [vmem:[#allocation10 + $0x1960] sm:$0xff]  ;;  %v6677_v8 = vld [vmem:[#allocation10 + $0x1a08] sm:$0xff] }
 0xfd2   : > { %15602 = vmatpush1.bf16.msra.mxu0 %v15601_v26  ;;  %v6632_v26 = vld [vmem:[#allocation10 + $0x18a0] sm:$0xff] }
 0xfd3   : > { %15604 = vmatprep.subr.bf16.mxu0 %v15603_v30  ;;  %v6635_v30 = vld [vmem:[#allocation10 + $0x18b8] sm:$0xff] }
 0xfd6   : > { %15606 = vmatpush1.bf16.msra.mxu0 %v15605_v42  ;;  %v15675_v42 = vpack.c.bf16 %v6586_v25, %v6583_v24  ;;  %v6659_v24 = vld [vmem:[#allocation10 + $0x1978] sm:$0xff] }
 0xfd9   : > { %6276 = vmatmul.mubr.f32.vlgmr.msra.gmra.mrb[58].mxu0 %v18258_v38 }
 0xfda   : > { %6486 = vmatprep.mubr.f32.mxu0 %v17346_v14 }
0x102c   : > { %v11686_v45 = vpop.f32.mrb[54].mxu0 }
0x102d   : > { %v11687_v10 = vpop.f32.mrb[55].mxu0 }
0x102e   : > { %v11688_v2 = vadd.f32 %v11687_v10, %v11686_v45  ;;  %v6585_v45 = vld [vmem:[#allocation10 + $0x1728] sm:$0xff]  ;;  %v6584_v10 = vld [vmem:[#allocation10 + $0x1720] sm:$0xff] }
0x104c   : > { %v5850_v55 = vpop.f32.mrb[64].mxu1  ;;  %v5991_v57 = vpop.f32.mrb[56].mxu0 }
0x104d   : > { %v5992_v37 = vadd.f32 %v11688_v2, %v5991_v57  ;;  %v5852_v59 = vpop.f32.mrb[65].mxu1  ;;  %v13304_v60 = vpop.f32.mrb[57].mxu0  ;;  %v15771_v2 = vpack.c.bf16 %v6635_v30, %v6632_v26  ;;  %v15679_v57 = vpack.c.bf16 %v6592_v49, %v6589_v48 }
0x104e   : > { %6422 = vmatprep.subr.mxu0 %v5852_v59  ;;  %v6593_v59 = vld [vmem:[#allocation10 + $0x1768] sm:$0xff]  ;;  %v6595_v60 = vld [vmem:[#allocation10 + $0x1778] sm:$0xff] }
0x104f   : > { %6423 = vmatpush1.msra.mxu0 %v5850_v55  ;;  %13341 = vmatpush3.msra.mxu1 %v5992_v37  ;;  %v15773_v55 = vpack.c.bf16 %v6587_v46, %v6584_v10  ;;  %v15775_v37 = vpack.c.bf16 %v6641_v15, %v6638_v50  ;;  %v15777_v63 = vpack.c.bf16 %v6593_v59, %v6590_v35  ;;  %v6613_v10 = vld [vmem:[#allocation10 + $0x1808] sm:$0xff]  ;;  %v6612_v50 = vld [vmem:[#allocation10 + $0x1800] sm:$0xff]  ;;  %v6615_v15 = vld [vmem:[#allocation10 + $0x1818] sm:$0xff] }
0x1050   : > { %11014 = vmatmul.mubr.msk.f32.vlgmr.msra.gmra.mrb[58].mxu0 %vm4844_vm4, %v16875_v6  ;;  %13343 = vmatmul.mubr.msk.f32.vlgmr.msra.gmra.mrb[70].mxu1 %vm4844_vm4, %v16875_v6  ;;  %v6599_v6 = vld [vmem:[#allocation10 + $0x1798] sm:$0xff] }
0x1051   : > { %15664 = vmatprep.subr.bf16.mxu1 %v15663_v39  ;;  %15760 = vmatprep.subr.bf16.mxu0 %v15759_v61  ;;  %v6598_v39 = vld [vmem:[#allocation10 + $0x1790] sm:$0xff]  ;;  %v6644_v61 = vld [vmem:[#allocation10 + $0x1900] sm:$0xff]  ;;  %v15781_v17 = vpack.c.bf16 %v6599_v6, %v6596_v5 }
0x1052   : > { %15666 = vmatpush1.bf16.msra.mxu1 %v15665_v0  ;;  %6772 = vmatprep.mubr.f32.mxu1 %v18239_v41  ;;  %v15683_v0 = vpack.c.bf16 %v6598_v39, %v6595_v60  ;;  %v15779_v47 = vpack.c.bf16 %v6647_v40, %v6644_v61  ;;  %v6618_v61 = vld [vmem:[#allocation10 + $0x1830] sm:$0xff]  ;;  %v6621_v40 = vld [vmem:[#allocation10 + $0x1848] sm:$0xff]  ;;  %v6624_v6 = vld [vmem:[#allocation10 + $0x1860] sm:$0xff] }
0x1053   : > { %15762 = vmatpush3.bf16.msra.mxu0 %v15761_v1  ;;  %6914 = vmatprep.mubr.f32.mxu0 %v18239_v41  ;;  %v6582_v41 = vld [vmem:[#allocation10 + $0x1710] sm:$0xff] }
0x1054   : > { %15668 = vmatprep.subr.bf16.mxu1 %v15667_v7  ;;  %15764 = vmatprep.subr.bf16.mxu0 %v15763_v12  ;;  %v15677_v54 = vpack.c.bf16 %v6585_v45, %v6582_v41  ;;  %v6594_v1 = vld [vmem:[#allocation10 + $0x1770] sm:$0xff]  ;;  %v6601_v7 = vld [vmem:[#allocation10 + $0x17a8] sm:$0xff]  ;;  %v6604_v12 = vld [vmem:[#allocation10 + $0x17c0] sm:$0xff]  ;;  %v15787_v41 = vpack.c.bf16 %v6659_v24, %v6656_v23 }
0x1055   : > { %v15685_v34 = vpack.c.bf16 %v6597_v4, %v6594_v1  ;;  %v15687_v18 = vpack.c.bf16 %v6604_v12, %v6601_v7  ;;  %v6611_v45 = vld [vmem:[#allocation10 + $0x17f8] sm:$0xff]  ;;  %v6628_v1 = vld [vmem:[#allocation10 + $0x1880] sm:$0xff]  ;;  %v15701_v4 = vpack.c.bf16 %v6621_v40, %v6618_v61  ;;  %v6674_v12 = vld [vmem:[#allocation10 + $0x19f0] sm:$0xff] }
0x1056   : > { %15670 = vmatpush1.bf16.msra.mxu1 %v15669_v19  ;;  %v6600_v19 = vld [vmem:[#allocation10 + $0x17a0] sm:$0xff]  ;;  %v6627_v7 = vld [vmem:[#allocation10 + $0x1878] sm:$0xff]  ;;  %v6658_v61 = vld [vmem:[#allocation10 + $0x1970] sm:$0xff] }
0x1057   : > { %15766 = vmatpush3.bf16.msra.mxu0 %v15765_v44  ;;  %15672 = vmatprep.subr.bf16.mxu1 %v15671_v52  ;;  %v6603_v44 = vld [vmem:[#allocation10 + $0x17b8] sm:$0xff]  ;;  %v6602_v52 = vld [vmem:[#allocation10 + $0x17b0] sm:$0xff] }
0x1058   : > { %15768 = vmatprep.subr.bf16.mxu0 %v15767_v22  ;;  %v6610_v22 = vld [vmem:[#allocation10 + $0x17f0] sm:$0xff]  ;;  %v15689_v25 = vpack.c.bf16 %v6603_v44, %v6600_v19  ;;  %v15785_v26 = vpack.c.bf16 %v6605_v51, %v6602_v52  ;;  %v6633_v52 = vld [vmem:[#allocation10 + $0x18a8] sm:$0xff]  ;;  %v6683_v51 = vld [vmem:[#allocation10 + $0x1a38] sm:$0xff] }
0x1059   : > { %v15691_v30 = vpack.c.bf16 %v6610_v22, %v6607_v21  ;;  %v6630_v44 = vld [vmem:[#allocation10 + $0x1890] sm:$0xff]  ;;  %v6637_v21 = vld [vmem:[#allocation10 + $0x18c8] sm:$0xff]  ;;  %v6640_v22 = vld [vmem:[#allocation10 + $0x18e0] sm:$0xff] }
0x105a   : > { %15674 = vmatpush1.bf16.msra.mxu1 %v15673_v33  ;;  %v6606_v33 = vld [vmem:[#allocation10 + $0x17d0] sm:$0xff]  ;;  %v15709_v23 = vpack.c.bf16 %v6633_v52, %v6630_v44 }
0x105b   : > { %15770 = vmatpush3.bf16.msra.mxu0 %v15769_v36  ;;  %15676 = vmatprep.subr.bf16.mxu1 %v15675_v42  ;;  %v6609_v36 = vld [vmem:[#allocation10 + $0x17e8] sm:$0xff]  ;;  %v6608_v42 = vld [vmem:[#allocation10 + $0x17e0] sm:$0xff] }
0x105c   : > { %15772 = vmatprep.subr.bf16.mxu0 %v15771_v2  ;;  %v6616_v2 = vld [vmem:[#allocation10 + $0x1820] sm:$0xff]  ;;  %v15693_v46 = vpack.c.bf16 %v6609_v36, %v6606_v33  ;;  %v15789_v48 = vpack.c.bf16 %v6611_v45, %v6608_v42  ;;  %v6686_v33 = vld [vmem:[#allocation10 + $0x1a50] sm:$0xff]  ;;  %v6689_v36 = vld [vmem:[#allocation10 + $0x1a68] sm:$0xff] }
0x105d   : > { %v15695_v49 = vpack.c.bf16 %v6616_v2, %v6613_v10  ;;  %v6643_v42 = vld [vmem:[#allocation10 + $0x18f8] sm:$0xff]  ;;  %v15804_v10 = vpack.c.bf16 %v6689_v36, %v6686_v33  ;;  %v6682_v36 = vld [vmem:[#allocation10 + $0x1a30] sm:$0xff] }
0x105e   : > { %15678 = vmatpush1.bf16.msra.mxu1 %v15677_v54  ;;  %v6662_v54 = vld [vmem:[#allocation10 + $0x1990] sm:$0xff]  ;;  %v6679_v33 = vld [vmem:[#allocation10 + $0x1a18] sm:$0xff] }
0x105f   : > { %15774 = vmatpush3.bf16.msra.mxu0 %v15773_v55  ;;  %15680 = vmatprep.subr.bf16.mxu1 %v15679_v57  ;;  %v6665_v55 = vld [vmem:[#allocation10 + $0x19a8] sm:$0xff]  ;;  %v6619_v57 = vld [vmem:[#allocation10 + $0x1838] sm:$0xff] }
0x1060   : > { %15776 = vmatprep.subr.bf16.mxu0 %v15775_v37  ;;  %v15697_v37 = vpack.c.bf16 %v6615_v15, %v6612_v50  ;;  %v15792_v60 = vpack.c.bf16 %v6665_v55, %v6662_v54  ;;  %v15699_v39 = vpack.c.bf16 %v6622_v56, %v6619_v57  ;;  %v6695_v50 = vld [vmem:[#allocation10 + $0x1a98] sm:$0xff]  ;;  %v6649_v15 = vld [vmem:[#allocation10 + $0x1928] sm:$0xff]  ;;  %v6652_v54 = vld [vmem:[#allocation10 + $0x1940] sm:$0xff] }
0x1061   : > { %v15719_v56 = vpack.c.bf16 %v6652_v54, %v6649_v15  ;;  %v6691_v15 = vld [vmem:[#allocation10 + $0x1a78] sm:$0xff]  ;;  %v6694_v54 = vld [vmem:[#allocation10 + $0x1a90] sm:$0xff] }
0x1062   : > { %15682 = vmatpush1.bf16.msra.mxu1 %v15681_v62  ;;  %v6668_v62 = vld [vmem:[#allocation10 + $0x19c0] sm:$0xff] }
0x1063   : > { %15778 = vmatpush3.bf16.msra.mxu0 %v15777_v63  ;;  %15684 = vmatprep.subr.bf16.mxu1 %v15683_v0  ;;  %v6671_v63 = vld [vmem:[#allocation10 + $0x19d8] sm:$0xff]  ;;  %v6625_v0 = vld [vmem:[#allocation10 + $0x1868] sm:$0xff] }
0x1064   : > { %15780 = vmatprep.subr.bf16.mxu0 %v15779_v47  ;;  %v15795_v5 = vpack.c.bf16 %v6671_v63, %v6668_v62  ;;  %v15703_v47 = vpack.c.bf16 %v6628_v1, %v6625_v0  ;;  %v6654_v0 = vld [vmem:[#allocation10 + $0x1950] sm:$0xff]  ;;  %v6657_v1 = vld [vmem:[#allocation10 + $0x1968] sm:$0xff] }
0x1066   : > { %15686 = vmatpush1.bf16.msra.mxu1 %v15685_v34  ;;  %v6634_v34 = vld [vmem:[#allocation10 + $0x18b0] sm:$0xff] }
0x1067   : > { %15782 = vmatpush3.bf16.msra.mxu0 %v15781_v17  ;;  %15688 = vmatprep.subr.bf16.mxu1 %v15687_v18  ;;  %v15705_v17 = vpack.c.bf16 %v6627_v7, %v6624_v6  ;;  %v15798_v18 = vpack.c.bf16 %v6677_v8, %v6674_v12  ;;  %v15707_v19 = vpack.c.bf16 %v6634_v34, %v6631_v32  ;;  %v6664_v6 = vld [vmem:[#allocation10 + $0x19a0] sm:$0xff]  ;;  %v6663_v34 = vld [vmem:[#allocation10 + $0x1998] sm:$0xff] }
0x1068   : > { %15784 = vmatprep.subr.bf16.mxu0 %v15783_v20  ;;  %v6680_v20 = vld [vmem:[#allocation10 + $0x1a20] sm:$0xff]  ;;  %v15725_v7 = vpack.c.bf16 %v6657_v1, %v6654_v0 }
0x1069   : > { %v15801_v24 = vpack.c.bf16 %v6683_v51, %v6680_v20  ;;  %v6660_v32 = vld [vmem:[#allocation10 + $0x1980] sm:$0xff] }
0x106a   : > { %15690 = vmatpush1.bf16.msra.mxu1 %v15689_v25  ;;  %v15711_v25 = vpack.c.bf16 %v6640_v22, %v6637_v21  ;;  %v15729_v20 = vpack.c.bf16 %v6663_v34, %v6660_v32  ;;  %v6666_v21 = vld [vmem:[#allocation10 + $0x19b0] sm:$0xff]  ;;  %v6669_v22 = vld [vmem:[#allocation10 + $0x19c8] sm:$0xff] }
0x106b   : > { %15786 = vmatpush3.bf16.msra.mxu0 %v15785_v26  ;;  %15692 = vmatprep.subr.bf16.mxu1 %v15691_v30  ;;  %v6636_v26 = vld [vmem:[#allocation10 + $0x18c0] sm:$0xff]  ;;  %v6639_v30 = vld [vmem:[#allocation10 + $0x18d8] sm:$0xff] }
0x106c   : > { %15788 = vmatprep.subr.bf16.mxu0 %v15787_v41  ;;  %v6646_v41 = vld [vmem:[#allocation10 + $0x1910] sm:$0xff]  ;;  %v15713_v45 = vpack.c.bf16 %v6639_v30, %v6636_v26  ;;  %v6675_v30 = vld [vmem:[#allocation10 + $0x19f8] sm:$0xff] }
0x106d   : > { %v11738_v58 = vpop.f32.mrb[66].mxu1  ;;  %v15715_v2 = vpack.c.bf16 %v6646_v41, %v6643_v42  ;;  %v15739_v41 = vpack.c.bf16 %v6682_v36, %v6679_v33  ;;  %v7183_v33 = vld [vmem:[#allocation12 + $0x140] sm:$0xff]  ;;  %v7184_v36 = vld [vmem:[#allocation12 + $0x148] sm:$0xff] }
0x106e   : > { %v11739_v35 = vpop.f32.mrb[67].mxu1  ;;  %15694 = vmatpush1.bf16.msra.mxu1 %v15693_v46  ;;  %v6642_v46 = vld [vmem:[#allocation10 + $0x18f0] sm:$0xff] }
0x106f   : > { %v18287_v59 = vadd.f32 %v11739_v35, %v11738_v58  ;;  %15790 = vmatpush3.bf16.msra.mxu0 %v15789_v48  ;;  %15696 = vmatprep.subr.bf16.mxu1 %v15695_v49  ;;  %v6645_v48 = vld [vmem:[#allocation10 + $0x1908] sm:$0xff]  ;;  %v6692_v49 = vld [vmem:[#allocation10 + $0x1a80] sm:$0xff]  ;;  %v6651_v35 = vld [vmem:[#allocation10 + $0x1938] sm:$0xff] }
0x1070   : > { %15791 = vmatprep.subr.bf16.mxu0 %v17344_v53  ;;  %v15717_v55 = vpack.c.bf16 %v6645_v48, %v6642_v46  ;;  %v15807_v57 = vpack.c.bf16 %v6695_v50, %v6692_v49  ;;  %v6648_v58 = vld [vmem:[#allocation10 + $0x1920] sm:$0xff]  ;;  %v6687_v50 = vld [vmem:[#allocation10 + $0x1a58] sm:$0xff] }
0x1071   : > { %v15721_v40 = vpack.c.bf16 %v6651_v35, %v6648_v58  ;;  %v6684_v49 = vld [vmem:[#allocation10 + $0x1a40] sm:$0xff]  ;;  %v6693_v58 = vld [vmem:[#allocation10 + $0x1a88] sm:$0xff] }
0x1072   : > { %6915 = vmatmul.mubr.f32.vlgmr.msra.gmra.mrb[60].mxu0 %v18241_v3  ;;  %15698 = vmatpush1.bf16.msra.mxu1 %v15697_v37  ;;  %v6698_v37 = vld [vmem:[#allocation10 + $0x1ab0] sm:$0xff]  ;;  %v6697_v35 = vld [vmem:[#allocation10 + $0x1aa8] sm:$0xff] }
0x1073   : > { %15793 = vmatpush3.bf16.msra.mxu0 %v15792_v60  ;;  %15700 = vmatprep.subr.bf16.mxu1 %v15699_v39  ;;  %v6701_v60 = vld [vmem:[#allocation10 + $0x1ac8] sm:$0xff]  ;;  %v6655_v39 = vld [vmem:[#allocation10 + $0x1958] sm:$0xff] }
0x1074   : > { %15794 = vmatprep.subr.bf16.mxu0 %v17344_v53  ;;  %13377 = vmatprep.mubr.msk.f32.mxu0 %vm17345_vm2, %v17346_v14  ;;  %v15810_v62 = vpack.c.bf16 %v6701_v60, %v6698_v37  ;;  %v15723_v63 = vpack.c.bf16 %v6658_v61, %v6655_v39  ;;  %v6700_v37 = vld [vmem:[#allocation10 + $0x1ac0] sm:$0xff] }
0x1075   : > { %v15751_v39 = vpack.c.bf16 %v6700_v37, %v6697_v35  ;;  %v6696_v61 = vld [vmem:[#allocation10 + $0x1aa0] sm:$0xff]  ;;  %v7144_v35 = vld [vmem:[#allocation12 + $0x8] sm:$0xff] }
0x1076   : > { %15702 = vmatpush1.bf16.msra.mxu1 %v15701_v4  ;;  %v6704_v4 = vld [vmem:[#allocation10 + $0x1ae0] sm:$0xff] }
0x1077   : > { %15796 = vmatpush3.bf16.msra.mxu0 %v15795_v5  ;;  %15704 = vmatprep.subr.bf16.mxu1 %v15703_v47  ;;  %v6707_v5 = vld [vmem:[#allocation10 + $0x1af8] sm:$0xff]  ;;  %v6661_v47 = vld [vmem:[#allocation10 + $0x1988] sm:$0xff] }
0x1078   : > { %15797 = vmatprep.subr.bf16.mxu0 %v17344_v53  ;;  %v15813_v12 = vpack.c.bf16 %v6707_v5, %v6704_v4  ;;  %v15727_v8 = vpack.c.bf16 %v6664_v6, %v6661_v47  ;;  %v6702_v4 = vld [vmem:[#allocation10 + $0x1ad0] sm:$0xff]  ;;  %v6705_v5 = vld [vmem:[#allocation10 + $0x1ae8] sm:$0xff] }
0x1079   : > { %v15757_v47 = vpack.c.bf16 %v6705_v5, %v6702_v4  ;;  %v7147_v5 = vld [vmem:[#allocation12 + $0x20] sm:$0xff] }
0x107a   : > { %15706 = vmatpush1.bf16.msra.mxu1 %v15705_v17  ;;  %v6667_v17 = vld [vmem:[#allocation10 + $0x19b8] sm:$0xff] }
0x107b   : > { %15799 = vmatpush3.bf16.msra.mxu0 %v15798_v18  ;;  %15708 = vmatprep.subr.bf16.mxu1 %v15707_v19  ;;  %v6670_v18 = vld [vmem:[#allocation10 + $0x19d0] sm:$0xff] }
0x107c   : > { %15800 = vmatprep.subr.bf16.mxu0 %v17344_v53  ;;  %v15731_v51 = vpack.c.bf16 %v6670_v18, %v6667_v17  ;;  %v7175_v17 = vld [vmem:[#allocation12 + $0x100] sm:$0xff]  ;;  %v7176_v18 = vld [vmem:[#allocation12 + $0x108] sm:$0xff] }
0x107e   : > { %15710 = vmatpush1.bf16.msra.mxu1 %v15709_v23  ;;  %v6673_v23 = vld [vmem:[#allocation10 + $0x19e8] sm:$0xff] }
0x107f   : > { %15802 = vmatpush3.bf16.msra.mxu0 %v15801_v24  ;;  %15712 = vmatprep.subr.bf16.mxu1 %v15711_v25  ;;  %v6676_v24 = vld [vmem:[#allocation10 + $0x1a00] sm:$0xff]  ;;  %v15733_v25 = vpack.c.bf16 %v6669_v22, %v6666_v21  ;;  %v7177_v21 = vld [vmem:[#allocation12 + $0x110] sm:$0xff]  ;;  %v7178_v22 = vld [vmem:[#allocation12 + $0x118] sm:$0xff] }
0x1080   : > { %15803 = vmatprep.subr.bf16.mxu0 %v17344_v53  ;;  %v15735_v26 = vpack.c.bf16 %v6676_v24, %v6673_v23  ;;  %v7179_v23 = vld [vmem:[#allocation12 + $0x120] sm:$0xff]  ;;  %v7180_v24 = vld [vmem:[#allocation12 + $0x128] sm:$0xff] }
0x1082   : > { %15714 = vmatpush1.bf16.msra.mxu1 %v15713_v45  ;;  %v6678_v45 = vld [vmem:[#allocation10 + $0x1a10] sm:$0xff] }
0x1083   : > { %15805 = vmatpush3.bf16.msra.mxu0 %v15804_v10  ;;  %15716 = vmatprep.subr.bf16.mxu1 %v15715_v2  ;;  %v6685_v10 = vld [vmem:[#allocation10 + $0x1a48] sm:$0xff]  ;;  %v6688_v2 = vld [vmem:[#allocation10 + $0x1a60] sm:$0xff] }
0x1084   : > { %15806 = vmatprep.subr.bf16.mxu0 %v17344_v53  ;;  %v15743_v48 = vpack.c.bf16 %v6688_v2, %v6685_v10  ;;  %v7187_v10 = vld [vmem:[#allocation12 + $0x160] sm:$0xff]  ;;  %v7188_v2 = vld [vmem:[#allocation12 + $0x168] sm:$0xff] }
0x1086   : > { %15718 = vmatpush1.bf16.msra.mxu1 %v15717_v55  ;;  %v15745_v55 = vpack.c.bf16 %v6687_v50, %v6684_v49  ;;  %v7189_v50 = vld [vmem:[#allocation12 + $0x170] sm:$0xff] }
0x1087   : > { %15808 = vmatpush3.bf16.msra.mxu0 %v15807_v57  ;;  %15720 = vmatprep.subr.bf16.mxu1 %v15719_v56  ;;  %v15747_v57 = vpack.c.bf16 %v6694_v54, %v6691_v15  ;;  %v6690_v56 = vld [vmem:[#allocation10 + $0x1a70] sm:$0xff]  ;;  %v7190_v15 = vld [vmem:[#allocation12 + $0x178] sm:$0xff] }
0x1088   : > { %15809 = vmatprep.subr.bf16.mxu0 %v17344_v53  ;;  %v15749_v60 = vpack.c.bf16 %v6693_v58, %v6690_v56  ;;  %v15869_v54 = vpack.c.bf16 %v7190_v15, %v7189_v50  ;;  %v7143_v58 = vld [vmem:[#allocation12] sm:$0xff]  ;;  %v7353_v50 = vld [vmem:[#allocation12 + $0x208] sm:$0xff] }
0x1089   : > { %v15817_v37 = vpack.c.bf16 %v7144_v35, %v7143_v58 }
0x108a   : > { %15722 = vmatpush1.bf16.msra.mxu1 %v15721_v40  ;;  %v6699_v40 = vld [vmem:[#allocation10 + $0x1ab8] sm:$0xff] }
0x108b   : > { %15811 = vmatpush3.bf16.msra.mxu0 %v15810_v62  ;;  %15724 = vmatprep.subr.bf16.mxu1 %v15723_v63  ;;  %v6703_v62 = vld [vmem:[#allocation10 + $0x1ad8] sm:$0xff]  ;;  %v6706_v63 = vld [vmem:[#allocation10 + $0x1af0] sm:$0xff]  ;;  %v15753_v0 = vpack.c.bf16 %v6699_v40, %v6696_v61 }
0x108c   : > { %15812 = vmatprep.subr.bf16.mxu0 %v17344_v53  ;;  %v15755_v1 = vpack.c.bf16 %v6706_v63, %v6703_v62  ;;  %v7145_v40 = vld [vmem:[#allocation12 + $0x10] sm:$0xff]  ;;  %v7146_v62 = vld [vmem:[#allocation12 + $0x18] sm:$0xff] }
0x108d   : > { %v6418_v19 = vpop.f32.mrb[68].mxu1  ;;  %v15821_v63 = vpack.c.bf16 %v7146_v62, %v7145_v40  ;;  %v7373_v62 = vld [vmem:[#allocation12 + $0x2a8] sm:$0xff] }
0x108e   : > { %v18301_v44 = vadd.f32 %v18287_v59, %v6418_v19  ;;  %v13339_v52 = vpop.f32.mrb[69].mxu1  ;;  %15726 = vmatpush1.bf16.msra.mxu1 %v15725_v7  ;;  %v6672_v59 = vld [vmem:[#allocation10 + $0x19e0] sm:$0xff] }
0x108f   : > { %15814 = vmatpush3.bf16.msra.mxu0 %v15813_v12  ;;  %15728 = vmatprep.subr.bf16.mxu1 %v15727_v8  ;;  %v15737_v42 = vpack.c.bf16 %v6675_v30, %v6672_v59  ;;  %v7182_v59 = vld [vmem:[#allocation12 + $0x138] sm:$0xff] }
0x1091   : > { %6773 = vmatmul.mubr.f32.vlgmr.msra.gmra.mrb[72].mxu1 %v18241_v3  ;;  %v6681_v3 = vld [vmem:[#allocation10 + $0x1a28] sm:$0xff] }
0x1092   : > { %13378 = vmatmul.mubr.f32.vlgmr.msra.gmra.mrb[62].mxu0 %v18258_v38  ;;  %15730 = vmatpush1.bf16.msra.mxu1 %v15729_v20  ;;  %v15741_v46 = vpack.c.bf16 %v6681_v3, %v6678_v45  ;;  %v7186_v45 = vld [vmem:[#allocation12 + $0x158] sm:$0xff] }
0x1093   : > { %15732 = vmatprep.subr.bf16.mxu1 %v15731_v51  ;;  %6843 = vmatprep.mubr.f32.mxu1 %v17346_v14  ;;  %v15848_v51 = vpack.c.bf16 %v7176_v18, %v7175_v17  ;;  %v7150_v17 = vld [vmem:[#allocation12 + $0x38] sm:$0xff] }
0x1094   : > { %7054 = vmatprep.mubr.f32.mxu0 %v17346_v14 }
0x1096   : > { %15734 = vmatpush1.bf16.msra.mxu1 %v15733_v25  ;;  %v15854_v25 = vpack.c.bf16 %v7180_v24, %v7179_v23  ;;  %v7153_v24 = vld [vmem:[#allocation12 + $0x50] sm:$0xff] }
0x1097   : > { %15736 = vmatprep.subr.bf16.mxu1 %v15735_v26  ;;  %v7181_v26 = vld [vmem:[#allocation12 + $0x130] sm:$0xff] }
0x1098   : > { %v15857_v30 = vpack.c.bf16 %v7182_v59, %v7181_v26  ;;  %v7171_v59 = vld [vmem:[#allocation12 + $0xe0] sm:$0xff] }
0x109a   : > { %15738 = vmatpush1.bf16.msra.mxu1 %v15737_v42  ;;  %v15860_v42 = vpack.c.bf16 %v7184_v36, %v7183_v33  ;;  %v7155_v36 = vld [vmem:[#allocation12 + $0x60] sm:$0xff] }
0x109b   : > { %15740 = vmatprep.subr.bf16.mxu1 %v15739_v41  ;;  %v7185_v41 = vld [vmem:[#allocation12 + $0x150] sm:$0xff] }
0x109c   : > { %v15863_v3 = vpack.c.bf16 %v7186_v45, %v7185_v41  ;;  %v7173_v45 = vld [vmem:[#allocation12 + $0xf0] sm:$0xff] }
0x109e   : > { %15742 = vmatpush1.bf16.msra.mxu1 %v15741_v46  ;;  %v15866_v46 = vpack.c.bf16 %v7188_v2, %v7187_v10  ;;  %v7157_v2 = vld [vmem:[#allocation12 + $0x70] sm:$0xff] }
0x109f   : > { %15744 = vmatprep.subr.bf16.mxu1 %v15743_v48 }
0x10a2   : > { %15746 = vmatpush1.bf16.msra.mxu1 %v15745_v55  ;;  %v7159_v55 = vld [vmem:[#allocation12 + $0x80] sm:$0xff] }
0x10a3   : > { %15748 = vmatprep.subr.bf16.mxu1 %v15747_v57  ;;  %v7160_v57 = vld [vmem:[#allocation12 + $0x88] sm:$0xff] }
0x10a4   : > { %v15815_v56 = vpack.c.bf16 %v7160_v57, %v7159_v55  ;;  %v7368_v57 = vld [vmem:[#allocation12 + $0x280] sm:$0xff] }
0x10a6   : > { %15750 = vmatpush1.bf16.msra.mxu1 %v15749_v60  ;;  %v7161_v60 = vld [vmem:[#allocation12 + $0x90] sm:$0xff] }
0x10a7   : > { %15752 = vmatprep.subr.bf16.mxu1 %v15751_v39  ;;  %v7162_v39 = vld [vmem:[#allocation12 + $0x98] sm:$0xff] }
0x10a8   : > { %v15819_v61 = vpack.c.bf16 %v7162_v39, %v7161_v60  ;;  %v7370_v39 = vld [vmem:[#allocation12 + $0x290] sm:$0xff] }
0x10aa   : > { %15754 = vmatpush1.bf16.msra.mxu1 %v15753_v0  ;;  %v7163_v0 = vld [vmem:[#allocation12 + $0xa0] sm:$0xff] }
0x10ab   : > { %15756 = vmatprep.subr.bf16.mxu1 %v15755_v1  ;;  %v7164_v1 = vld [vmem:[#allocation12 + $0xa8] sm:$0xff] }
0x10ac   : > { %v15823_v4 = vpack.c.bf16 %v7164_v1, %v7163_v0  ;;  %v7375_v0 = vld [vmem:[#allocation12 + $0x2b8] sm:$0xff] }
0x10ae   : > { %15758 = vmatpush1.bf16.msra.mxu1 %v15757_v47  ;;  %v7148_v47 = vld [vmem:[#allocation12 + $0x28] sm:$0xff] }
0x10af   : > { %13380 = vmatprep.subr.mxu1 %v17346_v14 }
0x10b1   : > { %6844 = vmatmul.mubr.f32.vlgmr.msra.gmra.mrb[72].mxu1 %v18258_v38  ;;  %v16876_v38 = vld [vmem:[#allocation18 + $0x10] sm:$0xff] }
0x10b2   : > { %13382 = vmatprep.mubr.msk.f32.mxu1 %vm17345_vm2, %v17346_v14 }
0x1123   : > { %v6559_v6 = vpop.f32.mrb[70].mxu1 }
0x1124   : > { %v18312_v7 = vadd.f32 %v6559_v6, %v18301_v44  ;;  %v13344_v12 = vpop.f32.mrb[71].mxu1  ;;  %v15851_v44 = vpack.c.bf16 %v7178_v22, %v7177_v21  ;;  %v15825_v6 = vpack.c.bf16 %v7148_v47, %v7147_v5  ;;  %v7152_v21 = vld [vmem:[#allocation12 + $0x48] sm:$0xff] }
0x1125   : > { %v7165_v12 = vld [vmem:[#allocation12 + $0xb0] sm:$0xff]  ;;  %v7377_v5 = vld [vmem:[#allocation12 + $0x2c8] sm:$0xff] }
0x1145   : > { %v11792_v8 = vpop.f32.mrb[60].mxu0 }
0x1146   : > { %v11793_v32 = vpop.f32.mrb[61].mxu0 }
0x1147   : > { %v11794_v34 = vadd.f32 %v11793_v32, %v11792_v8  ;;  %v7166_v8 = vld [vmem:[#allocation12 + $0xb8] sm:$0xff] }
0x1148   : > { %v15827_v32 = vpack.c.bf16 %v7166_v8, %v7165_v12  ;;  %v7379_v12 = vld [vmem:[#allocation12 + $0x2d8] sm:$0xff] }
0x1165   : > { %v6986_v19 = vpop.f32.mrb[62].mxu0 }
0x1166   : > { %v6987_v52 = vadd.f32 %v11794_v34, %v6986_v19  ;;  %v13379_v20 = vpop.f32.mrb[63].mxu0  ;;  %v7149_v34 = vld [vmem:[#allocation12 + $0x30] sm:$0xff]  ;;  %v7167_v19 = vld [vmem:[#allocation12 + $0xc0] sm:$0xff] }
0x1167   : > { %v15829_v18 = vpack.c.bf16 %v7150_v17, %v7149_v34  ;;  %v7381_v34 = vld [vmem:[#allocation12 + $0x2e8] sm:$0xff] }
0x1168   : > { %13381 = vmatpush3.msra.mxu1 %v6987_v52  ;;  %v7168_v52 = vld [vmem:[#allocation12 + $0xc8] sm:$0xff] }
0x1169   : > { %13383 = vmatmul.mubr.msk.f32.vlgmr.msra.gmra.mrb[74].mxu1 %vm4844_vm4, %v16876_v38  ;;  %15847 = vmatprep.subr.bf16.mxu1 %v17344_v53  ;;  %v15831_v20 = vpack.c.bf16 %v7168_v52, %v7167_v19  ;;  %v7383_v19 = vld [vmem:[#allocation12 + $0x2f8] sm:$0xff]  ;;  %v7723_v52 = vld [vmem:[#allocation12 + $0x380] sm:$0xff] }
0x116a   : > { %15849 = vmatpush3.bf16.msra.mxu1 %v15848_v51  ;;  %13417 = vmatprep.mubr.msk.f32.mxu1 %vm17345_vm2, %v17346_v14  ;;  %v7151_v51 = vld [vmem:[#allocation12 + $0x40] sm:$0xff] }
0x116b   : > { %15850 = vmatprep.subr.bf16.mxu1 %v17344_v53  ;;  %v15833_v22 = vpack.c.bf16 %v7152_v21, %v7151_v51 }
0x116e   : > { %15852 = vmatpush3.bf16.msra.mxu1 %v15851_v44  ;;  %v7170_v44 = vld [vmem:[#allocation12 + $0xd8] sm:$0xff] }
0x116f   : > { %15853 = vmatprep.subr.bf16.mxu1 %v17344_v53 }
0x1172   : > { %15855 = vmatpush3.bf16.msra.mxu1 %v15854_v25  ;;  %v7154_v25 = vld [vmem:[#allocation12 + $0x58] sm:$0xff] }
0x1173   : > { %15856 = vmatprep.subr.bf16.mxu1 %v17344_v53  ;;  %v15837_v26 = vpack.c.bf16 %v7154_v25, %v7153_v24 }
0x1176   : > { %15858 = vmatpush3.bf16.msra.mxu1 %v15857_v30  ;;  %v7172_v30 = vld [vmem:[#allocation12 + $0xe8] sm:$0xff] }
0x1177   : > { %15859 = vmatprep.subr.bf16.mxu1 %v17344_v53  ;;  %v15839_v33 = vpack.c.bf16 %v7172_v30, %v7171_v59  ;;  %v7708_v59 = vld [vmem:[#allocation12 + $0x308] sm:$0xff]  ;;  %v7354_v30 = vld [vmem:[#allocation12 + $0x210] sm:$0xff] }
0x117a   : > { %15861 = vmatpush3.bf16.msra.mxu1 %v15860_v42  ;;  %v7156_v42 = vld [vmem:[#allocation12 + $0x68] sm:$0xff] }
0x117b   : > { %15862 = vmatprep.subr.bf16.mxu1 %v17344_v53  ;;  %v15841_v41 = vpack.c.bf16 %v7156_v42, %v7155_v36 }
0x117e   : > { %15864 = vmatpush3.bf16.msra.mxu1 %v15863_v3  ;;  %v7174_v3 = vld [vmem:[#allocation12 + $0xf8] sm:$0xff] }
0x117f   : > { %15865 = vmatprep.subr.bf16.mxu1 %v17344_v53  ;;  %v15843_v10 = vpack.c.bf16 %v7174_v3, %v7173_v45  ;;  %v7726_v45 = vld [vmem:[#allocation12 + $0x398] sm:$0xff] }
0x1182   : > { %15867 = vmatpush3.bf16.msra.mxu1 %v15866_v46  ;;  %v7158_v46 = vld [vmem:[#allocation12 + $0x78] sm:$0xff] }
0x1183   : > { %15868 = vmatprep.subr.bf16.mxu1 %v17344_v53 }
0x1184   : > { %v6845_v48 = vpop.f32.mrb[72].mxu1 }
0x1185   : > { %v6847_v49 = vpop.f32.mrb[73].mxu1 }
0x1186   : > { %6990 = vmatprep.subr.mxu0 %v6847_v49  ;;  %15870 = vmatpush3.bf16.msra.mxu1 %v15869_v54  ;;  %v7352_v49 = vld [vmem:[#allocation12 + $0x200] sm:$0xff] }
0x1187   : > { %6991 = vmatpush1.msra.mxu0 %v6845_v48  ;;  %15903 = vmatprep.subr.bf16.mxu1 %v17344_v53  ;;  %v15845_v48 = vpack.c.bf16 %v7158_v46, %v7157_v2  ;;  %v15871_v15 = vpack.c.bf16 %v7353_v50, %v7352_v49  ;;  %v7339_v2 = vld [vmem:[#allocation12 + $0x198] sm:$0xff]  ;;  %v7709_v46 = vld [vmem:[#allocation12 + $0x310] sm:$0xff]  ;;  %v7356_v49 = vld [vmem:[#allocation12 + $0x220] sm:$0xff] }
0x1188   : > { %11016 = vmatmul.mubr.msk.f32.vlgmr.msra.gmra.mrb[58].mxu0 %vm4844_vm4, %v16876_v38  ;;  %15816 = vmatprep.subr.bf16.mxu0 %v15815_v56  ;;  %v7169_v38 = vld [vmem:[#allocation12 + $0xd0] sm:$0xff]  ;;  %v7369_v56 = vld [vmem:[#allocation12 + $0x288] sm:$0xff] }
0x1189   : > { %15818 = vmatpush3.bf16.msra.mxu0 %v15817_v37  ;;  %v15835_v23 = vpack.c.bf16 %v7170_v44, %v7169_v38  ;;  %v15904_v37 = vpack.c.bf16 %v7369_v56, %v7368_v57  ;;  %v7336_v44 = vld [vmem:[#allocation12 + $0x180] sm:$0xff]  ;;  %v7357_v50 = vld [vmem:[#allocation12 + $0x228] sm:$0xff] }
0x118a   : > { %15820 = vmatprep.subr.bf16.mxu0 %v15819_v61  ;;  %v7371_v61 = vld [vmem:[#allocation12 + $0x298] sm:$0xff] }
0x118b   : > { %v15907_v40 = vpack.c.bf16 %v7371_v61, %v7370_v39  ;;  %v7711_v39 = vld [vmem:[#allocation12 + $0x320] sm:$0xff] }
0x118d   : > { %15822 = vmatpush3.bf16.msra.mxu0 %v15821_v63 }
0x118e   : > { %15824 = vmatprep.subr.bf16.mxu0 %v15823_v4  ;;  %v7376_v4 = vld [vmem:[#allocation12 + $0x2c0] sm:$0xff] }
0x118f   : > { %v15916_v47 = vpack.c.bf16 %v7377_v5, %v7376_v4  ;;  %v7342_v5 = vld [vmem:[#allocation12 + $0x1b0] sm:$0xff] }
0x1191   : > { %15826 = vmatpush3.bf16.msra.mxu0 %v15825_v6  ;;  %v7378_v6 = vld [vmem:[#allocation12 + $0x2d0] sm:$0xff] }
0x1192   : > { %15828 = vmatprep.subr.bf16.mxu0 %v15827_v32  ;;  %v15919_v8 = vpack.c.bf16 %v7379_v12, %v7378_v6  ;;  %v7380_v32 = vld [vmem:[#allocation12 + $0x2e0] sm:$0xff]  ;;  %v7713_v6 = vld [vmem:[#allocation12 + $0x330] sm:$0xff] }
0x1193   : > { %v15922_v17 = vpack.c.bf16 %v7381_v34, %v7380_v32  ;;  %v7360_v32 = vld [vmem:[#allocation12 + $0x240] sm:$0xff]  ;;  %v7361_v34 = vld [vmem:[#allocation12 + $0x248] sm:$0xff] }
0x1195   : > { %15830 = vmatpush3.bf16.msra.mxu0 %v15829_v18  ;;  %v7382_v18 = vld [vmem:[#allocation12 + $0x2f0] sm:$0xff] }
0x1196   : > { %15832 = vmatprep.subr.bf16.mxu0 %v15831_v20  ;;  %v7724_v20 = vld [vmem:[#allocation12 + $0x388] sm:$0xff]  ;;  %v15925_v38 = vpack.c.bf16 %v7383_v19, %v7382_v18 }
0x1197   : > { %v15927_v25 = vpack.c.bf16 %v7724_v20, %v7723_v52  ;;  %v7732_v18 = vld [vmem:[#allocation12 + $0x3c8] sm:$0xff]  ;;  %v15887_v20 = vpack.c.bf16 %v7361_v34, %v7360_v32 }
0x1199   : > { %15834 = vmatpush3.bf16.msra.mxu0 %v15833_v22 }
0x119a   : > { %15836 = vmatprep.subr.bf16.mxu0 %v15835_v23  ;;  %v7337_v23 = vld [vmem:[#allocation12 + $0x188] sm:$0xff] }
0x119b   : > { %v15873_v42 = vpack.c.bf16 %v7337_v23, %v7336_v44  ;;  %v7716_v44 = vld [vmem:[#allocation12 + $0x348] sm:$0xff]  ;;  %v7362_v23 = vld [vmem:[#allocation12 + $0x250] sm:$0xff] }
0x119d   : > { %15838 = vmatpush3.bf16.msra.mxu0 %v15837_v26  ;;  %v7707_v26 = vld [vmem:[#allocation12 + $0x300] sm:$0xff] }
0x119e   : > { %15840 = vmatprep.subr.bf16.mxu0 %v15839_v33  ;;  %v7355_v33 = vld [vmem:[#allocation12 + $0x218] sm:$0xff] }
0x11a1   : > { %15842 = vmatpush3.bf16.msra.mxu0 %v15841_v41  ;;  %v7725_v41 = vld [vmem:[#allocation12 + $0x390] sm:$0xff] }
0x11a2   : > { %15844 = vmatprep.subr.bf16.mxu0 %v15843_v10  ;;  %v7338_v10 = vld [vmem:[#allocation12 + $0x190] sm:$0xff] }
0x11a3   : > { %v15877_v57 = vpack.c.bf16 %v7339_v2, %v7338_v10  ;;  %v7364_v10 = vld [vmem:[#allocation12 + $0x260] sm:$0xff]  ;;  %v7365_v2 = vld [vmem:[#allocation12 + $0x268] sm:$0xff] }
0x11a5   : > { %15846 = vmatpush3.bf16.msra.mxu0 %v15845_v48  ;;  %v7710_v48 = vld [vmem:[#allocation12 + $0x318] sm:$0xff] }
0x11a6   : > { %15872 = vmatprep.subr.bf16.mxu0 %v15871_v15  ;;  %v15931_v15 = vpack.c.bf16 %v7726_v45, %v7725_v41  ;;  %v15933_v56 = vpack.c.bf16 %v7710_v48, %v7709_v46  ;;  %v7717_v41 = vld [vmem:[#allocation12 + $0x350] sm:$0xff]  ;;  %v7735_v46 = vld [vmem:[#allocation12 + $0x3e0] sm:$0xff] }
0x123c   : > { %v7127_v54 = vpop.f32.mrb[74].mxu1 }
0x123d   : > { %v7133_v55 = vadd.f32 %v7127_v54, %v18312_v7  ;;  %v13384_v58 = vpop.f32.mrb[75].mxu1  ;;  %v7372_v7 = vld [vmem:[#allocation12 + $0x2a0] sm:$0xff] }
0x123e   : > { %v15910_v63 = vpack.c.bf16 %v7373_v62, %v7372_v7  ;;  %v7727_v54 = vld [vmem:[#allocation12 + $0x3a0] sm:$0xff]  ;;  %v15879_v58 = vpack.c.bf16 %v7357_v50, %v7356_v49  ;;  %v7358_v7 = vld [vmem:[#allocation12 + $0x230] sm:$0xff]  ;;  %v7359_v62 = vld [vmem:[#allocation12 + $0x238] sm:$0xff]  ;;  %v15895_v50 = vpack.c.bf16 %v7365_v2, %v7364_v10 }
0x123f   : > { %v7136_v35 = vadd.f32 %v7133_v55, %v18167_v29  ;;  %v7374_v29 = vld [vmem:[#allocation12 + $0x2b0] sm:$0xff]  ;;  %v7728_v55 = vld [vmem:[#allocation12 + $0x3a8] sm:$0xff]  ;;  %v15883_v4 = vpack.c.bf16 %v7359_v62, %v7358_v7  ;;  %v7142_v10 = vld [vmem:[%s18767_s22 + $0x10] sm:$0xff] }
0x1240   : > { %v15913_v1 = vpack.c.bf16 %v7375_v0, %v7374_v29  ;;  %v15935_v61 = vpack.c.bf16 %v7728_v55, %v7727_v54  ;;  %v7730_v29 = vld [vmem:[#allocation12 + $0x3b8] sm:$0xff]  ;;  %v7349_v54 = vld [vmem:[#allocation12 + $0x1e8] sm:$0xff]  ;;  %v7719_v55 = vld [vmem:[#allocation12 + $0x360] sm:$0xff] }
0x1241   : > { %v18329_v60 = vmax.f32 %v7136_v35, 0.0  ;;  %v7340_v35 = vld [vmem:[#allocation12 + $0x1a0] sm:$0xff]  ;;  %v7350_v62 = vld [vmem:[#allocation12 + $0x1f0] sm:$0xff] }
0x1242   : > { %v7745_v2 = vld [vmem:[#allocation12 + $0x430] sm:$0xff] }
0x1243   : > { %13418 = vmatmul.mubr.f32.vlgmr.msra.gmra.mrb[76].mxu1 %v18329_v60 }
0x1244   : > { %15905 = vmatpush3.bf16.msra.mxu1 %v15904_v37  ;;  %13452 = vmatprep.mubr.msk.f32.mxu1 %vm17345_vm2, %v17346_v14  ;;  %v7341_v37 = vld [vmem:[#allocation12 + $0x1a8] sm:$0xff] }
0x1245   : > { %15906 = vmatprep.subr.bf16.mxu1 %v17344_v53  ;;  %v15881_v0 = vpack.c.bf16 %v7341_v37, %v7340_v35  ;;  %v7367_v35 = vld [vmem:[#allocation12 + $0x278] sm:$0xff]  ;;  %v7737_v37 = vld [vmem:[#allocation12 + $0x3f0] sm:$0xff] }
0x1248   : > { %15908 = vmatpush3.bf16.msra.mxu1 %v15907_v40  ;;  %v7712_v40 = vld [vmem:[#allocation12 + $0x328] sm:$0xff] }
0x1249   : > { %15909 = vmatprep.subr.bf16.mxu1 %v17344_v53 }
0x124c   : > { %15911 = vmatpush3.bf16.msra.mxu1 %v15910_v63  ;;  %v7729_v63 = vld [vmem:[#allocation12 + $0x3b0] sm:$0xff] }
0x124d   : > { %15912 = vmatprep.subr.bf16.mxu1 %v17344_v53  ;;  %v15939_v12 = vpack.c.bf16 %v7730_v29, %v7729_v63  ;;  %v7351_v63 = vld [vmem:[#allocation12 + $0x1f8] sm:$0xff] }
0x1250   : > { %15914 = vmatpush3.bf16.msra.mxu1 %v15913_v1  ;;  %v15937_v1 = vpack.c.bf16 %v7712_v40, %v7711_v39  ;;  %v7738_v39 = vld [vmem:[#allocation12 + $0x3f8] sm:$0xff] }
0x1251   : > { %15915 = vmatprep.subr.bf16.mxu1 %v17344_v53  ;;  %v15955_v29 = vpack.c.bf16 %v7738_v39, %v7737_v37  ;;  %v7754_v37 = vld [vmem:[#allocation12 + $0x478] sm:$0xff] }
0x1254   : > { %15917 = vmatpush3.bf16.msra.mxu1 %v15916_v47  ;;  %v7343_v47 = vld [vmem:[#allocation12 + $0x1b8] sm:$0xff] }
0x1255   : > { %15918 = vmatprep.subr.bf16.mxu1 %v17344_v53  ;;  %v15885_v19 = vpack.c.bf16 %v7343_v47, %v7342_v5 }
0x1258   : > { %15920 = vmatpush3.bf16.msra.mxu1 %v15919_v8  ;;  %v7714_v8 = vld [vmem:[#allocation12 + $0x338] sm:$0xff] }
0x1259   : > { %15921 = vmatprep.subr.bf16.mxu1 %v17344_v53  ;;  %v15941_v52 = vpack.c.bf16 %v7714_v8, %v7713_v6 }
0x125b   : > { %v7056_v51 = vpop.f32.mrb[58].mxu0 }
0x125c   : > { %15923 = vmatpush3.bf16.msra.mxu1 %v15922_v17  ;;  %v7134_v21 = vadd.f32 %v7056_v51, %v18165_v27  ;;  %v7058_v22 = vpop.f32.mrb[59].mxu0  ;;  %v15929_v27 = vpack.c.bf16 %v7708_v59, %v7707_v26  ;;  %v7731_v17 = vld [vmem:[#allocation12 + $0x3c0] sm:$0xff]  ;;  %v7734_v26 = vld [vmem:[#allocation12 + $0x3d8] sm:$0xff] }
0x125d   : > { %v7135_v24 = vadd.f32 %v7058_v22, %v18169_v16  ;;  %15924 = vmatprep.subr.bf16.mxu1 %v17344_v53  ;;  %v15875_v16 = vpack.c.bf16 %v7355_v33, %v7354_v30  ;;  %v7344_v51 = vld [vmem:[#allocation12 + $0x1c0] sm:$0xff] }
0x125e   : > { %v18343_v3 = vmax.f32 %v7134_v21, 0.0  ;;  %v7345_v21 = vld [vmem:[#allocation12 + $0x1c8] sm:$0xff]  ;;  %v7715_v22 = vld [vmem:[#allocation12 + $0x340] sm:$0xff] }
0x125f   : > { %v7138_v36 = vmax.f32 %v7135_v24, 0.0  ;;  %v7363_v24 = vld [vmem:[#allocation12 + $0x258] sm:$0xff]  ;;  %v15889_v59 = vpack.c.bf16 %v7345_v21, %v7344_v51  ;;  %v15945_v30 = vpack.c.bf16 %v7716_v44, %v7715_v22  ;;  %v11019_v44 = vld [vmem:[%s18767_s22 + $0x20] sm:$0xff] }
0x1260   : > { %15926 = vmatpush3.bf16.msra.mxu1 %v15925_v38  ;;  %v15943_v38 = vpack.c.bf16 %v7732_v18, %v7731_v17  ;;  %v15891_v33 = vpack.c.bf16 %v7363_v24, %v7362_v23  ;;  %v11020_v23 = vld [vmem:[%s18767_s22 + $0x28] sm:$0xff]  ;;  %v7739_v24 = vld [vmem:[#allocation12 + $0x400] sm:$0xff] }
0x1261   : > { %7255 = vmatprep.mubr.f32.mxu0 %v7138_v36  ;;  %15928 = vmatprep.subr.bf16.mxu1 %v15927_v25  ;;  %v7733_v25 = vld [vmem:[#allocation12 + $0x3d0] sm:$0xff] }
0x1262   : > { %7256 = vmatmul.mubr.f32.vlgmr.msra.gmra.mrb[64].mxu0 %v18343_v3  ;;  %v15947_v45 = vpack.c.bf16 %v7734_v26, %v7733_v25  ;;  %v7740_v25 = vld [vmem:[#allocation12 + $0x408] sm:$0xff]  ;;  %v7140_v26 = vld [vmem:[%s18767_s22] sm:$0xff] }
0x1263   : > { %13453 = vmatmul.mubr.f32.vlgmr.msra.gmra.mrb[78].mxu1 %v18329_v60  ;;  %15874 = vmatpush3.bf16.msra.mxu0 %v15873_v42  ;;  %v7347_v42 = vld [vmem:[#allocation12 + $0x1d8] sm:$0xff] }
0x1264   : > { %15930 = vmatpush3.bf16.msra.mxu1 %v15929_v27  ;;  %7819 = vmatprep.mubr.f32.mxu1 %v7138_v36  ;;  %v7718_v27 = vld [vmem:[#allocation12 + $0x358] sm:$0xff] }
0x1265   : > { %7448 = vmatprep.mubr.f32.mxu0 %v7138_v36  ;;  %15876 = vmatprep.subr.bf16.mxu0 %v15875_v16  ;;  %v7346_v36 = vld [vmem:[#allocation12 + $0x1d0] sm:$0xff]  ;;  %v7736_v16 = vld [vmem:[#allocation12 + $0x3e8] sm:$0xff]  ;;  %v15949_v49 = vpack.c.bf16 %v7718_v27, %v7717_v41  ;;  %v7743_v41 = vld [vmem:[#allocation12 + $0x420] sm:$0xff] }
0x1266   : > { %15932 = vmatprep.subr.bf16.mxu1 %v15931_v15  ;;  %v15893_v48 = vpack.c.bf16 %v7347_v42, %v7346_v36  ;;  %v7348_v15 = vld [vmem:[#allocation12 + $0x1e0] sm:$0xff]  ;;  %v7141_v42 = vld [vmem:[%s18767_s22 + $0x8] sm:$0xff] }
0x1267   : > { %15878 = vmatpush3.bf16.msra.mxu0 %v15877_v57  ;;  %v15951_v57 = vpack.c.bf16 %v7736_v16, %v7735_v46  ;;  %v7746_v46 = vld [vmem:[#allocation12 + $0x438] sm:$0xff] }
0x1268   : > { %15934 = vmatpush3.bf16.msra.mxu1 %v15933_v56  ;;  %15880 = vmatprep.subr.bf16.mxu0 %v15879_v58  ;;  %v7720_v56 = vld [vmem:[#allocation12 + $0x368] sm:$0xff]  ;;  %v7366_v58 = vld [vmem:[#allocation12 + $0x270] sm:$0xff]  ;;  %v15969_v16 = vpack.c.bf16 %v7746_v46, %v7745_v2  ;;  %v8105_v46 = vld [vmem:[#allocation13 + $0xc0] sm:$0xff] }
0x1269   : > { %15936 = vmatprep.subr.bf16.mxu1 %v15935_v61  ;;  %v15897_v61 = vpack.c.bf16 %v7349_v54, %v7348_v15  ;;  %v15953_v40 = vpack.c.bf16 %v7720_v56, %v7719_v55  ;;  %v15899_v7 = vpack.c.bf16 %v7367_v35, %v7366_v58  ;;  %v7749_v15 = vld [vmem:[#allocation12 + $0x450] sm:$0xff]  ;;  %v7750_v54 = vld [vmem:[#allocation12 + $0x458] sm:$0xff]  ;;  %v7752_v56 = vld [vmem:[#allocation12 + $0x468] sm:$0xff] }
0x126a   : > { %v15975_v55 = vpack.c.bf16 %v7750_v54, %v7749_v15  ;;  %v7753_v35 = vld [vmem:[#allocation12 + $0x470] sm:$0xff]  ;;  %v8109_v54 = vld [vmem:[#allocation13 + $0xe0] sm:$0xff] }
0x126b   : > { %15882 = vmatpush3.bf16.msra.mxu0 %v15881_v0  ;;  %v7721_v0 = vld [vmem:[#allocation12 + $0x370] sm:$0xff]  ;;  %v15981_v39 = vpack.c.bf16 %v7754_v37, %v7753_v35 }
0x126c   : > { %15938 = vmatpush3.bf16.msra.mxu1 %v15937_v1  ;;  %15884 = vmatprep.subr.bf16.mxu0 %v15883_v4  ;;  %v7722_v1 = vld [vmem:[#allocation12 + $0x378] sm:$0xff]  ;;  %v15901_v4 = vpack.c.bf16 %v7351_v63, %v7350_v62  ;;  %v7995_v62 = vld [vmem:[#allocation13 + $0x10] sm:$0xff] }
0x126d   : > { %15940 = vmatprep.subr.bf16.mxu1 %v15939_v12  ;;  %v15957_v5 = vpack.c.bf16 %v7722_v1, %v7721_v0  ;;  %v7996_v63 = vld [vmem:[#allocation13 + $0x18] sm:$0xff]  ;;  %v7997_v0 = vld [vmem:[#allocation13 + $0x20] sm:$0xff]  ;;  %v7998_v1 = vld [vmem:[#allocation13 + $0x28] sm:$0xff] }
0x126f   : > { %15886 = vmatpush3.bf16.msra.mxu0 %v15885_v19 }
0x1270   : > { %15942 = vmatpush3.bf16.msra.mxu1 %v15941_v52  ;;  %15888 = vmatprep.subr.bf16.mxu0 %v15887_v20 }
0x1271   : > { %15944 = vmatprep.subr.bf16.mxu1 %v15943_v38  ;;  %v11018_v38 = vld [vmem:[%s18767_s22 + $0x18] sm:$0xff] }
0x1273   : > { %15890 = vmatpush3.bf16.msra.mxu0 %v15889_v59  ;;  %v15960_v59 = vpack.c.bf16 %v7740_v25, %v7739_v24  ;;  %v11027_v25 = vld [vmem:[%s18767_s22 + $0x30] sm:$0xff] }
0x1274   : > { %15946 = vmatpush3.bf16.msra.mxu1 %v15945_v30  ;;  %15892 = vmatprep.subr.bf16.mxu0 %v15891_v33  ;;  %v7741_v30 = vld [vmem:[#allocation12 + $0x410] sm:$0xff]  ;;  %v7742_v33 = vld [vmem:[#allocation12 + $0x418] sm:$0xff] }
0x1275   : > { %15948 = vmatprep.subr.bf16.mxu1 %v15947_v45  ;;  %v15963_v36 = vpack.c.bf16 %v7742_v33, %v7741_v30  ;;  %v7744_v45 = vld [vmem:[#allocation12 + $0x428] sm:$0xff]  ;;  %v8100_v30 = vld [vmem:[#allocation13 + $0x98] sm:$0xff] }
0x1276   : > { %v15966_v27 = vpack.c.bf16 %v7744_v45, %v7743_v41  ;;  %v11029_v41 = vld [vmem:[%s18767_s22 + $0x40] sm:$0xff] }
0x1277   : > { %15894 = vmatpush3.bf16.msra.mxu0 %v15893_v48  ;;  %v7747_v48 = vld [vmem:[#allocation12 + $0x440] sm:$0xff] }
0x1278   : > { %15950 = vmatpush3.bf16.msra.mxu1 %v15949_v49  ;;  %15896 = vmatprep.subr.bf16.mxu0 %v15895_v50  ;;  %v7748_v49 = vld [vmem:[#allocation12 + $0x448] sm:$0xff] }
0x1279   : > { %15952 = vmatprep.subr.bf16.mxu1 %v15951_v57  ;;  %v15972_v50 = vpack.c.bf16 %v7748_v49, %v7747_v48  ;;  %v7751_v57 = vld [vmem:[#allocation12 + $0x460] sm:$0xff]  ;;  %v8107_v49 = vld [vmem:[#allocation13 + $0xd0] sm:$0xff] }
0x127a   : > { %v15978_v58 = vpack.c.bf16 %v7752_v56, %v7751_v57  ;;  %v8111_v56 = vld [vmem:[#allocation13 + $0xf0] sm:$0xff] }
0x127b   : > { %15898 = vmatpush3.bf16.msra.mxu0 %v15897_v61  ;;  %v7993_v61 = vld [vmem:[#allocation13] sm:$0xff] }
0x127c   : > { %15954 = vmatpush3.bf16.msra.mxu1 %v15953_v40  ;;  %15900 = vmatprep.subr.bf16.mxu0 %v15899_v7  ;;  %v7994_v40 = vld [vmem:[#allocation13 + $0x8] sm:$0xff] }
0x127d   : > { %15956 = vmatprep.subr.bf16.mxu1 %v15955_v29  ;;  %v15984_v7 = vpack.c.bf16 %v7994_v40, %v7993_v61  ;;  %v15987_v29 = vpack.c.bf16 %v7996_v63, %v7995_v62  ;;  %v11033_v62 = vld [vmem:[%s18768_s29 + $0x30] sm:$0xff] }
0x127e   : > { %v8432_v63 = vld [vmem:[#allocation6 + $0x300] sm:$0xff] }
0x127f   : > { %15902 = vmatpush3.bf16.msra.mxu0 %v15901_v4  ;;  %v15990_v4 = vpack.c.bf16 %v7998_v1, %v7997_v0  ;;  %v8434_v1 = vld [vmem:[#allocation6 + $0x310] sm:$0xff] }
0x1280   : > { %15958 = vmatpush3.bf16.msra.mxu1 %v15957_v5  ;;  %13455 = vmatprep.subr.mxu0 %v17346_v14  ;;  %v7999_v5 = vld [vmem:[#allocation13 + $0x30] sm:$0xff] }
0x1281   : > { %15983 = vmatprep.subr.bf16.mxu1 %v17344_v53 }
0x1282   : > { %7449 = vmatmul.mubr.f32.vlgmr.msra.gmra.mrb[66].mxu0 %v18343_v3 }
0x1283   : > { %7820 = vmatmul.mubr.f32.vlgmr.msra.gmra.mrb[80].mxu1 %v18343_v3  ;;  %13457 = vmatprep.mubr.msk.f32.mxu0 %vm17345_vm2, %v17346_v14 }
0x1284   : > { %13555 = vmatprep.mubr.msk.f32.mxu1 %vm17345_vm2, %v17346_v14  ;;  %15985 = vmatpush3.bf16.msra.mxu1 %v15984_v7 }
0x1285   : > { %15986 = vmatprep.subr.bf16.mxu1 %v17344_v53 }
0x1288   : > { %15988 = vmatpush3.bf16.msra.mxu1 %v15987_v29  ;;  %v8433_v29 = vld [vmem:[#allocation6 + $0x308] sm:$0xff] }
0x1289   : > { %15989 = vmatprep.subr.bf16.mxu1 %v17344_v53  ;;  %v16039_v0 = vpack.c.bf16 %v8433_v29, %v8432_v63  ;;  %v8552_v63 = vld [vmem:[#allocation6 + $0x3c0] sm:$0xff]  ;;  %v8553_v29 = vld [vmem:[#allocation6 + $0x3c8] sm:$0xff] }
0x128c   : > { %15991 = vmatpush3.bf16.msra.mxu1 %v15990_v4  ;;  %v8435_v4 = vld [vmem:[#allocation6 + $0x318] sm:$0xff] }
0x128d   : > { %15992 = vmatprep.subr.bf16.mxu1 %v17344_v53 }
0x1316   : > { %v7327_v47 = vpop.f32.mrb[76].mxu1 }
0x1317   : > { %v13419_v6 = vpop.f32.mrb[77].mxu1 }
0x1318   : > { %v8001_v6 = vld [vmem:[#allocation13 + $0x40] sm:$0xff] }
0x1335   : > { %v11846_v12 = vpop.f32.mrb[64].mxu0 }
0x1336   : > { %v7520_v8 = vpop.f32.mrb[78].mxu1  ;;  %v11847_v32 = vpop.f32.mrb[65].mxu0 }
0x1337   : > { %v13454_v34 = vpop.f32.mrb[79].mxu1  ;;  %v11848_v17 = vadd.f32 %v11847_v32, %v11846_v12  ;;  %v8002_v12 = vld [vmem:[#allocation13 + $0x48] sm:$0xff]  ;;  %v8003_v32 = vld [vmem:[#allocation13 + $0x50] sm:$0xff] }
0x1338   : > { %v8004_v34 = vld [vmem:[#allocation13 + $0x58] sm:$0xff] }
0x1339   : > { %v7328_v18 = vadd.f32 %v11848_v17, %v7327_v47  ;;  %v15999_v17 = vpack.c.bf16 %v8004_v34, %v8003_v32  ;;  %v8440_v32 = vld [vmem:[#allocation6 + $0x340] sm:$0xff]  ;;  %v8441_v34 = vld [vmem:[#allocation6 + $0x348] sm:$0xff] }
0x1355   : > { %v11898_v19 = vpop.f32.mrb[66].mxu0 }
0x1356   : > { %v11958_v52 = vpop.f32.mrb[80].mxu1  ;;  %v11899_v20 = vpop.f32.mrb[67].mxu0 }
0x1357   : > { %v11900_v51 = vadd.f32 %v11899_v20, %v11898_v19  ;;  %v11959_v21 = vpop.f32.mrb[81].mxu1  ;;  %v8006_v19 = vld [vmem:[#allocation13 + $0x68] sm:$0xff]  ;;  %v8007_v20 = vld [vmem:[#allocation13 + $0x70] sm:$0xff] }
0x1358   : > { %v18355_v3 = vadd.f32 %v11959_v21, %v11958_v52 }
0x1359   : > { %v7521_v22 = vadd.f32 %v11900_v51, %v7520_v8  ;;  %v15996_v8 = vpack.c.bf16 %v8002_v12, %v8001_v6  ;;  %v8008_v51 = vld [vmem:[#allocation13 + $0x78] sm:$0xff]  ;;  %v8438_v6 = vld [vmem:[#allocation6 + $0x330] sm:$0xff] }
0x135a   : > { %v16005_v21 = vpack.c.bf16 %v8008_v51, %v8007_v20  ;;  %v8439_v12 = vld [vmem:[#allocation6 + $0x338] sm:$0xff]  ;;  %v8444_v20 = vld [vmem:[#allocation6 + $0x360] sm:$0xff]  ;;  %v8445_v51 = vld [vmem:[#allocation6 + $0x368] sm:$0xff] }
0x135b   : > { %13456 = vmatpush3.msra.mxu0 %v7521_v22  ;;  %v8097_v22 = vld [vmem:[#allocation13 + $0x80] sm:$0xff] }
0x135c   : > { %13458 = vmatmul.mubr.msk.f32.vlgmr.msra.gmra.mrb[68].mxu0 %vm4844_vm4, %v11018_v38  ;;  %13466 = vmatprep.subr.mxu0 %v17346_v14  ;;  %v8098_v38 = vld [vmem:[#allocation13 + $0x88] sm:$0xff] }
0x135d   : > { %13467 = vmatpush3.msra.mxu0 %v7328_v18  ;;  %13460 = vmatprep.mubr.msk.f32.mxu0 %vm17345_vm2, %v17346_v14  ;;  %v8005_v18 = vld [vmem:[#allocation13 + $0x60] sm:$0xff] }
0x135e   : > { %15959 = vmatprep.subr.bf16.mxu0 %v17344_v53  ;;  %v16002_v52 = vpack.c.bf16 %v8006_v19, %v8005_v18  ;;  %v8442_v18 = vld [vmem:[#allocation6 + $0x350] sm:$0xff]  ;;  %v8443_v19 = vld [vmem:[#allocation6 + $0x358] sm:$0xff] }
0x1360   : > { %13461 = vmatmul.mubr.msk.f32.gmra.mrb[70].mxu0 %vm4844_vm4, %v11019_v44 }
0x1361   : > { %13463 = vmatprep.mubr.msk.f32.mxu0 %vm17345_vm2, %v17346_v14 }
0x1364   : > { %13464 = vmatmul.mubr.msk.f32.gmra.mrb[72].mxu0 %vm4844_vm4, %v11020_v23 }
0x1365   : > { %13468 = vmatprep.mubr.msk.f32.mxu0 %vm17345_vm2, %v17346_v14 }
0x1368   : > { %13469 = vmatmul.mubr.msk.f32.vlgmr.msra.gmra.mrb[68].mxu0 %vm4844_vm4, %v7140_v26  ;;  %v16008_v26 = vpack.c.bf16 %v8098_v38, %v8097_v22 }
0x1369   : > { %15961 = vmatpush3.bf16.msra.mxu0 %v15960_v59  ;;  %13471 = vmatprep.mubr.msk.f32.mxu0 %vm17345_vm2, %v17346_v14  ;;  %v8099_v59 = vld [vmem:[#allocation13 + $0x90] sm:$0xff] }
0x136a   : > { %15962 = vmatprep.subr.bf16.mxu0 %v17344_v53  ;;  %v16011_v33 = vpack.c.bf16 %v8100_v30, %v8099_v59 }
0x136c   : > { %13472 = vmatmul.mubr.msk.f32.gmra.mrb[70].mxu0 %vm4844_vm4, %v7141_v42  ;;  %v8102_v42 = vld [vmem:[#allocation13 + $0xa8] sm:$0xff] }
0x136d   : > { %15964 = vmatpush3.bf16.msra.mxu0 %v15963_v36  ;;  %13474 = vmatprep.mubr.msk.f32.mxu0 %vm17345_vm2, %v17346_v14  ;;  %v8101_v36 = vld [vmem:[#allocation13 + $0xa0] sm:$0xff] }
0x136e   : > { %15965 = vmatprep.subr.bf16.mxu0 %v17344_v53  ;;  %v16014_v45 = vpack.c.bf16 %v8102_v42, %v8101_v36 }
0x1370   : > { %13475 = vmatmul.mubr.msk.f32.gmra.mrb[72].mxu0 %vm4844_vm4, %v7142_v10  ;;  %v8104_v10 = vld [vmem:[#allocation13 + $0xb8] sm:$0xff] }
0x1371   : > { %15967 = vmatpush3.bf16.msra.mxu0 %v15966_v27  ;;  %13509 = vmatprep.mubr.msk.f32.mxu0 %vm17345_vm2, %v17346_v14  ;;  %v8103_v27 = vld [vmem:[#allocation13 + $0xb0] sm:$0xff] }
0x1372   : > { %15968 = vmatprep.subr.bf16.mxu0 %v17344_v53  ;;  %v16017_v2 = vpack.c.bf16 %v8104_v10, %v8103_v27  ;;  %v11035_v27 = vld [vmem:[%s18768_s29 + $0x40] sm:$0xff]  ;;  %v8544_v10 = vld [vmem:[#allocation6 + $0x380] sm:$0xff] }
0x1375   : > { %15970 = vmatpush3.bf16.msra.mxu0 %v15969_v16  ;;  %v8106_v16 = vld [vmem:[#allocation13 + $0xc8] sm:$0xff] }
0x1376   : > { %15971 = vmatprep.subr.bf16.mxu0 %v17344_v53  ;;  %v16020_v48 = vpack.c.bf16 %v8106_v16, %v8105_v46  ;;  %v11036_v46 = vld [vmem:[%s18768_s29 + $0x48] sm:$0xff]  ;;  %v11037_v16 = vld [vmem:[%s18768_s29 + $0x50] sm:$0xff] }
0x1379   : > { %15973 = vmatpush3.bf16.msra.mxu0 %v15972_v50  ;;  %v8108_v50 = vld [vmem:[#allocation13 + $0xd8] sm:$0xff] }
0x137a   : > { %15974 = vmatprep.subr.bf16.mxu0 %v17344_v53  ;;  %v16023_v15 = vpack.c.bf16 %v8108_v50, %v8107_v49  ;;  %v11038_v49 = vld [vmem:[%s18768_s29 + $0x58] sm:$0xff]  ;;  %v7987_v50 = vld [vmem:[%s18768_s29] sm:$0xff] }
0x137d   : > { %15976 = vmatpush3.bf16.msra.mxu0 %v15975_v55  ;;  %v8110_v55 = vld [vmem:[#allocation13 + $0xe8] sm:$0xff] }
0x137e   : > { %15977 = vmatprep.subr.bf16.mxu0 %v17344_v53  ;;  %v16026_v57 = vpack.c.bf16 %v8110_v55, %v8109_v54  ;;  %v8547_v54 = vld [vmem:[#allocation6 + $0x398] sm:$0xff] }
0x137f   : > { %v7988_v55 = vld [vmem:[%s18768_s29 + $0x8] sm:$0xff] }
0x1381   : > { %15979 = vmatpush3.bf16.msra.mxu0 %v15978_v58  ;;  %v8112_v58 = vld [vmem:[#allocation13 + $0xf8] sm:$0xff] }
0x1382   : > { %15980 = vmatprep.subr.bf16.mxu0 %v17344_v53  ;;  %v16029_v35 = vpack.c.bf16 %v8112_v58, %v8111_v56  ;;  %v8548_v58 = vld [vmem:[#allocation6 + $0x3a0] sm:$0xff] }
0x1385   : > { %15982 = vmatpush3.bf16.msra.mxu0 %v15981_v39 }
0x1386   : > { %13512 = vmatprep.subr.mxu0 %v17346_v14 }
0x1388   : > { %13510 = vmatmul.mubr.f32.vlgmr.msra.gmra.mrb[74].mxu0 %v18329_v60  ;;  %v8000_v60 = vld [vmem:[#allocation13 + $0x38] sm:$0xff] }
0x1389   : > { %13514 = vmatprep.mubr.msk.f32.mxu0 %vm17345_vm2, %v17346_v14  ;;  %v15993_v47 = vpack.c.bf16 %v8000_v60, %v7999_v5  ;;  %v16043_v5 = vpack.c.bf16 %v8435_v4, %v8434_v1  ;;  %v8436_v60 = vld [vmem:[#allocation6 + $0x320] sm:$0xff]  ;;  %v8554_v1 = vld [vmem:[#allocation6 + $0x3d0] sm:$0xff]  ;;  %v8555_v4 = vld [vmem:[#allocation6 + $0x3d8] sm:$0xff] }
0x138b   : > { %15994 = vmatpush3.bf16.msra.mxu1 %v15993_v47  ;;  %v8437_v47 = vld [vmem:[#allocation6 + $0x328] sm:$0xff] }
0x138c   : > { %15995 = vmatprep.subr.bf16.mxu1 %v17344_v53 }
0x138f   : > { %15997 = vmatpush3.bf16.msra.mxu1 %v15996_v8  ;;  %v16051_v8 = vpack.c.bf16 %v8439_v12, %v8438_v6  ;;  %v8446_v6 = vld [vmem:[#allocation6 + $0x370] sm:$0xff]  ;;  %v8447_v12 = vld [vmem:[#allocation6 + $0x378] sm:$0xff] }
0x1390   : > { %15998 = vmatprep.subr.bf16.mxu1 %v17344_v53 }
0x1393   : > { %16000 = vmatpush3.bf16.msra.mxu1 %v15999_v17  ;;  %v16055_v17 = vpack.c.bf16 %v8441_v34, %v8440_v32  ;;  %v8558_v32 = vld [vmem:[#allocation6 + $0x3f0] sm:$0xff]  ;;  %v8559_v34 = vld [vmem:[#allocation6 + $0x3f8] sm:$0xff] }
0x1394   : > { %16001 = vmatprep.subr.bf16.mxu1 %v17344_v53 }
0x1397   : > { %16003 = vmatpush3.bf16.msra.mxu1 %v16002_v52  ;;  %v16059_v52 = vpack.c.bf16 %v8443_v19, %v8442_v18  ;;  %v8751_v18 = vld [vmem:[#allocation6 + $0x400] sm:$0xff]  ;;  %v8752_v19 = vld [vmem:[#allocation6 + $0x408] sm:$0xff] }
0x1398   : > { %16004 = vmatprep.subr.bf16.mxu1 %v17344_v53 }
0x139b   : > { %16006 = vmatpush3.bf16.msra.mxu1 %v16005_v21  ;;  %v16063_v21 = vpack.c.bf16 %v8445_v51, %v8444_v20 }
0x145b   : > { %v7891_v44 = vpop.f32.mrb[74].mxu0 }
0x145c   : > { %v7892_v23 = vadd.f32 %v18355_v3, %v7891_v44  ;;  %v13511_v24 = vpop.f32.mrb[75].mxu0  ;;  %v11028_v3 = vld [vmem:[%s18767_s22 + $0x38] sm:$0xff] }
0x145e   : > { %13513 = vmatpush3.msra.mxu0 %v7892_v23 }
0x145f   : > { %13515 = vmatmul.mubr.msk.f32.vlgmr.msra.gmra.mrb[68].mxu0 %vm4844_vm4, %v11027_v25  ;;  %16007 = vmatprep.subr.bf16.mxu0 %v17344_v53 }
0x1460   : > { %13517 = vmatprep.mubr.msk.f32.mxu0 %vm17345_vm2, %v17346_v14  ;;  %16009 = vmatpush3.bf16.msra.mxu0 %v16008_v26 }
0x1461   : > { %16010 = vmatprep.subr.bf16.mxu0 %v17344_v53 }
0x1463   : > { %13518 = vmatmul.mubr.msk.f32.gmra.mrb[70].mxu0 %vm4844_vm4, %v11028_v3 }
0x1464   : > { %13520 = vmatprep.mubr.msk.f32.mxu0 %vm17345_vm2, %v17346_v14  ;;  %16012 = vmatpush3.bf16.msra.mxu0 %v16011_v33 }
0x1465   : > { %16013 = vmatprep.subr.bf16.mxu0 %v17344_v53 }
0x1467   : > { %13521 = vmatmul.mubr.msk.f32.gmra.mrb[72].mxu0 %vm4844_vm4, %v11029_v41 }
0x1468   : > { %16015 = vmatpush3.bf16.msra.mxu0 %v16014_v45  ;;  %13596 = vmatprep.mubr.msk.f32.mxu0 %vm17345_vm2, %v17346_v14  ;;  %v11034_v45 = vld [vmem:[%s18768_s29 + $0x38] sm:$0xff] }
0x1469   : > { %16016 = vmatprep.subr.bf16.mxu0 %v17344_v53 }
0x146c   : > { %16018 = vmatpush3.bf16.msra.mxu0 %v16017_v2  ;;  %v8545_v2 = vld [vmem:[#allocation6 + $0x388] sm:$0xff] }
0x146d   : > { %16019 = vmatprep.subr.bf16.mxu0 %v17344_v53 }
0x1470   : > { %16021 = vmatpush3.bf16.msra.mxu0 %v16020_v48  ;;  %v16071_v48 = vpack.c.bf16 %v8545_v2, %v8544_v10  ;;  %v8757_v2 = vld [vmem:[#allocation6 + $0x430] sm:$0xff] }
0x1471   : > { %16022 = vmatprep.subr.bf16.mxu0 %v17344_v53 }
0x1474   : > { %16024 = vmatpush3.bf16.msra.mxu0 %v16023_v15  ;;  %v8546_v15 = vld [vmem:[#allocation6 + $0x390] sm:$0xff] }
0x1475   : > { %16025 = vmatprep.subr.bf16.mxu0 %v17344_v53  ;;  %v16075_v56 = vpack.c.bf16 %v8547_v54, %v8546_v15  ;;  %v8762_v15 = vld [vmem:[#allocation6 + $0x458] sm:$0xff] }
0x1478   : > { %16027 = vmatpush3.bf16.msra.mxu0 %v16026_v57  ;;  %v7989_v57 = vld [vmem:[%s18768_s29 + $0x10] sm:$0xff] }
0x1479   : > { %16028 = vmatprep.subr.bf16.mxu0 %v17344_v53 }
0x147c   : > { %16030 = vmatpush3.bf16.msra.mxu0 %v16029_v35  ;;  %v8549_v35 = vld [vmem:[#allocation6 + $0x3a8] sm:$0xff] }
0x147d   : > { %16040 = vmatprep.subr.bf16.mxu0 %v16039_v0 }
0x1532   : > { %v7970_v37 = vpop.f32.mrb[68].mxu0 }
0x1533   : > { %v13516_v39 = vpop.f32.mrb[69].mxu0  ;;  %13556 = vmatmul.mubr.f32.vlgmr.msra.gmra.mrb[82].mxu1 %v7970_v37  ;;  %13597 = vmatmul.mubr.f32.vlgmr.msra.gmra.mrb[76].mxu0 %v7970_v37  ;;  %v7990_v37 = vld [vmem:[%s18768_s29 + $0x18] sm:$0xff] }
0x1534   : > { %13558 = vmatprep.mubr.msk.f32.mxu1 %vm17345_vm2, %v17346_v14  ;;  %13599 = vmatprep.mubr.msk.f32.mxu0 %vm17345_vm2, %v17346_v14  ;;  %v7991_v39 = vld [vmem:[%s18768_s29 + $0x20] sm:$0xff] }
0x1535   : > { %16042 = vmatpush3.bf16.msra.mxu0 %v16039_v0  ;;  %v16087_v0 = vpack.c.bf16 %v8553_v29, %v8552_v63  ;;  %v9086_v63 = vld [vmem:[#allocation6 + $0x520] sm:$0xff]  ;;  %v9087_v29 = vld [vmem:[#allocation6 + $0x528] sm:$0xff] }
0x1536   : > { %v7975_v61 = vpop.f32.mrb[70].mxu0  ;;  %16044 = vmatprep.subr.bf16.mxu0 %v16043_v5 }
0x1537   : > { %v13519_v40 = vpop.f32.mrb[71].mxu0  ;;  %13559 = vmatmul.mubr.f32.gmra.mrb[84].mxu1 %v7975_v61  ;;  %13600 = vmatmul.mubr.f32.gmra.mrb[78].mxu0 %v7975_v61  ;;  %v16079_v61 = vpack.c.bf16 %v8549_v35, %v8548_v58  ;;  %v8765_v58 = vld [vmem:[#allocation6 + $0x470] sm:$0xff]  ;;  %v8766_v35 = vld [vmem:[#allocation6 + $0x478] sm:$0xff] }
0x1538   : > { %13561 = vmatprep.mubr.msk.f32.mxu1 %vm17345_vm2, %v17346_v14  ;;  %13602 = vmatprep.mubr.msk.f32.mxu0 %vm17345_vm2, %v17346_v14  ;;  %v16047_v14 = vpack.c.bf16 %v8437_v47, %v8436_v60  ;;  %v8550_v40 = vld [vmem:[#allocation6 + $0x3b0] sm:$0xff]  ;;  %v8556_v60 = vld [vmem:[#allocation6 + $0x3e0] sm:$0xff]  ;;  %v8557_v47 = vld [vmem:[#allocation6 + $0x3e8] sm:$0xff] }
0x1539   : > { %16046 = vmatpush3.bf16.msra.mxu0 %v16043_v5  ;;  %v16091_v5 = vpack.c.bf16 %v8555_v4, %v8554_v1  ;;  %v9088_v1 = vld [vmem:[#allocation6 + $0x530] sm:$0xff]  ;;  %v9089_v4 = vld [vmem:[#allocation6 + $0x538] sm:$0xff] }
0x153a   : > { %v7980_v53 = vpop.f32.mrb[72].mxu0  ;;  %16048 = vmatprep.subr.bf16.mxu0 %v16047_v14 }
0x153b   : > { %v13522_v7 = vpop.f32.mrb[73].mxu0  ;;  %13562 = vmatmul.mubr.f32.gmra.mrb[86].mxu1 %v7980_v53  ;;  %13603 = vmatmul.mubr.f32.gmra.mrb[80].mxu0 %v7980_v53  ;;  %v8551_v53 = vld [vmem:[#allocation6 + $0x3b8] sm:$0xff] }
0x153c   : > { %13611 = vmatprep.mubr.msk.f32.mxu1 %vm3194_vm3, %v11033_v62  ;;  %v7992_v7 = vld [vmem:[%s18768_s29 + $0x28] sm:$0xff]  ;;  %v16083_v62 = vpack.c.bf16 %v8551_v53, %v8550_v40  ;;  %v9084_v53 = vld [vmem:[#allocation6 + $0x510] sm:$0xff] }
0x153d   : > { %16050 = vmatpush3.bf16.msra.mxu0 %v16047_v14  ;;  %v16095_v14 = vpack.c.bf16 %v8557_v47, %v8556_v60  ;;  %v9090_v60 = vld [vmem:[#allocation6 + $0x540] sm:$0xff]  ;;  %v9091_v47 = vld [vmem:[#allocation6 + $0x548] sm:$0xff] }
0x153e   : > { %16052 = vmatprep.subr.bf16.mxu0 %v16051_v8 }
0x1541   : > { %16054 = vmatpush3.bf16.msra.mxu0 %v16051_v8  ;;  %v16067_v8 = vpack.c.bf16 %v8447_v12, %v8446_v6  ;;  %v9092_v6 = vld [vmem:[#allocation6 + $0x550] sm:$0xff]  ;;  %v9093_v12 = vld [vmem:[#allocation6 + $0x558] sm:$0xff] }
0x1542   : > { %16056 = vmatprep.subr.bf16.mxu0 %v16055_v17 }
0x1545   : > { %16058 = vmatpush3.bf16.msra.mxu0 %v16055_v17  ;;  %v16099_v17 = vpack.c.bf16 %v8559_v34, %v8558_v32  ;;  %v9094_v32 = vld [vmem:[#allocation6 + $0x560] sm:$0xff]  ;;  %v9095_v34 = vld [vmem:[#allocation6 + $0x568] sm:$0xff] }
0x1546   : > { %16060 = vmatprep.subr.bf16.mxu0 %v16059_v52 }
0x1549   : > { %16062 = vmatpush3.bf16.msra.mxu0 %v16059_v52  ;;  %v16115_v52 = vpack.c.bf16 %v8752_v19, %v8751_v18 }
0x154a   : > { %16064 = vmatprep.subr.bf16.mxu0 %v16063_v21 }
0x154d   : > { %16066 = vmatpush3.bf16.msra.mxu0 %v16063_v21 }
0x154e   : > { %16068 = vmatprep.subr.bf16.mxu0 %v16067_v8 }
0x1551   : > { %16070 = vmatpush3.bf16.msra.mxu0 %v16067_v8  ;;  %v16211_v8 = vpack.c.bf16 %v9093_v12, %v9092_v6  ;;  %v8985_v6 = vld [vmem:[#allocation6 + $0x4f8] sm:$0xff] }
0x1552   : > { %16116 = vmatprep.subr.bf16.mxu0 %v16115_v52 }
0x1606   : > { %v8075_v22 = vpop.f32.mrb[82].mxu1  ;;  %v8179_v38 = vpop.f32.mrb[76].mxu0 }
0x1607   : > { %v13557_v44 = vpop.f32.mrb[83].mxu1  ;;  %v13598_v23 = vpop.f32.mrb[77].mxu0 }
0x1608   : > { %v8754_v44 = vld [vmem:[#allocation6 + $0x418] sm:$0xff] }
0x160a   : > { %v8080_v24 = vpop.f32.mrb[84].mxu1  ;;  %v8184_v25 = vpop.f32.mrb[78].mxu0 }
0x160b   : > { %v16035_v26 = vpack.c.bf16 %v8080_v24, %v8075_v22  ;;  %v16031_v59 = vpack.c.bf16 %v8184_v25, %v8179_v38  ;;  %v13560_v30 = vpop.f32.mrb[85].mxu1  ;;  %v13601_v3 = vpop.f32.mrb[79].mxu0  ;;  %v8753_v38 = vld [vmem:[#allocation6 + $0x410] sm:$0xff] }
0x160c   : > { %v16119_v30 = vpack.c.bf16 %v8754_v44, %v8753_v38 }
0x160d   : > { %16032 = vmatprep.subr.bf16.mxu1 %v16031_v59 }
0x160e   : > { %v8085_v33 = vpop.f32.mrb[86].mxu1  ;;  %v8189_v36 = vpop.f32.mrb[80].mxu0  ;;  %16034 = vmatpush3.bf16.msra.mxu1 %v16031_v59 }
0x160f   : > { %v13563_v42 = vpop.f32.mrb[87].mxu1  ;;  %v13604_v41 = vpop.f32.mrb[81].mxu0  ;;  %13609 = vmatprep.subr.mxu1 %v8189_v36 }
0x1612   : > { %13610 = vmatpush3.msra.mxu1 %v8189_v36  ;;  %v8756_v36 = vld [vmem:[#allocation6 + $0x428] sm:$0xff] }
0x1613   : > { %13612 = vmatmul.mubr.msk.f32.vlgmr.msra.gmra.mrb[88].mxu1 %vm3194_vm3, %v11034_v45  ;;  %16036 = vmatprep.subr.bf16.mxu1 %v16035_v26 }
0x1614   : > { %16038 = vmatpush3.bf16.msra.mxu1 %v16035_v26  ;;  %13614 = vmatprep.mubr.msk.f32.mxu1 %vm3194_vm3, %v11035_v27 }
0x1615   : > { %13624 = vmatprep.subr.mxu1 %v8085_v33 }
0x1617   : > { %13615 = vmatmul.mubr.msk.f32.gmra.mrb[90].mxu1 %vm3194_vm3, %v11036_v46  ;;  %v8758_v46 = vld [vmem:[#allocation6 + $0x438] sm:$0xff] }
0x1618   : > { %13625 = vmatpush3.msra.mxu1 %v8085_v33  ;;  %13617 = vmatprep.mubr.msk.f32.mxu1 %vm3194_vm3, %v11037_v16  ;;  %v8755_v33 = vld [vmem:[#allocation6 + $0x420] sm:$0xff]  ;;  %v16127_v16 = vpack.c.bf16 %v8758_v46, %v8757_v2  ;;  %v8971_v46 = vld [vmem:[#allocation6 + $0x488] sm:$0xff] }
0x1619   : > { %16072 = vmatprep.subr.bf16.mxu1 %v16071_v48  ;;  %v16123_v27 = vpack.c.bf16 %v8756_v36, %v8755_v33  ;;  %v18556_v33 = vld [vmem:[#allocation16 + $0x90] sm:$0xff]  ;;  %v8970_v2 = vld [vmem:[#allocation6 + $0x480] sm:$0xff] }
0x161b   : > { %13618 = vmatmul.mubr.msk.f32.gmra.mrb[92].mxu1 %vm3194_vm3, %v11038_v49  ;;  %v8760_v49 = vld [vmem:[#allocation6 + $0x448] sm:$0xff] }
0x161c   : > { %13626 = vmatprep.mubr.msk.f32.mxu1 %vm3194_vm3, %v7987_v50  ;;  %v18527_v50 = vld [vmem:[#allocation16 + $0x30] sm:$0xff] }
0x161f   : > { %13627 = vmatmul.mubr.msk.f32.vlgmr.msra.gmra.mrb[88].mxu1 %vm3194_vm3, %v7988_v55  ;;  %v8763_v55 = vld [vmem:[#allocation6 + $0x460] sm:$0xff] }
0x1620   : > { %13629 = vmatprep.mubr.msk.f32.mxu1 %vm3194_vm3, %v7989_v57  ;;  %16074 = vmatpush3.bf16.msra.mxu1 %v16071_v48  ;;  %v8759_v48 = vld [vmem:[#allocation6 + $0x440] sm:$0xff]  ;;  %v8764_v57 = vld [vmem:[#allocation6 + $0x468] sm:$0xff] }
0x1621   : > { %16076 = vmatprep.subr.bf16.mxu1 %v16075_v56 }
0x1623   : > { %13630 = vmatmul.mubr.msk.f32.gmra.mrb[90].mxu1 %vm3194_vm3, %v7990_v37  ;;  %v16143_v37 = vpack.c.bf16 %v8766_v35, %v8765_v58  ;;  %v18564_v58 = vld [vmem:[#allocation16 + $0xa0] sm:$0xff] }
0x1624   : > { %13632 = vmatprep.mubr.msk.f32.mxu1 %vm3194_vm3, %v7991_v39  ;;  %16078 = vmatpush3.bf16.msra.mxu1 %v16075_v56  ;;  %v16139_v56 = vpack.c.bf16 %v8764_v57, %v8763_v55  ;;  %v9082_v39 = vld [vmem:[#allocation6 + $0x500] sm:$0xff]  ;;  %v8975_v57 = vld [vmem:[#allocation6 + $0x4a8] sm:$0xff] }
0x1625   : > { %16080 = vmatprep.subr.bf16.mxu1 %v16079_v61  ;;  %v8974_v55 = vld [vmem:[#allocation6 + $0x4a0] sm:$0xff] }
0x1626   : > { %v16167_v35 = vpack.c.bf16 %v8975_v57, %v8974_v55  ;;  %v9298_v55 = vld [vmem:[#allocation6 + $0x5c8] sm:$0xff] }
0x1627   : > { %13633 = vmatmul.mubr.msk.f32.gmra.mrb[92].mxu1 %vm3194_vm3, %v7992_v7  ;;  %v9085_v7 = vld [vmem:[#allocation6 + $0x518] sm:$0xff] }
0x1628   : > { %16082 = vmatpush3.bf16.msra.mxu1 %v16079_v61  ;;  %v9083_v61 = vld [vmem:[#allocation6 + $0x508] sm:$0xff] }
0x1629   : > { %16084 = vmatprep.subr.bf16.mxu1 %v16083_v62  ;;  %v16191_v40 = vpack.c.bf16 %v9083_v61, %v9082_v39  ;;  %v8977_v39 = vld [vmem:[#allocation6 + $0x4b8] sm:$0xff]  ;;  %v18568_v61 = vld [vmem:[#allocation16 + $0xa8] sm:$0xff] }
0x162c   : > { %16086 = vmatpush3.bf16.msra.mxu1 %v16083_v62  ;;  %v16195_v62 = vpack.c.bf16 %v9085_v7, %v9084_v53  ;;  %v8978_v7 = vld [vmem:[#allocation6 + $0x4c0] sm:$0xff] }
0x162d   : > { %16088 = vmatprep.subr.bf16.mxu1 %v16087_v0 }
0x1630   : > { %16090 = vmatpush3.bf16.msra.mxu1 %v16087_v0  ;;  %v16199_v0 = vpack.c.bf16 %v9087_v29, %v9086_v63  ;;  %v18576_v63 = vld [vmem:[#allocation16 + $0xb8] sm:$0xff] }
0x1631   : > { %16092 = vmatprep.subr.bf16.mxu1 %v16091_v5 }
0x1634   : > { %16094 = vmatpush3.bf16.msra.mxu1 %v16091_v5  ;;  %v16203_v5 = vpack.c.bf16 %v9089_v4, %v9088_v1  ;;  %v8981_v1 = vld [vmem:[#allocation6 + $0x4d8] sm:$0xff] }
0x1635   : > { %16096 = vmatprep.subr.bf16.mxu1 %v16095_v14 }
0x1638   : > { %16098 = vmatpush3.bf16.msra.mxu1 %v16095_v14  ;;  %v16207_v14 = vpack.c.bf16 %v9091_v47, %v9090_v60  ;;  %v8983_v60 = vld [vmem:[#allocation6 + $0x4e8] sm:$0xff] }
0x1639   : > { %16100 = vmatprep.subr.bf16.mxu1 %v16099_v17 }
0x163c   : > { %16102 = vmatpush3.bf16.msra.mxu1 %v16099_v17  ;;  %v16215_v17 = vpack.c.bf16 %v9095_v34, %v9094_v32  ;;  %v9097_v32 = vld [vmem:[#allocation6 + $0x578] sm:$0xff] }
0x16f2   : > { %v13628_v20 = vpop.f32.mrb[88].mxu1 }
0x16f3   : > { %v8420_v51 = vmax.f32 %v13628_v20, 0.0  ;;  %v8390_v21 = vpop.f32.mrb[89].mxu1 }
0x16f4   : > { %v8419_v22 = vmax.f32 %v8390_v21, 0.0 }
0x16f5   : > { %v18500_v25 = vadd.f32 %v17989_v28, %v8420_v51 }
0x16f6   : > { %v18497_v23 = vadd.f32 %v17992_v31, %v8419_v22  ;;  %v13631_v24 = vpop.f32.mrb[90].mxu1 }
0x16f7   : > { %v8422_v26 = vmax.f32 %v13631_v24, 0.0  ;;  %v8400_v59 = vpop.f32.mrb[91].mxu1  ;;  %v18536_v24 = vld [vmem:[#allocation16 + $0x38] sm:$0xff] }
0x16f8   : > { %v8421_v3 = vmax.f32 %v8400_v59, 0.0  ;;  %13667 = vmatprep.mubr.f32.mxu0 %v18497_v23  ;;  %13708 = vmatprep.mubr.f32.mxu1 %v18497_v23  ;;  %v18544_v59 = vld [vmem:[#allocation16 + $0x48] sm:$0xff] }
0x16f9   : > { %13668 = vmatmul.mubr.f32.vlgmr.msra.gmra.mrb[82].mxu0 %v18500_v25  ;;  %13709 = vmatmul.mubr.f32.vlgmr.msra.gmra.mrb[94].mxu1 %v18500_v25  ;;  %v18510_v42 = vadd.f32 %v17997_v43, %v8422_v26  ;;  %v18540_v26 = vld [vmem:[#allocation16 + $0x40] sm:$0xff] }
0x16fa   : > { %v18507_v31 = vadd.f32 %v18002_v9, %v8421_v3  ;;  %16118 = vmatpush3.bf16.msra.mxu0 %v16115_v52  ;;  %v13634_v28 = vpop.f32.mrb[92].mxu1  ;;  %v18552_v3 = vld [vmem:[#allocation16 + $0x58] sm:$0xff] }
0x16fb   : > { %v8424_v41 = vmax.f32 %v13634_v28, 0.0  ;;  %v8410_v45 = vpop.f32.mrb[93].mxu1  ;;  %16120 = vmatprep.subr.bf16.mxu0 %v16119_v30 }
0x16fc   : > { %v8423_v10 = vmax.f32 %v8410_v45, 0.0  ;;  %13670 = vmatprep.mubr.f32.mxu0 %v18507_v31  ;;  %13711 = vmatprep.mubr.f32.mxu1 %v18507_v31 }
0x16fd   : > { %13671 = vmatmul.mubr.f32.gmra.mrb[84].mxu0 %v18510_v42  ;;  %13712 = vmatmul.mubr.f32.gmra.mrb[96].mxu1 %v18510_v42  ;;  %v18520_v43 = vadd.f32 %v18007_v11, %v8424_v41  ;;  %v8761_v11 = vld [vmem:[#allocation6 + $0x450] sm:$0xff] }
0x16fe   : > { %v18517_v9 = vadd.f32 %v18012_v13, %v8423_v10  ;;  %16122 = vmatpush3.bf16.msra.mxu0 %v16119_v30  ;;  %v16131_v13 = vpack.c.bf16 %v8760_v49, %v8759_v48  ;;  %v16135_v54 = vpack.c.bf16 %v8762_v15, %v8761_v11  ;;  %v18548_v30 = vld [vmem:[#allocation16 + $0x50] sm:$0xff]  ;;  %v8973_v15 = vld [vmem:[#allocation6 + $0x498] sm:$0xff] }
0x16ff   : > { %16124 = vmatprep.subr.bf16.mxu0 %v16123_v27  ;;  %v8972_v11 = vld [vmem:[#allocation6 + $0x490] sm:$0xff] }
0x1700   : > { %13673 = vmatprep.mubr.f32.mxu0 %v18517_v9  ;;  %13714 = vmatprep.mubr.f32.mxu1 %v18517_v9 }
0x1701   : > { %13674 = vmatmul.mubr.f32.gmra.mrb[86].mxu0 %v18520_v43  ;;  %13715 = vmatmul.mubr.f32.gmra.mrb[98].mxu1 %v18520_v43 }
0x1702   : > { %16126 = vmatpush3.bf16.msra.mxu0 %v16123_v27  ;;  %13770 = vmatprep.mubr.f32.mxu0 %v18497_v23 }
0x1703   : > { %16128 = vmatprep.subr.bf16.mxu0 %v16127_v16  ;;  %13729 = vmatprep.mubr.msk.f32.mxu1 %vm922_vm1, %v18527_v50 }
0x1706   : > { %16130 = vmatpush3.bf16.msra.mxu0 %v16127_v16 }
0x1707   : > { %16132 = vmatprep.subr.bf16.mxu0 %v16131_v13 }
0x170a   : > { %16134 = vmatpush3.bf16.msra.mxu0 %v16131_v13  ;;  %v16159_v13 = vpack.c.bf16 %v8971_v46, %v8970_v2 }
0x170b   : > { %16136 = vmatprep.subr.bf16.mxu0 %v16135_v54 }
0x170e   : > { %16138 = vmatpush3.bf16.msra.mxu0 %v16135_v54  ;;  %v16163_v54 = vpack.c.bf16 %v8973_v15, %v8972_v11 }
0x170f   : > { %16140 = vmatprep.subr.bf16.mxu0 %v16139_v56 }
0x1712   : > { %16142 = vmatpush3.bf16.msra.mxu0 %v16139_v56  ;;  %v18560_v56 = vld [vmem:[#allocation16 + $0x98] sm:$0xff] }
0x1713   : > { %16144 = vmatprep.subr.bf16.mxu0 %v16143_v37 }
0x1716   : > { %16146 = vmatpush3.bf16.msra.mxu0 %v16143_v37  ;;  %v8976_v37 = vld [vmem:[#allocation6 + $0x4b0] sm:$0xff] }
0x1717   : > { %16192 = vmatprep.subr.bf16.mxu0 %v16191_v40  ;;  %v16171_v53 = vpack.c.bf16 %v8977_v39, %v8976_v37  ;;  %v9300_v37 = vld [vmem:[#allocation6 + $0x5d8] sm:$0xff] }
0x1719   : > { %13771 = vmatmul.mubr.f32.vlgmr.msra.gmra.mrb[88].mxu0 %v18500_v25 }
0x171a   : > { %13773 = vmatprep.mubr.f32.mxu0 %v18507_v31  ;;  %16194 = vmatpush3.bf16.msra.mxu0 %v16191_v40  ;;  %v18572_v40 = vld [vmem:[#allocation16 + $0xb0] sm:$0xff] }
0x171b   : > { %16196 = vmatprep.subr.bf16.mxu0 %v16195_v62 }
0x171d   : > { %13774 = vmatmul.mubr.f32.gmra.mrb[90].mxu0 %v18510_v42 }
0x171e   : > { %13776 = vmatprep.mubr.f32.mxu0 %v18517_v9  ;;  %16198 = vmatpush3.bf16.msra.mxu0 %v16195_v62  ;;  %v8979_v62 = vld [vmem:[#allocation6 + $0x4c8] sm:$0xff] }
0x171f   : > { %16200 = vmatprep.subr.bf16.mxu0 %v16199_v0  ;;  %v16175_v29 = vpack.c.bf16 %v8979_v62, %v8978_v7  ;;  %v9302_v7 = vld [vmem:[#allocation6 + $0x5e8] sm:$0xff] }
0x1721   : > { %13777 = vmatmul.mubr.f32.gmra.mrb[92].mxu0 %v18520_v43 }
0x1722   : > { %16202 = vmatpush3.bf16.msra.mxu0 %v16199_v0  ;;  %v8980_v0 = vld [vmem:[#allocation6 + $0x4d0] sm:$0xff] }
0x1723   : > { %16204 = vmatprep.subr.bf16.mxu0 %v16203_v5  ;;  %v16179_v4 = vpack.c.bf16 %v8981_v1, %v8980_v0  ;;  %v9304_v0 = vld [vmem:[#allocation6 + $0x5f8] sm:$0xff] }
0x1726   : > { %16206 = vmatpush3.bf16.msra.mxu0 %v16203_v5  ;;  %v8982_v5 = vld [vmem:[#allocation6 + $0x4e0] sm:$0xff] }
0x1727   : > { %16208 = vmatprep.subr.bf16.mxu0 %v16207_v14  ;;  %v16183_v47 = vpack.c.bf16 %v8983_v60, %v8982_v5  ;;  %v9627_v5 = vld [vmem:[#allocation6 + $0x688] sm:$0xff] }
0x172a   : > { %16210 = vmatpush3.bf16.msra.mxu0 %v16207_v14  ;;  %v8984_v14 = vld [vmem:[#allocation6 + $0x4f0] sm:$0xff] }
0x172b   : > { %16212 = vmatprep.subr.bf16.mxu0 %v16211_v8  ;;  %v16187_v12 = vpack.c.bf16 %v8985_v6, %v8984_v14  ;;  %v9629_v14 = vld [vmem:[#allocation6 + $0x698] sm:$0xff] }
0x172e   : > { %16214 = vmatpush3.bf16.msra.mxu0 %v16211_v8  ;;  %v9096_v8 = vld [vmem:[#allocation6 + $0x570] sm:$0xff] }
0x172f   : > { %16216 = vmatprep.subr.bf16.mxu0 %v16215_v17  ;;  %v16219_v34 = vpack.c.bf16 %v9097_v32, %v9096_v8  ;;  %v9631_v8 = vld [vmem:[#allocation6 + $0x6a8] sm:$0xff] }
0x1732   : > { %16218 = vmatpush3.bf16.msra.mxu0 %v16215_v17  ;;  %v9289_v17 = vld [vmem:[#allocation6 + $0x580] sm:$0xff] }
0x1733   : > { %16220 = vmatprep.subr.bf16.mxu0 %v16219_v34 }
0x1736   : > { %16222 = vmatpush3.bf16.msra.mxu0 %v16219_v34  ;;  %v9632_v34 = vld [vmem:[#allocation6 + $0x6b0] sm:$0xff] }
0x17cc   : > { %v13669_v18 = vpop.f32.mrb[82].mxu0 }
0x17cd   : > { %v8514_v19 = vpop.f32.mrb[83].mxu0 }
0x17ce   : > { %v16103_v52 = vpack.c.bf16 %v13669_v18, %v8514_v19  ;;  %v9290_v18 = vld [vmem:[#allocation6 + $0x588] sm:$0xff] }
0x17cf   : > { %v16235_v19 = vpack.c.bf16 %v9290_v18, %v9289_v17  ;;  %v9633_v17 = vld [vmem:[#allocation6 + $0x6b8] sm:$0xff] }
0x17d0   : > { %v13672_v20 = vpop.f32.mrb[84].mxu0  ;;  %16104 = vmatprep.subr.bf16.mxu1 %v16103_v52  ;;  %v16323_v18 = vpack.c.bf16 %v9633_v17, %v9632_v34  ;;  %v9525_v34 = vld [vmem:[#allocation6 + $0x658] sm:$0xff] }
0x17d1   : > { %v8524_v51 = vpop.f32.mrb[85].mxu0  ;;  %16106 = vmatpush3.bf16.msra.mxu1 %v16103_v52 }
0x17d2   : > { %v16107_v21 = vpack.c.bf16 %v13672_v20, %v8524_v51  ;;  %v9291_v20 = vld [vmem:[#allocation6 + $0x590] sm:$0xff]  ;;  %v9292_v51 = vld [vmem:[#allocation6 + $0x598] sm:$0xff] }
0x17d4   : > { %v13675_v22 = vpop.f32.mrb[86].mxu0  ;;  %16108 = vmatprep.subr.bf16.mxu1 %v16107_v21 }
0x17d5   : > { %v8534_v38 = vpop.f32.mrb[87].mxu0  ;;  %16110 = vmatpush3.bf16.msra.mxu1 %v16107_v21 }
0x17d6   : > { %v16111_v44 = vpack.c.bf16 %v13675_v22, %v8534_v38 }
0x17d8   : > { %16112 = vmatprep.subr.bf16.mxu1 %v16111_v44 }
0x17d9   : > { %16114 = vmatpush3.bf16.msra.mxu1 %v16111_v44  ;;  %v16239_v44 = vpack.c.bf16 %v9292_v51, %v9291_v20  ;;  %v9636_v51 = vld [vmem:[#allocation6 + $0x6d0] sm:$0xff] }
0x17dc   : > { %13730 = vmatmul.mubr.msk.f32.vlgmr.msra.gmra.mrb[94].mxu1 %vm922_vm1, %v18536_v24 }
0x17dd   : > { %13732 = vmatprep.mubr.msk.f32.mxu1 %vm922_vm1, %v18540_v26 }
0x17e0   : > { %13733 = vmatmul.mubr.msk.f32.gmra.mrb[96].mxu1 %vm922_vm1, %v18544_v59 }
0x17e1   : > { %13735 = vmatprep.mubr.msk.f32.mxu1 %vm922_vm1, %v18548_v30 }
0x17e4   : > { %13736 = vmatmul.mubr.msk.f32.gmra.mrb[98].mxu1 %vm922_vm1, %v18552_v3 }
0x17e5   : > { %13791 = vmatprep.mubr.msk.f32.mxu1 %vm922_vm1, %v18556_v33 }
0x17ec   : > { %v13772_v36 = vpop.f32.mrb[88].mxu0 }
0x17ed   : > { %v8833_v28 = vpop.f32.mrb[89].mxu0 }
0x17ee   : > { %v16147_v41 = vpack.c.bf16 %v13772_v36, %v8833_v28  ;;  %v9293_v28 = vld [vmem:[#allocation6 + $0x5a0] sm:$0xff] }
0x17f0   : > { %v13775_v45 = vpop.f32.mrb[90].mxu0  ;;  %16148 = vmatprep.subr.bf16.mxu1 %v16147_v41 }
0x17f1   : > { %v8843_v27 = vpop.f32.mrb[91].mxu0  ;;  %16150 = vmatpush3.bf16.msra.mxu1 %v16147_v41  ;;  %v9294_v41 = vld [vmem:[#allocation6 + $0x5a8] sm:$0xff] }
0x17f2   : > { %v16151_v10 = vpack.c.bf16 %v13775_v45, %v8843_v27  ;;  %v16243_v2 = vpack.c.bf16 %v9294_v41, %v9293_v28 }
0x17f4   : > { %v13778_v16 = vpop.f32.mrb[92].mxu0  ;;  %16152 = vmatprep.subr.bf16.mxu1 %v16151_v10 }
0x17f5   : > { %v8853_v48 = vpop.f32.mrb[93].mxu0  ;;  %16154 = vmatpush3.bf16.msra.mxu1 %v16151_v10 }
0x17f6   : > { %v16155_v49 = vpack.c.bf16 %v13778_v16, %v8853_v48  ;;  %v9295_v16 = vld [vmem:[#allocation6 + $0x5b0] sm:$0xff]  ;;  %v9296_v48 = vld [vmem:[#allocation6 + $0x5b8] sm:$0xff] }
0x17f7   : > { %v16247_v15 = vpack.c.bf16 %v9296_v48, %v9295_v16 }
0x17f8   : > { %16156 = vmatprep.subr.bf16.mxu1 %v16155_v49 }
0x17f9   : > { %16158 = vmatpush3.bf16.msra.mxu1 %v16155_v49 }
0x17fa   : > { %16160 = vmatprep.subr.bf16.mxu1 %v16159_v13 }
0x17fc   : > { %13792 = vmatmul.mubr.msk.f32.vlgmr.msra.gmra.mrb[94].mxu1 %vm922_vm1, %v18560_v56 }
0x17fd   : > { %13794 = vmatprep.mubr.msk.f32.mxu1 %vm922_vm1, %v18564_v58  ;;  %16162 = vmatpush3.bf16.msra.mxu1 %v16159_v13 }
0x17fe   : > { %16164 = vmatprep.subr.bf16.mxu1 %v16163_v54 }
0x1800   : > { %13795 = vmatmul.mubr.msk.f32.gmra.mrb[96].mxu1 %vm922_vm1, %v18568_v61 }
0x1801   : > { %13797 = vmatprep.mubr.msk.f32.mxu1 %vm922_vm1, %v18572_v40  ;;  %16166 = vmatpush3.bf16.msra.mxu1 %v16163_v54  ;;  %v9297_v54 = vld [vmem:[#allocation6 + $0x5c0] sm:$0xff] }
0x1802   : > { %16168 = vmatprep.subr.bf16.mxu1 %v16167_v35  ;;  %v16251_v57 = vpack.c.bf16 %v9298_v55, %v9297_v54 }
0x1804   : > { %13798 = vmatmul.mubr.msk.f32.gmra.mrb[98].mxu1 %vm922_vm1, %v18576_v63 }
0x1805   : > { %16170 = vmatpush3.bf16.msra.mxu1 %v16167_v35  ;;  %v9299_v35 = vld [vmem:[#allocation6 + $0x5d0] sm:$0xff] }
0x1806   : > { %16172 = vmatprep.subr.bf16.mxu1 %v16171_v53  ;;  %v16255_v39 = vpack.c.bf16 %v9300_v37, %v9299_v35  ;;  %v9515_v35 = vld [vmem:[#allocation6 + $0x608] sm:$0xff] }
0x1809   : > { %16174 = vmatpush3.bf16.msra.mxu1 %v16171_v53  ;;  %v9301_v53 = vld [vmem:[#allocation6 + $0x5e0] sm:$0xff] }
0x180a   : > { %16176 = vmatprep.subr.bf16.mxu1 %v16175_v29  ;;  %v16259_v62 = vpack.c.bf16 %v9302_v7, %v9301_v53 }
0x180d   : > { %16178 = vmatpush3.bf16.msra.mxu1 %v16175_v29  ;;  %v9303_v29 = vld [vmem:[#allocation6 + $0x5f0] sm:$0xff] }
0x180e   : > { %16180 = vmatprep.subr.bf16.mxu1 %v16179_v4  ;;  %v16263_v1 = vpack.c.bf16 %v9304_v0, %v9303_v29  ;;  %v9517_v29 = vld [vmem:[#allocation6 + $0x618] sm:$0xff] }
0x1811   : > { %16182 = vmatpush3.bf16.msra.mxu1 %v16179_v4  ;;  %v9626_v4 = vld [vmem:[#allocation6 + $0x680] sm:$0xff] }
0x1812   : > { %16184 = vmatprep.subr.bf16.mxu1 %v16183_v47  ;;  %v16311_v60 = vpack.c.bf16 %v9627_v5, %v9626_v4  ;;  %v9519_v4 = vld [vmem:[#allocation6 + $0x628] sm:$0xff] }
0x1815   : > { %16186 = vmatpush3.bf16.msra.mxu1 %v16183_v47  ;;  %v9628_v47 = vld [vmem:[#allocation6 + $0x690] sm:$0xff] }
0x1816   : > { %16188 = vmatprep.subr.bf16.mxu1 %v16187_v12  ;;  %v16315_v6 = vpack.c.bf16 %v9629_v14, %v9628_v47  ;;  %v9521_v47 = vld [vmem:[#allocation6 + $0x638] sm:$0xff] }
0x1819   : > { %16190 = vmatpush3.bf16.msra.mxu1 %v16187_v12  ;;  %v9630_v12 = vld [vmem:[#allocation6 + $0x6a0] sm:$0xff] }
0x181a   : > { %16236 = vmatprep.subr.bf16.mxu1 %v16235_v19  ;;  %v16319_v32 = vpack.c.bf16 %v9631_v8, %v9630_v12  ;;  %v9523_v12 = vld [vmem:[#allocation6 + $0x648] sm:$0xff] }
0x18cf   : > { %v13793_v52 = vpop.f32.mrb[94].mxu1 }
0x18d0   : > { %v8928_v21 = vpop.f32.mrb[95].mxu1  ;;  %v8964_v38 = vmax.f32 %v13793_v52, 0.0  ;;  %v9635_v52 = vld [vmem:[#allocation6 + $0x6c8] sm:$0xff] }
0x18d1   : > { %v8963_v22 = vmax.f32 %v8928_v21, 0.0  ;;  %v9637_v21 = vld [vmem:[#allocation6 + $0x6d8] sm:$0xff] }
0x18d3   : > { %v13796_v36 = vpop.f32.mrb[96].mxu1  ;;  %13832 = vmatprep.mubr.f32.mxu1 %v8963_v22  ;;  %13873 = vmatprep.mubr.f32.mxu0 %v8963_v22 }
0x18d4   : > { %v8938_v45 = vpop.f32.mrb[97].mxu1  ;;  %13833 = vmatmul.mubr.f32.vlgmr.msra.gmra.mrb[100].mxu1 %v8964_v38  ;;  %13874 = vmatmul.mubr.f32.vlgmr.msra.gmra.mrb[94].mxu0 %v8964_v38  ;;  %v8966_v10 = vmax.f32 %v13796_v36, 0.0 }
0x18d5   : > { %v8965_v27 = vmax.f32 %v8938_v45, 0.0  ;;  %16238 = vmatpush3.bf16.msra.mxu1 %v16235_v19  ;;  %v9634_v19 = vld [vmem:[#allocation6 + $0x6c0] sm:$0xff] }
0x18d6   : > { %16240 = vmatprep.subr.bf16.mxu1 %v16239_v44  ;;  %v16327_v20 = vpack.c.bf16 %v9635_v52, %v9634_v19  ;;  %v9527_v19 = vld [vmem:[#allocation6 + $0x668] sm:$0xff] }
0x18d7   : > { %v13799_v46 = vpop.f32.mrb[98].mxu1  ;;  %13835 = vmatprep.mubr.f32.mxu1 %v8965_v27  ;;  %13876 = vmatprep.mubr.f32.mxu0 %v8965_v27 }
0x18d8   : > { %v8948_v49 = vpop.f32.mrb[99].mxu1  ;;  %13836 = vmatmul.mubr.f32.gmra.mrb[102].mxu1 %v8966_v10  ;;  %13877 = vmatmul.mubr.f32.gmra.mrb[96].mxu0 %v8966_v10  ;;  %v8968_v11 = vmax.f32 %v13799_v46, 0.0 }
0x18d9   : > { %v8967_v13 = vmax.f32 %v8948_v49, 0.0  ;;  %16242 = vmatpush3.bf16.msra.mxu1 %v16239_v44  ;;  %v9639_v44 = vld [vmem:[#allocation6 + $0x6e8] sm:$0xff] }
0x18da   : > { %16244 = vmatprep.subr.bf16.mxu1 %v16243_v2 }
0x18db   : > { %13838 = vmatprep.mubr.f32.mxu1 %v8967_v13  ;;  %13879 = vmatprep.mubr.f32.mxu0 %v8967_v13 }
0x18dc   : > { %13839 = vmatmul.mubr.f32.gmra.mrb[104].mxu1 %v8968_v11  ;;  %13880 = vmatmul.mubr.f32.gmra.mrb[98].mxu0 %v8968_v11 }
0x18dd   : > { %16246 = vmatpush3.bf16.msra.mxu1 %v16243_v2  ;;  %13935 = vmatprep.mubr.f32.mxu1 %v8963_v22  ;;  %v16331_v22 = vpack.c.bf16 %v9637_v21, %v9636_v51  ;;  %v9529_v51 = vld [vmem:[#allocation6 + $0x678] sm:$0xff] }
0x18de   : > { %16248 = vmatprep.subr.bf16.mxu1 %v16247_v15  ;;  %13894 = vmatprep.mubr.msk.f32.mxu0 %vm922_vm1, %v18527_v50 }
0x18e1   : > { %16250 = vmatpush3.bf16.msra.mxu1 %v16247_v15 }
0x18e2   : > { %16252 = vmatprep.subr.bf16.mxu1 %v16251_v57 }
0x18e5   : > { %16254 = vmatpush3.bf16.msra.mxu1 %v16251_v57  ;;  %v9514_v57 = vld [vmem:[#allocation6 + $0x600] sm:$0xff] }
0x18e6   : > { %16256 = vmatprep.subr.bf16.mxu1 %v16255_v39  ;;  %v16279_v7 = vpack.c.bf16 %v9515_v35, %v9514_v57  ;;  %v9838_v57 = vld [vmem:[#allocation6 + $0x728] sm:$0xff] }
0x18e9   : > { %16258 = vmatpush3.bf16.msra.mxu1 %v16255_v39 }
0x18ea   : > { %16260 = vmatprep.subr.bf16.mxu1 %v16259_v62 }
0x18ed   : > { %16262 = vmatpush3.bf16.msra.mxu1 %v16259_v62  ;;  %v9516_v62 = vld [vmem:[#allocation6 + $0x610] sm:$0xff] }
0x18ee   : > { %16264 = vmatprep.subr.bf16.mxu1 %v16263_v1  ;;  %v16283_v0 = vpack.c.bf16 %v9517_v29, %v9516_v62  ;;  %v9840_v62 = vld [vmem:[#allocation6 + $0x738] sm:$0xff] }
0x18f1   : > { %16266 = vmatpush3.bf16.msra.mxu1 %v16263_v1  ;;  %v9518_v1 = vld [vmem:[#allocation6 + $0x620] sm:$0xff] }
0x18f2   : > { %16312 = vmatprep.subr.bf16.mxu1 %v16311_v60  ;;  %v16287_v5 = vpack.c.bf16 %v9519_v4, %v9518_v1  ;;  %v9842_v1 = vld [vmem:[#allocation6 + $0x748] sm:$0xff] }
0x18f4   : > { %13936 = vmatmul.mubr.f32.vlgmr.msra.gmra.mrb[106].mxu1 %v8964_v38  ;;  %v9638_v38 = vld [vmem:[#allocation6 + $0x6e0] sm:$0xff] }
0x18f5   : > { %13938 = vmatprep.mubr.f32.mxu1 %v8965_v27  ;;  %16314 = vmatpush3.bf16.msra.mxu1 %v16311_v60  ;;  %v16335_v36 = vpack.c.bf16 %v9639_v44, %v9638_v38  ;;  %v9520_v60 = vld [vmem:[#allocation6 + $0x630] sm:$0xff]  ;;  %v9641_v38 = vld [vmem:[#allocation6 + $0x6f8] sm:$0xff] }
0x18f6   : > { %16316 = vmatprep.subr.bf16.mxu1 %v16315_v6  ;;  %v16291_v14 = vpack.c.bf16 %v9521_v47, %v9520_v60  ;;  %v9844_v60 = vld [vmem:[#allocation6 + $0x758] sm:$0xff] }
0x18f8   : > { %13939 = vmatmul.mubr.f32.gmra.mrb[108].mxu1 %v8966_v10 }
0x18f9   : > { %13941 = vmatprep.mubr.f32.mxu1 %v8967_v13  ;;  %16318 = vmatpush3.bf16.msra.mxu1 %v16315_v6  ;;  %v9522_v6 = vld [vmem:[#allocation6 + $0x640] sm:$0xff] }
0x18fa   : > { %16320 = vmatprep.subr.bf16.mxu1 %v16319_v32  ;;  %v16295_v8 = vpack.c.bf16 %v9523_v12, %v9522_v6  ;;  %v9846_v6 = vld [vmem:[#allocation6 + $0x768] sm:$0xff] }
0x18fc   : > { %13942 = vmatmul.mubr.f32.gmra.mrb[110].mxu1 %v8968_v11 }
0x18fd   : > { %16322 = vmatpush3.bf16.msra.mxu1 %v16319_v32  ;;  %v9524_v32 = vld [vmem:[#allocation6 + $0x650] sm:$0xff] }
0x18fe   : > { %16324 = vmatprep.subr.bf16.mxu1 %v16323_v18  ;;  %v16299_v17 = vpack.c.bf16 %v9525_v34, %v9524_v32  ;;  %v9848_v32 = vld [vmem:[#allocation6 + $0x778] sm:$0xff] }
0x1901   : > { %16326 = vmatpush3.bf16.msra.mxu1 %v16323_v18  ;;  %v9526_v18 = vld [vmem:[#allocation6 + $0x660] sm:$0xff] }
0x1902   : > { %16328 = vmatprep.subr.bf16.mxu1 %v16327_v20  ;;  %v16303_v52 = vpack.c.bf16 %v9527_v19, %v9526_v18  ;;  %v10166_v19 = vld [vmem:[#allocation6 + $0x810] sm:$0xff] }
0x1905   : > { %16330 = vmatpush3.bf16.msra.mxu1 %v16327_v20  ;;  %v9528_v20 = vld [vmem:[#allocation6 + $0x670] sm:$0xff] }
0x1906   : > { %16332 = vmatprep.subr.bf16.mxu1 %v16331_v22  ;;  %v16307_v21 = vpack.c.bf16 %v9529_v51, %v9528_v20  ;;  %v10168_v51 = vld [vmem:[#allocation6 + $0x820] sm:$0xff] }
0x1909   : > { %16334 = vmatpush3.bf16.msra.mxu1 %v16331_v22  ;;  %v9640_v22 = vld [vmem:[#allocation6 + $0x6f0] sm:$0xff] }
0x190a   : > { %16336 = vmatprep.subr.bf16.mxu1 %v16335_v36  ;;  %v16339_v44 = vpack.c.bf16 %v9641_v38, %v9640_v22  ;;  %v10170_v38 = vld [vmem:[#allocation6 + $0x830] sm:$0xff] }
0x190d   : > { %16338 = vmatpush3.bf16.msra.mxu1 %v16335_v36  ;;  %v9833_v36 = vld [vmem:[#allocation6 + $0x700] sm:$0xff] }
0x190e   : > { %16340 = vmatprep.subr.bf16.mxu1 %v16339_v44 }
0x1911   : > { %16342 = vmatpush3.bf16.msra.mxu1 %v16339_v44  ;;  %v10171_v44 = vld [vmem:[#allocation6 + $0x838] sm:$0xff] }
0x19a7   : > { %v13834_v28 = vpop.f32.mrb[100].mxu1 }
0x19a8   : > { %v9052_v41 = vpop.f32.mrb[101].mxu1 }
0x19a9   : > { %v16223_v45 = vpack.c.bf16 %v13834_v28, %v9052_v41  ;;  %v9834_v28 = vld [vmem:[#allocation6 + $0x708] sm:$0xff] }
0x19aa   : > { %v16355_v41 = vpack.c.bf16 %v9834_v28, %v9833_v36  ;;  %v16443_v36 = vpack.c.bf16 %v10171_v44, %v10170_v38  ;;  %v10172_v28 = vld [vmem:[#allocation6 + $0x840] sm:$0xff]  ;;  %v10372_v38 = vld [vmem:[#allocation6 + $0x888] sm:$0xff] }
0x19ab   : > { %v13837_v27 = vpop.f32.mrb[102].mxu1  ;;  %16224 = vmatprep.subr.bf16.mxu0 %v16223_v45 }
0x19ac   : > { %v9062_v10 = vpop.f32.mrb[103].mxu1  ;;  %16226 = vmatpush3.bf16.msra.mxu0 %v16223_v45 }
0x19ad   : > { %v16227_v2 = vpack.c.bf16 %v13837_v27, %v9062_v10 }
0x19af   : > { %v13840_v46 = vpop.f32.mrb[104].mxu1  ;;  %16228 = vmatprep.subr.bf16.mxu0 %v16227_v2 }
0x19b0   : > { %v9072_v16 = vpop.f32.mrb[105].mxu1  ;;  %16230 = vmatpush3.bf16.msra.mxu0 %v16227_v2 }
0x19b1   : > { %v16231_v48 = vpack.c.bf16 %v13840_v46, %v9072_v16  ;;  %v9835_v46 = vld [vmem:[#allocation6 + $0x710] sm:$0xff]  ;;  %v9836_v16 = vld [vmem:[#allocation6 + $0x718] sm:$0xff] }
0x19b3   : > { %16232 = vmatprep.subr.bf16.mxu0 %v16231_v48 }
0x19b4   : > { %16234 = vmatpush3.bf16.msra.mxu0 %v16231_v48 }
0x19b7   : > { %13895 = vmatmul.mubr.msk.f32.vlgmr.msra.gmra.mrb[94].mxu0 %vm922_vm1, %v18536_v24 }
0x19b8   : > { %13897 = vmatprep.mubr.msk.f32.mxu0 %vm922_vm1, %v18540_v26 }
0x19bb   : > { %13898 = vmatmul.mubr.msk.f32.gmra.mrb[96].mxu0 %vm922_vm1, %v18544_v59 }
0x19bc   : > { %13900 = vmatprep.mubr.msk.f32.mxu0 %vm922_vm1, %v18548_v30 }
0x19bf   : > { %13901 = vmatmul.mubr.msk.f32.gmra.mrb[98].mxu0 %vm922_vm1, %v18552_v3 }
0x19c0   : > { %13956 = vmatprep.mubr.msk.f32.mxu0 %vm922_vm1, %v18556_v33 }
0x19c7   : > { %v13937_v49 = vpop.f32.mrb[106].mxu1 }
0x19c8   : > { %v9371_v13 = vpop.f32.mrb[107].mxu1 }
0x19c9   : > { %v16267_v11 = vpack.c.bf16 %v13937_v49, %v9371_v13 }
0x19cb   : > { %v13940_v15 = vpop.f32.mrb[108].mxu1  ;;  %16268 = vmatprep.subr.bf16.mxu0 %v16267_v11 }
0x19cc   : > { %v9381_v54 = vpop.f32.mrb[109].mxu1  ;;  %16270 = vmatpush3.bf16.msra.mxu0 %v16267_v11 }
0x19cd   : > { %v16271_v55 = vpack.c.bf16 %v13940_v15, %v9381_v54  ;;  %v16359_v54 = vpack.c.bf16 %v9836_v16, %v9835_v46  ;;  %v10176_v46 = vld [vmem:[#allocation6 + $0x860] sm:$0xff]  ;;  %v10177_v16 = vld [vmem:[#allocation6 + $0x868] sm:$0xff] }
0x19cf   : > { %v13943_v37 = vpop.f32.mrb[110].mxu1  ;;  %16272 = vmatprep.subr.bf16.mxu0 %v16271_v55 }
0x19d0   : > { %v9391_v39 = vpop.f32.mrb[111].mxu1  ;;  %16274 = vmatpush3.bf16.msra.mxu0 %v16271_v55 }
0x19d1   : > { %v16275_v53 = vpack.c.bf16 %v13943_v37, %v9391_v39 }
0x19d3   : > { %16276 = vmatprep.subr.bf16.mxu0 %v16275_v53 }
0x19d4   : > { %16278 = vmatpush3.bf16.msra.mxu0 %v16275_v53 }
0x19d5   : > { %16280 = vmatprep.subr.bf16.mxu0 %v16279_v7 }
0x19d7   : > { %13957 = vmatmul.mubr.msk.f32.vlgmr.msra.gmra.mrb[94].mxu0 %vm922_vm1, %v18560_v56 }
0x19d8   : > { %13959 = vmatprep.mubr.msk.f32.mxu0 %vm922_vm1, %v18564_v58  ;;  %16282 = vmatpush3.bf16.msra.mxu0 %v16279_v7  ;;  %v9839_v7 = vld [vmem:[#allocation6 + $0x730] sm:$0xff] }
0x19d9   : > { %16284 = vmatprep.subr.bf16.mxu0 %v16283_v0 }
0x19db   : > { %13960 = vmatmul.mubr.msk.f32.gmra.mrb[96].mxu0 %vm922_vm1, %v18568_v61 }
0x19dc   : > { %13962 = vmatprep.mubr.msk.f32.mxu0 %vm922_vm1, %v18572_v40  ;;  %16286 = vmatpush3.bf16.msra.mxu0 %v16283_v0 }
0x19dd   : > { %16288 = vmatprep.subr.bf16.mxu0 %v16287_v5 }
0x19df   : > { %13963 = vmatmul.mubr.msk.f32.gmra.mrb[98].mxu0 %vm922_vm1, %v18576_v63 }
0x19e0   : > { %16290 = vmatpush3.bf16.msra.mxu0 %v16287_v5  ;;  %v9843_v5 = vld [vmem:[#allocation6 + $0x750] sm:$0xff] }
0x19e1   : > { %16292 = vmatprep.subr.bf16.mxu0 %v16291_v14  ;;  %v16375_v47 = vpack.c.bf16 %v9844_v60, %v9843_v5  ;;  %v10055_v5 = vld [vmem:[#allocation6 + $0x798] sm:$0xff]  ;;  %v10056_v60 = vld [vmem:[#allocation6 + $0x7a0] sm:$0xff] }
0x19e4   : > { %16294 = vmatpush3.bf16.msra.mxu0 %v16291_v14  ;;  %v9845_v14 = vld [vmem:[#allocation6 + $0x760] sm:$0xff] }
0x19e5   : > { %16296 = vmatprep.subr.bf16.mxu0 %v16295_v8  ;;  %v16379_v12 = vpack.c.bf16 %v9846_v6, %v9845_v14  ;;  %v10058_v6 = vld [vmem:[#allocation6 + $0x7b0] sm:$0xff] }
0x19e8   : > { %16298 = vmatpush3.bf16.msra.mxu0 %v16295_v8  ;;  %v9847_v8 = vld [vmem:[#allocation6 + $0x770] sm:$0xff] }
0x19e9   : > { %16300 = vmatprep.subr.bf16.mxu0 %v16299_v17  ;;  %v16383_v34 = vpack.c.bf16 %v9848_v32, %v9847_v8  ;;  %v10060_v32 = vld [vmem:[#allocation6 + $0x7c0] sm:$0xff] }
0x19ec   : > { %16302 = vmatpush3.bf16.msra.mxu0 %v16299_v17  ;;  %v10165_v17 = vld [vmem:[#allocation6 + $0x808] sm:$0xff] }
0x19ed   : > { %16304 = vmatprep.subr.bf16.mxu0 %v16303_v52 }
0x19f0   : > { %16306 = vmatpush3.bf16.msra.mxu0 %v16303_v52  ;;  %v10167_v52 = vld [vmem:[#allocation6 + $0x818] sm:$0xff] }
0x19f1   : > { %16308 = vmatprep.subr.bf16.mxu0 %v16307_v21  ;;  %v16435_v20 = vpack.c.bf16 %v10167_v52, %v10166_v19  ;;  %v10066_v19 = vld [vmem:[#allocation6 + $0x7f0] sm:$0xff]  ;;  %v10067_v52 = vld [vmem:[#allocation6 + $0x7f8] sm:$0xff] }
0x19f4   : > { %16310 = vmatpush3.bf16.msra.mxu0 %v16307_v21  ;;  %v10169_v21 = vld [vmem:[#allocation6 + $0x828] sm:$0xff] }
0x19f5   : > { %16356 = vmatprep.subr.bf16.mxu0 %v16355_v41  ;;  %v16439_v22 = vpack.c.bf16 %v10169_v21, %v10168_v51  ;;  %v10179_v51 = vld [vmem:[#allocation6 + $0x878] sm:$0xff] }
0x1aaa   : > { %v13958_v45 = vpop.f32.mrb[94].mxu0 }
0x1aab   : > { %v9502_v27 = vadd.f32 %v13958_v45, %v18500_v25  ;;  %v9466_v10 = vpop.f32.mrb[95].mxu0  ;;  %v9837_v25 = vld [vmem:[#allocation6 + $0x720] sm:$0xff] }
0x1aac   : > { %v9501_v2 = vadd.f32 %v9466_v10, %v18497_v23  ;;  %v10175_v10 = vld [vmem:[#allocation6 + $0x858] sm:$0xff] }
0x1aad   : > { %v18608_v13 = vmax.f32 %v9502_v27, 0.0  ;;  %v10174_v27 = vld [vmem:[#allocation6 + $0x850] sm:$0xff] }
0x1aae   : > { %v18606_v48 = vmax.f32 %v9501_v2, 0.0  ;;  %v13961_v49 = vpop.f32.mrb[96].mxu0  ;;  %v16451_v2 = vpack.c.bf16 %v10175_v10, %v10174_v27 }
0x1aaf   : > { %v9504_v11 = vadd.f32 %v13961_v49, %v18510_v42  ;;  %v9476_v15 = vpop.f32.mrb[97].mxu0  ;;  %v16455_v49 = vpack.c.bf16 %v10177_v16, %v10176_v46  ;;  %v10375_v16 = vld [vmem:[#allocation6 + $0x8a0] sm:$0xff] }
0x1ab0   : > { %v9503_v55 = vadd.f32 %v9476_v15, %v18507_v31  ;;  %13997 = vmatprep.mubr.f32.mxu0 %v18606_v48  ;;  %14038 = vmatprep.mubr.f32.mxu1 %v18606_v48  ;;  %v16363_v31 = vpack.c.bf16 %v9838_v57, %v9837_v25 }
0x1ab1   : > { %13998 = vmatmul.mubr.f32.vlgmr.msra.gmra.mrb[100].mxu0 %v18608_v13  ;;  %14039 = vmatmul.mubr.f32.vlgmr.msra.gmra.mrb[112].mxu1 %v18608_v13  ;;  %v18618_v37 = vmax.f32 %v9504_v11, 0.0 }
0x1ab2   : > { %v18616_v23 = vmax.f32 %v9503_v55, 0.0  ;;  %16358 = vmatpush3.bf16.msra.mxu0 %v16355_v41  ;;  %v13964_v35 = vpop.f32.mrb[98].mxu0  ;;  %v10173_v41 = vld [vmem:[#allocation6 + $0x848] sm:$0xff] }
0x1ab3   : > { %v9506_v42 = vadd.f32 %v13964_v35, %v18520_v43  ;;  %v9486_v39 = vpop.f32.mrb[99].mxu0  ;;  %16360 = vmatprep.subr.bf16.mxu0 %v16359_v54  ;;  %v16367_v43 = vpack.c.bf16 %v9840_v62, %v9839_v7  ;;  %v16447_v45 = vpack.c.bf16 %v10173_v41, %v10172_v28  ;;  %v10373_v28 = vld [vmem:[#allocation6 + $0x890] sm:$0xff]  ;;  %v10374_v41 = vld [vmem:[#allocation6 + $0x898] sm:$0xff] }
0x1ab4   : > { %v9505_v53 = vadd.f32 %v9486_v39, %v18517_v9  ;;  %14000 = vmatprep.mubr.f32.mxu0 %v18616_v23  ;;  %14041 = vmatprep.mubr.f32.mxu1 %v18616_v23  ;;  %v9841_v9 = vld [vmem:[#allocation6 + $0x740] sm:$0xff] }
0x1ab5   : > { %14001 = vmatmul.mubr.f32.gmra.mrb[102].mxu0 %v18618_v37  ;;  %14042 = vmatmul.mubr.f32.gmra.mrb[114].mxu1 %v18618_v37  ;;  %v18628_v0 = vmax.f32 %v9506_v42, 0.0  ;;  %v16371_v4 = vpack.c.bf16 %v9842_v1, %v9841_v9  ;;  %v10053_v9 = vld [vmem:[#allocation6 + $0x788] sm:$0xff] }
0x1ab6   : > { %v18626_v29 = vmax.f32 %v9505_v53, 0.0  ;;  %16362 = vmatpush3.bf16.msra.mxu0 %v16359_v54 }
0x1ab7   : > { %16364 = vmatprep.subr.bf16.mxu0 %v16363_v31 }
0x1ab8   : > { %14003 = vmatprep.mubr.f32.mxu0 %v18626_v29  ;;  %14044 = vmatprep.mubr.f32.mxu1 %v18626_v29 }
0x1ab9   : > { %14004 = vmatmul.mubr.f32.gmra.mrb[104].mxu0 %v18628_v0  ;;  %14045 = vmatmul.mubr.f32.gmra.mrb[116].mxu1 %v18628_v0 }
0x1aba   : > { %16366 = vmatpush3.bf16.msra.mxu0 %v16363_v31  ;;  %14100 = vmatprep.mubr.f32.mxu0 %v18606_v48 }
0x1abb   : > { %16368 = vmatprep.subr.bf16.mxu0 %v16367_v43  ;;  %14059 = vmatprep.mubr.msk.f32.mxu1 %vm922_vm1, %v18527_v50  ;;  %v10164_v50 = vld [vmem:[#allocation6 + $0x800] sm:$0xff] }
0x1abc   : > { %v16431_v18 = vpack.c.bf16 %v10165_v17, %v10164_v50  ;;  %v10063_v50 = vld [vmem:[#allocation6 + $0x7d8] sm:$0xff] }
0x1abe   : > { %16370 = vmatpush3.bf16.msra.mxu0 %v16367_v43  ;;  %v10052_v43 = vld [vmem:[#allocation6 + $0x780] sm:$0xff] }
0x1abf   : > { %16372 = vmatprep.subr.bf16.mxu0 %v16371_v4 }
0x1ac2   : > { %16374 = vmatpush3.bf16.msra.mxu0 %v16371_v4  ;;  %v16399_v4 = vpack.c.bf16 %v10053_v9, %v10052_v43  ;;  %v10381_v43 = vld [vmem:[#allocation6 + $0x8d0] sm:$0xff]  ;;  %v10382_v9 = vld [vmem:[#allocation6 + $0x8d8] sm:$0xff] }
0x1ac3   : > { %16376 = vmatprep.subr.bf16.mxu0 %v16375_v47 }
0x1ac6   : > { %16378 = vmatpush3.bf16.msra.mxu0 %v16375_v47  ;;  %v10057_v47 = vld [vmem:[#allocation6 + $0x7a8] sm:$0xff] }
0x1ac7   : > { %16380 = vmatprep.subr.bf16.mxu0 %v16379_v12  ;;  %v16407_v14 = vpack.c.bf16 %v10057_v47, %v10056_v60 }
0x1aca   : > { %16382 = vmatpush3.bf16.msra.mxu0 %v16379_v12  ;;  %v10059_v12 = vld [vmem:[#allocation6 + $0x7b8] sm:$0xff] }
0x1acb   : > { %16384 = vmatprep.subr.bf16.mxu0 %v16383_v34  ;;  %v16411_v8 = vpack.c.bf16 %v10059_v12, %v10058_v6 }
0x1ace   : > { %16386 = vmatpush3.bf16.msra.mxu0 %v16383_v34  ;;  %v10061_v34 = vld [vmem:[#allocation6 + $0x7c8] sm:$0xff] }
0x1acf   : > { %16432 = vmatprep.subr.bf16.mxu0 %v16431_v18 }
0x1ad1   : > { %14101 = vmatmul.mubr.f32.vlgmr.msra.gmra.mrb[106].mxu0 %v18608_v13 }
0x1ad2   : > { %14103 = vmatprep.mubr.f32.mxu0 %v18616_v23  ;;  %16434 = vmatpush3.bf16.msra.mxu0 %v16431_v18  ;;  %v10065_v18 = vld [vmem:[#allocation6 + $0x7e8] sm:$0xff] }
0x1ad3   : > { %16436 = vmatprep.subr.bf16.mxu0 %v16435_v20 }
0x1ad5   : > { %14104 = vmatmul.mubr.f32.gmra.mrb[108].mxu0 %v18618_v37 }
0x1ad6   : > { %14106 = vmatprep.mubr.f32.mxu0 %v18626_v29  ;;  %16438 = vmatpush3.bf16.msra.mxu0 %v16435_v20  ;;  %v16427_v20 = vpack.c.bf16 %v10067_v52, %v10066_v19 }
0x1ad7   : > { %16440 = vmatprep.subr.bf16.mxu0 %v16439_v22 }
0x1ad9   : > { %14107 = vmatmul.mubr.f32.gmra.mrb[110].mxu0 %v18628_v0 }
0x1ada   : > { %16442 = vmatpush3.bf16.msra.mxu0 %v16439_v22  ;;  %v10371_v22 = vld [vmem:[#allocation6 + $0x880] sm:$0xff] }
0x1adb   : > { %16444 = vmatprep.subr.bf16.mxu0 %v16443_v36  ;;  %v16475_v44 = vpack.c.bf16 %v10372_v38, %v10371_v22  ;;  %v10595_v22 = vld [vmem:[#allocation15] sm:$0xff]  ;;  %v10596_v38 = vld [vmem:[#allocation15 + $0x8] sm:$0xff] }
0x1ade   : > { %16446 = vmatpush3.bf16.msra.mxu0 %v16443_v36 }
0x1adf   : > { %16448 = vmatprep.subr.bf16.mxu0 %v16447_v45 }
0x1ae2   : > { %16450 = vmatpush3.bf16.msra.mxu0 %v16447_v45 }
0x1ae3   : > { %16452 = vmatprep.subr.bf16.mxu0 %v16451_v2 }
0x1ae6   : > { %16454 = vmatpush3.bf16.msra.mxu0 %v16451_v2  ;;  %v16479_v2 = vpack.c.bf16 %v10374_v41, %v10373_v28  ;;  %v16519_v41 = vpack.c.bf16 %v10596_v38, %v10595_v22 }
0x1ae7   : > { %16456 = vmatprep.subr.bf16.mxu0 %v16455_v49 }
0x1aea   : > { %16458 = vmatpush3.bf16.msra.mxu0 %v16455_v49  ;;  %v10376_v49 = vld [vmem:[#allocation6 + $0x8a8] sm:$0xff] }
0x1b84   : > { %v13999_v11 = vpop.f32.mrb[100].mxu0 }
0x1b85   : > { %v9596_v15 = vpop.f32.mrb[101].mxu0 }
0x1b86   : > { %v16343_v54 = vpack.c.bf16 %v13999_v11, %v9596_v15 }
0x1b88   : > { %v14002_v55 = vpop.f32.mrb[102].mxu0  ;;  %16344 = vmatprep.subr.bf16.mxu1 %v16343_v54 }
0x1b89   : > { %v9606_v25 = vpop.f32.mrb[103].mxu0  ;;  %16346 = vmatpush3.bf16.msra.mxu1 %v16343_v54 }
0x1b8a   : > { %v16347_v57 = vpack.c.bf16 %v14002_v55, %v9606_v25  ;;  %v16483_v55 = vpack.c.bf16 %v10376_v49, %v10375_v16  ;;  %v16896_v16 = vld [vmem:[#allocation16 + $0x98] sm:$0xff]  ;;  %v16897_v49 = vld [vmem:[#allocation16 + $0xa0] sm:$0xff] }
0x1b8c   : > { %v14005_v35 = vpop.f32.mrb[104].mxu0  ;;  %16348 = vmatprep.subr.bf16.mxu1 %v16347_v57 }
0x1b8d   : > { %v9616_v42 = vpop.f32.mrb[105].mxu0  ;;  %16350 = vmatpush3.bf16.msra.mxu1 %v16347_v57  ;;  %v10377_v57 = vld [vmem:[#allocation6 + $0x8b0] sm:$0xff] }
0x1b8e   : > { %v16351_v39 = vpack.c.bf16 %v14005_v35, %v9616_v42  ;;  %v10378_v35 = vld [vmem:[#allocation6 + $0x8b8] sm:$0xff] }
0x1b90   : > { %16352 = vmatprep.subr.bf16.mxu1 %v16351_v39 }
0x1b91   : > { %16354 = vmatpush3.bf16.msra.mxu1 %v16351_v39 }
0x1b94   : > { %14060 = vmatmul.mubr.msk.f32.vlgmr.msra.gmra.mrb[112].mxu1 %vm922_vm1, %v18536_v24 }
0x1b95   : > { %14062 = vmatprep.mubr.msk.f32.mxu1 %vm922_vm1, %v18540_v26 }
0x1b98   : > { %14063 = vmatmul.mubr.msk.f32.gmra.mrb[114].mxu1 %vm922_vm1, %v18544_v59 }
0x1b99   : > { %14065 = vmatprep.mubr.msk.f32.mxu1 %vm922_vm1, %v18548_v30 }
0x1b9c   : > { %14066 = vmatmul.mubr.msk.f32.gmra.mrb[116].mxu1 %vm922_vm1, %v18552_v3  ;;  %v10054_v3 = vld [vmem:[#allocation6 + $0x790] sm:$0xff] }
0x1b9d   : > { %14121 = vmatprep.mubr.msk.f32.mxu1 %vm922_vm1, %v18556_v33  ;;  %v16403_v33 = vpack.c.bf16 %v10055_v5, %v10054_v3  ;;  %v10385_v3 = vld [vmem:[#allocation6 + $0x8f0] sm:$0xff]  ;;  %v10386_v5 = vld [vmem:[#allocation6 + $0x8f8] sm:$0xff] }
0x1ba4   : > { %v14102_v31 = vpop.f32.mrb[106].mxu0 }
0x1ba5   : > { %v9915_v53 = vpop.f32.mrb[107].mxu0 }
0x1ba6   : > { %v16387_v7 = vpack.c.bf16 %v14102_v31, %v9915_v53  ;;  %v16487_v53 = vpack.c.bf16 %v10378_v35, %v10377_v57  ;;  %v10603_v35 = vld [vmem:[#allocation15 + $0x40] sm:$0xff] }
0x1ba8   : > { %v14105_v62 = vpop.f32.mrb[108].mxu0  ;;  %16388 = vmatprep.subr.bf16.mxu1 %v16387_v7 }
0x1ba9   : > { %v9925_v24 = vpop.f32.mrb[109].mxu0  ;;  %16390 = vmatpush3.bf16.msra.mxu1 %v16387_v7  ;;  %v10379_v7 = vld [vmem:[#allocation6 + $0x8c0] sm:$0xff] }
0x1baa   : > { %v16391_v26 = vpack.c.bf16 %v14105_v62, %v9925_v24  ;;  %v10380_v62 = vld [vmem:[#allocation6 + $0x8c8] sm:$0xff] }
0x1bab   : > { %v16491_v24 = vpack.c.bf16 %v10380_v62, %v10379_v7  ;;  %v10606_v7 = vld [vmem:[#allocation15 + $0x58] sm:$0xff] }
0x1bac   : > { %v14108_v59 = vpop.f32.mrb[110].mxu0  ;;  %16392 = vmatprep.subr.bf16.mxu1 %v16391_v26 }
0x1bad   : > { %v9935_v1 = vpop.f32.mrb[111].mxu0  ;;  %16394 = vmatpush3.bf16.msra.mxu1 %v16391_v26  ;;  %v16889_v26 = vld [vmem:[#allocation16 + $0x30] sm:$0xff] }
0x1bae   : > { %v16395_v30 = vpack.c.bf16 %v14108_v59, %v9935_v1  ;;  %v16495_v59 = vpack.c.bf16 %v10382_v9, %v10381_v43  ;;  %v10383_v1 = vld [vmem:[#allocation6 + $0x8e0] sm:$0xff]  ;;  %v10609_v9 = vld [vmem:[#allocation15 + $0x70] sm:$0xff] }
0x1bb0   : > { %16396 = vmatprep.subr.bf16.mxu1 %v16395_v30 }
0x1bb1   : > { %16398 = vmatpush3.bf16.msra.mxu1 %v16395_v30  ;;  %v10384_v30 = vld [vmem:[#allocation6 + $0x8e8] sm:$0xff] }
0x1bb2   : > { %16400 = vmatprep.subr.bf16.mxu1 %v16399_v4 }
0x1bb4   : > { %14122 = vmatmul.mubr.msk.f32.vlgmr.msra.gmra.mrb[112].mxu1 %vm922_vm1, %v18560_v56  ;;  %v16415_v56 = vpack.c.bf16 %v10061_v34, %v10060_v32 }
0x1bb5   : > { %14124 = vmatprep.mubr.msk.f32.mxu1 %vm922_vm1, %v18564_v58  ;;  %16402 = vmatpush3.bf16.msra.mxu1 %v16399_v4  ;;  %v10062_v58 = vld [vmem:[#allocation6 + $0x7d0] sm:$0xff]  ;;  %v16499_v4 = vpack.c.bf16 %v10384_v30, %v10383_v1 }
0x1bb6   : > { %16404 = vmatprep.subr.bf16.mxu1 %v16403_v33  ;;  %v16419_v17 = vpack.c.bf16 %v10063_v50, %v10062_v58  ;;  %v16890_v58 = vld [vmem:[#allocation16 + $0x38] sm:$0xff]  ;;  %v16891_v50 = vld [vmem:[#allocation16 + $0x40] sm:$0xff] }
0x1bb8   : > { %14125 = vmatmul.mubr.msk.f32.gmra.mrb[114].mxu1 %vm922_vm1, %v18568_v61  ;;  %v10064_v61 = vld [vmem:[#allocation6 + $0x7e0] sm:$0xff] }
0x1bb9   : > { %14127 = vmatprep.mubr.msk.f32.mxu1 %vm922_vm1, %v18572_v40  ;;  %16406 = vmatpush3.bf16.msra.mxu1 %v16403_v33  ;;  %v16423_v40 = vpack.c.bf16 %v10065_v18, %v10064_v61  ;;  %v16503_v33 = vpack.c.bf16 %v10386_v5, %v10385_v3  ;;  %v16893_v61 = vld [vmem:[#allocation16 + $0x50] sm:$0xff]  ;;  %v16894_v18 = vld [vmem:[#allocation16 + $0x58] sm:$0xff] }
0x1bba   : > { %16408 = vmatprep.subr.bf16.mxu1 %v16407_v14 }
0x1bbc   : > { %14128 = vmatmul.mubr.msk.f32.gmra.mrb[116].mxu1 %vm922_vm1, %v18576_v63  ;;  %v10178_v63 = vld [vmem:[#allocation6 + $0x870] sm:$0xff] }
0x1bbd   : > { %16410 = vmatpush3.bf16.msra.mxu1 %v16407_v14  ;;  %v16459_v21 = vpack.c.bf16 %v10179_v51, %v10178_v63 }
0x1bbe   : > { %16412 = vmatprep.subr.bf16.mxu1 %v16411_v8 }
0x1bbf   : > { %16460 = vmatprep.subr.bf16.mxu0 %v16459_v21 }
0x1bc0   : > { %16462 = vmatpush3.bf16.msra.mxu0 %v16459_v21 }
0x1bc1   : > { %16414 = vmatpush3.bf16.msra.mxu1 %v16411_v8 }
0x1bc2   : > { %16416 = vmatprep.subr.bf16.mxu1 %v16415_v56 }
0x1bc5   : > { %16418 = vmatpush3.bf16.msra.mxu1 %v16415_v56 }
0x1bc6   : > { %16420 = vmatprep.subr.bf16.mxu1 %v16419_v17 }
0x1bc9   : > { %16422 = vmatpush3.bf16.msra.mxu1 %v16419_v17  ;;  %v16892_v17 = vld [vmem:[#allocation16 + $0x48] sm:$0xff] }
0x1bca   : > { %16424 = vmatprep.subr.bf16.mxu1 %v16423_v40 }
0x1bcd   : > { %16426 = vmatpush3.bf16.msra.mxu1 %v16423_v40  ;;  %v16895_v40 = vld [vmem:[#allocation16 + $0x90] sm:$0xff] }
0x1bce   : > { %16428 = vmatprep.subr.bf16.mxu1 %v16427_v20 }
0x1bd1   : > { %16430 = vmatpush3.bf16.msra.mxu1 %v16427_v20 }
0x1bd2   : > { %16476 = vmatprep.subr.bf16.mxu1 %v16475_v44 }
0x1c87   : > { %v14123_v36 = vpop.f32.mrb[112].mxu1 }
0x1c88   : > { %v10010_v45 = vpop.f32.mrb[113].mxu1  ;;  %v10046_v10 = vmax.f32 %v14123_v36, 0.0 }
0x1c89   : > { %v10045_v27 = vmax.f32 %v10010_v45, 0.0  ;;  %v10597_v45 = vld [vmem:[#allocation15 + $0x10] sm:$0xff] }
0x1c8b   : > { %v14126_v46 = vpop.f32.mrb[114].mxu1  ;;  %14162 = vmatprep.mubr.f32.mxu1 %v10045_v27  ;;  %14203 = vmatprep.mubr.f32.mxu0 %v10045_v27 }
0x1c8c   : > { %v10020_v11 = vpop.f32.mrb[115].mxu1  ;;  %14163 = vmatmul.mubr.f32.vlgmr.msra.gmra.mrb[118].mxu1 %v10046_v10  ;;  %14204 = vmatmul.mubr.f32.vlgmr.msra.gmra.mrb[112].mxu0 %v10046_v10  ;;  %v10048_v54 = vmax.f32 %v14126_v46, 0.0  ;;  %v10600_v46 = vld [vmem:[#allocation15 + $0x28] sm:$0xff] }
0x1c8d   : > { %v10047_v15 = vmax.f32 %v10020_v11, 0.0  ;;  %16478 = vmatpush3.bf16.msra.mxu1 %v16475_v44 }
0x1c8e   : > { %16480 = vmatprep.subr.bf16.mxu1 %v16479_v2 }
0x1c8f   : > { %v14129_v25 = vpop.f32.mrb[116].mxu1  ;;  %14165 = vmatprep.mubr.f32.mxu1 %v10047_v15  ;;  %14206 = vmatprep.mubr.f32.mxu0 %v10047_v15 }
0x1c90   : > { %v10030_v42 = vpop.f32.mrb[117].mxu1  ;;  %14166 = vmatmul.mubr.f32.gmra.mrb[120].mxu1 %v10048_v54  ;;  %14207 = vmatmul.mubr.f32.gmra.mrb[114].mxu0 %v10048_v54  ;;  %v10050_v31 = vmax.f32 %v14129_v25, 0.0  ;;  %v16899_v25 = vld [vmem:[#allocation16 + $0xb0] sm:$0xff] }
0x1c91   : > { %v10049_v39 = vmax.f32 %v10030_v42, 0.0  ;;  %16482 = vmatpush3.bf16.msra.mxu1 %v16479_v2  ;;  %v10599_v2 = vld [vmem:[#allocation15 + $0x20] sm:$0xff]  ;;  %v10604_v42 = vld [vmem:[#allocation15 + $0x48] sm:$0xff] }
0x1c92   : > { %16484 = vmatprep.subr.bf16.mxu1 %v16483_v55  ;;  %v16527_v11 = vpack.c.bf16 %v10600_v46, %v10599_v2 }
0x1c93   : > { %14168 = vmatprep.mubr.f32.mxu1 %v10049_v39  ;;  %14209 = vmatprep.mubr.f32.mxu0 %v10049_v39 }
0x1c94   : > { %14169 = vmatmul.mubr.f32.gmra.mrb[122].mxu1 %v10050_v31  ;;  %14210 = vmatmul.mubr.f32.gmra.mrb[116].mxu0 %v10050_v31 }
0x1c95   : > { %16486 = vmatpush3.bf16.msra.mxu1 %v16483_v55  ;;  %14265 = vmatprep.mubr.f32.mxu1 %v10045_v27  ;;  %v10598_v27 = vld [vmem:[#allocation15 + $0x18] sm:$0xff]  ;;  %v16898_v55 = vld [vmem:[#allocation16 + $0xa8] sm:$0xff] }
0x1c96   : > { %16488 = vmatprep.subr.bf16.mxu1 %v16487_v53  ;;  %14224 = vmatprep.mubr.msk.f32.mxu0 %vm922_vm1, %v16889_v26  ;;  %v10608_v26 = vld [vmem:[#allocation15 + $0x68] sm:$0xff] }
0x1c99   : > { %16490 = vmatpush3.bf16.msra.mxu1 %v16487_v53  ;;  %v10605_v53 = vld [vmem:[#allocation15 + $0x50] sm:$0xff] }
0x1c9a   : > { %16492 = vmatprep.subr.bf16.mxu1 %v16491_v24  ;;  %v16539_v62 = vpack.c.bf16 %v10606_v7, %v10605_v53 }
0x1c9d   : > { %16494 = vmatpush3.bf16.msra.mxu1 %v16491_v24  ;;  %v10607_v24 = vld [vmem:[#allocation15 + $0x60] sm:$0xff] }
0x1c9e   : > { %16496 = vmatprep.subr.bf16.mxu1 %v16495_v59  ;;  %v16543_v43 = vpack.c.bf16 %v10608_v26, %v10607_v24 }
0x1ca1   : > { %16498 = vmatpush3.bf16.msra.mxu1 %v16495_v59  ;;  %v10610_v59 = vld [vmem:[#allocation15 + $0x78] sm:$0xff] }
0x1ca2   : > { %16500 = vmatprep.subr.bf16.mxu1 %v16499_v4  ;;  %v16547_v1 = vpack.c.bf16 %v10610_v59, %v10609_v9 }
0x1ca5   : > { %16502 = vmatpush3.bf16.msra.mxu1 %v16499_v4 }
0x1ca6   : > { %16504 = vmatprep.subr.bf16.mxu1 %v16503_v33 }
0x1ca9   : > { %16506 = vmatpush3.bf16.msra.mxu1 %v16503_v33 }
0x1cac   : > { %14266 = vmatmul.mubr.f32.vlgmr.msra.gmra.mrb[124].mxu1 %v10046_v10  ;;  %v16523_v10 = vpack.c.bf16 %v10598_v27, %v10597_v45 }
0x1cad   : > { %14268 = vmatprep.mubr.f32.mxu1 %v10047_v15  ;;  %v10601_v15 = vld [vmem:[#allocation15 + $0x30] sm:$0xff] }
0x1cb0   : > { %14269 = vmatmul.mubr.f32.gmra.mrb[126].mxu1 %v10048_v54  ;;  %v10602_v54 = vld [vmem:[#allocation15 + $0x38] sm:$0xff] }
0x1cb1   : > { %14271 = vmatprep.mubr.f32.mxu1 %v10049_v39  ;;  %v16531_v57 = vpack.c.bf16 %v10602_v54, %v10601_v15  ;;  %v16900_v39 = vld [vmem:[#allocation16 + $0xb8] sm:$0xff] }
0x1cb4   : > { %14272 = vmatmul.mubr.f32.gmra.mrb[128].mxu1 %v10050_v31  ;;  %v16535_v31 = vpack.c.bf16 %v10604_v42, %v10603_v35 }
0x1d5f   : > { %v14164_v60 = vpop.f32.mrb[118].mxu1 }
0x1d60   : > { %v10134_v47 = vpop.f32.mrb[119].mxu1 }
0x1d61   : > { %v16463_v14 = vpack.c.bf16 %v14164_v60, %v10134_v47 }
0x1d63   : > { %v14167_v6 = vpop.f32.mrb[120].mxu1  ;;  %16464 = vmatprep.subr.bf16.mxu0 %v16463_v14 }
0x1d64   : > { %v10144_v12 = vpop.f32.mrb[121].mxu1  ;;  %16466 = vmatpush3.bf16.msra.mxu0 %v16463_v14 }
0x1d65   : > { %v16467_v8 = vpack.c.bf16 %v14167_v6, %v10144_v12 }
0x1d67   : > { %v14170_v32 = vpop.f32.mrb[122].mxu1  ;;  %16468 = vmatprep.subr.bf16.mxu0 %v16467_v8 }
0x1d68   : > { %v10154_v34 = vpop.f32.mrb[123].mxu1  ;;  %16470 = vmatpush3.bf16.msra.mxu0 %v16467_v8 }
0x1d69   : > { %v16471_v56 = vpack.c.bf16 %v14170_v32, %v10154_v34 }
0x1d6b   : > { %16472 = vmatprep.subr.bf16.mxu0 %v16471_v56 }
0x1d6c   : > { %16474 = vmatpush3.bf16.msra.mxu0 %v16471_v56 }
0x1d6f   : > { %14225 = vmatmul.mubr.msk.f32.vlgmr.msra.gmra.mrb[112].mxu0 %vm922_vm1, %v16890_v58 }
0x1d70   : > { %14227 = vmatprep.mubr.msk.f32.mxu0 %vm922_vm1, %v16891_v50 }
0x1d73   : > { %14228 = vmatmul.mubr.msk.f32.gmra.mrb[114].mxu0 %vm922_vm1, %v16892_v17 }
0x1d74   : > { %14230 = vmatprep.mubr.msk.f32.mxu0 %vm922_vm1, %v16893_v61 }
0x1d77   : > { %14231 = vmatmul.mubr.msk.f32.gmra.mrb[116].mxu0 %vm922_vm1, %v16894_v18 }
0x1d78   : > { %14286 = vmatprep.mubr.msk.f32.mxu0 %vm922_vm1, %v16895_v40 }
0x1d7f   : > { %v14267_v19 = vpop.f32.mrb[124].mxu1 }
0x1d80   : > { %v10453_v52 = vpop.f32.mrb[125].mxu1 }
0x1d81   : > { %v16507_v20 = vpack.c.bf16 %v14267_v19, %v10453_v52 }
0x1d83   : > { %v14270_v63 = vpop.f32.mrb[126].mxu1  ;;  %16508 = vmatprep.subr.bf16.mxu0 %v16507_v20 }
0x1d84   : > { %v10463_v51 = vpop.f32.mrb[127].mxu1  ;;  %16510 = vmatpush3.bf16.msra.mxu0 %v16507_v20 }
0x1d85   : > { %v16511_v21 = vpack.c.bf16 %v14270_v63, %v10463_v51 }
0x1d87   : > { %v14273_v44 = vpop.f32.mrb[128].mxu1  ;;  %16512 = vmatprep.subr.bf16.mxu0 %v16511_v21 }
0x1d88   : > { %v10473_v36 = vpop.f32.mrb[129].mxu1  ;;  %16514 = vmatpush3.bf16.msra.mxu0 %v16511_v21 }
0x1d89   : > { %v16515_v28 = vpack.c.bf16 %v14273_v44, %v10473_v36 }
0x1d8b   : > { %16516 = vmatprep.subr.bf16.mxu0 %v16515_v28 }
0x1d8c   : > { %16518 = vmatpush3.bf16.msra.mxu0 %v16515_v28 }
0x1d8d   : > { %16520 = vmatprep.subr.bf16.mxu0 %v16519_v41 }
0x1d8f   : > { %14287 = vmatmul.mubr.msk.f32.vlgmr.msra.gmra.mrb[112].mxu0 %vm922_vm1, %v16896_v16 }
0x1d90   : > { %14289 = vmatprep.mubr.msk.f32.mxu0 %vm922_vm1, %v16897_v49  ;;  %16522 = vmatpush3.bf16.msra.mxu0 %v16519_v41 }
0x1d91   : > { %16524 = vmatprep.subr.bf16.mxu0 %v16523_v10 }
0x1d93   : > { %14290 = vmatmul.mubr.msk.f32.gmra.mrb[114].mxu0 %vm922_vm1, %v16898_v55 }
0x1d94   : > { %14292 = vmatprep.mubr.msk.f32.mxu0 %vm922_vm1, %v16899_v25  ;;  %16526 = vmatpush3.bf16.msra.mxu0 %v16523_v10 }
0x1d95   : > { %16528 = vmatprep.subr.bf16.mxu0 %v16527_v11 }
0x1d97   : > { %14293 = vmatmul.mubr.msk.f32.gmra.mrb[116].mxu0 %vm922_vm1, %v16900_v39 }
0x1d98   : > { %16530 = vmatpush3.bf16.msra.mxu0 %v16527_v11 }
0x1d99   : > { %16532 = vmatprep.subr.bf16.mxu0 %v16531_v57 }
0x1d9c   : > { %16534 = vmatpush3.bf16.msra.mxu0 %v16531_v57 }
0x1d9d   : > { %16536 = vmatprep.subr.bf16.mxu0 %v16535_v31 }
0x1da0   : > { %16538 = vmatpush3.bf16.msra.mxu0 %v16535_v31 }
0x1da1   : > { %16540 = vmatprep.subr.bf16.mxu0 %v16539_v62 }
0x1da4   : > { %16542 = vmatpush3.bf16.msra.mxu0 %v16539_v62 }
0x1da5   : > { %16544 = vmatprep.subr.bf16.mxu0 %v16543_v43 }
0x1da8   : > { %16546 = vmatpush3.bf16.msra.mxu0 %v16543_v43 }
0x1da9   : > { %16548 = vmatprep.subr.bf16.mxu0 %v16547_v1 }
0x1dac   : > { %16550 = vmatpush3.bf16.msra.mxu0 %v16547_v1 }
0x1e62   : > { %v14288_v30 = vpop.f32.mrb[112].mxu0 }
0x1e63   : > { %v10584_v4 = vadd.f32 %v14288_v30, %v18608_v13  ;;  %v10548_v3 = vpop.f32.mrb[113].mxu0 }
0x1e64   : > { %v10583_v5 = vadd.f32 %v10548_v3, %v18606_v48 }
0x1e65   : > { %v10590_v47 = vmax.f32 %v10584_v4, 0.0 }
0x1e66   : > { %v10589_v33 = vmax.f32 %v10583_v5, 0.0  ;;  %v14291_v60 = vpop.f32.mrb[114].mxu0 }
0x1e67   : > { %v10586_v14 = vadd.f32 %v14291_v60, %v18618_v37  ;;  %v10558_v6 = vpop.f32.mrb[115].mxu0 }
0x1e68   : > { %v10585_v12 = vadd.f32 %v10558_v6, %v18616_v23  ;;  %14327 = vmatprep.mubr.f32.mxu0 %v10589_v33 }
0x1e69   : > { %14328 = vmatmul.mubr.f32.vlgmr.msra.gmra.mrb[118].mxu0 %v10590_v47  ;;  %v10592_v34 = vmax.f32 %v10586_v14, 0.0 }
0x1e6a   : > { %v10591_v8 = vmax.f32 %v10585_v12, 0.0  ;;  %v14294_v32 = vpop.f32.mrb[116].mxu0 }
0x1e6b   : > { %v10588_v13 = vadd.f32 %v14294_v32, %v18628_v0  ;;  %v10568_v56 = vpop.f32.mrb[117].mxu0 }
0x1e6c   : > { %v10587_v48 = vadd.f32 %v10568_v56, %v18626_v29  ;;  %14330 = vmatprep.mubr.f32.mxu0 %v10591_v8 }
0x1e6d   : > { %14331 = vmatmul.mubr.f32.gmra.mrb[120].mxu0 %v10592_v34  ;;  %v10594_v50 = vmax.f32 %v10588_v13, 0.0 }
0x1e6e   : > { %v10593_v58 = vmax.f32 %v10587_v48, 0.0 }
0x1e70   : > { %14333 = vmatprep.mubr.f32.mxu0 %v10593_v58 }
0x1e71   : > { %14334 = vmatmul.mubr.f32.gmra.mrb[122].mxu0 %v10594_v50 }
0x1f3c   : > { %v14329_v23 = vpop.f32.mrb[118].mxu0 }
0x1f3d   : > { %10707 = vst [vmem:[%s688_s18 + $0x8] sm:$0xff] %v14329_v23  ;;  %v10677_v37 = vpop.f32.mrb[119].mxu0 }
0x1f3e   : > { %10706 = vst [vmem:[%s688_s18] sm:$0xff] %v10677_v37 }
0x1f40   : > { %v14332_v0 = vpop.f32.mrb[120].mxu0 }
0x1f41   : > { %10709 = vst [vmem:[%s688_s18 + $0x18] sm:$0xff] %v14332_v0  ;;  %v10687_v29 = vpop.f32.mrb[121].mxu0 }
0x1f42   : > { %10708 = vst [vmem:[%s688_s18 + $0x10] sm:$0xff] %v10687_v29 }
0x1f44   : > { %v14335_v17 = vpop.f32.mrb[122].mxu0 }
0x1f45   : > { %10711 = vst [vmem:[%s688_s18 + $0x28] sm:$0xff] %v14335_v17  ;;  %v10697_v61 = vpop.f32.mrb[123].mxu0 }
0x1f46   : > { %10710 = vst [vmem:[%s688_s18 + $0x20] sm:$0xff] %v10697_v61 }
0x1f47 PF: > { %p31_p6 = scmp.ge.s32.totalorder %s17741_s28, 4   ;;  %s18770_s18 = smov %s17317_s19 }
0x1f48   : > { %s18771_s19 = smov %s17321_s20  ;;  %s18772_s20 = smov %s17753_s1 }
0x1f49   : > { %s18773_s21 = smov %s17741_s28  ;;  %33 = sbr.rel (!%p31_p6) target bundleno = 16 (0x10), region = 210 }
0x1f50   :  { %10733 = vsyncpa [#allocation3], 1 }
0x1f51   :  { %10735 = vsyncpa [#allocation3 + $0x1], 1 }
0x1f52   :  { %10736 = vsyncpa [#allocation5], 1 }
0x1f53   :  { %10737 = vsyncpa [#allocation8], 1 }
0x1f54   :  { %10738 = vsyncpa [#allocation11], 1 }
0x1f55   :  { %10739 = vsyncpa [#allocation14], 1 }
0x1f56   :  { %10740 = vsyncpa [#allocation17], 1 }
0x1f57   :  { %10741 = vsyncpa [#allocation20], 1 }

</bundles_post_ra>
